<compile_context>
chip_gen: v7x
topology: tpu7x:2x2x1
jax: 0.10.0
libtpu: 0.0.40
codegen_flags: <defaults>
</compile_context>

<pallas_src>
import functools

import jax
import jax.numpy as jnp
from jax.experimental import pallas as pl
from jax.experimental.pallas import tpu as pltpu

LATENT_DIMS = 4
L1 = 2250          # hidden width of linear1
OUT = 3272         # output width of linear3


def _round_up(x, m):
    return (x + m - 1) // m * m


# ---------------------------------------------------------------------------
# Kernel
# ---------------------------------------------------------------------------
def decoder_kernel(z_ref, w1_ref, b1_ref, w2_ref, b2_ref, o_ref):
    """One grid step computes one `tile_n`-wide column tile of the output.

    The first layer + sigmoid is recomputed each step (it is tiny and hides
    completely under the W2 tile DMA); this keeps the grid axis dependency-free
    so it can run with "parallel" semantics (v7x 2-TC sharding).
    """
    pre = jnp.dot(z_ref[...], w1_ref[...],
                  preferred_element_type=jnp.float32) + b1_ref[...]
    h = jax.nn.sigmoid(pre).astype(w2_ref.dtype)          # bf16 for the MXU

    o_ref[...] = (jnp.dot(h, w2_ref[...],
                          preferred_element_type=jnp.float32)
                  + b2_ref[...]).astype(o_ref.dtype)


# ---------------------------------------------------------------------------
# One-time parameter preparation (pad + retile + cast) — do NOT call per step.
# ---------------------------------------------------------------------------
def prepare_params(w1_t, b1, w2_t, b2, *, tile_n=1664, w2_dtype=jnp.bfloat16):
    """w1_t: (4, L1), b1: (L1,), w2_t: (L1, OUT), b2: (OUT,)  -> padded params.

    Padded hidden units produce sigmoid(0)=0.5 but hit zero W2 rows, so they
    contribute nothing; padded output columns are sliced off in the wrapper.
    """
    assert tile_n % 128 == 0, "tile_n must be a multiple of the 128-lane dim"
    L1_pad = _round_up(L1, 128)                 # 2304
    OUT_pad = _round_up(OUT, tile_n)            # 3328 for tile_n=1664
    n_tiles = OUT_pad // tile_n

    w1_p = jnp.zeros((LATENT_DIMS, L1_pad), jnp.float32).at[:, :L1].set(w1_t)
    b1_p = jnp.zeros((1, L1_pad), jnp.float32).at[:, :L1].set(b1[None, :])

    w2_p = jnp.zeros((L1_pad, OUT_pad), jnp.float32).at[:L1, :OUT].set(w2_t)
    # Contiguous per-tile layout: (n_tiles, L1_pad, tile_n), cast to bf16.
    w2_tiles = (w2_p.reshape(L1_pad, n_tiles, tile_n)
                     .transpose(1, 0, 2)
                     .astype(w2_dtype))
    b2_p = jnp.zeros((1, OUT_pad), jnp.float32).at[:, :OUT].set(b2[None, :])
    return w1_p, b1_p, w2_tiles, b2_p


# ---------------------------------------------------------------------------
# Forward
# ---------------------------------------------------------------------------
@jax.jit
def decoder_forward(z, w1_p, b1_p, w2_tiles, b2_p):
    """z: (B, 4) float32; other args from `prepare_params` (already padded)."""
    B = z.shape[0]
    B_pad = _round_up(max(B, 8), 8)
    n_tiles, L1_pad, tile_n = w2_tiles.shape
    OUT_pad = n_tiles * tile_n

    # Only the tiny activation is padded per call.
    z_p = jnp.zeros((B_pad, LATENT_DIMS), jnp.float32).at[:B].set(z)

    out_p = pl.pallas_call(
        decoder_kernel,
        out_shape=jax.ShapeDtypeStruct((B_pad, OUT_pad), jnp.float32),
        grid_spec=pltpu.PrefetchScalarGridSpec(
            num_scalar_prefetch=0,
            grid=(n_tiles,),
            in_specs=[
                pl.BlockSpec((B_pad, LATENT_DIMS), lambda j: (0, 0)),     # z
                pl.BlockSpec((LATENT_DIMS, L1_pad), lambda j: (0, 0)),    # W1^T
                pl.BlockSpec((1, L1_pad), lambda j: (0, 0)),              # b1
                pl.BlockSpec((None, L1_pad, tile_n), lambda j: (j, 0, 0)),  # W2 tile (contiguous)
                pl.BlockSpec((1, tile_n), lambda j: (0, j)),              # b2 tile
            ],
            out_specs=pl.BlockSpec((B_pad, tile_n), lambda j: (0, j)),
        ),
        compiler_params=pltpu.CompilerParams(
            dimension_semantics=("parallel",),        # no cross-step state
            vmem_limit_bytes=32 * 1024 * 1024,
        ),
    )(z_p, w1_p, b1_p, w2_tiles, b2_p)

    return out_p[:B, :OUT]


# ---------------------------------------------------------------------------
# Reference / init helpers
# ---------------------------------------------------------------------------
def init_params(key):
    """Mirrors nn.Linear's U(-1/sqrt(fan_in), 1/sqrt(fan_in)) init."""
    k1, k2, k3, k4 = jax.random.split(key, 4)
    bound1 = 1.0 / jnp.sqrt(LATENT_DIMS)
    bound2 = 1.0 / jnp.sqrt(L1)
    w1_t = jax.random.uniform(k1, (LATENT_DIMS, L1), jnp.float32, -bound1, bound1)
    b1 = jax.random.uniform(k2, (L1,), jnp.float32, -bound1, bound1)
    w2_t = jax.random.uniform(k3, (L1, OUT), jnp.float32, -bound2, bound2)
    b2 = jax.random.uniform(k4, (OUT,), jnp.float32, -bound2, bound2)
    return w1_t, b1, w2_t, b2


def decoder_reference_f32(z, w1_t, b1, w2_t, b2):
    h = jax.nn.sigmoid(z @ w1_t + b1)
    return h @ w2_t + b2


def decoder_reference_prepared(z, w1_p, b1_p, w2_tiles, b2_p):
    """Same math / same weight quantization as the kernel, in plain jnp."""
    n_tiles, L1_pad, tile_n = w2_tiles.shape
    h = jax.nn.sigmoid(z @ w1_p + b1_p).astype(w2_tiles.dtype)
    w2_full = w2_tiles.transpose(1, 0, 2).reshape(L1_pad, n_tiles * tile_n)
    y = jnp.dot(h, w2_full, preferred_element_type=jnp.float32) + b2_p
    return y[:, :OUT]


if __name__ == "__main__":
    key = jax.random.PRNGKey(0)
    kp, kz = jax.random.split(key)
    w1_t, b1, w2_t, b2 = init_params(kp)

    # One-time padding / retiling / bf16 cast of the weights.
    params = prepare_params(w1_t, b1, w2_t, b2)
    params = jax.tree_util.tree_map(jax.block_until_ready, params)

    batch = 2
    z = jax.random.normal(kz, (batch, LATENT_DIMS), jnp.float32)

    out = decoder_forward(z, *params)
    out = jax.block_until_ready(out)
    assert out.shape == (batch, OUT), out.shape

    # Tight check: same math & same (bf16) weight quantization as the kernel.
    ref_q = decoder_reference_prepared(z, *params)
    assert jnp.allclose(out, ref_q, atol=2e-3, rtol=2e-3), float(
        jnp.max(jnp.abs(out - ref_q)))

    # Loose check vs the full-f32 PyTorch-equivalent forward (bf16 W2 quant
    # noise over 2250-term dot products is ~1e-3).
    ref_f32 = decoder_reference_f32(z, w1_t, b1, w2_t, b2)
    assert jnp.allclose(out, ref_f32, atol=2e-2, rtol=2e-2), float(
        jnp.max(jnp.abs(out - ref_f32)))

    print("KERNEL_OK")
</pallas_src>

<mosaic_0001>
module attributes {stable_mosaic.version = 11 : i64} {
  func.func @decoder_kernel(%arg0: i32, %arg1: memref<8x4xf32, #tpu.memory_space<vmem>>, %arg2: memref<4x2304xf32, #tpu.memory_space<vmem>>, %arg3: memref<1x2304xf32, #tpu.memory_space<vmem>>, %arg4: memref<1x2304x1664xbf16, #tpu.memory_space<vmem>>, %arg5: memref<1x1664xf32, #tpu.memory_space<vmem>>, %arg6: memref<8x1664xf32, #tpu.memory_space<vmem>>) attributes {dimension_semantics = [#tpu.dimension_semantics<parallel>], iteration_bounds = array<i64: 2>, scalar_prefetch = 0 : i64, scratch_operands = 0 : i64, tpu.core_type = #tpu.core_type<tc>, window_params = [{pipeline_mode = #tpu.pipeline_mode<synchronous>, transform_indices = @transform_0, window_bounds = array<i64: 8, 4>}, {pipeline_mode = #tpu.pipeline_mode<synchronous>, transform_indices = @transform_1, window_bounds = array<i64: 4, 2304>}, {pipeline_mode = #tpu.pipeline_mode<synchronous>, transform_indices = @transform_2, window_bounds = array<i64: 1, 2304>}, {transform_indices = @transform_3, window_bounds = array<i64: 1, 2304, 1664>}, {transform_indices = @transform_4, window_bounds = array<i64: 1, 1664>}, {transform_indices = @transform_5, window_bounds = array<i64: 8, 1664>}]} {
    %c0 = arith.constant 0 : index
    %c0_0 = arith.constant 0 : index
    %0 = vector.load %arg1[%c0, %c0_0] : memref<8x4xf32, #tpu.memory_space<vmem>>, vector<8x4xf32>
    %c0_1 = arith.constant 0 : index
    %c0_2 = arith.constant 0 : index
    %1 = vector.load %arg2[%c0_1, %c0_2] : memref<4x2304xf32, #tpu.memory_space<vmem>>, vector<4x2304xf32>
    %cst = arith.constant dense<0.000000e+00> : vector<8x2304xf32>
    %2 = tpu.matmul %0, %1, %cst {dimension_numbers = #tpu.dot_dimension_numbers<[1], [0], [0], [1], [0, 0, 1, 1], [], []>} : vector<8x4xf32>, vector<4x2304xf32>, vector<8x2304xf32> -> vector<8x2304xf32>
    %c0_3 = arith.constant 0 : index
    %c0_4 = arith.constant 0 : index
    %3 = vector.load %arg3[%c0_3, %c0_4] : memref<1x2304xf32, #tpu.memory_space<vmem>>, vector<1x2304xf32>
    %4 = vector.broadcast %3 : vector<1x2304xf32> to vector<8x2304xf32>
    %5 = arith.addf %2, %4 : vector<8x2304xf32>
    %6 = arith.negf %5 : vector<8x2304xf32>
    %7 = math.exp %6 : vector<8x2304xf32>
    %cst_5 = arith.constant 1.000000e+00 : f32
    %8 = vector.broadcast %cst_5 : f32 to vector<8x2304xf32>
    %9 = arith.addf %8, %7 : vector<8x2304xf32>
    %10 = arith.divf %8, %9 : vector<8x2304xf32>
    %11 = arith.truncf %10 : vector<8x2304xf32> to vector<8x2304xbf16>
    %c0_6 = arith.constant 0 : index
    %c0_7 = arith.constant 0 : index
    %c0_8 = arith.constant 0 : index
    %12 = vector.load %arg4[%c0_6, %c0_7, %c0_8] : memref<1x2304x1664xbf16, #tpu.memory_space<vmem>>, vector<1x2304x1664xbf16>
    %13 = vector.shape_cast %12 : vector<1x2304x1664xbf16> to vector<2304x1664xbf16>
    %cst_9 = arith.constant dense<0.000000e+00> : vector<8x1664xf32>
    %14 = tpu.matmul %11, %13, %cst_9 {dimension_numbers = #tpu.dot_dimension_numbers<[1], [0], [0], [1], [0, 0, 1, 1], [], []>} : vector<8x2304xbf16>, vector<2304x1664xbf16>, vector<8x1664xf32> -> vector<8x1664xf32>
    %c0_10 = arith.constant 0 : index
    %c0_11 = arith.constant 0 : index
    %15 = vector.load %arg5[%c0_10, %c0_11] : memref<1x1664xf32, #tpu.memory_space<vmem>>, vector<1x1664xf32>
    %16 = vector.broadcast %15 : vector<1x1664xf32> to vector<8x1664xf32>
    %17 = arith.addf %14, %16 : vector<8x1664xf32>
    %c0_12 = arith.constant 0 : index
    %c0_13 = arith.constant 0 : index
    %18 = vector.load %arg6[%c0_12, %c0_13] : memref<8x1664xf32, #tpu.memory_space<vmem>>, vector<8x1664xf32>
    tpu.vector_store %arg6[%c0_12, %c0_13], %17 {strides = array<i32>} : memref<8x1664xf32, #tpu.memory_space<vmem>>, vector<8x1664xf32>,
    return
  }
  func.func @transform_0(%arg0: i32) -> (i32, i32) {
    %c0_i32 = arith.constant 0 : i32
    %c0_i32_0 = arith.constant 0 : i32
    %c0_i32_1 = arith.constant 0 : i32
    return %c0_i32, %c0_i32_0 : i32, i32
  }
  func.func @transform_1(%arg0: i32) -> (i32, i32) {
    %c0_i32 = arith.constant 0 : i32
    %c0_i32_0 = arith.constant 0 : i32
    %c0_i32_1 = arith.constant 0 : i32
    return %c0_i32, %c0_i32_0 : i32, i32
  }
  func.func @transform_2(%arg0: i32) -> (i32, i32) {
    %c0_i32 = arith.constant 0 : i32
    %c0_i32_0 = arith.constant 0 : i32
    %c0_i32_1 = arith.constant 0 : i32
    return %c0_i32, %c0_i32_0 : i32, i32
  }
  func.func @transform_3(%arg0: i32) -> (i32, i32, i32) {
    %c0_i32 = arith.constant 0 : i32
    %c0_i32_0 = arith.constant 0 : i32
    %c0_i32_1 = arith.constant 0 : i32
    return %arg0, %c0_i32, %c0_i32_0 : i32, i32, i32
  }
  func.func @transform_4(%arg0: i32) -> (i32, i32) {
    %c0_i32 = arith.constant 0 : i32
    %c0_i32_0 = arith.constant 0 : i32
    return %c0_i32, %arg0 : i32, i32
  }
  func.func @transform_5(%arg0: i32) -> (i32, i32) {
    %c0_i32 = arith.constant 0 : i32
    %c0_i32_0 = arith.constant 0 : i32
    return %c0_i32, %arg0 : i32, i32
  }
}

</mosaic_0001>

<bundles_post_ra>
// kernel: decoder_forward.1
= control target key start
LH: loop header
LB: loop body
LE: loop exit
PB: predicated region body
PF: predicated region fallthrough
CT: control target
= control target key end

     0   :  { %s23388_s0 = inlined_call_operand.vmem [shape: f32[8,4], index: 0, kind: input, shape index: {}]   ;;  %s23389_s1 = inlined_call_operand.hbm [shape: f32[4,2304], index: 1, kind: input, shape index: {}]   ;;  %s23390_s2 = inlined_call_operand.hbm [shape: f32[1,2304], index: 2, kind: input, shape index: {}]   ;;  %s23391_s3 = inlined_call_operand.hbm [shape: bf16[2,2304,1664], index: 3, kind: input, shape index: {}]   ;;  %s23392_s4 = inlined_call_operand.hbm [shape: f32[1,3328], index: 4, kind: input, shape index: {}]   ;;  %s23393_s5 = inlined_call_operand.vmem [shape: f32[8,3328], index: 5, kind: output, shape index: {}]  }
   0x1   :  { %23401 = sst [smem:[#allocation11_spill]] %s23389_s1 }
   0x2   :  { %10 = vsyncpa [#allocation3], 0 }
   0x3   :  { %11 = vsyncpa [#allocation5], 0  ;;  %s20942_s18 = smov 0   ;;  %s20944_s19 = smov 0  }
   0x4   :  { %s20946_s20 = smov 0   ;;  %s20948_s21 = smov 0  }
   0x5 LB: > { %s20961_s22 = sadd.s32 4294967295, %s20903_s21   ;;  %s20964_s23 = sadd.s32 1, %s20903_s21   ;;  %s20903_s21 = sphi %s20948_s21, %s23423_s21   ;;  %s20899_s20 = sphi %s20946_s20, %s23422_s20   ;;  %s20895_s19 = sphi %s20944_s19, %s23421_s19   ;;  %s20891_s18 = sphi %s20942_s18, %s23420_s18  }
   0x6   : > { %s84_s24 = ssub.s32 %s20903_s21, %s20964_s23  ;;  %s87_s25 = sadd.s32 1, %s20899_s20 }
   0x7   : > { %p85_p0 = scmp.eq.s32.totalorder %s84_s24, 0  ;;  %p94_p1 = scmp.ne.s32.totalorder %s20899_s20, %s20895_s19 }
   0x8   : > { %p95_p2 = scmp.eq.s32.totalorder %s20903_s21, 0  ;;  %p100_p3 = scmp.ne.s32.totalorder %s20895_s19, %s20891_s18 }
   0x9   : > { %s20974_s26 = scalar_select %p85_p0, %s20899_s20, %s87_s25  }
   0xa   : > { %p20976_p4 = por %p95_p2, %p94_p1  ;;  %p23394_p5 = scmp.eq.s32.totalorder %s20961_s22, 0 }
   0xb   : > { %p15520_p6 = scmp.ge.s32.totalorder %s20903_s21, 1  ;;  %p163_p7 = scmp.lt.s32.totalorder %s20903_s21, 3 }
   0xc   : > { %p20985_p8 = por %p23394_p5, %p100_p3  ;;  %s20905_s30 = smov [#allocation2]  }
   0xd   : > { %p20989_p9 = pnand %p15520_p6, %p163_p7  ;;  %s179_s6 = sshll.u32 %s20905_s30, 4  ;;  %s180_s6 = int_to_ptr.vmem [resolvable:$true] %s179_s6 }
   0xe   : > { %s23403_s28 = scalar_select %p20985_p8, 1, 0 }
   0xf   : > { %s23404_s29 = scalar_select %p20989_p9, 1, 0 }
  0x10   : > { %p17869_p10 = pneg %p20989_p9  ;;  %p17885_p11 = scmp.lt.s32.totalorder %s20903_s21, 2 }
  0x11   : > { %s201_s7 = sand.u32 1, %s20903_s21   ;;  %s203_s10 = sand.u32 1, %s20899_s20  }
  0x12   : > { %p20999_p12 = pnand %p17869_p10, %p23394_p5  ;;  %p21005_p13 = pnand %p17885_p11, %p20976_p4 }
  0x13   : > { %s17852_s11 = smul.u32 14976, %s203_s10  ;;  %s23407_s1 = sld [smem:[#allocation11_spill]] }
  0x14   : > { %s23406_s9 = scalar_select %p21005_p13, 1, 0 }
  0x15   : > { %p23398_p1 = pneg %p20999_p12 }
  0x19   : > { %s20745_s14 = scalar_lea.hbm %s23407_s1, 1152 }
  0x1a   : > { %p20746_p0 = scmp.ne.s32.totalorder %s23407_s1, %s20745_s14  ;;  %p20752_p4 = scmp.lt.u32.totalorder %s20745_s14, %s23407_s1 }
  0x1c   : > { %p20748_p2 = pnand %p23398_p1, %p20746_p0 }
  0x1e   : > { %p20749_p3 = pneg %p20748_p2 }
  0x20   : > { %p20754_p6 = pnand %p20752_p4, %p20749_p3 }
  0x22   : > { %20757 = shalt.err (!%p20754_p6)
}
  0x23   : > { %s20758_s24 = scalar_lea.vmem %s180_s6, 1152  ;;  %p20766_p5 = scmp.lt.s32.totalorder %s180_s6, %s180_s6 }
  0x24   : > { %p20759_p7 = scmp.ne.s32.totalorder %s180_s6, %s20758_s24  ;;  %p20767_p8 = scmp.lt.s32.totalorder %s20758_s24, %s20758_s24 }
  0x26   : > { %p20761_p10 = pnand %p20759_p7, %p23398_p1  ;;  %p20768_p9 = por %p20767_p8, %p20766_p5 }
  0x28   : > { %p20762_p11 = pneg %p20761_p10 }
  0x2a   : > { %p20769_p13 = pnand %p20768_p9, %p20762_p11 }
  0x2c   : > { %20772 = shalt.err (!%p20769_p13)
}
  0x2d   : > { %17872 = dma.hbm_to_vmem [thread:$0]  (!%p20999_p12), %s23407_s1, 1152, %s180_s6, [#allocation3]  }
  0x2e   : > { %s17853_s30 = smul.u32 239616, %s20903_s21  ;;  %s205_s12 = scalar_lea.vmem [#allocation6], %s17852_s11 }
  0x2f   : > { %s212_s13 = sshll.u32 %s205_s12, 4  ;;  %s21042_s17 = scalar_lea.sflag [#allocation3], %s201_s7  ;;  %s21035_s13 = int_to_ptr.vmem [resolvable:$true] %s212_s13 }
  0x30   : > { %s21040_s16 = scalar_lea.hbm %s23391_s3, %s17853_s30  ;;  %p23408_p8 = scmp.ne.s32.totalorder %s23406_s9, 0 }
  0x31   : > { %s20773_s18 = scalar_lea.hbm %s21040_s16, 239616  ;;  %s20778_s24 = scalar_lea.hbm %s23391_s3, 479232 }
  0x32   : > { %p20774_p5 = scmp.ne.s32.totalorder %s21040_s16, %s20773_s18  ;;  %p23399_p9 = pneg %p23408_p8 }
  0x33   : > { %p20779_p2 = scmp.lt.u32.totalorder %s21040_s16, %s23391_s3  ;;  %p20780_p3 = scmp.lt.u32.totalorder %s20778_s24, %s20773_s18 }
  0x34   : > { %p20776_p13 = pnand %p23399_p9, %p20774_p5  ;;  %p20782_p6 = scmp.lt.u32.totalorder %s20773_s18, %s21040_s16 }
  0x35   : > { %p20781_p4 = por %p20780_p3, %p20779_p2 }
  0x36   : > { %p20777_p0 = pneg %p20776_p13 }
  0x37   : > { %p20783_p7 = por %p20782_p6, %p20781_p4 }
  0x39   : > { %p20784_p10 = pnand %p20783_p7, %p20777_p0 }
  0x3b   : > { %20787 = shalt.err (!%p20784_p10)
}
  0x3c   : > { %s20788_s7 = scalar_lea.vmem %s21035_s13, 239616  ;;  %s20906_s30 = smov [#allocation6]  }
  0x3d   : > { %p20789_p11 = scmp.ne.s32.totalorder %s21035_s13, %s20788_s7  ;;  %s20793_s12 = sshll.u32 %s20906_s30, 4  ;;  %s20794_s12 = int_to_ptr.vmem [resolvable:$false] %s20793_s12 }
  0x3e   : > { %s20795_s14 = scalar_lea.vmem %s20794_s12, 479232  ;;  %p20796_p1 = scmp.lt.s32.totalorder %s21035_s13, %s20794_s12 }
  0x3f   : > { %p20791_p5 = pnand %p20789_p11, %p23399_p9  ;;  %p20797_p2 = scmp.lt.s32.totalorder %s20795_s14, %s20788_s7 }
  0x41   : > { %p20792_p13 = pneg %p20791_p5  ;;  %p20798_p3 = por %p20797_p2, %p20796_p1 }
  0x43   : > { %p20799_p4 = pnand %p20798_p3, %p20792_p13 }
  0x45   : > { %20802 = shalt.err (!%p20799_p4)
}
  0x46   : > { %s20907_s15 = smov 832   ;;  %s20908_s18 = smov 52  }
  0x47   : > { %17879 = dma.hbm_to_vmem [thread:$0]  (!%p23408_p8), %s21040_s16, 239616, %s21035_s13, %s21042_s17, %s20907_s15, %s20907_s15, %s20908_s18  }
  0x48   : > { %s17854_s6 = smul.u32 13, %s203_s10  ;;  %s20909_s11 = smov [#allocation4]  }
  0x49   : > { %s190_s24 = sshll.u32 %s20909_s11, 4  ;;  %s17449_s25 = smul.u32 208, %s20903_s21  ;;  %s191_s24 = int_to_ptr.vmem [resolvable:$true] %s190_s24 }
  0x4a   : > { %s20803_s30 = scalar_lea.hbm %s23390_s2, 288  ;;  %p23409_p0 = pneg %p20999_p12 }
  0x4b   : > { %p20804_p1 = scmp.ne.s32.totalorder %s23390_s2, %s20803_s30  ;;  %p20810_p10 = scmp.lt.u32.totalorder %s20803_s30, %s23390_s2 }
  0x4d   : > { %p20806_p6 = pnand %p20804_p1, %p23409_p0 }
  0x4f   : > { %p20807_p7 = pneg %p20806_p6 }
  0x51   : > { %p20812_p11 = pnand %p20810_p10, %p20807_p7 }
  0x53   : > { %20815 = shalt.err (!%p20812_p11)
}
  0x54   : > { %s20816_s21 = scalar_lea.vmem %s191_s24, 288  ;;  %p23410_p13 = pmov %p23409_p0 }
  0x55   : > { %p20817_p5 = scmp.ne.s32.totalorder %s191_s24, %s20816_s21  ;;  %p20824_p4 = scmp.lt.s32.totalorder %s191_s24, %s191_s24 }
  0x56   : > { %p20825_p9 = scmp.lt.s32.totalorder %s20816_s21, %s20816_s21 }
  0x57   : > { %p20819_p2 = pnand %p20817_p5, %p23410_p13 }
  0x58   : > { %p20826_p8 = por %p20825_p9, %p20824_p4 }
  0x59   : > { %p20820_p3 = pneg %p20819_p2 }
  0x5b   : > { %p20827_p0 = pnand %p20826_p8, %p20820_p3 }
  0x5d   : > { %20830 = shalt.err (!%p20827_p0)
}
  0x5e   : > { %17875 = dma.hbm_to_vmem [thread:$0]  (!%p20999_p12), %s23390_s2, 288, %s191_s24, [#allocation5]  }
  0x5f   : > { %s21096_s18 = scalar_lea.hbm %s23392_s4, %s17449_s25  ;;  %s226_s11 = scalar_lea.vmem [#allocation7], %s17854_s6 }
  0x60   : > { %s234_s27 = sshll.u32 %s226_s11, 4  ;;  %s20831_s7 = scalar_lea.hbm %s21096_s18, 208  ;;  %s235_s27 = int_to_ptr.vmem [resolvable:$true] %s234_s27 }
  0x61   : > { %p20832_p8 = scmp.ne.s32.totalorder %s21096_s18, %s20831_s7  ;;  %p23411_p9 = scmp.ne.s32.totalorder %s23406_s9, 0 }
  0x62   : > { %s20836_s30 = scalar_lea.hbm %s23392_s4, 416  ;;  %p20837_p12 = scmp.lt.u32.totalorder %s21096_s18, %s23392_s4 }
  0x63   : > { %p23412_p1 = pneg %p23411_p9  ;;  %p20838_p10 = scmp.lt.u32.totalorder %s20836_s30, %s20831_s7 }
  0x64   : > { %p20840_p5 = scmp.lt.u32.totalorder %s20831_s7, %s21096_s18 }
  0x65   : > { %p20834_p6 = pnand %p20832_p8, %p23412_p1  ;;  %p20839_p11 = por %p20838_p10, %p20837_p12 }
  0x67   : > { %p20835_p7 = pneg %p20834_p6  ;;  %p20841_p13 = por %p20840_p5, %p20839_p11 }
  0x69   : > { %p20842_p2 = pnand %p20841_p13, %p20835_p7 }
  0x6b   : > { %20845 = shalt.err (!%p20842_p2)
}
  0x6c   : > { %s20846_s6 = scalar_lea.vmem %s235_s27, 208  ;;  %p23413_p4 = pmov %p23412_p1 }
  0x6d   : > { %p20847_p3 = scmp.ne.s32.totalorder %s235_s27, %s20846_s6  ;;  %s20910_s14 = smov [#allocation7]  }
  0x6e   : > { %s20851_s13 = sshll.u32 %s20910_s14, 4  ;;  %s20852_s13 = int_to_ptr.vmem [resolvable:$false] %s20851_s13 }
  0x6f   : > { %p20849_p0 = pnand %p20847_p3, %p23413_p4  ;;  %s20853_s21 = scalar_lea.vmem %s20852_s13, 416 }
  0x70   : > { %p20854_p1 = scmp.lt.s32.totalorder %s235_s27, %s20852_s13  ;;  %p20855_p6 = scmp.lt.s32.totalorder %s20853_s21, %s20846_s6 }
  0x71   : > { %p20850_p8 = pneg %p20849_p0 }
  0x72   : > { %p20856_p10 = por %p20855_p6, %p20854_p1 }
  0x74   : > { %p20857_p12 = pnand %p20856_p10, %p20850_p8 }
  0x76   : > { %20860 = shalt.err (!%p20857_p12)
}
  0x77   : > { %17882 = dma.hbm_to_vmem [thread:$0]  (!%p23411_p9), %s21096_s18, 208, %s235_s27, %s21042_s17  }
  0x78   : > { %p23414_p7 = scmp.ne.s32.totalorder %s23404_s29, 0 }
  0x79   : > { %p23415_p11 = scmp.eq.s32.totalorder (!%p23414_p7), %s20961_s22, 0 }
  0x7a   : > { %243 = sbr.rel (%p23414_p7) target bundleno = 2430 (0x97e), region = 40 }
  0x81   : > { %20878 = dma.done.wait (%p23415_p11), [#allocation3], 1152   ;;  %p23416_p5 = pmov %p23415_p11 }
  0x83   : > { %20880 = vsyncadd (%p23416_p5), [#allocation3], 4294966144  ;;  %p23417_p13 = pmov %p23416_p5 }
  0x84   : > { %p23418_p2 = pmov %p23416_p5 }
  0x85   : > { %20882 = dma.done.wait (%p23417_p13), [#allocation5], 288  }
  0x86   : > { %20884 = vsyncadd (%p23418_p2), [#allocation5], 4294967008  ;;  %s253_s9 = sand.u32 1, %s20961_s22   ;;  %s255_s17 = sand.u32 1, %s20895_s19  }
  0x87   : > { %s17855_s29 = smul.u32 14976, %s255_s17  ;;  %s254_s10 = scalar_lea.sflag [#allocation3], %s253_s9 }
  0x88   : > { %p23419_p9 = scmp.ne.s32.totalorder %s23403_s28, 0 }
  0x89   : > { %s21132_s16 = scalar_lea.vmem [#allocation6], %s17855_s29 }
  0x8a   : > { %20886 = dma.done.wait (%p23419_p9), %s254_s10, 239824  }
  0x8b   : > { %20888 = vsyncadd (%p23419_p9), %s254_s10, 4294727472  ;;  %v20911_v0 = vmov 0.0   ;;  %v307_v1 = vld [vmem:[#allocation2] sm:$0xff]  ;;  %vm434_vm0 = vcmask 1043456   ;;  %v308_v2 = vld [vmem:[#allocation2 + $0x8] sm:$0xff]  ;;  %vm430_vm1 = vcmask 31744  }
  0x8c   : > { %535 = vmatprep.mubr.f32.mxu0 %v20911_v0  ;;  %1032 = vmatprep.mubr.f32.mxu1 %v20911_v0  ;;  %v421_v3 = vcombine.high %v307_v1, %v307_v1  ;;  %v422_v4 = vcombine.high %v308_v2, %v308_v2  ;;  %v309_v5 = vld [vmem:[#allocation2 + $0x10] sm:$0xff]  ;;  %v21143_v6 = vld [vmem:[%s23388_s0] sm:$0xff]  ;;  %v314_v7 = vld [vmem:[#allocation2 + $0x38] sm:$0xff]  ;;  %s17856_s28 = smul.u32 13, %s255_s17 }
  0x8d   : > { %v423_v8 = vcombine.high %v309_v5, %v309_v5  ;;  %v428_v9 = vcombine.high %v314_v7, %v314_v7  ;;  %v310_v10 = vld [vmem:[#allocation2 + $0x18] sm:$0xff]  ;;  %v311_v13 = vld [vmem:[#allocation2 + $0x20] sm:$0xff]  ;;  %v312_v17 = vld [vmem:[#allocation2 + $0x28] sm:$0xff]  ;;  %s299_s18 = smul.u32 13, %s20961_s22 }
  0x8e   : > { %15530 = vmatprep.subr.msk.mxu0 %vm434_vm0, %v421_v3  ;;  %v424_v11 = vcombine.high %v310_v10, %v310_v10  ;;  %v17936_v12 = vld [vmem:[%s21132_s16 + $0x4] ss:$52 sps:$4 sm:$0xff]   ;;  %v17934_v14 = vld [vmem:[%s21132_s16] ss:$52 sps:$4 sm:$0xff]   ;;  %v425_v16 = vcombine.high %v311_v13, %v311_v13  ;;  %v17940_v18 = vld [vmem:[%s21132_s16 + $0x68] ss:$52 sps:$4 sm:$0xff]   ;;  %v426_v20 = vcombine.high %v312_v17, %v312_v17 }
  0x8f   : > { %15531 = vmatpush1.msk.msra.mxu0 %vm434_vm0, %v307_v1  ;;  %15551 = vmatprep.subr.msk.mxu1 %vm434_vm0, %v428_v9  ;;  %v17942_v15 = vld [vmem:[%s21132_s16 + $0x6c] ss:$52 sps:$4 sm:$0xff]   ;;  %v17948_v19 = vld [vmem:[%s21132_s16 + $0xd4] ss:$52 sps:$4 sm:$0xff]   ;;  %v17946_v22 = vld [vmem:[%s21132_s16 + $0xd0] ss:$52 sps:$4 sm:$0xff]  }
  0x90   : > { %15532 = vmatmul.mubr.msk.f32.vlgmr.msra.gmra.mrb[0].mxu0 %vm430_vm1, %v21143_v6  ;;  %15533 = vmatprep.subr.msk.mxu0 %vm434_vm0, %v422_v4  ;;  %v313_v21 = vld [vmem:[#allocation2 + $0x30] sm:$0xff]  ;;  %v315_v25 = vld [vmem:[#allocation2 + $0x40] sm:$0xff]  ;;  %p300_p3 = scmp.lt.s32.totalorder %s299_s18, 25  ;;  %s22178_s22 = scalar_lea.vmem [#allocation7], %s17856_s28 }
  0x91   : > { %15534 = vmatpush1.msk.msra.mxu0 %vm434_vm0, %v308_v2  ;;  %606 = vmatprep.mubr.f32.mxu0 %v20911_v0  ;;  %v17954_v23 = vld [vmem:[%s21132_s16 + $0x13c] ss:$52 sps:$4 sm:$0xff]   ;;  %v427_v24 = vcombine.high %v313_v21, %v313_v21  ;;  %v17952_v26 = vld [vmem:[%s21132_s16 + $0x138] ss:$52 sps:$4 sm:$0xff]   ;;  %v429_v28 = vcombine.high %v315_v25, %v315_v25  ;;  %v17958_v29 = vld [vmem:[%s21132_s16 + $0x1a0] ss:$52 sps:$4 sm:$0xff]  }
  0x92   : > { %15536 = vmatprep.subr.msk.mxu0 %vm434_vm0, %v423_v8  ;;  %15552 = vmatpush1.msk.msra.mxu1 %vm434_vm0, %v314_v7  ;;  %v17960_v27 = vld [vmem:[%s21132_s16 + $0x1a4] ss:$52 sps:$4 sm:$0xff]   ;;  %v17966_v30 = vld [vmem:[%s21132_s16 + $0x20c] ss:$52 sps:$4 sm:$0xff]   ;;  %v17964_v32 = vld [vmem:[%s21132_s16 + $0x208] ss:$52 sps:$4 sm:$0xff]  }
  0x93   : > { %15553 = vmatmul.mubr.msk.f32.vlgmr.msra.gmra.mrb[0].mxu1 %vm430_vm1, %v21143_v6  ;;  %12825 = vmatprep.subr.bf16.mxu1 %v17936_v12  ;;  %v17939_v31 = vld [vmem:[%s21132_s16 + $0xc] ss:$52 sps:$4 sm:$0xff]   ;;  %v17972_v33 = vld [vmem:[%s21132_s16 + $0x274] ss:$52 sps:$4 sm:$0xff]   ;;  %v17970_v36 = vld [vmem:[%s21132_s16 + $0x270] ss:$52 sps:$4 sm:$0xff]  }
  0x94   : > { %15535 = vmatmul.mubr.msk.f32.vlgmr.msra.gmra.mrb[2].mxu0 %vm430_vm1, %v21143_v6  ;;  %12826 = vmatpush1.bf16.msra.mxu1 %v17934_v14  ;;  %v17937_v34 = vld [vmem:[%s21132_s16 + $0x8] ss:$52 sps:$4 sm:$0xff]   ;;  %v17943_v38 = vld [vmem:[%s21132_s16 + $0x70] ss:$52 sps:$4 sm:$0xff]   ;;  %v17976_v40 = vld [vmem:[%s21132_s16 + $0x2d8] ss:$52 sps:$4 sm:$0xff]  }
  0x95   : > { %15537 = vmatpush1.msk.msra.mxu0 %vm434_vm0, %v309_v5  ;;  %677 = vmatprep.mubr.f32.mxu0 %v20911_v0  ;;  %v17945_v35 = vld [vmem:[%s21132_s16 + $0x74] ss:$52 sps:$4 sm:$0xff]   ;;  %v17978_v37 = vld [vmem:[%s21132_s16 + $0x2dc] ss:$52 sps:$4 sm:$0xff]   ;;  %v17949_v41 = vld [vmem:[%s21132_s16 + $0xd8] ss:$52 sps:$4 sm:$0xff]  }
  0x96   : > { %15539 = vmatprep.subr.msk.mxu0 %vm434_vm0, %v424_v11  ;;  %12827 = vmatprep.subr.bf16.mxu1 %v17942_v15  ;;  %v17951_v39 = vld [vmem:[%s21132_s16 + $0xdc] ss:$52 sps:$4 sm:$0xff]   ;;  %v17957_v42 = vld [vmem:[%s21132_s16 + $0x144] ss:$52 sps:$4 sm:$0xff]   ;;  %v17955_v43 = vld [vmem:[%s21132_s16 + $0x140] ss:$52 sps:$4 sm:$0xff]  }
  0x97   : > { %v17963_v44 = vld [vmem:[%s21132_s16 + $0x1ac] ss:$52 sps:$4 sm:$0xff]   ;;  %v17961_v45 = vld [vmem:[%s21132_s16 + $0x1a8] ss:$52 sps:$4 sm:$0xff]   ;;  %v17967_v47 = vld [vmem:[%s21132_s16 + $0x210] ss:$52 sps:$4 sm:$0xff]  }
  0x98   : > { %15538 = vmatmul.mubr.msk.f32.vlgmr.msra.gmra.mrb[4].mxu0 %vm430_vm1, %v21143_v6  ;;  %12828 = vmatpush1.bf16.msra.mxu1 %v17940_v18  ;;  %v17969_v46 = vld [vmem:[%s21132_s16 + $0x214] ss:$52 sps:$4 sm:$0xff]   ;;  %v17975_v48 = vld [vmem:[%s21132_s16 + $0x27c] ss:$52 sps:$4 sm:$0xff]   ;;  %v17973_v49 = vld [vmem:[%s21132_s16 + $0x278] ss:$52 sps:$4 sm:$0xff]  }
  0x99   : > { %15540 = vmatpush1.msk.msra.mxu0 %vm434_vm0, %v310_v10  ;;  %748 = vmatprep.mubr.f32.mxu0 %v20911_v0  ;;  %v17981_v50 = vld [vmem:[%s21132_s16 + $0x2e4] ss:$52 sps:$4 sm:$0xff]   ;;  %v17979_v51 = vld [vmem:[%s21132_s16 + $0x2e0] ss:$52 sps:$4 sm:$0xff]   ;;  %v17985_v55 = vld [vmem:[%s21132_s16 + $0x348] ss:$52 sps:$4 sm:$0xff]  }
  0x9a   : > { %15542 = vmatprep.subr.msk.mxu0 %vm434_vm0, %v425_v16  ;;  %12829 = vmatprep.subr.bf16.mxu1 %v17948_v19  ;;  %v17984_v52 = vld [vmem:[%s21132_s16 + $0x344] ss:$52 sps:$4 sm:$0xff]   ;;  %v17987_v53 = vld [vmem:[%s21132_s16 + $0x34c] ss:$52 sps:$4 sm:$0xff]   ;;  %v17993_v57 = vld [vmem:[%s21132_s16 + $0x3b4] ss:$52 sps:$4 sm:$0xff]  }
  0x9b   : > { %v17982_v54 = vld [vmem:[%s21132_s16 + $0x340] ss:$52 sps:$4 sm:$0xff]   ;;  %v17988_v58 = vld [vmem:[%s21132_s16 + $0x3a8] ss:$52 sps:$4 sm:$0xff]   ;;  %v17991_v59 = vld [vmem:[%s21132_s16 + $0x3b0] ss:$52 sps:$4 sm:$0xff]  }
  0x9c   : > { %15541 = vmatmul.mubr.msk.f32.vlgmr.msra.gmra.mrb[6].mxu0 %vm430_vm1, %v21143_v6  ;;  %12830 = vmatpush1.bf16.msra.mxu1 %v17946_v22  ;;  %v17990_v56 = vld [vmem:[%s21132_s16 + $0x3ac] ss:$52 sps:$4 sm:$0xff]   ;;  %v17996_v60 = vld [vmem:[%s21132_s16 + $0x414] ss:$52 sps:$4 sm:$0xff]   ;;  %v17999_v61 = vld [vmem:[%s21132_s16 + $0x41c] ss:$52 sps:$4 sm:$0xff]   ;;  %v322_v22 = vlaneseq }
  0x9d   : > { %15543 = vmatpush1.msk.msra.mxu0 %vm434_vm0, %v311_v13  ;;  %819 = vmatprep.mubr.f32.mxu0 %v20911_v0  ;;  %v17994_v62 = vld [vmem:[%s21132_s16 + $0x410] ss:$52 sps:$4 sm:$0xff]   ;;  %v17997_v63 = vld [vmem:[%s21132_s16 + $0x418] ss:$52 sps:$4 sm:$0xff]   ;;  %v18003_v3 = vld [vmem:[%s21132_s16 + $0x480] ss:$52 sps:$4 sm:$0xff]  }
  0x9e   : > { %15545 = vmatprep.subr.msk.mxu0 %vm434_vm0, %v426_v20  ;;  %12831 = vmatprep.subr.bf16.mxu1 %v17954_v23  ;;  %v18005_v1 = vld [vmem:[%s21132_s16 + $0x484] ss:$52 sps:$4 sm:$0xff]   ;;  %v18011_v5 = vld [vmem:[%s21132_s16 + $0x4ec] ss:$52 sps:$4 sm:$0xff]   ;;  %v18009_v7 = vld [vmem:[%s21132_s16 + $0x4e8] ss:$52 sps:$4 sm:$0xff]  }
  0x9f   : > { %v18000_v2 = vld [vmem:[%s21132_s16 + $0x478] ss:$52 sps:$4 sm:$0xff]   ;;  %v18017_v9 = vld [vmem:[%s21132_s16 + $0x554] ss:$52 sps:$4 sm:$0xff]   ;;  %v18015_v11 = vld [vmem:[%s21132_s16 + $0x550] ss:$52 sps:$4 sm:$0xff]  }
  0xa0   : > { %15544 = vmatmul.mubr.msk.f32.vlgmr.msra.gmra.mrb[8].mxu0 %vm430_vm1, %v21143_v6  ;;  %12832 = vmatpush1.bf16.msra.mxu1 %v17952_v26  ;;  %v18008_v4 = vld [vmem:[%s21132_s16 + $0x4e4] ss:$52 sps:$4 sm:$0xff]   ;;  %v18014_v8 = vld [vmem:[%s21132_s16 + $0x54c] ss:$52 sps:$4 sm:$0xff]   ;;  %v18012_v10 = vld [vmem:[%s21132_s16 + $0x548] ss:$52 sps:$4 sm:$0xff]  }
  0xa1   : > { %15546 = vmatpush1.msk.msra.mxu0 %vm434_vm0, %v312_v17  ;;  %890 = vmatprep.mubr.f32.mxu0 %v20911_v0  ;;  %v18020_v12 = vld [vmem:[%s21132_s16 + $0x5b4] ss:$52 sps:$4 sm:$0xff]   ;;  %v18023_v13 = vld [vmem:[%s21132_s16 + $0x5bc] ss:$52 sps:$4 sm:$0xff]   ;;  %v18021_v15 = vld [vmem:[%s21132_s16 + $0x5b8] ss:$52 sps:$4 sm:$0xff]  }
  0xa2   : > { %15548 = vmatprep.subr.msk.mxu0 %vm434_vm0, %v427_v24  ;;  %12833 = vmatprep.subr.bf16.mxu1 %v17960_v27  ;;  %v18018_v14 = vld [vmem:[%s21132_s16 + $0x5b0] ss:$52 sps:$4 sm:$0xff]   ;;  %v18024_v18 = vld [vmem:[%s21132_s16 + $0x618] ss:$52 sps:$4 sm:$0xff]   ;;  %v18027_v19 = vld [vmem:[%s21132_s16 + $0x620] ss:$52 sps:$4 sm:$0xff]  }
  0xa3   : > { %v18026_v16 = vld [vmem:[%s21132_s16 + $0x61c] ss:$52 sps:$4 sm:$0xff]   ;;  %v18029_v17 = vld [vmem:[%s21132_s16 + $0x624] ss:$52 sps:$4 sm:$0xff]   ;;  %v21254_v23 = vshrl.u32 %v322_v22, 7  ;;  %s23425_s18 = smov (!%p300_p3, %s299_s18), 25 }
  0xa4   : > { %15547 = vmatmul.mubr.msk.f32.vlgmr.msra.gmra.mrb[10].mxu0 %vm430_vm1, %v21143_v6  ;;  %12834 = vmatpush1.bf16.msra.mxu1 %v17958_v29  ;;  %v18032_v20 = vld [vmem:[%s21132_s16 + $0x684] ss:$52 sps:$4 sm:$0xff]   ;;  %s15529_s11 = sshll.u32 %s23425_s18, 3 }
  0xa5   : > { %15549 = vmatpush1.msk.msra.mxu0 %vm434_vm0, %v313_v21  ;;  %961 = vmatprep.mubr.f32.mxu0 %v20911_v0  ;;  %v18035_v21 = vld [vmem:[%s21132_s16 + $0x68c] ss:$52 sps:$4 sm:$0xff]   ;;  %v21257_v24 = vsub.s32 0, %v21254_v23  ;;  %v21262_v26 = vsub.s32 1, %v21254_v23  ;;  %v21269_v29 = vsub.s32 3, %v21254_v23  ;;  %s22194_s8 = scalar_lea.vmem %s23393_s5, %s15529_s11 }
  0xa6   : > { %15554 = vmatprep.subr.msk.mxu0 %vm434_vm0, %v429_v28  ;;  %12835 = vmatprep.subr.bf16.mxu1 %v17966_v30 }
  0xa8   : > { %15550 = vmatmul.mubr.msk.f32.vlgmr.msra.gmra.mrb[12].mxu0 %vm430_vm1, %v21143_v6  ;;  %12836 = vmatpush1.bf16.msra.mxu1 %v17964_v32 }
  0xa9   : > { %15555 = vmatpush1.msk.msra.mxu0 %vm434_vm0, %v315_v25  ;;  %1103 = vmatprep.mubr.f32.mxu0 %v20911_v0  ;;  %v18002_v0 = vld [vmem:[%s21132_s16 + $0x47c] ss:$52 sps:$4 sm:$0xff]  }
  0xaa   : > { %13194 = vmatprep.subr.bf16.mxu0 %v17939_v31  ;;  %12837 = vmatprep.subr.bf16.mxu1 %v17972_v33  ;;  %v21259_v25 = vld [vmem:[#allocation4] sm:$0xff] }
  0xab   : > { %v325_v27 = vrot.slane %v21259_v25, %v21257_v24  ;;  %v329_v28 = vrot.slane %v21259_v25, %v21262_v26 }
  0xac   : > { %15556 = vmatmul.mubr.msk.f32.vlgmr.msra.gmra.mrb[14].mxu0 %vm430_vm1, %v21143_v6  ;;  %12838 = vmatpush1.bf16.msra.mxu1 %v17970_v36  ;;  %v18006_v6 = vld [vmem:[%s21132_s16 + $0x4e0] ss:$52 sps:$4 sm:$0xff]  }
  0xad   : > { %13195 = vmatpush1.bf16.msra.mxu0 %v17937_v34  ;;  %12839 = vmatprep.subr.bf16.mxu1 %v17978_v37  ;;  %v337_v34 = vrot.slane %v21259_v25, %v21269_v29 }
  0xae   : > { %13196 = vmatprep.subr.bf16.mxu0 %v17945_v35 }
  0xb0   : > { %12840 = vmatpush1.bf16.msra.mxu1 %v17976_v40 }
  0xb1   : > { %13197 = vmatpush1.bf16.msra.mxu0 %v17943_v38  ;;  %12841 = vmatprep.subr.bf16.mxu1 %v17984_v52 }
  0xb2   : > { %13198 = vmatprep.subr.bf16.mxu0 %v17951_v39 }
  0xb4   : > { %12842 = vmatpush1.bf16.msra.mxu1 %v17982_v54 }
  0xb5   : > { %13199 = vmatpush1.bf16.msra.mxu0 %v17949_v41  ;;  %12843 = vmatprep.subr.bf16.mxu1 %v17990_v56  ;;  %v18041_v56 = vld [vmem:[%s21132_s16 + $0x6f4] ss:$52 sps:$4 sm:$0xff]  }
  0xb6   : > { %13200 = vmatprep.subr.bf16.mxu0 %v17957_v42 }
  0xb8   : > { %12844 = vmatpush1.bf16.msra.mxu1 %v17988_v58  ;;  %v18036_v58 = vld [vmem:[%s21132_s16 + $0x6e8] ss:$52 sps:$4 sm:$0xff]  }
  0xb9   : > { %13201 = vmatpush1.bf16.msra.mxu0 %v17955_v43  ;;  %12845 = vmatprep.subr.bf16.mxu1 %v17996_v60 }
  0xba   : > { %13202 = vmatprep.subr.bf16.mxu0 %v17963_v44 }
  0xbc   : > { %12846 = vmatpush1.bf16.msra.mxu1 %v17994_v62  ;;  %v18047_v62 = vld [vmem:[%s21132_s16 + $0x75c] ss:$52 sps:$4 sm:$0xff]  }
  0xbd   : > { %13203 = vmatpush1.bf16.msra.mxu0 %v17961_v45  ;;  %12847 = vmatprep.subr.bf16.mxu1 %v18002_v0  ;;  %v18045_v0 = vld [vmem:[%s21132_s16 + $0x758] ss:$52 sps:$4 sm:$0xff]  }
  0xbe   : > { %13204 = vmatprep.subr.bf16.mxu0 %v17969_v46 }
  0xc0   : > { %12848 = vmatpush1.bf16.msra.mxu1 %v18000_v2  ;;  %v18053_v2 = vld [vmem:[%s21132_s16 + $0x7c4] ss:$52 sps:$4 sm:$0xff]  }
  0xc1   : > { %13205 = vmatpush1.bf16.msra.mxu0 %v17967_v47  ;;  %12849 = vmatprep.subr.bf16.mxu1 %v18008_v4  ;;  %v18051_v4 = vld [vmem:[%s21132_s16 + $0x7c0] ss:$52 sps:$4 sm:$0xff]  }
  0xc2   : > { %13206 = vmatprep.subr.bf16.mxu0 %v17975_v48 }
  0xc4   : > { %12850 = vmatpush1.bf16.msra.mxu1 %v18006_v6  ;;  %v18059_v6 = vld [vmem:[%s21132_s16 + $0x82c] ss:$52 sps:$4 sm:$0xff]  }
  0xc5   : > { %13207 = vmatpush1.bf16.msra.mxu0 %v17973_v49  ;;  %12851 = vmatprep.subr.bf16.mxu1 %v18014_v8  ;;  %v18057_v8 = vld [vmem:[%s21132_s16 + $0x828] ss:$52 sps:$4 sm:$0xff]  }
  0xc6   : > { %13208 = vmatprep.subr.bf16.mxu0 %v17981_v50  ;;  %v18030_v50 = vld [vmem:[%s21132_s16 + $0x680] ss:$52 sps:$4 sm:$0xff]  }
  0xc8   : > { %12852 = vmatpush1.bf16.msra.mxu1 %v18012_v10  ;;  %v18065_v10 = vld [vmem:[%s21132_s16 + $0x894] ss:$52 sps:$4 sm:$0xff]  }
  0xc9   : > { %13209 = vmatpush1.bf16.msra.mxu0 %v17979_v51  ;;  %12853 = vmatprep.subr.bf16.mxu1 %v18020_v12  ;;  %v18033_v51 = vld [vmem:[%s21132_s16 + $0x688] ss:$52 sps:$4 sm:$0xff]  }
  0xca   : > { %13210 = vmatprep.subr.bf16.mxu0 %v17987_v53  ;;  %v18060_v12 = vld [vmem:[%s21132_s16 + $0x888] ss:$52 sps:$4 sm:$0xff]  }
  0xcc   : > { %12854 = vmatpush1.bf16.msra.mxu1 %v18018_v14  ;;  %v21317_v14 = vsub.s32 5, %v21254_v23 }
  0xcd   : > { %13211 = vmatpush1.bf16.msra.mxu0 %v17985_v55  ;;  %12855 = vmatprep.subr.bf16.mxu1 %v18026_v16  ;;  %v18038_v55 = vld [vmem:[%s21132_s16 + $0x6ec] ss:$52 sps:$4 sm:$0xff]   ;;  %v21322_v16 = vsub.s32 6, %v21254_v23 }
  0xce   : > { %13212 = vmatprep.subr.bf16.mxu0 %v17993_v57 }
  0xd0   : > { %12856 = vmatpush1.bf16.msra.mxu1 %v18024_v18  ;;  %v21325_v18 = vsub.s32 7, %v21254_v23 }
  0xd1   : > { %13213 = vmatpush1.bf16.msra.mxu0 %v17991_v59  ;;  %12866 = vmatprep.subr.bf16.mxu1 %v18032_v20  ;;  %v18039_v59 = vld [vmem:[%s21132_s16 + $0x6f0] ss:$52 sps:$4 sm:$0xff]  }
  0xd2   : > { %13214 = vmatprep.subr.bf16.mxu0 %v17999_v61  ;;  %v18044_v61 = vld [vmem:[%s21132_s16 + $0x754] ss:$52 sps:$4 sm:$0xff]   ;;  %v18071_v20 = vld [vmem:[%s21132_s16 + $0x8fc] ss:$52 sps:$4 sm:$0xff]  }
  0xd5   : > { %13215 = vmatpush1.bf16.msra.mxu0 %v17997_v63  ;;  %v18042_v63 = vld [vmem:[%s21132_s16 + $0x750] ss:$52 sps:$4 sm:$0xff]  }
  0xd6   : > { %13216 = vmatprep.subr.bf16.mxu0 %v18005_v1  ;;  %v18050_v1 = vld [vmem:[%s21132_s16 + $0x7bc] ss:$52 sps:$4 sm:$0xff]  }
  0xd9   : > { %13217 = vmatpush1.bf16.msra.mxu0 %v18003_v3  ;;  %v18048_v3 = vld [vmem:[%s21132_s16 + $0x7b8] ss:$52 sps:$4 sm:$0xff]  }
  0xda   : > { %13218 = vmatprep.subr.bf16.mxu0 %v18011_v5  ;;  %v18056_v5 = vld [vmem:[%s21132_s16 + $0x824] ss:$52 sps:$4 sm:$0xff]  }
  0xdd   : > { %13219 = vmatpush1.bf16.msra.mxu0 %v18009_v7  ;;  %v18054_v7 = vld [vmem:[%s21132_s16 + $0x820] ss:$52 sps:$4 sm:$0xff]  }
  0xde   : > { %13220 = vmatprep.subr.bf16.mxu0 %v18017_v9  ;;  %v18062_v9 = vld [vmem:[%s21132_s16 + $0x88c] ss:$52 sps:$4 sm:$0xff]  }
  0xe1   : > { %13221 = vmatpush1.bf16.msra.mxu0 %v18015_v11  ;;  %v21312_v11 = vsub.s32 2, %v21254_v23 }
  0xe2   : > { %13222 = vmatprep.subr.bf16.mxu0 %v18023_v13  ;;  %v18063_v13 = vld [vmem:[%s21132_s16 + $0x890] ss:$52 sps:$4 sm:$0xff]  }
  0xe5   : > { %13223 = vmatpush1.bf16.msra.mxu0 %v18021_v15  ;;  %v21319_v15 = vld [vmem:[#allocation4 + $0x8] sm:$0xff] }
  0xe6   : > { %13224 = vmatprep.subr.bf16.mxu0 %v18029_v17 }
  0xe9   : > { %13225 = vmatpush1.bf16.msra.mxu0 %v18027_v19  ;;  %v18068_v19 = vld [vmem:[%s21132_s16 + $0x8f4] ss:$52 sps:$4 sm:$0xff]  }
  0xea   : > { %13235 = vmatprep.subr.bf16.mxu0 %v18035_v21  ;;  %v333_v21 = vrot.slane %v21259_v25, %v21312_v11 }
 0x163   : > { %v537_v30 = vpop.f32.mrb[0].mxu0 }
 0x164   : > { %v538_v31 = vadd.f32 %v537_v30, %v325_v27  ;;  %v539_v32 = vpop.f32.mrb[1].mxu0  ;;  %v381_v27 = vrot.slane %v21319_v15, %v21322_v16  ;;  %v18066_v30 = vld [vmem:[%s21132_s16 + $0x8f0] ss:$52 sps:$4 sm:$0xff]  }
 0x165   : > { %v540_v33 = vadd.f32 %v539_v32, %v329_v28  ;;  %v385_v28 = vrot.slane %v21319_v15, %v21325_v18  ;;  %v345_v32 = vrot.slane %v21259_v25, %v21317_v14 }
 0x166   : > { %v15557_v35 = vmul.f32 -1.442695, %v538_v31  ;;  %v1034_v17 = vpop.f32.mrb[0].mxu1  ;;  %v18069_v31 = vld [vmem:[%s21132_s16 + $0x8f8] ss:$52 sps:$4 sm:$0xff]  }
 0x167   : > { %v15558_v36 = vmul.f32 -1.442695, %v540_v33  ;;  %v21273_v37 = vpop.f32.mrb[2].mxu0  ;;  %v1036_v22 = vpop.f32.mrb[1].mxu1  ;;  %v21339_v33 = vadd.f32 %v1034_v17, %v381_v27 }
 0x168   : > { %20670 = vpow2.f32 %v15557_v35  ;;  %v610_v38 = vpop.f32.mrb[3].mxu0  ;;  %v18074_v35 = vld [vmem:[%s21132_s16 + $0x95c] ss:$52 sps:$4 sm:$0xff]  }
 0x169   : > { %20672 = vpow2.f32 %v15558_v36  ;;  %v611_v39 = vadd.f32 %v610_v38, %v337_v34  ;;  %v21341_v34 = vadd.f32 %v1036_v22, %v385_v28  ;;  %v18077_v36 = vld [vmem:[%s21132_s16 + $0x964] ss:$52 sps:$4 sm:$0xff]   ;;  %v609_v38 = vadd.f32 %v21273_v37, %v333_v21  ;;  %v18105_v21 = vld [vmem:[%s21132_s16 + $0xb68] ss:$52 sps:$4 sm:$0xff]   ;;  %v18110_v28 = vld [vmem:[%s21132_s16 + $0xbcc] ss:$52 sps:$4 sm:$0xff]  }
 0x16a   : > { %v377_v22 = vrot.slane %v21319_v15, %v21317_v14 }
 0x16b   : > { %v15560_v40 = vmul.f32 -1.442695, %v611_v39  ;;  %v21275_v41 = vpop.f32.mrb[4].mxu0  ;;  %v18072_v39 = vld [vmem:[%s21132_s16 + $0x958] ss:$52 sps:$4 sm:$0xff]  }
 0x16c   : > { %v21277_v42 = vpop.f32.mrb[5].mxu0 }
 0x16d   : > { %20674 = vpow2.f32 %v15560_v40  ;;  %v18075_v40 = vld [vmem:[%s21132_s16 + $0x960] ss:$52 sps:$4 sm:$0xff]  }
 0x172   : > { %v20671_v43 = vpop.eup %20670 }
 0x173   : > { %v20673_v44 = vpop.eup %20672  ;;  %v1164_v45 = vadd.f32 1.0, %v20671_v43  ;;  %v18080_v43 = vld [vmem:[%s21132_s16 + $0x9c4] ss:$52 sps:$4 sm:$0xff]  }
 0x174   : > { %v1165_v46 = vadd.f32 1.0, %v20673_v44  ;;  %v682_v44 = vadd.f32 %v21277_v42, %v345_v32  ;;  %v18086_v42 = vld [vmem:[%s21132_s16 + $0xa2c] ss:$52 sps:$4 sm:$0xff]  }
 0x175   : > { %20676 = vrcp.f32 %v1164_v45  ;;  %v15559_v45 = vmul.f32 -1.442695, %v609_v38 }
 0x176   : > { %20678 = vrcp.f32 %v1165_v46  ;;  %v18083_v46 = vld [vmem:[%s21132_s16 + $0x9cc] ss:$52 sps:$4 sm:$0xff]   ;;  %v15562_v37 = vmul.f32 -1.442695, %v682_v44 }
 0x177   : > { %v20675_v47 = vpop.eup %20674  ;;  %v18117_v44 = vld [vmem:[%s21132_s16 + $0xc38] ss:$52 sps:$4 sm:$0xff]  }
 0x178   : > { %v1167_v48 = vadd.f32 1.0, %v20675_v47  ;;  %v18078_v47 = vld [vmem:[%s21132_s16 + $0x9c0] ss:$52 sps:$4 sm:$0xff]  }
 0x17a   : > { %20680 = vrcp.f32 %v1167_v48  ;;  %v18081_v48 = vld [vmem:[%s21132_s16 + $0x9c8] ss:$52 sps:$4 sm:$0xff]  }
 0x17b   : > { %20682 = vpow2.f32 %v15559_v45  ;;  %v18122_v45 = vld [vmem:[%s21132_s16 + $0xc9c] ss:$52 sps:$4 sm:$0xff]  }
 0x17c   : > { %20684 = vpow2.f32 %v15562_v37  ;;  %v18123_v37 = vld [vmem:[%s21132_s16 + $0xca0] ss:$52 sps:$4 sm:$0xff]  }
 0x17f   : > { %v20677_v49 = vpop.eup %20676 }
 0x180   : > { %v20679_v52 = vpop.eup %20678  ;;  %v21283_v54 = vpack.c.bf16 %v20677_v49, %v20677_v49  ;;  %v21353_v49 = vpop.f32.mrb[6].mxu0 }
 0x181   : > { %v21281_v53 = vpack.c.bf16 %v20679_v52, %v20679_v52  ;;  %v18084_v52 = vld [vmem:[%s21132_s16 + $0xa28] ss:$52 sps:$4 sm:$0xff]  }
 0x183   : > { %12857 = vmatprep.mubr.bf16.mxu1 %v21281_v53  ;;  %13226 = vmatprep.mubr.bf16.mxu0 %v21281_v53 }
 0x184   : > { %v20681_v57 = vpop.eup %20680  ;;  %12858 = vmatmul.mubr.bf16.vlgmr.msra.gmra.mrb[4].mxu1 %v21283_v54  ;;  %13227 = vmatmul.mubr.bf16.vlgmr.msra.gmra.mrb[16].mxu0 %v21283_v54 }
 0x185   : > { %12867 = vmatpush1.bf16.msra.mxu1 %v18030_v50  ;;  %13236 = vmatpush1.bf16.msra.mxu0 %v18033_v51  ;;  %v21293_v60 = vpack.c.bf16 %v20681_v57, %v20681_v57  ;;  %v18089_v50 = vld [vmem:[%s21132_s16 + $0xa34] ss:$52 sps:$4 sm:$0xff]   ;;  %v21357_v51 = vpop.f32.mrb[7].mxu0  ;;  %v18095_v57 = vld [vmem:[%s21132_s16 + $0xa9c] ss:$52 sps:$4 sm:$0xff]  }
 0x186   : > { %12868 = vmatprep.subr.bf16.mxu1 %v18038_v55  ;;  %13237 = vmatprep.subr.bf16.mxu0 %v18041_v56  ;;  %v18087_v55 = vld [vmem:[%s21132_s16 + $0xa30] ss:$52 sps:$4 sm:$0xff]   ;;  %v18092_v56 = vld [vmem:[%s21132_s16 + $0xa94] ss:$52 sps:$4 sm:$0xff]  }
 0x187   : > { %12898 = vmatprep.mubr.bf16.mxu1 %v21293_v60  ;;  %13267 = vmatprep.mubr.bf16.mxu0 %v21293_v60 }
 0x189   : > { %12869 = vmatpush1.bf16.msra.mxu1 %v18036_v58  ;;  %13238 = vmatpush1.bf16.msra.mxu0 %v18039_v59  ;;  %v21363_v58 = vpop.f32.mrb[8].mxu0  ;;  %v18090_v59 = vld [vmem:[%s21132_s16 + $0xa90] ss:$52 sps:$4 sm:$0xff]  }
 0x18a   : > { %12870 = vmatprep.subr.bf16.mxu1 %v18044_v61  ;;  %13239 = vmatprep.subr.bf16.mxu0 %v18047_v62  ;;  %v18093_v61 = vld [vmem:[%s21132_s16 + $0xa98] ss:$52 sps:$4 sm:$0xff]   ;;  %v21367_v62 = vpop.f32.mrb[9].mxu0 }
 0x18d   : > { %12871 = vmatpush1.bf16.msra.mxu1 %v18042_v63  ;;  %13240 = vmatpush1.bf16.msra.mxu0 %v18045_v0  ;;  %v18098_v63 = vld [vmem:[%s21132_s16 + $0xafc] ss:$52 sps:$4 sm:$0xff]   ;;  %v18101_v0 = vld [vmem:[%s21132_s16 + $0xb04] ss:$52 sps:$4 sm:$0xff]  }
 0x18e   : > { %12872 = vmatprep.subr.bf16.mxu1 %v18050_v1  ;;  %13241 = vmatprep.subr.bf16.mxu0 %v18053_v2  ;;  %v365_v1 = vrot.slane %v21319_v15, %v21312_v11  ;;  %v892_v2 = vpop.f32.mrb[10].mxu0 }
 0x191   : > { %12873 = vmatpush1.bf16.msra.mxu1 %v18048_v3  ;;  %13242 = vmatpush1.bf16.msra.mxu0 %v18051_v4  ;;  %v20683_v3 = vpop.eup %20682  ;;  %v21374_v4 = vsub.s32 4, %v21254_v23 }
 0x192   : > { %12874 = vmatprep.subr.bf16.mxu1 %v18056_v5  ;;  %13243 = vmatprep.subr.bf16.mxu0 %v18059_v6  ;;  %v21376_v5 = vadd.f32 %v892_v2, %v365_v1  ;;  %v18096_v6 = vld [vmem:[%s21132_s16 + $0xaf8] ss:$52 sps:$4 sm:$0xff]   ;;  %v18135_v1 = vld [vmem:[%s21132_s16 + $0xd70] ss:$52 sps:$4 sm:$0xff]   ;;  %v18140_v2 = vld [vmem:[%s21132_s16 + $0xdd4] ss:$52 sps:$4 sm:$0xff]  }
 0x193   : > { %v373_v23 = vrot.slane %v21319_v15, %v21374_v4  ;;  %v18108_v15 = vld [vmem:[%s21132_s16 + $0xbc8] ss:$52 sps:$4 sm:$0xff]  }
 0x195   : > { %12875 = vmatpush1.bf16.msra.mxu1 %v18054_v7  ;;  %13244 = vmatpush1.bf16.msra.mxu0 %v18057_v8  ;;  %v18099_v7 = vld [vmem:[%s21132_s16 + $0xb00] ss:$52 sps:$4 sm:$0xff]   ;;  %v21380_v8 = vpop.f32.mrb[11].mxu0 }
 0x196   : > { %12876 = vmatprep.subr.bf16.mxu1 %v18062_v9  ;;  %13245 = vmatprep.subr.bf16.mxu0 %v18065_v10  ;;  %v18104_v9 = vld [vmem:[%s21132_s16 + $0xb64] ss:$52 sps:$4 sm:$0xff]   ;;  %v18107_v10 = vld [vmem:[%s21132_s16 + $0xb6c] ss:$52 sps:$4 sm:$0xff]   ;;  %v963_v17 = vpop.f32.mrb[12].mxu0 }
 0x197   : > { %v965_v27 = vpop.f32.mrb[13].mxu0 }
 0x198   : > { %v21394_v32 = vpop.f32.mrb[14].mxu0 }
 0x199   : > { %12877 = vmatpush1.bf16.msra.mxu1 %v18060_v12  ;;  %13246 = vmatpush1.bf16.msra.mxu0 %v18063_v13  ;;  %v20685_v12 = vpop.eup %20684  ;;  %v1166_v13 = vadd.f32 1.0, %v20683_v3  ;;  %v21400_v38 = vpop.f32.mrb[15].mxu0  ;;  %v18143_v3 = vld [vmem:[%s21132_s16 + $0xddc] ss:$52 sps:$4 sm:$0xff]  }
 0x19a   : > { %12878 = vmatprep.subr.bf16.mxu1 %v18068_v19  ;;  %13247 = vmatprep.subr.bf16.mxu0 %v18071_v20  ;;  %v21386_v19 = vadd.f32 %v963_v17, %v373_v23  ;;  %v18102_v20 = vld [vmem:[%s21132_s16 + $0xb60] ss:$52 sps:$4 sm:$0xff]   ;;  %v18144_v23 = vld [vmem:[%s21132_s16 + $0xe38] ss:$52 sps:$4 sm:$0xff]  }
 0x19b   : > { %20686 = vrcp.f32 %v1166_v13  ;;  %v18152_v13 = vld [vmem:[%s21132_s16 + $0xea4] ss:$52 sps:$4 sm:$0xff]   ;;  %v18155_v17 = vld [vmem:[%s21132_s16 + $0xeac] ss:$52 sps:$4 sm:$0xff]  }
 0x19d   : > { %12879 = vmatpush1.bf16.msra.mxu1 %v18066_v30  ;;  %13248 = vmatpush1.bf16.msra.mxu0 %v18069_v31  ;;  %v18113_v30 = vld [vmem:[%s21132_s16 + $0xbd4] ss:$52 sps:$4 sm:$0xff]   ;;  %v1169_v31 = vadd.f32 1.0, %v20685_v12 }
 0x19e   : > { %12880 = vmatprep.subr.bf16.mxu1 %v18074_v35  ;;  %13249 = vmatprep.subr.bf16.mxu0 %v18077_v36  ;;  %v21396_v35 = vadd.f32 %v965_v27, %v377_v22  ;;  %v18111_v36 = vld [vmem:[%s21132_s16 + $0xbd0] ss:$52 sps:$4 sm:$0xff]   ;;  %v18147_v12 = vld [vmem:[%s21132_s16 + $0xe40] ss:$52 sps:$4 sm:$0xff]  }
 0x19f   : > { %20688 = vrcp.f32 %v1169_v31  ;;  %v18158_v22 = vld [vmem:[%s21132_s16 + $0xf0c] ss:$52 sps:$4 sm:$0xff]   ;;  %v18161_v27 = vld [vmem:[%s21132_s16 + $0xf14] ss:$52 sps:$4 sm:$0xff]  }
 0x1a0   : > { %v18164_v31 = vld [vmem:[%s21132_s16 + $0xf74] ss:$52 sps:$4 sm:$0xff]  }
 0x1a1   : > { %12881 = vmatpush1.bf16.msra.mxu1 %v18072_v39  ;;  %13250 = vmatpush1.bf16.msra.mxu0 %v18075_v40  ;;  %v18116_v39 = vld [vmem:[%s21132_s16 + $0xc34] ss:$52 sps:$4 sm:$0xff]   ;;  %v18119_v40 = vld [vmem:[%s21132_s16 + $0xc3c] ss:$52 sps:$4 sm:$0xff]  }
 0x1a2   : > { %12882 = vmatprep.subr.bf16.mxu1 %v18080_v43  ;;  %13251 = vmatprep.subr.bf16.mxu0 %v18083_v46  ;;  %v18114_v43 = vld [vmem:[%s21132_s16 + $0xc30] ss:$52 sps:$4 sm:$0xff]  }
 0x1a3   : > { %v18125_v46 = vld [vmem:[%s21132_s16 + $0xca4] ss:$52 sps:$4 sm:$0xff]  }
 0x1a5   : > { %12883 = vmatpush1.bf16.msra.mxu1 %v18078_v47  ;;  %13252 = vmatpush1.bf16.msra.mxu0 %v18081_v48  ;;  %v20687_v47 = vpop.eup %20686  ;;  %v18120_v48 = vld [vmem:[%s21132_s16 + $0xc98] ss:$52 sps:$4 sm:$0xff]  }
 0x1a6   : > { %12884 = vmatprep.subr.bf16.mxu1 %v18086_v42  ;;  %13253 = vmatprep.subr.bf16.mxu0 %v18089_v50  ;;  %v18128_v42 = vld [vmem:[%s21132_s16 + $0xd04] ss:$52 sps:$4 sm:$0xff]   ;;  %v18131_v50 = vld [vmem:[%s21132_s16 + $0xd0c] ss:$52 sps:$4 sm:$0xff]  }
 0x1a9   : > { %12885 = vmatpush1.bf16.msra.mxu1 %v18084_v52  ;;  %13254 = vmatpush1.bf16.msra.mxu0 %v18087_v55  ;;  %v18126_v52 = vld [vmem:[%s21132_s16 + $0xd00] ss:$52 sps:$4 sm:$0xff]   ;;  %v18129_v55 = vld [vmem:[%s21132_s16 + $0xd08] ss:$52 sps:$4 sm:$0xff]  }
 0x1aa   : > { %12886 = vmatprep.subr.bf16.mxu1 %v18092_v56  ;;  %13255 = vmatprep.subr.bf16.mxu0 %v18095_v57  ;;  %v20689_v56 = vpop.eup %20688  ;;  %v21414_v57 = vpack.c.bf16 %v20687_v47, %v20687_v47  ;;  %v18168_v47 = vld [vmem:[%s21132_s16 + $0xfd8] ss:$52 sps:$4 sm:$0xff]  }
 0x1ad   : > { %12887 = vmatpush1.bf16.msra.mxu1 %v18090_v59  ;;  %13256 = vmatpush1.bf16.msra.mxu0 %v18093_v61  ;;  %v18134_v59 = vld [vmem:[%s21132_s16 + $0xd6c] ss:$52 sps:$4 sm:$0xff]   ;;  %v18137_v61 = vld [vmem:[%s21132_s16 + $0xd74] ss:$52 sps:$4 sm:$0xff]  }
 0x1ae   : > { %12888 = vmatprep.subr.bf16.mxu1 %v18098_v63  ;;  %13257 = vmatprep.subr.bf16.mxu0 %v18101_v0  ;;  %v21418_v63 = vpack.c.bf16 %v20689_v56, %v20689_v56  ;;  %v18132_v0 = vld [vmem:[%s21132_s16 + $0xd68] ss:$52 sps:$4 sm:$0xff]   ;;  %v18182_v56 = vld [vmem:[%s21132_s16 + $0x10ac] ss:$52 sps:$4 sm:$0xff]  }
 0x1b1   : > { %12889 = vmatpush1.bf16.msra.mxu1 %v18096_v6  ;;  %13258 = vmatpush1.bf16.msra.mxu0 %v18099_v7  ;;  %v18138_v6 = vld [vmem:[%s21132_s16 + $0xdd0] ss:$52 sps:$4 sm:$0xff]   ;;  %v18141_v7 = vld [vmem:[%s21132_s16 + $0xdd8] ss:$52 sps:$4 sm:$0xff]  }
 0x1b2   : > { %12890 = vmatprep.subr.bf16.mxu1 %v18104_v9  ;;  %13259 = vmatprep.subr.bf16.mxu0 %v18107_v10  ;;  %v18146_v9 = vld [vmem:[%s21132_s16 + $0xe3c] ss:$52 sps:$4 sm:$0xff]   ;;  %v18149_v10 = vld [vmem:[%s21132_s16 + $0xe44] ss:$52 sps:$4 sm:$0xff]  }
 0x1b5   : > { %12891 = vmatpush1.bf16.msra.mxu1 %v18102_v20  ;;  %13260 = vmatpush1.bf16.msra.mxu0 %v18105_v21  ;;  %v18150_v20 = vld [vmem:[%s21132_s16 + $0xea0] ss:$52 sps:$4 sm:$0xff]   ;;  %v18153_v21 = vld [vmem:[%s21132_s16 + $0xea8] ss:$52 sps:$4 sm:$0xff]  }
 0x1b6   : > { %12892 = vmatprep.subr.bf16.mxu1 %v18110_v28  ;;  %13261 = vmatprep.subr.bf16.mxu0 %v18113_v30  ;;  %v18156_v28 = vld [vmem:[%s21132_s16 + $0xf08] ss:$52 sps:$4 sm:$0xff]   ;;  %v18159_v30 = vld [vmem:[%s21132_s16 + $0xf10] ss:$52 sps:$4 sm:$0xff]  }
 0x1b9   : > { %12893 = vmatpush1.bf16.msra.mxu1 %v18108_v15  ;;  %13262 = vmatpush1.bf16.msra.mxu0 %v18111_v36  ;;  %v18167_v15 = vld [vmem:[%s21132_s16 + $0xf7c] ss:$52 sps:$4 sm:$0xff]   ;;  %v341_v36 = vrot.slane %v21259_v25, %v21374_v4 }
 0x1ba   : > { %12894 = vmatprep.subr.bf16.mxu1 %v18116_v39  ;;  %13263 = vmatprep.subr.bf16.mxu0 %v18119_v40  ;;  %v18162_v39 = vld [vmem:[%s21132_s16 + $0xf70] ss:$52 sps:$4 sm:$0xff]   ;;  %v18165_v40 = vld [vmem:[%s21132_s16 + $0xf78] ss:$52 sps:$4 sm:$0xff]  }
 0x1bd   : > { %12895 = vmatpush1.bf16.msra.mxu1 %v18114_v43  ;;  %13264 = vmatpush1.bf16.msra.mxu0 %v18117_v44  ;;  %v353_v43 = vrot.slane %v21259_v25, %v21325_v18  ;;  %v18170_v44 = vld [vmem:[%s21132_s16 + $0xfdc] ss:$52 sps:$4 sm:$0xff]  }
 0x1be   : > { %12896 = vmatprep.subr.bf16.mxu1 %v18122_v45  ;;  %13265 = vmatprep.subr.bf16.mxu0 %v18125_v46  ;;  %v18173_v45 = vld [vmem:[%s21132_s16 + $0xfe4] ss:$52 sps:$4 sm:$0xff]   ;;  %v680_v46 = vadd.f32 %v21275_v41, %v341_v36  ;;  %v18177_v41 = vld [vmem:[%s21132_s16 + $0x1048] ss:$52 sps:$4 sm:$0xff]  }
 0x1bf   : > { %v18212_v36 = vld [vmem:[%s21132_s16 + $0x12b4] ss:$52 sps:$4 sm:$0xff]  }
 0x1c0   : > { %v15561_v25 = vmul.f32 -1.442695, %v680_v46 }
 0x1c1   : > { %12897 = vmatpush1.bf16.msra.mxu1 %v18120_v48  ;;  %13266 = vmatpush1.bf16.msra.mxu0 %v18123_v37  ;;  %v18171_v48 = vld [vmem:[%s21132_s16 + $0xfe0] ss:$52 sps:$4 sm:$0xff]   ;;  %v18176_v37 = vld [vmem:[%s21132_s16 + $0x1044] ss:$52 sps:$4 sm:$0xff]  }
 0x1c2   : > { %12907 = vmatprep.subr.bf16.mxu1 %v18128_v42  ;;  %13276 = vmatprep.subr.bf16.mxu0 %v18131_v50  ;;  %v753_v42 = vadd.f32 %v21357_v51, %v353_v43  ;;  %v18179_v50 = vld [vmem:[%s21132_s16 + $0x104c] ss:$52 sps:$4 sm:$0xff]   ;;  %20690 = vpow2.f32 %v15561_v25  ;;  %v18185_v51 = vld [vmem:[%s21132_s16 + $0x10b4] ss:$52 sps:$4 sm:$0xff]  }
 0x1c3   : > { %v18213_v43 = vld [vmem:[%s21132_s16 + $0x12b8] ss:$52 sps:$4 sm:$0xff]   ;;  %v18222_v25 = vld [vmem:[%s21132_s16 + $0x1380] ss:$52 sps:$4 sm:$0xff]  }
 0x1c4   : > { %12899 = vmatmul.mubr.bf16.vlgmr.msra.gmra.mrb[4].mxu1 %v21414_v57  ;;  %13268 = vmatmul.mubr.bf16.vlgmr.msra.gmra.mrb[16].mxu0 %v21414_v57 }
 0x1c5   : > { %12908 = vmatpush1.bf16.msra.mxu1 %v18126_v52  ;;  %13277 = vmatpush1.bf16.msra.mxu0 %v18129_v55  ;;  %v18174_v52 = vld [vmem:[%s21132_s16 + $0x1040] ss:$52 sps:$4 sm:$0xff]   ;;  %v15564_v55 = vmul.f32 -1.442695, %v753_v42 }
 0x1c6   : > { %12909 = vmatprep.subr.bf16.mxu1 %v18134_v59  ;;  %13278 = vmatprep.subr.bf16.mxu0 %v18137_v61  ;;  %v18180_v59 = vld [vmem:[%s21132_s16 + $0x10a8] ss:$52 sps:$4 sm:$0xff]   ;;  %v18183_v61 = vld [vmem:[%s21132_s16 + $0x10b0] ss:$52 sps:$4 sm:$0xff]   ;;  %v18227_v42 = vld [vmem:[%s21132_s16 + $0x138c] ss:$52 sps:$4 sm:$0xff]  }
 0x1c7   : > { %12939 = vmatprep.mubr.bf16.mxu1 %v21418_v63  ;;  %13308 = vmatprep.mubr.bf16.mxu0 %v21418_v63  ;;  %20692 = vpow2.f32 %v15564_v55  ;;  %v18230_v55 = vld [vmem:[%s21132_s16 + $0x13ec] ss:$52 sps:$4 sm:$0xff]  }
 0x1c9   : > { %12910 = vmatpush1.bf16.msra.mxu1 %v18132_v0  ;;  %13279 = vmatpush1.bf16.msra.mxu0 %v18135_v1  ;;  %v18188_v0 = vld [vmem:[%s21132_s16 + $0x1114] ss:$52 sps:$4 sm:$0xff]   ;;  %v18191_v1 = vld [vmem:[%s21132_s16 + $0x111c] ss:$52 sps:$4 sm:$0xff]  }
 0x1ca   : > { %12911 = vmatprep.subr.bf16.mxu1 %v18140_v2  ;;  %13280 = vmatprep.subr.bf16.mxu0 %v18143_v3  ;;  %v18186_v2 = vld [vmem:[%s21132_s16 + $0x1110] ss:$52 sps:$4 sm:$0xff]   ;;  %v18189_v3 = vld [vmem:[%s21132_s16 + $0x1118] ss:$52 sps:$4 sm:$0xff]  }
 0x1cd   : > { %12912 = vmatpush1.bf16.msra.mxu1 %v18138_v6  ;;  %13281 = vmatpush1.bf16.msra.mxu0 %v18141_v7  ;;  %v18194_v6 = vld [vmem:[%s21132_s16 + $0x117c] ss:$52 sps:$4 sm:$0xff]   ;;  %v18197_v7 = vld [vmem:[%s21132_s16 + $0x1184] ss:$52 sps:$4 sm:$0xff]  }
 0x1ce   : > { %12913 = vmatprep.subr.bf16.mxu1 %v18146_v9  ;;  %13282 = vmatprep.subr.bf16.mxu0 %v18149_v10  ;;  %v20691_v9 = vpop.eup %20690  ;;  %v18192_v10 = vld [vmem:[%s21132_s16 + $0x1178] ss:$52 sps:$4 sm:$0xff]  }
 0x1d1   : > { %12914 = vmatpush1.bf16.msra.mxu1 %v18144_v23  ;;  %13283 = vmatpush1.bf16.msra.mxu0 %v18147_v12  ;;  %v18195_v23 = vld [vmem:[%s21132_s16 + $0x1180] ss:$52 sps:$4 sm:$0xff]   ;;  %v18200_v12 = vld [vmem:[%s21132_s16 + $0x11e4] ss:$52 sps:$4 sm:$0xff]  }
 0x1d2   : > { %12915 = vmatprep.subr.bf16.mxu1 %v18152_v13  ;;  %13284 = vmatprep.subr.bf16.mxu0 %v18155_v17  ;;  %v18203_v13 = vld [vmem:[%s21132_s16 + $0x11ec] ss:$52 sps:$4 sm:$0xff]   ;;  %v20693_v17 = vpop.eup %20692 }
 0x1d5   : > { %12916 = vmatpush1.bf16.msra.mxu1 %v18150_v20  ;;  %13285 = vmatpush1.bf16.msra.mxu0 %v18153_v21  ;;  %v1168_v20 = vadd.f32 1.0, %v20691_v9  ;;  %v18198_v21 = vld [vmem:[%s21132_s16 + $0x11e0] ss:$52 sps:$4 sm:$0xff]   ;;  %v18240_v9 = vld [vmem:[%s21132_s16 + $0x14b8] ss:$52 sps:$4 sm:$0xff]  }
 0x1d6   : > { %12917 = vmatprep.subr.bf16.mxu1 %v18158_v22  ;;  %13286 = vmatprep.subr.bf16.mxu0 %v18161_v27  ;;  %v18201_v22 = vld [vmem:[%s21132_s16 + $0x11e8] ss:$52 sps:$4 sm:$0xff]   ;;  %v18206_v27 = vld [vmem:[%s21132_s16 + $0x124c] ss:$52 sps:$4 sm:$0xff]  }
 0x1d7   : > { %20694 = vrcp.f32 %v1168_v20  ;;  %v18254_v20 = vld [vmem:[%s21132_s16 + $0x158c] ss:$52 sps:$4 sm:$0xff]  }
 0x1d9   : > { %12918 = vmatpush1.bf16.msra.mxu1 %v18156_v28  ;;  %13287 = vmatpush1.bf16.msra.mxu0 %v18159_v30  ;;  %v18209_v28 = vld [vmem:[%s21132_s16 + $0x1254] ss:$52 sps:$4 sm:$0xff]   ;;  %v1171_v30 = vadd.f32 1.0, %v20693_v17 }
 0x1da   : > { %12919 = vmatprep.subr.bf16.mxu1 %v18164_v31  ;;  %13288 = vmatprep.subr.bf16.mxu0 %v18167_v15  ;;  %v18204_v31 = vld [vmem:[%s21132_s16 + $0x1248] ss:$52 sps:$4 sm:$0xff]   ;;  %v18207_v15 = vld [vmem:[%s21132_s16 + $0x1250] ss:$52 sps:$4 sm:$0xff]  }
 0x1db   : > { %20696 = vrcp.f32 %v1171_v30  ;;  %v18249_v17 = vld [vmem:[%s21132_s16 + $0x1528] ss:$52 sps:$4 sm:$0xff]  }
 0x1dc   : > { %v18263_v30 = vld [vmem:[%s21132_s16 + $0x15fc] ss:$52 sps:$4 sm:$0xff]  }
 0x1dd   : > { %12920 = vmatpush1.bf16.msra.mxu1 %v18162_v39  ;;  %13289 = vmatpush1.bf16.msra.mxu0 %v18165_v40  ;;  %v18215_v39 = vld [vmem:[%s21132_s16 + $0x12bc] ss:$52 sps:$4 sm:$0xff]  }
 0x1de   : > { %12921 = vmatprep.subr.bf16.mxu1 %v18170_v44  ;;  %13290 = vmatprep.subr.bf16.mxu0 %v18173_v45  ;;  %v18210_v40 = vld [vmem:[%s21132_s16 + $0x12b0] ss:$52 sps:$4 sm:$0xff]  }
 0x1df   : > { %v18218_v44 = vld [vmem:[%s21132_s16 + $0x131c] ss:$52 sps:$4 sm:$0xff]   ;;  %v18221_v45 = vld [vmem:[%s21132_s16 + $0x1324] ss:$52 sps:$4 sm:$0xff]  }
 0x1e1   : > { %12922 = vmatpush1.bf16.msra.mxu1 %v18168_v47  ;;  %13291 = vmatpush1.bf16.msra.mxu0 %v18171_v48  ;;  %v20695_v46 = vpop.eup %20694  ;;  %v18216_v47 = vld [vmem:[%s21132_s16 + $0x1318] ss:$52 sps:$4 sm:$0xff]   ;;  %v18219_v48 = vld [vmem:[%s21132_s16 + $0x1320] ss:$52 sps:$4 sm:$0xff]  }
 0x1e2   : > { %12923 = vmatprep.subr.bf16.mxu1 %v18176_v37  ;;  %13292 = vmatprep.subr.bf16.mxu0 %v18179_v50  ;;  %v18224_v37 = vld [vmem:[%s21132_s16 + $0x1384] ss:$52 sps:$4 sm:$0xff]   ;;  %v18225_v50 = vld [vmem:[%s21132_s16 + $0x1388] ss:$52 sps:$4 sm:$0xff]  }
 0x1e5   : > { %12924 = vmatpush1.bf16.msra.mxu1 %v18174_v52  ;;  %13293 = vmatpush1.bf16.msra.mxu0 %v18177_v41  ;;  %v20697_v52 = vpop.eup %20696  ;;  %v21492_v41 = vpack.c.bf16 %v20695_v46, %v20695_v46 }
 0x1e6   : > { %12925 = vmatprep.subr.bf16.mxu1 %v18182_v56  ;;  %13294 = vmatprep.subr.bf16.mxu0 %v18185_v51  ;;  %v18233_v56 = vld [vmem:[%s21132_s16 + $0x13f4] ss:$52 sps:$4 sm:$0xff]  }
 0x1e7   : > { %v18228_v51 = vld [vmem:[%s21132_s16 + $0x13e8] ss:$52 sps:$4 sm:$0xff]  }
 0x1e9   : > { %12926 = vmatpush1.bf16.msra.mxu1 %v18180_v59  ;;  %13295 = vmatpush1.bf16.msra.mxu0 %v18183_v61  ;;  %v18231_v59 = vld [vmem:[%s21132_s16 + $0x13f0] ss:$52 sps:$4 sm:$0xff]   ;;  %v21498_v61 = vpack.c.bf16 %v20697_v52, %v20697_v52  ;;  %v18270_v52 = vld [vmem:[%s21132_s16 + $0x16c0] ss:$52 sps:$4 sm:$0xff]  }
 0x1ea   : > { %12927 = vmatprep.subr.bf16.mxu1 %v18188_v0  ;;  %13296 = vmatprep.subr.bf16.mxu0 %v18191_v1  ;;  %v18236_v0 = vld [vmem:[%s21132_s16 + $0x1454] ss:$52 sps:$4 sm:$0xff]   ;;  %v18239_v1 = vld [vmem:[%s21132_s16 + $0x145c] ss:$52 sps:$4 sm:$0xff]  }
 0x1ed   : > { %12928 = vmatpush1.bf16.msra.mxu1 %v18186_v2  ;;  %13297 = vmatpush1.bf16.msra.mxu0 %v18189_v3  ;;  %v18234_v2 = vld [vmem:[%s21132_s16 + $0x1450] ss:$52 sps:$4 sm:$0xff]   ;;  %v18237_v3 = vld [vmem:[%s21132_s16 + $0x1458] ss:$52 sps:$4 sm:$0xff]  }
 0x1ee   : > { %12929 = vmatprep.subr.bf16.mxu1 %v18194_v6  ;;  %13298 = vmatprep.subr.bf16.mxu0 %v18197_v7  ;;  %v18242_v6 = vld [vmem:[%s21132_s16 + $0x14bc] ss:$52 sps:$4 sm:$0xff]   ;;  %v18245_v7 = vld [vmem:[%s21132_s16 + $0x14c4] ss:$52 sps:$4 sm:$0xff]  }
 0x1f1   : > { %12930 = vmatpush1.bf16.msra.mxu1 %v18192_v10  ;;  %13299 = vmatpush1.bf16.msra.mxu0 %v18195_v23  ;;  %v18243_v10 = vld [vmem:[%s21132_s16 + $0x14c0] ss:$52 sps:$4 sm:$0xff]   ;;  %v18248_v23 = vld [vmem:[%s21132_s16 + $0x1524] ss:$52 sps:$4 sm:$0xff]  }
 0x1f2   : > { %12931 = vmatprep.subr.bf16.mxu1 %v18200_v12  ;;  %13300 = vmatprep.subr.bf16.mxu0 %v18203_v13  ;;  %v18251_v12 = vld [vmem:[%s21132_s16 + $0x152c] ss:$52 sps:$4 sm:$0xff]  }
 0x1f3   : > { %v18246_v13 = vld [vmem:[%s21132_s16 + $0x1520] ss:$52 sps:$4 sm:$0xff]  }
 0x1f5   : > { %12932 = vmatpush1.bf16.msra.mxu1 %v18198_v21  ;;  %13301 = vmatpush1.bf16.msra.mxu0 %v18201_v22  ;;  %v18257_v21 = vld [vmem:[%s21132_s16 + $0x1594] ss:$52 sps:$4 sm:$0xff]  }
 0x1f6   : > { %12933 = vmatprep.subr.bf16.mxu1 %v18206_v27  ;;  %13302 = vmatprep.subr.bf16.mxu0 %v18209_v28  ;;  %v18252_v22 = vld [vmem:[%s21132_s16 + $0x1588] ss:$52 sps:$4 sm:$0xff]   ;;  %v18255_v27 = vld [vmem:[%s21132_s16 + $0x1590] ss:$52 sps:$4 sm:$0xff]  }
 0x1f7   : > { %v18260_v28 = vld [vmem:[%s21132_s16 + $0x15f4] ss:$52 sps:$4 sm:$0xff]  }
 0x1f9   : > { %12934 = vmatpush1.bf16.msra.mxu1 %v18204_v31  ;;  %13303 = vmatpush1.bf16.msra.mxu0 %v18207_v15  ;;  %v20742_v31 = vld [vmem:[#allocation4] sm:$0xff] }
 0x1fa   : > { %12935 = vmatprep.subr.bf16.mxu1 %v18212_v36  ;;  %13304 = vmatprep.subr.bf16.mxu0 %v18215_v39  ;;  %v349_v15 = vrot.slane %v20742_v31, %v21322_v16  ;;  %v18258_v36 = vld [vmem:[%s21132_s16 + $0x15f0] ss:$52 sps:$4 sm:$0xff]   ;;  %v18261_v39 = vld [vmem:[%s21132_s16 + $0x15f8] ss:$52 sps:$4 sm:$0xff]   ;;  %v18300_v31 = vld [vmem:[%s21132_s16 + $0x18c8] ss:$52 sps:$4 sm:$0xff]  }
 0x1fc   : > { %v751_v46 = vadd.f32 %v21353_v49, %v349_v15  ;;  %v18303_v15 = vld [vmem:[%s21132_s16 + $0x18d0] ss:$52 sps:$4 sm:$0xff]  }
 0x1fd   : > { %12936 = vmatpush1.bf16.msra.mxu1 %v18210_v40  ;;  %13305 = vmatpush1.bf16.msra.mxu0 %v18213_v43  ;;  %v21525_v40 = vld [vmem:[#allocation4 + $0x8] sm:$0xff] }
 0x1fe   : > { %12937 = vmatprep.subr.bf16.mxu1 %v18218_v44  ;;  %13306 = vmatprep.subr.bf16.mxu0 %v18221_v45  ;;  %v361_v43 = vrot.slane %v21525_v40, %v21262_v26  ;;  %v18266_v44 = vld [vmem:[%s21132_s16 + $0x165c] ss:$52 sps:$4 sm:$0xff]   ;;  %v18269_v45 = vld [vmem:[%s21132_s16 + $0x1664] ss:$52 sps:$4 sm:$0xff]  }
 0x201   : > { %12938 = vmatpush1.bf16.msra.mxu1 %v18216_v47  ;;  %13307 = vmatpush1.bf16.msra.mxu0 %v18219_v48  ;;  %v18264_v47 = vld [vmem:[%s21132_s16 + $0x1658] ss:$52 sps:$4 sm:$0xff]   ;;  %v18267_v48 = vld [vmem:[%s21132_s16 + $0x1660] ss:$52 sps:$4 sm:$0xff]  }
 0x202   : > { %12948 = vmatprep.subr.bf16.mxu1 %v18224_v37  ;;  %13317 = vmatprep.subr.bf16.mxu0 %v18227_v42  ;;  %v824_v37 = vadd.f32 %v21367_v62, %v361_v43  ;;  %v15563_v42 = vmul.f32 -1.442695, %v751_v46  ;;  %v18278_v62 = vld [vmem:[%s21132_s16 + $0x172c] ss:$52 sps:$4 sm:$0xff]   ;;  %v18306_v43 = vld [vmem:[%s21132_s16 + $0x1930] ss:$52 sps:$4 sm:$0xff]  }
 0x203   : > { %v18317_v46 = vld [vmem:[%s21132_s16 + $0x19a4] ss:$52 sps:$4 sm:$0xff]  }
 0x204   : > { %12940 = vmatmul.mubr.bf16.vlgmr.msra.gmra.mrb[4].mxu1 %v21492_v41  ;;  %13309 = vmatmul.mubr.bf16.vlgmr.msra.gmra.mrb[16].mxu0 %v21492_v41  ;;  %v15566_v49 = vmul.f32 -1.442695, %v824_v37  ;;  %20698 = vpow2.f32 %v15563_v42  ;;  %v18320_v42 = vld [vmem:[%s21132_s16 + $0x1a04] ss:$52 sps:$4 sm:$0xff]  }
 0x205   : > { %12949 = vmatpush1.bf16.msra.mxu1 %v18222_v25  ;;  %13318 = vmatpush1.bf16.msra.mxu0 %v18225_v50  ;;  %v18272_v25 = vld [vmem:[%s21132_s16 + $0x16c4] ss:$52 sps:$4 sm:$0xff]   ;;  %v18275_v50 = vld [vmem:[%s21132_s16 + $0x16cc] ss:$52 sps:$4 sm:$0xff]  }
 0x206   : > { %12950 = vmatprep.subr.bf16.mxu1 %v18230_v55  ;;  %13319 = vmatprep.subr.bf16.mxu0 %v18233_v56  ;;  %v18273_v55 = vld [vmem:[%s21132_s16 + $0x16c8] ss:$52 sps:$4 sm:$0xff]   ;;  %20700 = vpow2.f32 %v15566_v49 }
 0x207   : > { %12980 = vmatprep.mubr.bf16.mxu1 %v21498_v61  ;;  %13349 = vmatprep.mubr.bf16.mxu0 %v21498_v61  ;;  %v18281_v56 = vld [vmem:[%s21132_s16 + $0x1734] ss:$52 sps:$4 sm:$0xff]  }
 0x209   : > { %12951 = vmatpush1.bf16.msra.mxu1 %v18228_v51  ;;  %13320 = vmatpush1.bf16.msra.mxu0 %v18231_v59  ;;  %v18276_v51 = vld [vmem:[%s21132_s16 + $0x1728] ss:$52 sps:$4 sm:$0xff]   ;;  %v18279_v59 = vld [vmem:[%s21132_s16 + $0x1730] ss:$52 sps:$4 sm:$0xff]  }
 0x20a   : > { %12952 = vmatprep.subr.bf16.mxu1 %v18236_v0  ;;  %13321 = vmatprep.subr.bf16.mxu0 %v18239_v1  ;;  %v18284_v0 = vld [vmem:[%s21132_s16 + $0x1794] ss:$52 sps:$4 sm:$0xff]   ;;  %v18287_v1 = vld [vmem:[%s21132_s16 + $0x179c] ss:$52 sps:$4 sm:$0xff]  }
 0x20d   : > { %12953 = vmatpush1.bf16.msra.mxu1 %v18234_v2  ;;  %13322 = vmatpush1.bf16.msra.mxu0 %v18237_v3  ;;  %v18282_v2 = vld [vmem:[%s21132_s16 + $0x1790] ss:$52 sps:$4 sm:$0xff]   ;;  %v18285_v3 = vld [vmem:[%s21132_s16 + $0x1798] ss:$52 sps:$4 sm:$0xff]  }
 0x20e   : > { %12954 = vmatprep.subr.bf16.mxu1 %v18242_v6  ;;  %13323 = vmatprep.subr.bf16.mxu0 %v18245_v7  ;;  %v18290_v6 = vld [vmem:[%s21132_s16 + $0x17fc] ss:$52 sps:$4 sm:$0xff]   ;;  %v18293_v7 = vld [vmem:[%s21132_s16 + $0x1804] ss:$52 sps:$4 sm:$0xff]  }
 0x211   : > { %12955 = vmatpush1.bf16.msra.mxu1 %v18240_v9  ;;  %13324 = vmatpush1.bf16.msra.mxu0 %v18243_v10  ;;  %v18288_v9 = vld [vmem:[%s21132_s16 + $0x17f8] ss:$52 sps:$4 sm:$0xff]   ;;  %v18291_v10 = vld [vmem:[%s21132_s16 + $0x1800] ss:$52 sps:$4 sm:$0xff]  }
 0x212   : > { %12956 = vmatprep.subr.bf16.mxu1 %v18248_v23  ;;  %13325 = vmatprep.subr.bf16.mxu0 %v18251_v12  ;;  %v20699_v23 = vpop.eup %20698  ;;  %v18296_v12 = vld [vmem:[%s21132_s16 + $0x1864] ss:$52 sps:$4 sm:$0xff]  }
 0x215   : > { %12957 = vmatpush1.bf16.msra.mxu1 %v18246_v13  ;;  %13326 = vmatpush1.bf16.msra.mxu0 %v18249_v17  ;;  %v18299_v13 = vld [vmem:[%s21132_s16 + $0x186c] ss:$52 sps:$4 sm:$0xff]   ;;  %v20701_v17 = vpop.eup %20700 }
 0x216   : > { %12958 = vmatprep.subr.bf16.mxu1 %v18254_v20  ;;  %13327 = vmatprep.subr.bf16.mxu0 %v18257_v21  ;;  %v1170_v20 = vadd.f32 1.0, %v20699_v23  ;;  %v18294_v21 = vld [vmem:[%s21132_s16 + $0x1860] ss:$52 sps:$4 sm:$0xff]  }
 0x217   : > { %v18339_v23 = vld [vmem:[%s21132_s16 + $0x1b40] ss:$52 sps:$4 sm:$0xff]  }
 0x218   : > { %20702 = vrcp.f32 %v1170_v20  ;;  %v18345_v20 = vld [vmem:[%s21132_s16 + $0x1ba8] ss:$52 sps:$4 sm:$0xff]  }
 0x219   : > { %12959 = vmatpush1.bf16.msra.mxu1 %v18252_v22  ;;  %13328 = vmatpush1.bf16.msra.mxu0 %v18255_v27  ;;  %v18297_v22 = vld [vmem:[%s21132_s16 + $0x1868] ss:$52 sps:$4 sm:$0xff]   ;;  %v1173_v27 = vadd.f32 1.0, %v20701_v17  ;;  %v18342_v17 = vld [vmem:[%s21132_s16 + $0x1ba0] ss:$52 sps:$4 sm:$0xff]  }
 0x21a   : > { %12960 = vmatprep.subr.bf16.mxu1 %v18260_v28  ;;  %13329 = vmatprep.subr.bf16.mxu0 %v18263_v30  ;;  %v18302_v28 = vld [vmem:[%s21132_s16 + $0x18cc] ss:$52 sps:$4 sm:$0xff]   ;;  %v18305_v30 = vld [vmem:[%s21132_s16 + $0x18d4] ss:$52 sps:$4 sm:$0xff]  }
 0x21b   : > { %20704 = vrcp.f32 %v1173_v27  ;;  %v18348_v27 = vld [vmem:[%s21132_s16 + $0x1c08] ss:$52 sps:$4 sm:$0xff]  }
 0x21d   : > { %12961 = vmatpush1.bf16.msra.mxu1 %v18258_v36  ;;  %13330 = vmatpush1.bf16.msra.mxu0 %v18261_v39  ;;  %v18308_v36 = vld [vmem:[%s21132_s16 + $0x1934] ss:$52 sps:$4 sm:$0xff]   ;;  %v18311_v39 = vld [vmem:[%s21132_s16 + $0x193c] ss:$52 sps:$4 sm:$0xff]  }
 0x21e   : > { %12962 = vmatprep.subr.bf16.mxu1 %v18266_v44  ;;  %13331 = vmatprep.subr.bf16.mxu0 %v18269_v45  ;;  %v18309_v44 = vld [vmem:[%s21132_s16 + $0x1938] ss:$52 sps:$4 sm:$0xff]   ;;  %v18314_v45 = vld [vmem:[%s21132_s16 + $0x199c] ss:$52 sps:$4 sm:$0xff]  }
 0x221   : > { %12963 = vmatpush1.bf16.msra.mxu1 %v18264_v47  ;;  %13332 = vmatpush1.bf16.msra.mxu0 %v18267_v48  ;;  %v18312_v47 = vld [vmem:[%s21132_s16 + $0x1998] ss:$52 sps:$4 sm:$0xff]   ;;  %v18315_v48 = vld [vmem:[%s21132_s16 + $0x19a0] ss:$52 sps:$4 sm:$0xff]  }
 0x222   : > { %12964 = vmatprep.subr.bf16.mxu1 %v18272_v25  ;;  %13333 = vmatprep.subr.bf16.mxu0 %v18275_v50  ;;  %v20703_v37 = vpop.eup %20702  ;;  %v18323_v25 = vld [vmem:[%s21132_s16 + $0x1a0c] ss:$52 sps:$4 sm:$0xff]  }
 0x223   : > { %v18318_v50 = vld [vmem:[%s21132_s16 + $0x1a00] ss:$52 sps:$4 sm:$0xff]   ;;  %v21571_v49 = vpack.c.bf16 %v20703_v37, %v20703_v37 }
 0x225   : > { %12965 = vmatpush1.bf16.msra.mxu1 %v18270_v52  ;;  %13334 = vmatpush1.bf16.msra.mxu0 %v18273_v55  ;;  %v18321_v52 = vld [vmem:[%s21132_s16 + $0x1a08] ss:$52 sps:$4 sm:$0xff]   ;;  %v20705_v55 = vpop.eup %20704 }
 0x226   : > { %12966 = vmatprep.subr.bf16.mxu1 %v18278_v62  ;;  %13335 = vmatprep.subr.bf16.mxu0 %v18281_v56  ;;  %v18326_v62 = vld [vmem:[%s21132_s16 + $0x1a6c] ss:$52 sps:$4 sm:$0xff]   ;;  %v18329_v56 = vld [vmem:[%s21132_s16 + $0x1a74] ss:$52 sps:$4 sm:$0xff]  }
 0x229   : > { %12967 = vmatpush1.bf16.msra.mxu1 %v18276_v51  ;;  %13336 = vmatpush1.bf16.msra.mxu0 %v18279_v59  ;;  %v21575_v51 = vpack.c.bf16 %v20705_v55, %v20705_v55  ;;  %v18324_v59 = vld [vmem:[%s21132_s16 + $0x1a68] ss:$52 sps:$4 sm:$0xff]  }
 0x22a   : > { %12968 = vmatprep.subr.bf16.mxu1 %v18284_v0  ;;  %13337 = vmatprep.subr.bf16.mxu0 %v18287_v1  ;;  %v18327_v0 = vld [vmem:[%s21132_s16 + $0x1a70] ss:$52 sps:$4 sm:$0xff]   ;;  %v18332_v1 = vld [vmem:[%s21132_s16 + $0x1ad4] ss:$52 sps:$4 sm:$0xff]  }
 0x22d   : > { %12969 = vmatpush1.bf16.msra.mxu1 %v18282_v2  ;;  %13338 = vmatpush1.bf16.msra.mxu0 %v18285_v3  ;;  %v18335_v2 = vld [vmem:[%s21132_s16 + $0x1adc] ss:$52 sps:$4 sm:$0xff]  }
 0x22e   : > { %12970 = vmatprep.subr.bf16.mxu1 %v18290_v6  ;;  %13339 = vmatprep.subr.bf16.mxu0 %v18293_v7  ;;  %v18330_v3 = vld [vmem:[%s21132_s16 + $0x1ad0] ss:$52 sps:$4 sm:$0xff]   ;;  %v18333_v6 = vld [vmem:[%s21132_s16 + $0x1ad8] ss:$52 sps:$4 sm:$0xff]  }
 0x22f   : > { %v18338_v7 = vld [vmem:[%s21132_s16 + $0x1b3c] ss:$52 sps:$4 sm:$0xff]  }
 0x231   : > { %12971 = vmatpush1.bf16.msra.mxu1 %v18288_v9  ;;  %13340 = vmatpush1.bf16.msra.mxu0 %v18291_v10  ;;  %v18341_v9 = vld [vmem:[%s21132_s16 + $0x1b44] ss:$52 sps:$4 sm:$0xff]  }
 0x232   : > { %12972 = vmatprep.subr.bf16.mxu1 %v18296_v12  ;;  %13341 = vmatprep.subr.bf16.mxu0 %v18299_v13  ;;  %v18336_v10 = vld [vmem:[%s21132_s16 + $0x1b38] ss:$52 sps:$4 sm:$0xff]  }
 0x233   : > { %v18344_v12 = vld [vmem:[%s21132_s16 + $0x1ba4] ss:$52 sps:$4 sm:$0xff]   ;;  %v18347_v13 = vld [vmem:[%s21132_s16 + $0x1bac] ss:$52 sps:$4 sm:$0xff]  }
 0x235   : > { %12973 = vmatpush1.bf16.msra.mxu1 %v18294_v21  ;;  %13342 = vmatpush1.bf16.msra.mxu0 %v18297_v22  ;;  %v18350_v21 = vld [vmem:[%s21132_s16 + $0x1c0c] ss:$52 sps:$4 sm:$0xff]   ;;  %v18353_v22 = vld [vmem:[%s21132_s16 + $0x1c14] ss:$52 sps:$4 sm:$0xff]  }
 0x236   : > { %12974 = vmatprep.subr.bf16.mxu1 %v18302_v28  ;;  %13343 = vmatprep.subr.bf16.mxu0 %v18305_v30  ;;  %v18351_v28 = vld [vmem:[%s21132_s16 + $0x1c10] ss:$52 sps:$4 sm:$0xff]   ;;  %v18356_v30 = vld [vmem:[%s21132_s16 + $0x1c74] ss:$52 sps:$4 sm:$0xff]  }
 0x239   : > { %12975 = vmatpush1.bf16.msra.mxu1 %v18300_v31  ;;  %13344 = vmatpush1.bf16.msra.mxu0 %v18303_v15  ;;  %v18359_v31 = vld [vmem:[%s21132_s16 + $0x1c7c] ss:$52 sps:$4 sm:$0xff]  }
 0x23a   : > { %12976 = vmatprep.subr.bf16.mxu1 %v18308_v36  ;;  %13345 = vmatprep.subr.bf16.mxu0 %v18311_v39  ;;  %v18354_v15 = vld [vmem:[%s21132_s16 + $0x1c70] ss:$52 sps:$4 sm:$0xff]   ;;  %v18357_v36 = vld [vmem:[%s21132_s16 + $0x1c78] ss:$52 sps:$4 sm:$0xff]   ;;  %v357_v39 = vrot.slane %v21525_v40, %v21257_v24 }
 0x23d   : > { %12977 = vmatpush1.bf16.msra.mxu1 %v18306_v43  ;;  %13346 = vmatpush1.bf16.msra.mxu0 %v18309_v44  ;;  %v369_v43 = vrot.slane %v21525_v40, %v21269_v29  ;;  %v18362_v44 = vld [vmem:[%s21132_s16 + $0x1cdc] ss:$52 sps:$4 sm:$0xff]   ;;  %v18368_v40 = vld [vmem:[%s21132_s16 + $0x1d44] ss:$52 sps:$4 sm:$0xff]  }
 0x23e   : > { %12978 = vmatprep.subr.bf16.mxu1 %v18314_v45  ;;  %13347 = vmatprep.subr.bf16.mxu0 %v18317_v46  ;;  %v18365_v45 = vld [vmem:[%s21132_s16 + $0x1ce4] ss:$52 sps:$4 sm:$0xff]  }
 0x23f   : > { %v18360_v46 = vld [vmem:[%s21132_s16 + $0x1cd8] ss:$52 sps:$4 sm:$0xff]   ;;  %v895_v37 = vadd.f32 %v21380_v8, %v369_v43  ;;  %v18377_v8 = vld [vmem:[%s21132_s16 + $0x1db4] ss:$52 sps:$4 sm:$0xff]  }
 0x240   : > { %v18405_v43 = vld [vmem:[%s21132_s16 + $0x1fb8] ss:$52 sps:$4 sm:$0xff]  }
 0x241   : > { %12979 = vmatpush1.bf16.msra.mxu1 %v18312_v47  ;;  %13348 = vmatpush1.bf16.msra.mxu0 %v18315_v48  ;;  %v18363_v47 = vld [vmem:[%s21132_s16 + $0x1ce0] ss:$52 sps:$4 sm:$0xff]   ;;  %v822_v48 = vadd.f32 %v21363_v58, %v357_v39  ;;  %v15568_v55 = vmul.f32 -1.442695, %v895_v37  ;;  %v18402_v39 = vld [vmem:[%s21132_s16 + $0x1fb0] ss:$52 sps:$4 sm:$0xff]  }
 0x242   : > { %12989 = vmatprep.subr.bf16.mxu1 %v18320_v42  ;;  %13358 = vmatprep.subr.bf16.mxu0 %v18323_v25  ;;  %v18371_v42 = vld [vmem:[%s21132_s16 + $0x1d4c] ss:$52 sps:$4 sm:$0xff]  }
 0x243   : > { %v18366_v25 = vld [vmem:[%s21132_s16 + $0x1d40] ss:$52 sps:$4 sm:$0xff]  }
 0x244   : > { %12981 = vmatmul.mubr.bf16.vlgmr.msra.gmra.mrb[4].mxu1 %v21571_v49  ;;  %13350 = vmatmul.mubr.bf16.vlgmr.msra.gmra.mrb[16].mxu0 %v21571_v49  ;;  %v18374_v58 = vld [vmem:[%s21132_s16 + $0x1dac] ss:$52 sps:$4 sm:$0xff]  }
 0x245   : > { %12990 = vmatpush1.bf16.msra.mxu1 %v18318_v50  ;;  %13359 = vmatpush1.bf16.msra.mxu0 %v18321_v52  ;;  %v18369_v50 = vld [vmem:[%s21132_s16 + $0x1d48] ss:$52 sps:$4 sm:$0xff]   ;;  %v15565_v52 = vmul.f32 -1.442695, %v822_v48  ;;  %v18416_v48 = vld [vmem:[%s21132_s16 + $0x2084] ss:$52 sps:$4 sm:$0xff]  }
 0x246   : > { %12991 = vmatprep.subr.bf16.mxu1 %v18326_v62  ;;  %13360 = vmatprep.subr.bf16.mxu0 %v18329_v56  ;;  %v18372_v62 = vld [vmem:[%s21132_s16 + $0x1da8] ss:$52 sps:$4 sm:$0xff]   ;;  %v18375_v56 = vld [vmem:[%s21132_s16 + $0x1db0] ss:$52 sps:$4 sm:$0xff]   ;;  %v18419_v37 = vld [vmem:[%s21132_s16 + $0x208c] ss:$52 sps:$4 sm:$0xff]  }
 0x247   : > { %13021 = vmatprep.mubr.bf16.mxu1 %v21575_v51  ;;  %13390 = vmatprep.mubr.bf16.mxu0 %v21575_v51  ;;  %20706 = vpow2.f32 %v15565_v52  ;;  %v18422_v52 = vld [vmem:[%s21132_s16 + $0x20ec] ss:$52 sps:$4 sm:$0xff]  }
 0x248   : > { %20708 = vpow2.f32 %v15568_v55  ;;  %v18425_v55 = vld [vmem:[%s21132_s16 + $0x20f4] ss:$52 sps:$4 sm:$0xff]  }
 0x249   : > { %12992 = vmatpush1.bf16.msra.mxu1 %v18324_v59  ;;  %13361 = vmatpush1.bf16.msra.mxu0 %v18327_v0  ;;  %v18380_v59 = vld [vmem:[%s21132_s16 + $0x1e14] ss:$52 sps:$4 sm:$0xff]   ;;  %v18383_v0 = vld [vmem:[%s21132_s16 + $0x1e1c] ss:$52 sps:$4 sm:$0xff]  }
 0x24a   : > { %12993 = vmatprep.subr.bf16.mxu1 %v18332_v1  ;;  %13362 = vmatprep.subr.bf16.mxu0 %v18335_v2  ;;  %v18378_v1 = vld [vmem:[%s21132_s16 + $0x1e10] ss:$52 sps:$4 sm:$0xff]   ;;  %v18381_v2 = vld [vmem:[%s21132_s16 + $0x1e18] ss:$52 sps:$4 sm:$0xff]  }
 0x24d   : > { %12994 = vmatpush1.bf16.msra.mxu1 %v18330_v3  ;;  %13363 = vmatpush1.bf16.msra.mxu0 %v18333_v6  ;;  %v18386_v3 = vld [vmem:[%s21132_s16 + $0x1e7c] ss:$52 sps:$4 sm:$0xff]   ;;  %v18389_v6 = vld [vmem:[%s21132_s16 + $0x1e84] ss:$52 sps:$4 sm:$0xff]  }
 0x24e   : > { %12995 = vmatprep.subr.bf16.mxu1 %v18338_v7  ;;  %13364 = vmatprep.subr.bf16.mxu0 %v18341_v9  ;;  %v18384_v7 = vld [vmem:[%s21132_s16 + $0x1e78] ss:$52 sps:$4 sm:$0xff]   ;;  %v18387_v9 = vld [vmem:[%s21132_s16 + $0x1e80] ss:$52 sps:$4 sm:$0xff]  }
 0x251   : > { %12996 = vmatpush1.bf16.msra.mxu1 %v18336_v10  ;;  %13365 = vmatpush1.bf16.msra.mxu0 %v18339_v23  ;;  %v20707_v10 = vpop.eup %20706  ;;  %v18392_v23 = vld [vmem:[%s21132_s16 + $0x1ee4] ss:$52 sps:$4 sm:$0xff]  }
 0x252   : > { %12997 = vmatprep.subr.bf16.mxu1 %v18344_v12  ;;  %13366 = vmatprep.subr.bf16.mxu0 %v18347_v13  ;;  %v18395_v12 = vld [vmem:[%s21132_s16 + $0x1eec] ss:$52 sps:$4 sm:$0xff]   ;;  %v20709_v13 = vpop.eup %20708 }
 0x255   : > { %12998 = vmatpush1.bf16.msra.mxu1 %v18342_v17  ;;  %13367 = vmatpush1.bf16.msra.mxu0 %v18345_v20  ;;  %v18390_v17 = vld [vmem:[%s21132_s16 + $0x1ee0] ss:$52 sps:$4 sm:$0xff]   ;;  %v18393_v20 = vld [vmem:[%s21132_s16 + $0x1ee8] ss:$52 sps:$4 sm:$0xff]  }
 0x256   : > { %12999 = vmatprep.subr.bf16.mxu1 %v18350_v21  ;;  %13368 = vmatprep.subr.bf16.mxu0 %v18353_v22  ;;  %v1172_v21 = vadd.f32 1.0, %v20707_v10  ;;  %v1175_v22 = vadd.f32 1.0, %v20709_v13  ;;  %v18440_v10 = vld [vmem:[%s21132_s16 + $0x2224] ss:$52 sps:$4 sm:$0xff]   ;;  %v18441_v13 = vld [vmem:[%s21132_s16 + $0x2228] ss:$52 sps:$4 sm:$0xff]  }
 0x258   : > { %20710 = vrcp.f32 %v1172_v21  ;;  %v18449_v21 = vld [vmem:[%s21132_s16 + $0x2294] ss:$52 sps:$4 sm:$0xff]  }
 0x259   : > { %13000 = vmatpush1.bf16.msra.mxu1 %v18348_v27  ;;  %13369 = vmatpush1.bf16.msra.mxu0 %v18351_v28  ;;  %v18398_v27 = vld [vmem:[%s21132_s16 + $0x1f4c] ss:$52 sps:$4 sm:$0xff]   ;;  %v18401_v28 = vld [vmem:[%s21132_s16 + $0x1f54] ss:$52 sps:$4 sm:$0xff]   ;;  %20712 = vrcp.f32 %v1175_v22  ;;  %v18447_v22 = vld [vmem:[%s21132_s16 + $0x2290] ss:$52 sps:$4 sm:$0xff]  }
 0x25a   : > { %13001 = vmatprep.subr.bf16.mxu1 %v18356_v30  ;;  %13370 = vmatprep.subr.bf16.mxu0 %v18359_v31  ;;  %v18396_v30 = vld [vmem:[%s21132_s16 + $0x1f48] ss:$52 sps:$4 sm:$0xff]   ;;  %v18399_v31 = vld [vmem:[%s21132_s16 + $0x1f50] ss:$52 sps:$4 sm:$0xff]  }
 0x25d   : > { %13002 = vmatpush1.bf16.msra.mxu1 %v18354_v15  ;;  %13371 = vmatpush1.bf16.msra.mxu0 %v18357_v36  ;;  %v18404_v15 = vld [vmem:[%s21132_s16 + $0x1fb4] ss:$52 sps:$4 sm:$0xff]   ;;  %v18407_v36 = vld [vmem:[%s21132_s16 + $0x1fbc] ss:$52 sps:$4 sm:$0xff]  }
 0x25e   : > { %13003 = vmatprep.subr.bf16.mxu1 %v18362_v44  ;;  %13372 = vmatprep.subr.bf16.mxu0 %v18365_v45  ;;  %v18410_v44 = vld [vmem:[%s21132_s16 + $0x201c] ss:$52 sps:$4 sm:$0xff]   ;;  %v18413_v45 = vld [vmem:[%s21132_s16 + $0x2024] ss:$52 sps:$4 sm:$0xff]  }
 0x261   : > { %13004 = vmatpush1.bf16.msra.mxu1 %v18360_v46  ;;  %13373 = vmatpush1.bf16.msra.mxu0 %v18363_v47  ;;  %v18408_v46 = vld [vmem:[%s21132_s16 + $0x2018] ss:$52 sps:$4 sm:$0xff]   ;;  %v18411_v47 = vld [vmem:[%s21132_s16 + $0x2020] ss:$52 sps:$4 sm:$0xff]  }
 0x262   : > { %13005 = vmatprep.subr.bf16.mxu1 %v18368_v40  ;;  %13374 = vmatprep.subr.bf16.mxu0 %v18371_v42  ;;  %v20711_v40 = vpop.eup %20710  ;;  %v18414_v42 = vld [vmem:[%s21132_s16 + $0x2080] ss:$52 sps:$4 sm:$0xff]  }
 0x265   : > { %13006 = vmatpush1.bf16.msra.mxu1 %v18366_v25  ;;  %13375 = vmatpush1.bf16.msra.mxu0 %v18369_v50  ;;  %v20713_v25 = vpop.eup %20712  ;;  %v18417_v50 = vld [vmem:[%s21132_s16 + $0x2088] ss:$52 sps:$4 sm:$0xff]  }
 0x266   : > { %13007 = vmatprep.subr.bf16.mxu1 %v18374_v58  ;;  %13376 = vmatprep.subr.bf16.mxu0 %v18377_v8  ;;  %v21651_v58 = vpack.c.bf16 %v20711_v40, %v20711_v40  ;;  %v21653_v8 = vpack.c.bf16 %v20713_v25, %v20713_v25  ;;  %v18470_v40 = vld [vmem:[%s21132_s16 + $0x242c] ss:$52 sps:$4 sm:$0xff]   ;;  %v18473_v25 = vld [vmem:[%s21132_s16 + $0x2434] ss:$52 sps:$4 sm:$0xff]  }
 0x269   : > { %13008 = vmatpush1.bf16.msra.mxu1 %v18372_v62  ;;  %13377 = vmatpush1.bf16.msra.mxu0 %v18375_v56  ;;  %v18420_v62 = vld [vmem:[%s21132_s16 + $0x20e8] ss:$52 sps:$4 sm:$0xff]   ;;  %v18423_v56 = vld [vmem:[%s21132_s16 + $0x20f0] ss:$52 sps:$4 sm:$0xff]  }
 0x26a   : > { %13009 = vmatprep.subr.bf16.mxu1 %v18380_v59  ;;  %13378 = vmatprep.subr.bf16.mxu0 %v18383_v0  ;;  %v18428_v59 = vld [vmem:[%s21132_s16 + $0x2154] ss:$52 sps:$4 sm:$0xff]   ;;  %v18431_v0 = vld [vmem:[%s21132_s16 + $0x215c] ss:$52 sps:$4 sm:$0xff]  }
 0x26d   : > { %13010 = vmatpush1.bf16.msra.mxu1 %v18378_v1  ;;  %13379 = vmatpush1.bf16.msra.mxu0 %v18381_v2  ;;  %v18426_v1 = vld [vmem:[%s21132_s16 + $0x2150] ss:$52 sps:$4 sm:$0xff]   ;;  %v18429_v2 = vld [vmem:[%s21132_s16 + $0x2158] ss:$52 sps:$4 sm:$0xff]  }
 0x26e   : > { %13011 = vmatprep.subr.bf16.mxu1 %v18386_v3  ;;  %13380 = vmatprep.subr.bf16.mxu0 %v18389_v6  ;;  %v18434_v3 = vld [vmem:[%s21132_s16 + $0x21bc] ss:$52 sps:$4 sm:$0xff]   ;;  %v18432_v6 = vld [vmem:[%s21132_s16 + $0x21b8] ss:$52 sps:$4 sm:$0xff]  }
 0x271   : > { %13012 = vmatpush1.bf16.msra.mxu1 %v18384_v7  ;;  %13381 = vmatpush1.bf16.msra.mxu0 %v18387_v9  ;;  %v18437_v7 = vld [vmem:[%s21132_s16 + $0x21c4] ss:$52 sps:$4 sm:$0xff]   ;;  %v18435_v9 = vld [vmem:[%s21132_s16 + $0x21c0] ss:$52 sps:$4 sm:$0xff]  }
 0x272   : > { %13013 = vmatprep.subr.bf16.mxu1 %v18392_v23  ;;  %13382 = vmatprep.subr.bf16.mxu0 %v18395_v12  ;;  %v18438_v23 = vld [vmem:[%s21132_s16 + $0x2220] ss:$52 sps:$4 sm:$0xff]  }
 0x273   : > { %v18443_v12 = vld [vmem:[%s21132_s16 + $0x222c] ss:$52 sps:$4 sm:$0xff]  }
 0x275   : > { %13014 = vmatpush1.bf16.msra.mxu1 %v18390_v17  ;;  %13383 = vmatpush1.bf16.msra.mxu0 %v18393_v20  ;;  %v18446_v17 = vld [vmem:[%s21132_s16 + $0x228c] ss:$52 sps:$4 sm:$0xff]   ;;  %v18444_v20 = vld [vmem:[%s21132_s16 + $0x2288] ss:$52 sps:$4 sm:$0xff]  }
 0x276   : > { %13015 = vmatprep.subr.bf16.mxu1 %v18398_v27  ;;  %13384 = vmatprep.subr.bf16.mxu0 %v18401_v28  ;;  %v18452_v27 = vld [vmem:[%s21132_s16 + $0x22f4] ss:$52 sps:$4 sm:$0xff]   ;;  %v18450_v28 = vld [vmem:[%s21132_s16 + $0x22f0] ss:$52 sps:$4 sm:$0xff]  }
 0x279   : > { %13016 = vmatpush1.bf16.msra.mxu1 %v18396_v30  ;;  %13385 = vmatpush1.bf16.msra.mxu0 %v18399_v31  ;;  %v18455_v30 = vld [vmem:[%s21132_s16 + $0x22fc] ss:$52 sps:$4 sm:$0xff]   ;;  %v18453_v31 = vld [vmem:[%s21132_s16 + $0x22f8] ss:$52 sps:$4 sm:$0xff]  }
 0x27a   : > { %13017 = vmatprep.subr.bf16.mxu1 %v18404_v15  ;;  %13386 = vmatprep.subr.bf16.mxu0 %v18407_v36  ;;  %v18458_v15 = vld [vmem:[%s21132_s16 + $0x235c] ss:$52 sps:$4 sm:$0xff]   ;;  %v18456_v36 = vld [vmem:[%s21132_s16 + $0x2358] ss:$52 sps:$4 sm:$0xff]  }
 0x27d   : > { %13018 = vmatpush1.bf16.msra.mxu1 %v18402_v39  ;;  %13387 = vmatpush1.bf16.msra.mxu0 %v18405_v43  ;;  %v18461_v39 = vld [vmem:[%s21132_s16 + $0x2364] ss:$52 sps:$4 sm:$0xff]   ;;  %v18459_v43 = vld [vmem:[%s21132_s16 + $0x2360] ss:$52 sps:$4 sm:$0xff]  }
 0x27e   : > { %13019 = vmatprep.subr.bf16.mxu1 %v18410_v44  ;;  %13388 = vmatprep.subr.bf16.mxu0 %v18413_v45  ;;  %v18464_v44 = vld [vmem:[%s21132_s16 + $0x23c4] ss:$52 sps:$4 sm:$0xff]   ;;  %v18462_v45 = vld [vmem:[%s21132_s16 + $0x23c0] ss:$52 sps:$4 sm:$0xff]  }
 0x281   : > { %13020 = vmatpush1.bf16.msra.mxu1 %v18408_v46  ;;  %13389 = vmatpush1.bf16.msra.mxu0 %v18411_v47  ;;  %v18467_v46 = vld [vmem:[%s21132_s16 + $0x23cc] ss:$52 sps:$4 sm:$0xff]   ;;  %v15567_v47 = vmul.f32 -1.442695, %v21376_v5  ;;  %v18471_v5 = vld [vmem:[%s21132_s16 + $0x2430] ss:$52 sps:$4 sm:$0xff]  }
 0x282   : > { %13030 = vmatprep.subr.bf16.mxu1 %v18416_v48  ;;  %13399 = vmatprep.subr.bf16.mxu0 %v18419_v37  ;;  %v15570_v48 = vmul.f32 -1.442695, %v21396_v35  ;;  %v18465_v37 = vld [vmem:[%s21132_s16 + $0x23c8] ss:$52 sps:$4 sm:$0xff]  }
 0x283   : > { %20714 = vpow2.f32 %v15567_v47  ;;  %v18476_v35 = vld [vmem:[%s21132_s16 + $0x2494] ss:$52 sps:$4 sm:$0xff]  }
 0x284   : > { %13022 = vmatmul.mubr.bf16.vlgmr.msra.gmra.mrb[4].mxu1 %v21651_v58  ;;  %13391 = vmatmul.mubr.bf16.vlgmr.msra.gmra.mrb[16].mxu0 %v21651_v58  ;;  %20716 = vpow2.f32 %v15570_v48  ;;  %v18518_v48 = vld [vmem:[%s21132_s16 + $0x276c] ss:$52 sps:$4 sm:$0xff]  }
 0x285   : > { %13031 = vmatpush1.bf16.msra.mxu1 %v18414_v42  ;;  %13062 = vmatprep.mubr.bf16.mxu1 %v21653_v8  ;;  %v18468_v42 = vld [vmem:[%s21132_s16 + $0x2428] ss:$52 sps:$4 sm:$0xff]  }
 0x286   : > { %13400 = vmatpush1.bf16.msra.mxu0 %v18417_v50  ;;  %13431 = vmatprep.mubr.bf16.mxu0 %v21653_v8  ;;  %v18474_v50 = vld [vmem:[%s21132_s16 + $0x2490] ss:$52 sps:$4 sm:$0xff]  }
 0x287   : > { %13032 = vmatprep.subr.bf16.mxu1 %v18422_v52  ;;  %13401 = vmatprep.subr.bf16.mxu0 %v18425_v55  ;;  %v18479_v52 = vld [vmem:[%s21132_s16 + $0x249c] ss:$52 sps:$4 sm:$0xff]   ;;  %v18477_v55 = vld [vmem:[%s21132_s16 + $0x2498] ss:$52 sps:$4 sm:$0xff]  }
 0x289   : > { %13033 = vmatpush1.bf16.msra.mxu1 %v18420_v62  ;;  %v18482_v62 = vld [vmem:[%s21132_s16 + $0x24fc] ss:$52 sps:$4 sm:$0xff]  }
 0x28a   : > { %13402 = vmatpush1.bf16.msra.mxu0 %v18423_v56  ;;  %13034 = vmatprep.subr.bf16.mxu1 %v18428_v59  ;;  %v18480_v56 = vld [vmem:[%s21132_s16 + $0x24f8] ss:$52 sps:$4 sm:$0xff]  }
 0x28b   : > { %13403 = vmatprep.subr.bf16.mxu0 %v18431_v0  ;;  %v18485_v59 = vld [vmem:[%s21132_s16 + $0x2504] ss:$52 sps:$4 sm:$0xff]  }
 0x28d   : > { %13035 = vmatpush1.bf16.msra.mxu1 %v18426_v1  ;;  %v20715_v0 = vpop.eup %20714  ;;  %v18483_v1 = vld [vmem:[%s21132_s16 + $0x2500] ss:$52 sps:$4 sm:$0xff]  }
 0x28e   : > { %13404 = vmatpush1.bf16.msra.mxu0 %v18429_v2  ;;  %13036 = vmatprep.subr.bf16.mxu1 %v18434_v3  ;;  %v18488_v2 = vld [vmem:[%s21132_s16 + $0x2564] ss:$52 sps:$4 sm:$0xff]   ;;  %v18486_v3 = vld [vmem:[%s21132_s16 + $0x2560] ss:$52 sps:$4 sm:$0xff]  }
 0x28f   : > { %13405 = vmatprep.subr.bf16.mxu0 %v18437_v7  ;;  %v20717_v7 = vpop.eup %20716 }
 0x291   : > { %13037 = vmatpush1.bf16.msra.mxu1 %v18432_v6  ;;  %v18491_v6 = vld [vmem:[%s21132_s16 + $0x256c] ss:$52 sps:$4 sm:$0xff]  }
 0x292   : > { %13406 = vmatpush1.bf16.msra.mxu0 %v18435_v9  ;;  %13038 = vmatprep.subr.bf16.mxu1 %v18440_v10  ;;  %v1174_v9 = vadd.f32 1.0, %v20715_v0  ;;  %v18489_v10 = vld [vmem:[%s21132_s16 + $0x2568] ss:$52 sps:$4 sm:$0xff]   ;;  %v18531_v0 = vld [vmem:[%s21132_s16 + $0x2840] ss:$52 sps:$4 sm:$0xff]  }
 0x293   : > { %13407 = vmatprep.subr.bf16.mxu0 %v18443_v12  ;;  %v1177_v12 = vadd.f32 1.0, %v20717_v7  ;;  %v18542_v7 = vld [vmem:[%s21132_s16 + $0x290c] ss:$52 sps:$4 sm:$0xff]  }
 0x294   : > { %20718 = vrcp.f32 %v1174_v9  ;;  %v18540_v9 = vld [vmem:[%s21132_s16 + $0x2908] ss:$52 sps:$4 sm:$0xff]  }
 0x295   : > { %13039 = vmatpush1.bf16.msra.mxu1 %v18438_v23  ;;  %v18494_v23 = vld [vmem:[%s21132_s16 + $0x25cc] ss:$52 sps:$4 sm:$0xff]   ;;  %20720 = vrcp.f32 %v1177_v12  ;;  %v18548_v12 = vld [vmem:[%s21132_s16 + $0x2974] ss:$52 sps:$4 sm:$0xff]  }
 0x296   : > { %13408 = vmatpush1.bf16.msra.mxu0 %v18441_v13  ;;  %13040 = vmatprep.subr.bf16.mxu1 %v18446_v17  ;;  %v18492_v13 = vld [vmem:[%s21132_s16 + $0x25c8] ss:$52 sps:$4 sm:$0xff]  }
 0x297   : > { %13409 = vmatprep.subr.bf16.mxu0 %v18449_v21  ;;  %v18497_v17 = vld [vmem:[%s21132_s16 + $0x25d4] ss:$52 sps:$4 sm:$0xff]  }
 0x298   : > { %v18500_v21 = vld [vmem:[%s21132_s16 + $0x2634] ss:$52 sps:$4 sm:$0xff]  }
 0x299   : > { %13041 = vmatpush1.bf16.msra.mxu1 %v18444_v20  ;;  %v18495_v20 = vld [vmem:[%s21132_s16 + $0x25d0] ss:$52 sps:$4 sm:$0xff]  }
 0x29a   : > { %13410 = vmatpush1.bf16.msra.mxu0 %v18447_v22  ;;  %13042 = vmatprep.subr.bf16.mxu1 %v18452_v27  ;;  %v18498_v22 = vld [vmem:[%s21132_s16 + $0x2630] ss:$52 sps:$4 sm:$0xff]  }
 0x29b   : > { %13411 = vmatprep.subr.bf16.mxu0 %v18455_v30  ;;  %v18503_v27 = vld [vmem:[%s21132_s16 + $0x263c] ss:$52 sps:$4 sm:$0xff]  }
 0x29c   : > { %v18506_v30 = vld [vmem:[%s21132_s16 + $0x269c] ss:$52 sps:$4 sm:$0xff]  }
 0x29d   : > { %13043 = vmatpush1.bf16.msra.mxu1 %v18450_v28  ;;  %v18501_v28 = vld [vmem:[%s21132_s16 + $0x2638] ss:$52 sps:$4 sm:$0xff]  }
 0x29e   : > { %13412 = vmatpush1.bf16.msra.mxu0 %v18453_v31  ;;  %13044 = vmatprep.subr.bf16.mxu1 %v18458_v15  ;;  %v18504_v31 = vld [vmem:[%s21132_s16 + $0x2698] ss:$52 sps:$4 sm:$0xff]  }
 0x29f   : > { %13413 = vmatprep.subr.bf16.mxu0 %v18461_v39  ;;  %v18509_v15 = vld [vmem:[%s21132_s16 + $0x26a4] ss:$52 sps:$4 sm:$0xff]  }
 0x2a0   : > { %v18512_v39 = vld [vmem:[%s21132_s16 + $0x2704] ss:$52 sps:$4 sm:$0xff]  }
 0x2a1   : > { %13045 = vmatpush1.bf16.msra.mxu1 %v18456_v36  ;;  %v18507_v36 = vld [vmem:[%s21132_s16 + $0x26a0] ss:$52 sps:$4 sm:$0xff]  }
 0x2a2   : > { %13414 = vmatpush1.bf16.msra.mxu0 %v18459_v43  ;;  %13046 = vmatprep.subr.bf16.mxu1 %v18464_v44  ;;  %v18515_v43 = vld [vmem:[%s21132_s16 + $0x270c] ss:$52 sps:$4 sm:$0xff]   ;;  %v20719_v44 = vpop.eup %20718 }
 0x2a3   : > { %13415 = vmatprep.subr.bf16.mxu0 %v18467_v46  ;;  %v18513_v46 = vld [vmem:[%s21132_s16 + $0x2708] ss:$52 sps:$4 sm:$0xff]   ;;  %v20721_v47 = vpop.eup %20720 }
 0x2a5   : > { %13047 = vmatpush1.bf16.msra.mxu1 %v18462_v45  ;;  %v18510_v45 = vld [vmem:[%s21132_s16 + $0x2700] ss:$52 sps:$4 sm:$0xff]  }
 0x2a6   : > { %13416 = vmatpush1.bf16.msra.mxu0 %v18465_v37  ;;  %13048 = vmatprep.subr.bf16.mxu1 %v18470_v40  ;;  %v21724_v37 = vpack.c.bf16 %v20719_v44, %v20719_v44  ;;  %v21726_v40 = vpack.c.bf16 %v20721_v47, %v20721_v47  ;;  %v18566_v44 = vld [vmem:[%s21132_s16 + $0x2aac] ss:$52 sps:$4 sm:$0xff]   ;;  %v18570_v47 = vld [vmem:[%s21132_s16 + $0x2b10] ss:$52 sps:$4 sm:$0xff]  }
 0x2a7   : > { %13417 = vmatprep.subr.bf16.mxu0 %v18473_v25  ;;  %v18519_v25 = vld [vmem:[%s21132_s16 + $0x2770] ss:$52 sps:$4 sm:$0xff]  }
 0x2a9   : > { %13049 = vmatpush1.bf16.msra.mxu1 %v18468_v42  ;;  %v18516_v42 = vld [vmem:[%s21132_s16 + $0x2768] ss:$52 sps:$4 sm:$0xff]  }
 0x2aa   : > { %13418 = vmatpush1.bf16.msra.mxu0 %v18471_v5  ;;  %13050 = vmatprep.subr.bf16.mxu1 %v18476_v35  ;;  %v18521_v5 = vld [vmem:[%s21132_s16 + $0x2774] ss:$52 sps:$4 sm:$0xff]  }
 0x2ab   : > { %13419 = vmatprep.subr.bf16.mxu0 %v18479_v52  ;;  %v18524_v35 = vld [vmem:[%s21132_s16 + $0x27d4] ss:$52 sps:$4 sm:$0xff]   ;;  %v18522_v52 = vld [vmem:[%s21132_s16 + $0x27d0] ss:$52 sps:$4 sm:$0xff]  }
 0x2ad   : > { %13051 = vmatpush1.bf16.msra.mxu1 %v18474_v50  ;;  %v18527_v50 = vld [vmem:[%s21132_s16 + $0x27dc] ss:$52 sps:$4 sm:$0xff]  }
 0x2ae   : > { %13420 = vmatpush1.bf16.msra.mxu0 %v18477_v55  ;;  %13052 = vmatprep.subr.bf16.mxu1 %v18482_v62  ;;  %v18525_v55 = vld [vmem:[%s21132_s16 + $0x27d8] ss:$52 sps:$4 sm:$0xff]   ;;  %v18530_v62 = vld [vmem:[%s21132_s16 + $0x283c] ss:$52 sps:$4 sm:$0xff]  }
 0x2af   : > { %13421 = vmatprep.subr.bf16.mxu0 %v18485_v59  ;;  %v18533_v59 = vld [vmem:[%s21132_s16 + $0x2844] ss:$52 sps:$4 sm:$0xff]  }
 0x2b1   : > { %13053 = vmatpush1.bf16.msra.mxu1 %v18480_v56  ;;  %v18528_v56 = vld [vmem:[%s21132_s16 + $0x2838] ss:$52 sps:$4 sm:$0xff]  }
 0x2b2   : > { %13422 = vmatpush1.bf16.msra.mxu0 %v18483_v1  ;;  %13054 = vmatprep.subr.bf16.mxu1 %v18488_v2  ;;  %v18536_v1 = vld [vmem:[%s21132_s16 + $0x28a4] ss:$52 sps:$4 sm:$0xff]   ;;  %v18534_v2 = vld [vmem:[%s21132_s16 + $0x28a0] ss:$52 sps:$4 sm:$0xff]  }
 0x2b3   : > { %13423 = vmatprep.subr.bf16.mxu0 %v18491_v6  ;;  %v18537_v6 = vld [vmem:[%s21132_s16 + $0x28a8] ss:$52 sps:$4 sm:$0xff]  }
 0x2b5   : > { %13055 = vmatpush1.bf16.msra.mxu1 %v18486_v3  ;;  %v18539_v3 = vld [vmem:[%s21132_s16 + $0x28ac] ss:$52 sps:$4 sm:$0xff]  }
 0x2b6   : > { %13424 = vmatpush1.bf16.msra.mxu0 %v18489_v10  ;;  %13056 = vmatprep.subr.bf16.mxu1 %v18494_v23  ;;  %v18545_v10 = vld [vmem:[%s21132_s16 + $0x2914] ss:$52 sps:$4 sm:$0xff]   ;;  %v18543_v23 = vld [vmem:[%s21132_s16 + $0x2910] ss:$52 sps:$4 sm:$0xff]  }
 0x2b7   : > { %13425 = vmatprep.subr.bf16.mxu0 %v18497_v17  ;;  %v18551_v17 = vld [vmem:[%s21132_s16 + $0x297c] ss:$52 sps:$4 sm:$0xff]  }
 0x2b9   : > { %13057 = vmatpush1.bf16.msra.mxu1 %v18492_v13  ;;  %v18546_v13 = vld [vmem:[%s21132_s16 + $0x2970] ss:$52 sps:$4 sm:$0xff]  }
 0x2ba   : > { %13426 = vmatpush1.bf16.msra.mxu0 %v18495_v20  ;;  %13058 = vmatprep.subr.bf16.mxu1 %v18500_v21  ;;  %v18549_v20 = vld [vmem:[%s21132_s16 + $0x2978] ss:$52 sps:$4 sm:$0xff]   ;;  %v18554_v21 = vld [vmem:[%s21132_s16 + $0x29dc] ss:$52 sps:$4 sm:$0xff]  }
 0x2bb   : > { %13427 = vmatprep.subr.bf16.mxu0 %v18503_v27  ;;  %v18557_v27 = vld [vmem:[%s21132_s16 + $0x29e4] ss:$52 sps:$4 sm:$0xff]  }
 0x2bd   : > { %13059 = vmatpush1.bf16.msra.mxu1 %v18498_v22  ;;  %v18552_v22 = vld [vmem:[%s21132_s16 + $0x29d8] ss:$52 sps:$4 sm:$0xff]  }
 0x2be   : > { %13428 = vmatpush1.bf16.msra.mxu0 %v18501_v28  ;;  %13060 = vmatprep.subr.bf16.mxu1 %v18506_v30  ;;  %v18555_v28 = vld [vmem:[%s21132_s16 + $0x29e0] ss:$52 sps:$4 sm:$0xff]   ;;  %v18560_v30 = vld [vmem:[%s21132_s16 + $0x2a44] ss:$52 sps:$4 sm:$0xff]  }
 0x2bf   : > { %13429 = vmatprep.subr.bf16.mxu0 %v18509_v15  ;;  %v18563_v15 = vld [vmem:[%s21132_s16 + $0x2a4c] ss:$52 sps:$4 sm:$0xff]  }
 0x2c1   : > { %13061 = vmatpush1.bf16.msra.mxu1 %v18504_v31  ;;  %v18558_v31 = vld [vmem:[%s21132_s16 + $0x2a40] ss:$52 sps:$4 sm:$0xff]  }
 0x2c2   : > { %13430 = vmatpush1.bf16.msra.mxu0 %v18507_v36  ;;  %13071 = vmatprep.subr.bf16.mxu1 %v18512_v39  ;;  %v15569_v36 = vmul.f32 -1.442695, %v21386_v19  ;;  %v15572_v39 = vmul.f32 -1.442695, %v21341_v34  ;;  %v18567_v19 = vld [vmem:[%s21132_s16 + $0x2ab0] ss:$52 sps:$4 sm:$0xff]  }
 0x2c3   : > { %13440 = vmatprep.subr.bf16.mxu0 %v18515_v43  ;;  %v18561_v43 = vld [vmem:[%s21132_s16 + $0x2a48] ss:$52 sps:$4 sm:$0xff]  }
 0x2c4   : > { %13063 = vmatmul.mubr.bf16.vlgmr.msra.gmra.mrb[4].mxu1 %v21724_v37  ;;  %20722 = vpow2.f32 %v15569_v36  ;;  %v18572_v34 = vld [vmem:[%s21132_s16 + $0x2b14] ss:$52 sps:$4 sm:$0xff]  }
 0x2c5   : > { %13432 = vmatmul.mubr.bf16.vlgmr.msra.gmra.mrb[16].mxu0 %v21724_v37  ;;  %13072 = vmatpush1.bf16.msra.mxu1 %v18510_v45  ;;  %v18564_v45 = vld [vmem:[%s21132_s16 + $0x2aa8] ss:$52 sps:$4 sm:$0xff]   ;;  %20724 = vpow2.f32 %v15572_v39  ;;  %v18614_v39 = vld [vmem:[%s21132_s16 + $0x2dec] ss:$52 sps:$4 sm:$0xff]  }
 0x2c6   : > { %13103 = vmatprep.mubr.bf16.mxu1 %v21726_v40  ;;  %13441 = vmatpush1.bf16.msra.mxu0 %v18513_v46  ;;  %v18569_v46 = vld [vmem:[%s21132_s16 + $0x2ab4] ss:$52 sps:$4 sm:$0xff]  }
 0x2c7   : > { %13472 = vmatprep.mubr.bf16.mxu0 %v21726_v40  ;;  %13073 = vmatprep.subr.bf16.mxu1 %v18518_v48  ;;  %v18575_v48 = vld [vmem:[%s21132_s16 + $0x2b1c] ss:$52 sps:$4 sm:$0xff]  }
 0x2c8   : > { %13442 = vmatprep.subr.bf16.mxu0 %v18521_v5  ;;  %v18576_v5 = vld [vmem:[%s21132_s16 + $0x2b78] ss:$52 sps:$4 sm:$0xff]  }
 0x2c9   : > { %13074 = vmatpush1.bf16.msra.mxu1 %v18516_v42  ;;  %v18573_v42 = vld [vmem:[%s21132_s16 + $0x2b18] ss:$52 sps:$4 sm:$0xff]  }
 0x2ca   : > { %13443 = vmatpush1.bf16.msra.mxu0 %v18519_v25  ;;  %13075 = vmatprep.subr.bf16.mxu1 %v18524_v35  ;;  %v18578_v25 = vld [vmem:[%s21132_s16 + $0x2b7c] ss:$52 sps:$4 sm:$0xff]   ;;  %v18581_v35 = vld [vmem:[%s21132_s16 + $0x2b84] ss:$52 sps:$4 sm:$0xff]  }
 0x2cb   : > { %13444 = vmatprep.subr.bf16.mxu0 %v18527_v50 }
 0x2cd   : > { %13076 = vmatpush1.bf16.msra.mxu1 %v18522_v52  ;;  %v18579_v52 = vld [vmem:[%s21132_s16 + $0x2b80] ss:$52 sps:$4 sm:$0xff]  }
 0x2ce   : > { %13445 = vmatpush1.bf16.msra.mxu0 %v18525_v55  ;;  %13077 = vmatprep.subr.bf16.mxu1 %v18530_v62  ;;  %v20723_v50 = vpop.eup %20722  ;;  %v18584_v55 = vld [vmem:[%s21132_s16 + $0x2be4] ss:$52 sps:$4 sm:$0xff]   ;;  %v18582_v62 = vld [vmem:[%s21132_s16 + $0x2be0] ss:$52 sps:$4 sm:$0xff]  }
 0x2cf   : > { %13446 = vmatprep.subr.bf16.mxu0 %v18533_v59  ;;  %v20725_v59 = vpop.eup %20724 }
 0x2d1   : > { %13078 = vmatpush1.bf16.msra.mxu1 %v18528_v56  ;;  %v18587_v56 = vld [vmem:[%s21132_s16 + $0x2bec] ss:$52 sps:$4 sm:$0xff]  }
 0x2d2   : > { %13447 = vmatpush1.bf16.msra.mxu0 %v18531_v0  ;;  %13079 = vmatprep.subr.bf16.mxu1 %v18536_v1  ;;  %v1176_v0 = vadd.f32 1.0, %v20723_v50  ;;  %v18585_v1 = vld [vmem:[%s21132_s16 + $0x2be8] ss:$52 sps:$4 sm:$0xff]   ;;  %v18627_v50 = vld [vmem:[%s21132_s16 + $0x2ec0] ss:$52 sps:$4 sm:$0xff]  }
 0x2d3   : > { %13448 = vmatprep.subr.bf16.mxu0 %v18539_v3  ;;  %v1179_v3 = vadd.f32 1.0, %v20725_v59  ;;  %v18638_v59 = vld [vmem:[%s21132_s16 + $0x2f8c] ss:$52 sps:$4 sm:$0xff]  }
 0x2d4   : > { %20726 = vrcp.f32 %v1176_v0  ;;  %v18636_v0 = vld [vmem:[%s21132_s16 + $0x2f88] ss:$52 sps:$4 sm:$0xff]  }
 0x2d5   : > { %13080 = vmatpush1.bf16.msra.mxu1 %v18534_v2  ;;  %v18590_v2 = vld [vmem:[%s21132_s16 + $0x2c4c] ss:$52 sps:$4 sm:$0xff]   ;;  %20728 = vrcp.f32 %v1179_v3  ;;  %v18639_v3 = vld [vmem:[%s21132_s16 + $0x2f90] ss:$52 sps:$4 sm:$0xff]  }
 0x2d6   : > { %13449 = vmatpush1.bf16.msra.mxu0 %v18537_v6  ;;  %13081 = vmatprep.subr.bf16.mxu1 %v18542_v7  ;;  %v18588_v6 = vld [vmem:[%s21132_s16 + $0x2c48] ss:$52 sps:$4 sm:$0xff]  }
 0x2d7   : > { %13450 = vmatprep.subr.bf16.mxu0 %v18545_v10  ;;  %v18593_v7 = vld [vmem:[%s21132_s16 + $0x2c54] ss:$52 sps:$4 sm:$0xff]  }
 0x2d8   : > { %v18596_v10 = vld [vmem:[%s21132_s16 + $0x2cb4] ss:$52 sps:$4 sm:$0xff]  }
 0x2d9   : > { %13082 = vmatpush1.bf16.msra.mxu1 %v18540_v9  ;;  %v18591_v9 = vld [vmem:[%s21132_s16 + $0x2c50] ss:$52 sps:$4 sm:$0xff]  }
 0x2da   : > { %13451 = vmatpush1.bf16.msra.mxu0 %v18543_v23  ;;  %13083 = vmatprep.subr.bf16.mxu1 %v18548_v12  ;;  %v18594_v23 = vld [vmem:[%s21132_s16 + $0x2cb0] ss:$52 sps:$4 sm:$0xff]  }
 0x2db   : > { %13452 = vmatprep.subr.bf16.mxu0 %v18551_v17  ;;  %v18599_v12 = vld [vmem:[%s21132_s16 + $0x2cbc] ss:$52 sps:$4 sm:$0xff]  }
 0x2dc   : > { %v18602_v17 = vld [vmem:[%s21132_s16 + $0x2d1c] ss:$52 sps:$4 sm:$0xff]  }
 0x2dd   : > { %13084 = vmatpush1.bf16.msra.mxu1 %v18546_v13  ;;  %v18597_v13 = vld [vmem:[%s21132_s16 + $0x2cb8] ss:$52 sps:$4 sm:$0xff]  }
 0x2de   : > { %13453 = vmatpush1.bf16.msra.mxu0 %v18549_v20  ;;  %13085 = vmatprep.subr.bf16.mxu1 %v18554_v21  ;;  %v18600_v20 = vld [vmem:[%s21132_s16 + $0x2d18] ss:$52 sps:$4 sm:$0xff]  }
 0x2df   : > { %13454 = vmatprep.subr.bf16.mxu0 %v18557_v27  ;;  %v18605_v21 = vld [vmem:[%s21132_s16 + $0x2d24] ss:$52 sps:$4 sm:$0xff]  }
 0x2e0   : > { %v18608_v27 = vld [vmem:[%s21132_s16 + $0x2d84] ss:$52 sps:$4 sm:$0xff]  }
 0x2e1   : > { %13086 = vmatpush1.bf16.msra.mxu1 %v18552_v22  ;;  %v18603_v22 = vld [vmem:[%s21132_s16 + $0x2d20] ss:$52 sps:$4 sm:$0xff]  }
 0x2e2   : > { %13455 = vmatpush1.bf16.msra.mxu0 %v18555_v28  ;;  %13087 = vmatprep.subr.bf16.mxu1 %v18560_v30  ;;  %v20727_v28 = vpop.eup %20726  ;;  %v18606_v30 = vld [vmem:[%s21132_s16 + $0x2d80] ss:$52 sps:$4 sm:$0xff]  }
 0x2e3   : > { %13456 = vmatprep.subr.bf16.mxu0 %v18563_v15  ;;  %v18609_v15 = vld [vmem:[%s21132_s16 + $0x2d88] ss:$52 sps:$4 sm:$0xff]   ;;  %v20729_v36 = vpop.eup %20728 }
 0x2e5   : > { %13088 = vmatpush1.bf16.msra.mxu1 %v18558_v31  ;;  %v18611_v31 = vld [vmem:[%s21132_s16 + $0x2d8c] ss:$52 sps:$4 sm:$0xff]  }
 0x2e6   : > { %13457 = vmatpush1.bf16.msra.mxu0 %v18561_v43  ;;  %13089 = vmatprep.subr.bf16.mxu1 %v18566_v44  ;;  %v21798_v43 = vpack.c.bf16 %v20727_v28, %v20727_v28  ;;  %v21800_v44 = vpack.c.bf16 %v20729_v36, %v20729_v36  ;;  %v18659_v28 = vld [vmem:[%s21132_s16 + $0x30cc] ss:$52 sps:$4 sm:$0xff]   ;;  %v18660_v36 = vld [vmem:[%s21132_s16 + $0x3128] ss:$52 sps:$4 sm:$0xff]  }
 0x2e7   : > { %13458 = vmatprep.subr.bf16.mxu0 %v18569_v46  ;;  %v18617_v46 = vld [vmem:[%s21132_s16 + $0x2df4] ss:$52 sps:$4 sm:$0xff]  }
 0x2e9   : > { %13090 = vmatpush1.bf16.msra.mxu1 %v18564_v45  ;;  %v18612_v45 = vld [vmem:[%s21132_s16 + $0x2de8] ss:$52 sps:$4 sm:$0xff]  }
 0x2ea   : > { %13459 = vmatpush1.bf16.msra.mxu0 %v18567_v19  ;;  %13091 = vmatprep.subr.bf16.mxu1 %v18572_v34  ;;  %v18615_v19 = vld [vmem:[%s21132_s16 + $0x2df0] ss:$52 sps:$4 sm:$0xff]   ;;  %v18620_v34 = vld [vmem:[%s21132_s16 + $0x2e54] ss:$52 sps:$4 sm:$0xff]  }
 0x2eb   : > { %13460 = vmatprep.subr.bf16.mxu0 %v18575_v48  ;;  %v18618_v48 = vld [vmem:[%s21132_s16 + $0x2e50] ss:$52 sps:$4 sm:$0xff]  }
 0x2ed   : > { %13092 = vmatpush1.bf16.msra.mxu1 %v18570_v47  ;;  %v18623_v47 = vld [vmem:[%s21132_s16 + $0x2e5c] ss:$52 sps:$4 sm:$0xff]  }
 0x2ee   : > { %13461 = vmatpush1.bf16.msra.mxu0 %v18573_v42  ;;  %13093 = vmatprep.subr.bf16.mxu1 %v18578_v25  ;;  %v18621_v42 = vld [vmem:[%s21132_s16 + $0x2e58] ss:$52 sps:$4 sm:$0xff]   ;;  %v18626_v25 = vld [vmem:[%s21132_s16 + $0x2ebc] ss:$52 sps:$4 sm:$0xff]  }
 0x2ef   : > { %13462 = vmatprep.subr.bf16.mxu0 %v18581_v35  ;;  %v18629_v35 = vld [vmem:[%s21132_s16 + $0x2ec4] ss:$52 sps:$4 sm:$0xff]  }
 0x2f1   : > { %13094 = vmatpush1.bf16.msra.mxu1 %v18576_v5  ;;  %v18624_v5 = vld [vmem:[%s21132_s16 + $0x2eb8] ss:$52 sps:$4 sm:$0xff]  }
 0x2f2   : > { %13463 = vmatpush1.bf16.msra.mxu0 %v18579_v52  ;;  %13095 = vmatprep.subr.bf16.mxu1 %v18584_v55  ;;  %v18632_v52 = vld [vmem:[%s21132_s16 + $0x2f24] ss:$52 sps:$4 sm:$0xff]   ;;  %v18630_v55 = vld [vmem:[%s21132_s16 + $0x2f20] ss:$52 sps:$4 sm:$0xff]  }
 0x2f3   : > { %13464 = vmatprep.subr.bf16.mxu0 %v18587_v56  ;;  %v18633_v56 = vld [vmem:[%s21132_s16 + $0x2f28] ss:$52 sps:$4 sm:$0xff]  }
 0x2f5   : > { %13096 = vmatpush1.bf16.msra.mxu1 %v18582_v62  ;;  %v18635_v62 = vld [vmem:[%s21132_s16 + $0x2f2c] ss:$52 sps:$4 sm:$0xff]  }
 0x2f6   : > { %13465 = vmatpush1.bf16.msra.mxu0 %v18585_v1  ;;  %13097 = vmatprep.subr.bf16.mxu1 %v18590_v2  ;;  %v18641_v1 = vld [vmem:[%s21132_s16 + $0x2f94] ss:$52 sps:$4 sm:$0xff]   ;;  %v21824_v2 = vld [vmem:[#allocation4 + $0x10] sm:$0x3] }
 0x2f7   : > { %13466 = vmatprep.subr.bf16.mxu0 %v18593_v7  ;;  %v18642_v7 = vld [vmem:[%s21132_s16 + $0x2ff0] ss:$52 sps:$4 sm:$0xff]  }
 0x2f9   : > { %13098 = vmatpush1.bf16.msra.mxu1 %v18588_v6  ;;  %v18644_v6 = vld [vmem:[%s21132_s16 + $0x2ff4] ss:$52 sps:$4 sm:$0xff]  }
 0x2fa   : > { %13467 = vmatpush1.bf16.msra.mxu0 %v18591_v9  ;;  %13099 = vmatprep.subr.bf16.mxu1 %v18596_v10  ;;  %v18647_v9 = vld [vmem:[%s21132_s16 + $0x2ffc] ss:$52 sps:$4 sm:$0xff]   ;;  %v393_v10 = vrot.slane %v21824_v2, %v21262_v26 }
 0x2fb   : > { %13468 = vmatprep.subr.bf16.mxu0 %v18599_v12  ;;  %v18650_v12 = vld [vmem:[%s21132_s16 + $0x305c] ss:$52 sps:$4 sm:$0xff]  }
 0x2fd   : > { %13100 = vmatpush1.bf16.msra.mxu1 %v18594_v23  ;;  %v18645_v23 = vld [vmem:[%s21132_s16 + $0x2ff8] ss:$52 sps:$4 sm:$0xff]  }
 0x2fe   : > { %13469 = vmatpush1.bf16.msra.mxu0 %v18597_v13  ;;  %13101 = vmatprep.subr.bf16.mxu1 %v18602_v17  ;;  %v18648_v13 = vld [vmem:[%s21132_s16 + $0x3058] ss:$52 sps:$4 sm:$0xff]  }
 0x2ff   : > { %13470 = vmatprep.subr.bf16.mxu0 %v18605_v21  ;;  %v18653_v17 = vld [vmem:[%s21132_s16 + $0x3064] ss:$52 sps:$4 sm:$0xff]   ;;  %v18651_v21 = vld [vmem:[%s21132_s16 + $0x3060] ss:$52 sps:$4 sm:$0xff]  }
 0x301   : > { %13102 = vmatpush1.bf16.msra.mxu1 %v18600_v20  ;;  %v1108_v20 = vadd.f32 %v21400_v38, %v393_v10  ;;  %v18657_v38 = vld [vmem:[%s21132_s16 + $0x30c8] ss:$52 sps:$4 sm:$0xff]  }
 0x302   : > { %13471 = vmatpush1.bf16.msra.mxu0 %v18603_v22  ;;  %13112 = vmatprep.subr.bf16.mxu1 %v18608_v27  ;;  %v18656_v22 = vld [vmem:[%s21132_s16 + $0x30c4] ss:$52 sps:$4 sm:$0xff]   ;;  %v18654_v27 = vld [vmem:[%s21132_s16 + $0x30c0] ss:$52 sps:$4 sm:$0xff]   ;;  %v18695_v10 = vld [vmem:[%s21132_s16 + $0x333c] ss:$52 sps:$4 sm:$0xff]  }
 0x303   : > { %13481 = vmatprep.subr.bf16.mxu0 %v18611_v31  ;;  %v15574_v31 = vmul.f32 -1.442695, %v1108_v20  ;;  %v18699_v20 = vld [vmem:[%s21132_s16 + $0x33a0] ss:$52 sps:$4 sm:$0xff]  }
 0x304   : > { %13104 = vmatmul.mubr.bf16.vlgmr.msra.gmra.mrb[4].mxu1 %v21798_v43 }
 0x305   : > { %13473 = vmatmul.mubr.bf16.vlgmr.msra.gmra.mrb[16].mxu0 %v21798_v43  ;;  %13113 = vmatpush1.bf16.msra.mxu1 %v18606_v30  ;;  %v15571_v30 = vmul.f32 -1.442695, %v21339_v33  ;;  %v18663_v33 = vld [vmem:[%s21132_s16 + $0x3130] ss:$52 sps:$4 sm:$0xff]  }
 0x306   : > { %13144 = vmatprep.mubr.bf16.mxu1 %v21800_v44  ;;  %13482 = vmatpush1.bf16.msra.mxu0 %v18609_v15  ;;  %v18662_v15 = vld [vmem:[%s21132_s16 + $0x312c] ss:$52 sps:$4 sm:$0xff]  }
 0x307   : > { %13513 = vmatprep.mubr.bf16.mxu0 %v21800_v44  ;;  %13114 = vmatprep.subr.bf16.mxu1 %v18614_v39  ;;  %v18665_v39 = vld [vmem:[%s21132_s16 + $0x3134] ss:$52 sps:$4 sm:$0xff]   ;;  %20730 = vpow2.f32 %v15571_v30 }
 0x308   : > { %13483 = vmatprep.subr.bf16.mxu0 %v18617_v46  ;;  %20732 = vpow2.f32 %v15574_v31  ;;  %v18666_v46 = vld [vmem:[%s21132_s16 + $0x3190] ss:$52 sps:$4 sm:$0xff]   ;;  %v18705_v30 = vld [vmem:[%s21132_s16 + $0x3408] ss:$52 sps:$4 sm:$0xff]  }
 0x309   : > { %13115 = vmatpush1.bf16.msra.mxu1 %v18612_v45  ;;  %v18668_v45 = vld [vmem:[%s21132_s16 + $0x3194] ss:$52 sps:$4 sm:$0xff]  }
 0x30a   : > { %13484 = vmatpush1.bf16.msra.mxu0 %v18615_v19  ;;  %13116 = vmatprep.subr.bf16.mxu1 %v18620_v34  ;;  %v18671_v19 = vld [vmem:[%s21132_s16 + $0x319c] ss:$52 sps:$4 sm:$0xff]   ;;  %v18669_v34 = vld [vmem:[%s21132_s16 + $0x3198] ss:$52 sps:$4 sm:$0xff]  }
 0x30b   : > { %13485 = vmatprep.subr.bf16.mxu0 %v18623_v47  ;;  %v18674_v47 = vld [vmem:[%s21132_s16 + $0x31fc] ss:$52 sps:$4 sm:$0xff]  }
 0x30d   : > { %13117 = vmatpush1.bf16.msra.mxu1 %v18618_v48  ;;  %v18672_v48 = vld [vmem:[%s21132_s16 + $0x31f8] ss:$52 sps:$4 sm:$0xff]  }
 0x30e   : > { %13486 = vmatpush1.bf16.msra.mxu0 %v18621_v42  ;;  %13118 = vmatprep.subr.bf16.mxu1 %v18626_v25  ;;  %v18677_v42 = vld [vmem:[%s21132_s16 + $0x3204] ss:$52 sps:$4 sm:$0xff]  }
 0x30f   : > { %13487 = vmatprep.subr.bf16.mxu0 %v18629_v35  ;;  %v18680_v35 = vld [vmem:[%s21132_s16 + $0x3264] ss:$52 sps:$4 sm:$0xff]  }
 0x311   : > { %13119 = vmatpush1.bf16.msra.mxu1 %v18624_v5  ;;  %v20731_v25 = vpop.eup %20730  ;;  %v18675_v5 = vld [vmem:[%s21132_s16 + $0x3200] ss:$52 sps:$4 sm:$0xff]  }
 0x312   : > { %13488 = vmatpush1.bf16.msra.mxu0 %v18627_v50  ;;  %13120 = vmatprep.subr.bf16.mxu1 %v18632_v52  ;;  %v18678_v50 = vld [vmem:[%s21132_s16 + $0x3260] ss:$52 sps:$4 sm:$0xff]  }
 0x313   : > { %13489 = vmatprep.subr.bf16.mxu0 %v18635_v62  ;;  %v18683_v52 = vld [vmem:[%s21132_s16 + $0x326c] ss:$52 sps:$4 sm:$0xff]   ;;  %v1178_v62 = vadd.f32 1.0, %v20731_v25  ;;  %v18725_v25 = vld [vmem:[%s21132_s16 + $0x3544] ss:$52 sps:$4 sm:$0xff]  }
 0x315   : > { %13121 = vmatpush1.bf16.msra.mxu1 %v18630_v55  ;;  %v20733_v55 = vpop.eup %20732  ;;  %20734 = vrcp.f32 %v1178_v62  ;;  %v18734_v62 = vld [vmem:[%s21132_s16 + $0x360c] ss:$52 sps:$4 sm:$0xff]  }
 0x316   : > { %13490 = vmatpush1.bf16.msra.mxu0 %v18633_v56  ;;  %13122 = vmatprep.subr.bf16.mxu1 %v18638_v59  ;;  %v18681_v56 = vld [vmem:[%s21132_s16 + $0x3268] ss:$52 sps:$4 sm:$0xff]   ;;  %v18686_v59 = vld [vmem:[%s21132_s16 + $0x32cc] ss:$52 sps:$4 sm:$0xff]  }
 0x317   : > { %13491 = vmatprep.subr.bf16.mxu0 %v18641_v1  ;;  %v18684_v1 = vld [vmem:[%s21132_s16 + $0x32c8] ss:$52 sps:$4 sm:$0xff]  }
 0x319   : > { %13123 = vmatpush1.bf16.msra.mxu1 %v18636_v0  ;;  %v1181_v0 = vadd.f32 1.0, %v20733_v55  ;;  %v18729_v55 = vld [vmem:[%s21132_s16 + $0x35a8] ss:$52 sps:$4 sm:$0xff]  }
 0x31a   : > { %13492 = vmatpush1.bf16.msra.mxu0 %v18639_v3  ;;  %13124 = vmatprep.subr.bf16.mxu1 %v18644_v6  ;;  %v18689_v3 = vld [vmem:[%s21132_s16 + $0x32d4] ss:$52 sps:$4 sm:$0xff]   ;;  %v18687_v6 = vld [vmem:[%s21132_s16 + $0x32d0] ss:$52 sps:$4 sm:$0xff]  }
 0x31b   : > { %13493 = vmatprep.subr.bf16.mxu0 %v18647_v9  ;;  %20736 = vrcp.f32 %v1181_v0  ;;  %v18690_v9 = vld [vmem:[%s21132_s16 + $0x3330] ss:$52 sps:$4 sm:$0xff]  }
 0x31c   : > { %v18735_v0 = vld [vmem:[%s21132_s16 + $0x3610] ss:$52 sps:$4 sm:$0xff]  }
 0x31d   : > { %13125 = vmatpush1.bf16.msra.mxu1 %v18642_v7  ;;  %v18692_v7 = vld [vmem:[%s21132_s16 + $0x3334] ss:$52 sps:$4 sm:$0xff]  }
 0x31e   : > { %13494 = vmatpush1.bf16.msra.mxu0 %v18645_v23  ;;  %13126 = vmatprep.subr.bf16.mxu1 %v18650_v12  ;;  %v18693_v23 = vld [vmem:[%s21132_s16 + $0x3338] ss:$52 sps:$4 sm:$0xff]   ;;  %v18698_v12 = vld [vmem:[%s21132_s16 + $0x339c] ss:$52 sps:$4 sm:$0xff]  }
 0x31f   : > { %13495 = vmatprep.subr.bf16.mxu0 %v18653_v17  ;;  %v18701_v17 = vld [vmem:[%s21132_s16 + $0x33a4] ss:$52 sps:$4 sm:$0xff]  }
 0x321   : > { %13127 = vmatpush1.bf16.msra.mxu1 %v18648_v13  ;;  %v18696_v13 = vld [vmem:[%s21132_s16 + $0x3398] ss:$52 sps:$4 sm:$0xff]  }
 0x322   : > { %13496 = vmatpush1.bf16.msra.mxu0 %v18651_v21  ;;  %13128 = vmatprep.subr.bf16.mxu1 %v18656_v22  ;;  %v18704_v21 = vld [vmem:[%s21132_s16 + $0x3404] ss:$52 sps:$4 sm:$0xff]   ;;  %v20735_v22 = vpop.eup %20734 }
 0x323   : > { %13497 = vmatprep.subr.bf16.mxu0 %v18659_v28  ;;  %v18707_v28 = vld [vmem:[%s21132_s16 + $0x340c] ss:$52 sps:$4 sm:$0xff]  }
 0x325   : > { %13129 = vmatpush1.bf16.msra.mxu1 %v18654_v27  ;;  %v18702_v27 = vld [vmem:[%s21132_s16 + $0x3400] ss:$52 sps:$4 sm:$0xff]   ;;  %v20737_v31 = vpop.eup %20736 }
 0x326   : > { %13498 = vmatpush1.bf16.msra.mxu0 %v18657_v38  ;;  %13130 = vmatprep.subr.bf16.mxu1 %v18662_v15  ;;  %v18710_v38 = vld [vmem:[%s21132_s16 + $0x346c] ss:$52 sps:$4 sm:$0xff]   ;;  %v21876_v15 = vpack.c.bf16 %v20735_v22, %v20735_v22 }
 0x327   : > { %13499 = vmatprep.subr.bf16.mxu0 %v18665_v39  ;;  %v18708_v39 = vld [vmem:[%s21132_s16 + $0x3468] ss:$52 sps:$4 sm:$0xff]  }
 0x329   : > { %13131 = vmatpush1.bf16.msra.mxu1 %v18660_v36  ;;  %v21878_v36 = vpack.c.bf16 %v20737_v31, %v20737_v31  ;;  %v18759_v31 = vld [vmem:[%s21132_s16 + $0x37b0] ss:$52 sps:$4 sm:$0xff]  }
 0x32a   : > { %13500 = vmatpush1.bf16.msra.mxu0 %v18663_v33  ;;  %13132 = vmatprep.subr.bf16.mxu1 %v18668_v45  ;;  %v18711_v33 = vld [vmem:[%s21132_s16 + $0x3470] ss:$52 sps:$4 sm:$0xff]   ;;  %v18713_v45 = vld [vmem:[%s21132_s16 + $0x3474] ss:$52 sps:$4 sm:$0xff]  }
 0x32b   : > { %13501 = vmatprep.subr.bf16.mxu0 %v18671_v19  ;;  %v18719_v19 = vld [vmem:[%s21132_s16 + $0x34dc] ss:$52 sps:$4 sm:$0xff]  }
 0x32d   : > { %13133 = vmatpush1.bf16.msra.mxu1 %v18666_v46  ;;  %v18716_v46 = vld [vmem:[%s21132_s16 + $0x34d4] ss:$52 sps:$4 sm:$0xff]  }
 0x32e   : > { %13502 = vmatpush1.bf16.msra.mxu0 %v18669_v34  ;;  %13134 = vmatprep.subr.bf16.mxu1 %v18674_v47  ;;  %v18714_v34 = vld [vmem:[%s21132_s16 + $0x34d0] ss:$52 sps:$4 sm:$0xff]   ;;  %v18717_v47 = vld [vmem:[%s21132_s16 + $0x34d8] ss:$52 sps:$4 sm:$0xff]  }
 0x32f   : > { %13503 = vmatprep.subr.bf16.mxu0 %v18677_v42  ;;  %v18720_v42 = vld [vmem:[%s21132_s16 + $0x3538] ss:$52 sps:$4 sm:$0xff]  }
 0x331   : > { %13135 = vmatpush1.bf16.msra.mxu1 %v18672_v48  ;;  %v18722_v48 = vld [vmem:[%s21132_s16 + $0x353c] ss:$52 sps:$4 sm:$0xff]  }
 0x332   : > { %13504 = vmatpush1.bf16.msra.mxu0 %v18675_v5  ;;  %13136 = vmatprep.subr.bf16.mxu1 %v18680_v35  ;;  %v18723_v5 = vld [vmem:[%s21132_s16 + $0x3540] ss:$52 sps:$4 sm:$0xff]   ;;  %v18728_v35 = vld [vmem:[%s21132_s16 + $0x35a4] ss:$52 sps:$4 sm:$0xff]  }
 0x333   : > { %13505 = vmatprep.subr.bf16.mxu0 %v18683_v52  ;;  %v18731_v52 = vld [vmem:[%s21132_s16 + $0x35ac] ss:$52 sps:$4 sm:$0xff]  }
 0x335   : > { %13137 = vmatpush1.bf16.msra.mxu1 %v18678_v50  ;;  %v18726_v50 = vld [vmem:[%s21132_s16 + $0x35a0] ss:$52 sps:$4 sm:$0xff]  }
 0x336   : > { %13506 = vmatpush1.bf16.msra.mxu0 %v18681_v56  ;;  %13138 = vmatprep.subr.bf16.mxu1 %v18686_v59  ;;  %v18732_v56 = vld [vmem:[%s21132_s16 + $0x3608] ss:$52 sps:$4 sm:$0xff]  }
 0x337   : > { %13507 = vmatprep.subr.bf16.mxu0 %v18689_v3  ;;  %v18737_v59 = vld [vmem:[%s21132_s16 + $0x3614] ss:$52 sps:$4 sm:$0xff]   ;;  %v18738_v3 = vld [vmem:[%s21132_s16 + $0x3670] ss:$52 sps:$4 sm:$0xff]  }
 0x339   : > { %13139 = vmatpush1.bf16.msra.mxu1 %v18684_v1  ;;  %v18740_v1 = vld [vmem:[%s21132_s16 + $0x3674] ss:$52 sps:$4 sm:$0xff]  }
 0x33a   : > { %13508 = vmatpush1.bf16.msra.mxu0 %v18687_v6  ;;  %13140 = vmatprep.subr.bf16.mxu1 %v18692_v7  ;;  %v18743_v6 = vld [vmem:[%s21132_s16 + $0x367c] ss:$52 sps:$4 sm:$0xff]   ;;  %v389_v7 = vrot.slane %v21824_v2, %v21257_v24  ;;  %v18747_v2 = vld [vmem:[%s21132_s16 + $0x36e0] ss:$52 sps:$4 sm:$0xff]  }
 0x33b   : > { %13509 = vmatprep.subr.bf16.mxu0 %v18695_v10  ;;  %v18746_v10 = vld [vmem:[%s21132_s16 + $0x36dc] ss:$52 sps:$4 sm:$0xff]  }
 0x33d   : > { %13141 = vmatpush1.bf16.msra.mxu1 %v18690_v9  ;;  %v18741_v9 = vld [vmem:[%s21132_s16 + $0x3678] ss:$52 sps:$4 sm:$0xff]  }
 0x33e   : > { %13510 = vmatpush1.bf16.msra.mxu0 %v18693_v23  ;;  %13142 = vmatprep.subr.bf16.mxu1 %v18698_v12  ;;  %v18744_v23 = vld [vmem:[%s21132_s16 + $0x36d8] ss:$52 sps:$4 sm:$0xff]  }
 0x33f   : > { %13511 = vmatprep.subr.bf16.mxu0 %v18701_v17  ;;  %v18749_v12 = vld [vmem:[%s21132_s16 + $0x36e4] ss:$52 sps:$4 sm:$0xff]  }
 0x340   : > { %v18752_v17 = vld [vmem:[%s21132_s16 + $0x3744] ss:$52 sps:$4 sm:$0xff]  }
 0x341   : > { %13143 = vmatpush1.bf16.msra.mxu1 %v18696_v13  ;;  %v1106_v13 = vadd.f32 %v21394_v32, %v389_v7  ;;  %v18758_v32 = vld [vmem:[%s21132_s16 + $0x37ac] ss:$52 sps:$4 sm:$0xff]  }
 0x342   : > { %13512 = vmatpush1.bf16.msra.mxu0 %v18699_v20  ;;  %13153 = vmatprep.subr.bf16.mxu1 %v18704_v21  ;;  %v18750_v20 = vld [vmem:[%s21132_s16 + $0x3740] ss:$52 sps:$4 sm:$0xff]   ;;  %v18792_v7 = vld [vmem:[%s21132_s16 + $0x3a18] ss:$52 sps:$4 sm:$0xff]  }
 0x343   : > { %13522 = vmatprep.subr.bf16.mxu0 %v18707_v28  ;;  %v18755_v21 = vld [vmem:[%s21132_s16 + $0x374c] ss:$52 sps:$4 sm:$0xff]   ;;  %v15573_v22 = vmul.f32 -1.442695, %v1106_v13  ;;  %v18756_v28 = vld [vmem:[%s21132_s16 + $0x37a8] ss:$52 sps:$4 sm:$0xff]  }
 0x344   : > { %13145 = vmatmul.mubr.bf16.vlgmr.msra.gmra.mrb[4].mxu1 %v21876_v15 }
 0x345   : > { %13514 = vmatmul.mubr.bf16.vlgmr.msra.gmra.mrb[16].mxu0 %v21876_v15  ;;  %13154 = vmatpush1.bf16.msra.mxu1 %v18702_v27  ;;  %v18753_v27 = vld [vmem:[%s21132_s16 + $0x3748] ss:$52 sps:$4 sm:$0xff]   ;;  %20738 = vpow2.f32 %v15573_v22  ;;  %v18804_v22 = vld [vmem:[%s21132_s16 + $0x78] ss:$52 sps:$4 sm:$0xff]  }
 0x346   : > { %13185 = vmatprep.mubr.bf16.mxu1 %v21878_v36  ;;  %13523 = vmatpush1.bf16.msra.mxu0 %v18705_v30  ;;  %v18761_v30 = vld [vmem:[%s21132_s16 + $0x37b4] ss:$52 sps:$4 sm:$0xff]  }
 0x347   : > { %13554 = vmatprep.mubr.bf16.mxu0 %v21878_v36  ;;  %13155 = vmatprep.subr.bf16.mxu1 %v18710_v38  ;;  %v18764_v38 = vld [vmem:[%s21132_s16 + $0x3814] ss:$52 sps:$4 sm:$0xff]  }
 0x348   : > { %13524 = vmatprep.subr.bf16.mxu0 %v18713_v45  ;;  %v18765_v45 = vld [vmem:[%s21132_s16 + $0x3818] ss:$52 sps:$4 sm:$0xff]  }
 0x349   : > { %13156 = vmatpush1.bf16.msra.mxu1 %v18708_v39  ;;  %v18762_v39 = vld [vmem:[%s21132_s16 + $0x3810] ss:$52 sps:$4 sm:$0xff]  }
 0x34a   : > { %13525 = vmatpush1.bf16.msra.mxu0 %v18711_v33  ;;  %13157 = vmatprep.subr.bf16.mxu1 %v18716_v46  ;;  %v18767_v33 = vld [vmem:[%s21132_s16 + $0x381c] ss:$52 sps:$4 sm:$0xff]  }
 0x34b   : > { %13526 = vmatprep.subr.bf16.mxu0 %v18719_v19  ;;  %v18770_v46 = vld [vmem:[%s21132_s16 + $0x387c] ss:$52 sps:$4 sm:$0xff]   ;;  %v18768_v19 = vld [vmem:[%s21132_s16 + $0x3878] ss:$52 sps:$4 sm:$0xff]  }
 0x34d   : > { %13158 = vmatpush1.bf16.msra.mxu1 %v18714_v34  ;;  %v18773_v34 = vld [vmem:[%s21132_s16 + $0x3884] ss:$52 sps:$4 sm:$0xff]  }
 0x34e   : > { %13527 = vmatpush1.bf16.msra.mxu0 %v18717_v47  ;;  %13159 = vmatprep.subr.bf16.mxu1 %v18722_v48  ;;  %v18771_v48 = vld [vmem:[%s21132_s16 + $0x3880] ss:$52 sps:$4 sm:$0xff]  }
 0x34f   : > { %13528 = vmatprep.subr.bf16.mxu0 %v18725_v25  ;;  %v20739_v47 = vpop.eup %20738  ;;  %v18774_v25 = vld [vmem:[%s21132_s16 + $0x38e0] ss:$52 sps:$4 sm:$0xff]  }
 0x351   : > { %13160 = vmatpush1.bf16.msra.mxu1 %v18720_v42  ;;  %v18776_v42 = vld [vmem:[%s21132_s16 + $0x38e4] ss:$52 sps:$4 sm:$0xff]  }
 0x352   : > { %13529 = vmatpush1.bf16.msra.mxu0 %v18723_v5  ;;  %13161 = vmatprep.subr.bf16.mxu1 %v18728_v35  ;;  %v18779_v5 = vld [vmem:[%s21132_s16 + $0x38ec] ss:$52 sps:$4 sm:$0xff]   ;;  %v1180_v35 = vadd.f32 1.0, %v20739_v47  ;;  %v18827_v47 = vld [vmem:[%s21132_s16 + $0x1bc] ss:$52 sps:$4 sm:$0xff]  }
 0x353   : > { %13530 = vmatprep.subr.bf16.mxu0 %v18731_v52  ;;  %v18782_v52 = vld [vmem:[%s21132_s16 + $0x394c] ss:$52 sps:$4 sm:$0xff]  }
 0x354   : > { %20740 = vrcp.f32 %v1180_v35  ;;  %v18831_v35 = vld [vmem:[%s21132_s16 + $0x220] ss:$52 sps:$4 sm:$0xff]  }
 0x355   : > { %13162 = vmatpush1.bf16.msra.mxu1 %v18726_v50  ;;  %v18777_v50 = vld [vmem:[%s21132_s16 + $0x38e8] ss:$52 sps:$4 sm:$0xff]  }
 0x356   : > { %13531 = vmatpush1.bf16.msra.mxu0 %v18729_v55  ;;  %13163 = vmatprep.subr.bf16.mxu1 %v18734_v62  ;;  %v18780_v55 = vld [vmem:[%s21132_s16 + $0x3948] ss:$52 sps:$4 sm:$0xff]  }
 0x357   : > { %13532 = vmatprep.subr.bf16.mxu0 %v18737_v59  ;;  %v18785_v62 = vld [vmem:[%s21132_s16 + $0x3954] ss:$52 sps:$4 sm:$0xff]  }
 0x358   : > { %v18788_v59 = vld [vmem:[%s21132_s16 + $0x39b4] ss:$52 sps:$4 sm:$0xff]  }
 0x359   : > { %13164 = vmatpush1.bf16.msra.mxu1 %v18732_v56  ;;  %v18783_v56 = vld [vmem:[%s21132_s16 + $0x3950] ss:$52 sps:$4 sm:$0xff]  }
 0x35a   : > { %13533 = vmatpush1.bf16.msra.mxu0 %v18735_v0  ;;  %13165 = vmatprep.subr.bf16.mxu1 %v18740_v1  ;;  %v18786_v0 = vld [vmem:[%s21132_s16 + $0x39b0] ss:$52 sps:$4 sm:$0xff]  }
 0x35b   : > { %13534 = vmatprep.subr.bf16.mxu0 %v18743_v6  ;;  %v18791_v1 = vld [vmem:[%s21132_s16 + $0x39bc] ss:$52 sps:$4 sm:$0xff]  }
 0x35c   : > { %v18794_v6 = vld [vmem:[%s21132_s16 + $0x3a1c] ss:$52 sps:$4 sm:$0xff]  }
 0x35d   : > { %13166 = vmatpush1.bf16.msra.mxu1 %v18738_v3  ;;  %v18789_v3 = vld [vmem:[%s21132_s16 + $0x39b8] ss:$52 sps:$4 sm:$0xff]  }
 0x35e   : > { %13535 = vmatpush1.bf16.msra.mxu0 %v18741_v9  ;;  %13167 = vmatprep.subr.bf16.mxu1 %v18746_v10  ;;  %v18797_v9 = vld [vmem:[%s21132_s16 + $0x3a24] ss:$52 sps:$4 sm:$0xff]   ;;  %v18795_v10 = vld [vmem:[%s21132_s16 + $0x3a20] ss:$52 sps:$4 sm:$0xff]   ;;  %v20741_v13 = vpop.eup %20740 }
 0x35f   : > { %13536 = vmatprep.subr.bf16.mxu0 %v18749_v12  ;;  %v18803_v12 = vld [vmem:[%s21132_s16 + $0x1c] ss:$52 sps:$4 sm:$0xff]  }
 0x361   : > { %13168 = vmatpush1.bf16.msra.mxu1 %v18744_v23  ;;  %v18800_v23 = vld [vmem:[%s21132_s16 + $0x14] ss:$52 sps:$4 sm:$0xff]  }
 0x362   : > { %13537 = vmatpush1.bf16.msra.mxu0 %v18747_v2  ;;  %13169 = vmatprep.subr.bf16.mxu1 %v18752_v17  ;;  %v18798_v2 = vld [vmem:[%s21132_s16 + $0x10] ss:$52 sps:$4 sm:$0xff]   ;;  %v18801_v17 = vld [vmem:[%s21132_s16 + $0x18] ss:$52 sps:$4 sm:$0xff]  }
 0x363   : > { %13538 = vmatprep.subr.bf16.mxu0 %v18755_v21  ;;  %v21951_v21 = vpack.c.bf16 %v20741_v13, %v20741_v13  ;;  %v18855_v13 = vld [vmem:[%s21132_s16 + $0x3c0] ss:$52 sps:$4 sm:$0xff]  }
 0x365   : > { %13170 = vmatpush1.bf16.msra.mxu1 %v18750_v20  ;;  %v18806_v20 = vld [vmem:[%s21132_s16 + $0x7c] ss:$52 sps:$4 sm:$0xff]  }
 0x366   : > { %13539 = vmatpush1.bf16.msra.mxu0 %v18753_v27  ;;  %13171 = vmatprep.subr.bf16.mxu1 %v18758_v32  ;;  %v18807_v27 = vld [vmem:[%s21132_s16 + $0x80] ss:$52 sps:$4 sm:$0xff]   ;;  %v18809_v32 = vld [vmem:[%s21132_s16 + $0x84] ss:$52 sps:$4 sm:$0xff]  }
 0x367   : > { %13540 = vmatprep.subr.bf16.mxu0 %v18761_v30  ;;  %v18815_v30 = vld [vmem:[%s21132_s16 + $0xec] ss:$52 sps:$4 sm:$0xff]  }
 0x369   : > { %13172 = vmatpush1.bf16.msra.mxu1 %v18756_v28  ;;  %v18812_v28 = vld [vmem:[%s21132_s16 + $0xe4] ss:$52 sps:$4 sm:$0xff]  }
 0x36a   : > { %13541 = vmatpush1.bf16.msra.mxu0 %v18759_v31  ;;  %13173 = vmatprep.subr.bf16.mxu1 %v18764_v38  ;;  %v18810_v31 = vld [vmem:[%s21132_s16 + $0xe0] ss:$52 sps:$4 sm:$0xff]   ;;  %v18813_v38 = vld [vmem:[%s21132_s16 + $0xe8] ss:$52 sps:$4 sm:$0xff]  }
 0x36b   : > { %13542 = vmatprep.subr.bf16.mxu0 %v18767_v33  ;;  %v18816_v33 = vld [vmem:[%s21132_s16 + $0x148] ss:$52 sps:$4 sm:$0xff]  }
 0x36d   : > { %13174 = vmatpush1.bf16.msra.mxu1 %v18762_v39  ;;  %v18818_v39 = vld [vmem:[%s21132_s16 + $0x14c] ss:$52 sps:$4 sm:$0xff]  }
 0x36e   : > { %13543 = vmatpush1.bf16.msra.mxu0 %v18765_v45  ;;  %13175 = vmatprep.subr.bf16.mxu1 %v18770_v46  ;;  %v18821_v45 = vld [vmem:[%s21132_s16 + $0x154] ss:$52 sps:$4 sm:$0xff]   ;;  %v18819_v46 = vld [vmem:[%s21132_s16 + $0x150] ss:$52 sps:$4 sm:$0xff]  }
 0x36f   : > { %13544 = vmatprep.subr.bf16.mxu0 %v18773_v34  ;;  %v18822_v34 = vld [vmem:[%s21132_s16 + $0x1b0] ss:$52 sps:$4 sm:$0xff]  }
 0x371   : > { %13176 = vmatpush1.bf16.msra.mxu1 %v18768_v19  ;;  %v18824_v19 = vld [vmem:[%s21132_s16 + $0x1b4] ss:$52 sps:$4 sm:$0xff]  }
 0x372   : > { %13545 = vmatpush1.bf16.msra.mxu0 %v18771_v48  ;;  %13177 = vmatprep.subr.bf16.mxu1 %v18776_v42  ;;  %v18825_v48 = vld [vmem:[%s21132_s16 + $0x1b8] ss:$52 sps:$4 sm:$0xff]   ;;  %v18830_v42 = vld [vmem:[%s21132_s16 + $0x21c] ss:$52 sps:$4 sm:$0xff]  }
 0x373   : > { %13546 = vmatprep.subr.bf16.mxu0 %v18779_v5  ;;  %v18833_v5 = vld [vmem:[%s21132_s16 + $0x224] ss:$52 sps:$4 sm:$0xff]  }
 0x375   : > { %13178 = vmatpush1.bf16.msra.mxu1 %v18774_v25  ;;  %v18828_v25 = vld [vmem:[%s21132_s16 + $0x218] ss:$52 sps:$4 sm:$0xff]  }
 0x376   : > { %13547 = vmatpush1.bf16.msra.mxu0 %v18777_v50  ;;  %13179 = vmatprep.subr.bf16.mxu1 %v18782_v52  ;;  %v18836_v50 = vld [vmem:[%s21132_s16 + $0x284] ss:$52 sps:$4 sm:$0xff]   ;;  %v18834_v52 = vld [vmem:[%s21132_s16 + $0x280] ss:$52 sps:$4 sm:$0xff]  }
 0x377   : > { %13548 = vmatprep.subr.bf16.mxu0 %v18785_v62  ;;  %v18837_v62 = vld [vmem:[%s21132_s16 + $0x288] ss:$52 sps:$4 sm:$0xff]  }
 0x379   : > { %13180 = vmatpush1.bf16.msra.mxu1 %v18780_v55  ;;  %v18839_v55 = vld [vmem:[%s21132_s16 + $0x28c] ss:$52 sps:$4 sm:$0xff]  }
 0x37a   : > { %13549 = vmatpush1.bf16.msra.mxu0 %v18783_v56  ;;  %13181 = vmatprep.subr.bf16.mxu1 %v18788_v59  ;;  %v18842_v56 = vld [vmem:[%s21132_s16 + $0x2ec] ss:$52 sps:$4 sm:$0xff]   ;;  %v18840_v59 = vld [vmem:[%s21132_s16 + $0x2e8] ss:$52 sps:$4 sm:$0xff]  }
 0x37b   : > { %13550 = vmatprep.subr.bf16.mxu0 %v18791_v1  ;;  %v18843_v1 = vld [vmem:[%s21132_s16 + $0x2f0] ss:$52 sps:$4 sm:$0xff]  }
 0x37d   : > { %13182 = vmatpush1.bf16.msra.mxu1 %v18786_v0  ;;  %v18845_v0 = vld [vmem:[%s21132_s16 + $0x2f4] ss:$52 sps:$4 sm:$0xff]  }
 0x37e   : > { %13551 = vmatpush1.bf16.msra.mxu0 %v18789_v3  ;;  %13183 = vmatprep.subr.bf16.mxu1 %v18794_v6  ;;  %v18848_v3 = vld [vmem:[%s21132_s16 + $0x354] ss:$52 sps:$4 sm:$0xff]   ;;  %v18846_v6 = vld [vmem:[%s21132_s16 + $0x350] ss:$52 sps:$4 sm:$0xff]  }
 0x37f   : > { %13552 = vmatprep.subr.bf16.mxu0 %v18797_v9  ;;  %v18849_v9 = vld [vmem:[%s21132_s16 + $0x358] ss:$52 sps:$4 sm:$0xff]  }
 0x381   : > { %13184 = vmatpush1.bf16.msra.mxu1 %v18792_v7  ;;  %v18851_v7 = vld [vmem:[%s21132_s16 + $0x35c] ss:$52 sps:$4 sm:$0xff]  }
 0x382   : > { %13553 = vmatpush1.bf16.msra.mxu0 %v18795_v10  ;;  %13563 = vmatprep.subr.bf16.mxu1 %v18800_v23  ;;  %v18854_v10 = vld [vmem:[%s21132_s16 + $0x3bc] ss:$52 sps:$4 sm:$0xff]   ;;  %v18852_v23 = vld [vmem:[%s21132_s16 + $0x3b8] ss:$52 sps:$4 sm:$0xff]  }
 0x383   : > { %13932 = vmatprep.subr.bf16.mxu0 %v18803_v12  ;;  %v18857_v12 = vld [vmem:[%s21132_s16 + $0x3c4] ss:$52 sps:$4 sm:$0xff]  }
 0x384   : > { %13186 = vmatmul.mubr.bf16.vlgmr.msra.gmra.mrb[4].mxu1 %v21951_v21 }
 0x385   : > { %13555 = vmatmul.mubr.bf16.vlgmr.msra.gmra.mrb[16].mxu0 %v21951_v21  ;;  %13564 = vmatpush1.bf16.msra.mxu1 %v18798_v2  ;;  %v18860_v2 = vld [vmem:[%s21132_s16 + $0x424] ss:$52 sps:$4 sm:$0xff]  }
 0x386   : > { %13595 = vmatprep.mubr.bf16.mxu1 %v21281_v53  ;;  %13933 = vmatpush1.bf16.msra.mxu0 %v18801_v17  ;;  %v18858_v17 = vld [vmem:[%s21132_s16 + $0x420] ss:$52 sps:$4 sm:$0xff]  }
 0x387   : > { %13964 = vmatprep.mubr.bf16.mxu0 %v21281_v53  ;;  %13565 = vmatprep.subr.bf16.mxu1 %v18806_v20  ;;  %v18863_v20 = vld [vmem:[%s21132_s16 + $0x42c] ss:$52 sps:$4 sm:$0xff]  }
 0x388   : > { %13934 = vmatprep.subr.bf16.mxu0 %v18809_v32  ;;  %v18864_v32 = vld [vmem:[%s21132_s16 + $0x488] ss:$52 sps:$4 sm:$0xff]  }
 0x389   : > { %13566 = vmatpush1.bf16.msra.mxu1 %v18804_v22  ;;  %v18861_v22 = vld [vmem:[%s21132_s16 + $0x428] ss:$52 sps:$4 sm:$0xff]  }
 0x38a   : > { %13935 = vmatpush1.bf16.msra.mxu0 %v18807_v27  ;;  %13567 = vmatprep.subr.bf16.mxu1 %v18812_v28  ;;  %v18866_v27 = vld [vmem:[%s21132_s16 + $0x48c] ss:$52 sps:$4 sm:$0xff]   ;;  %v18869_v28 = vld [vmem:[%s21132_s16 + $0x494] ss:$52 sps:$4 sm:$0xff]  }
 0x38b   : > { %13936 = vmatprep.subr.bf16.mxu0 %v18815_v30  ;;  %v18867_v30 = vld [vmem:[%s21132_s16 + $0x490] ss:$52 sps:$4 sm:$0xff]  }
 0x38d   : > { %13568 = vmatpush1.bf16.msra.mxu1 %v18810_v31  ;;  %v18872_v31 = vld [vmem:[%s21132_s16 + $0x4f4] ss:$52 sps:$4 sm:$0xff]  }
 0x38e   : > { %13937 = vmatpush1.bf16.msra.mxu0 %v18813_v38  ;;  %13569 = vmatprep.subr.bf16.mxu1 %v18818_v39  ;;  %v18870_v38 = vld [vmem:[%s21132_s16 + $0x4f0] ss:$52 sps:$4 sm:$0xff]  }
 0x38f   : > { %13938 = vmatprep.subr.bf16.mxu0 %v18821_v45  ;;  %v18875_v39 = vld [vmem:[%s21132_s16 + $0x4fc] ss:$52 sps:$4 sm:$0xff]  }
 0x390   : > { %v18878_v45 = vld [vmem:[%s21132_s16 + $0x55c] ss:$52 sps:$4 sm:$0xff]  }
 0x391   : > { %13570 = vmatpush1.bf16.msra.mxu1 %v18816_v33  ;;  %v18873_v33 = vld [vmem:[%s21132_s16 + $0x4f8] ss:$52 sps:$4 sm:$0xff]  }
 0x392   : > { %13939 = vmatpush1.bf16.msra.mxu0 %v18819_v46  ;;  %13571 = vmatprep.subr.bf16.mxu1 %v18824_v19  ;;  %v18876_v46 = vld [vmem:[%s21132_s16 + $0x558] ss:$52 sps:$4 sm:$0xff]  }
 0x393   : > { %13940 = vmatprep.subr.bf16.mxu0 %v18827_v47  ;;  %v18881_v19 = vld [vmem:[%s21132_s16 + $0x564] ss:$52 sps:$4 sm:$0xff]  }
 0x394   : > { %v18884_v47 = vld [vmem:[%s21132_s16 + $0x5c4] ss:$52 sps:$4 sm:$0xff]  }
 0x395   : > { %13572 = vmatpush1.bf16.msra.mxu1 %v18822_v34  ;;  %v18879_v34 = vld [vmem:[%s21132_s16 + $0x560] ss:$52 sps:$4 sm:$0xff]  }
 0x396   : > { %13941 = vmatpush1.bf16.msra.mxu0 %v18825_v48  ;;  %13573 = vmatprep.subr.bf16.mxu1 %v18830_v42  ;;  %v18882_v48 = vld [vmem:[%s21132_s16 + $0x5c0] ss:$52 sps:$4 sm:$0xff]  }
 0x397   : > { %13942 = vmatprep.subr.bf16.mxu0 %v18833_v5  ;;  %v18887_v42 = vld [vmem:[%s21132_s16 + $0x5cc] ss:$52 sps:$4 sm:$0xff]  }
 0x398   : > { %v18890_v5 = vld [vmem:[%s21132_s16 + $0x62c] ss:$52 sps:$4 sm:$0xff]  }
 0x399   : > { %13574 = vmatpush1.bf16.msra.mxu1 %v18828_v25  ;;  %v18885_v25 = vld [vmem:[%s21132_s16 + $0x5c8] ss:$52 sps:$4 sm:$0xff]  }
 0x39a   : > { %13943 = vmatpush1.bf16.msra.mxu0 %v18831_v35  ;;  %13575 = vmatprep.subr.bf16.mxu1 %v18836_v50  ;;  %v18888_v35 = vld [vmem:[%s21132_s16 + $0x628] ss:$52 sps:$4 sm:$0xff]  }
 0x39b   : > { %13944 = vmatprep.subr.bf16.mxu0 %v18839_v55  ;;  %v18893_v50 = vld [vmem:[%s21132_s16 + $0x634] ss:$52 sps:$4 sm:$0xff]  }
 0x39c   : > { %v18896_v55 = vld [vmem:[%s21132_s16 + $0x694] ss:$52 sps:$4 sm:$0xff]  }
 0x39d   : > { %13576 = vmatpush1.bf16.msra.mxu1 %v18834_v52  ;;  %v18891_v52 = vld [vmem:[%s21132_s16 + $0x630] ss:$52 sps:$4 sm:$0xff]  }
 0x39e   : > { %13945 = vmatpush1.bf16.msra.mxu0 %v18837_v62  ;;  %13577 = vmatprep.subr.bf16.mxu1 %v18842_v56  ;;  %v18894_v62 = vld [vmem:[%s21132_s16 + $0x690] ss:$52 sps:$4 sm:$0xff]  }
 0x39f   : > { %13946 = vmatprep.subr.bf16.mxu0 %v18845_v0  ;;  %v18899_v56 = vld [vmem:[%s21132_s16 + $0x69c] ss:$52 sps:$4 sm:$0xff]  }
 0x3a0   : > { %v18902_v0 = vld [vmem:[%s21132_s16 + $0x6fc] ss:$52 sps:$4 sm:$0xff]  }
 0x3a1   : > { %13578 = vmatpush1.bf16.msra.mxu1 %v18840_v59  ;;  %v18897_v59 = vld [vmem:[%s21132_s16 + $0x698] ss:$52 sps:$4 sm:$0xff]  }
 0x3a2   : > { %13947 = vmatpush1.bf16.msra.mxu0 %v18843_v1  ;;  %13579 = vmatprep.subr.bf16.mxu1 %v18848_v3  ;;  %v18900_v1 = vld [vmem:[%s21132_s16 + $0x6f8] ss:$52 sps:$4 sm:$0xff]   ;;  %v18903_v3 = vld [vmem:[%s21132_s16 + $0x700] ss:$52 sps:$4 sm:$0xff]  }
 0x3a3   : > { %13948 = vmatprep.subr.bf16.mxu0 %v18851_v7  ;;  %v18908_v7 = vld [vmem:[%s21132_s16 + $0x764] ss:$52 sps:$4 sm:$0xff]  }
 0x3a5   : > { %13580 = vmatpush1.bf16.msra.mxu1 %v18846_v6  ;;  %v18905_v6 = vld [vmem:[%s21132_s16 + $0x704] ss:$52 sps:$4 sm:$0xff]  }
 0x3a6   : > { %13949 = vmatpush1.bf16.msra.mxu0 %v18849_v9  ;;  %13581 = vmatprep.subr.bf16.mxu1 %v18854_v10  ;;  %v18911_v9 = vld [vmem:[%s21132_s16 + $0x76c] ss:$52 sps:$4 sm:$0xff]  }
 0x3a7   : > { %13950 = vmatprep.subr.bf16.mxu0 %v18857_v12  ;;  %v18906_v10 = vld [vmem:[%s21132_s16 + $0x760] ss:$52 sps:$4 sm:$0xff]  }
 0x3a8   : > { %v18914_v12 = vld [vmem:[%s21132_s16 + $0x7cc] ss:$52 sps:$4 sm:$0xff]  }
 0x3a9   : > { %13582 = vmatpush1.bf16.msra.mxu1 %v18852_v23  ;;  %v18909_v23 = vld [vmem:[%s21132_s16 + $0x768] ss:$52 sps:$4 sm:$0xff]  }
 0x3aa   : > { %13951 = vmatpush1.bf16.msra.mxu0 %v18855_v13  ;;  %13583 = vmatprep.subr.bf16.mxu1 %v18860_v2  ;;  %v18912_v13 = vld [vmem:[%s21132_s16 + $0x7c8] ss:$52 sps:$4 sm:$0xff]  }
 0x3ab   : > { %13952 = vmatprep.subr.bf16.mxu0 %v18863_v20  ;;  %v18917_v2 = vld [vmem:[%s21132_s16 + $0x7d4] ss:$52 sps:$4 sm:$0xff]  }
 0x3ac   : > { %v18920_v20 = vld [vmem:[%s21132_s16 + $0x834] ss:$52 sps:$4 sm:$0xff]  }
 0x3ad   : > { %13584 = vmatpush1.bf16.msra.mxu1 %v18858_v17  ;;  %v18915_v17 = vld [vmem:[%s21132_s16 + $0x7d0] ss:$52 sps:$4 sm:$0xff]  }
 0x3ae   : > { %13953 = vmatpush1.bf16.msra.mxu0 %v18861_v22  ;;  %13585 = vmatprep.subr.bf16.mxu1 %v18866_v27  ;;  %v18918_v22 = vld [vmem:[%s21132_s16 + $0x830] ss:$52 sps:$4 sm:$0xff]  }
 0x3af   : > { %13954 = vmatprep.subr.bf16.mxu0 %v18869_v28  ;;  %v18923_v27 = vld [vmem:[%s21132_s16 + $0x83c] ss:$52 sps:$4 sm:$0xff]  }
 0x3b0   : > { %v18926_v28 = vld [vmem:[%s21132_s16 + $0x89c] ss:$52 sps:$4 sm:$0xff]  }
 0x3b1   : > { %13586 = vmatpush1.bf16.msra.mxu1 %v18864_v32  ;;  %v18921_v32 = vld [vmem:[%s21132_s16 + $0x838] ss:$52 sps:$4 sm:$0xff]  }
 0x3b2   : > { %13955 = vmatpush1.bf16.msra.mxu0 %v18867_v30  ;;  %13587 = vmatprep.subr.bf16.mxu1 %v18872_v31  ;;  %v18924_v30 = vld [vmem:[%s21132_s16 + $0x898] ss:$52 sps:$4 sm:$0xff]  }
 0x3b3   : > { %13956 = vmatprep.subr.bf16.mxu0 %v18875_v39  ;;  %v18929_v31 = vld [vmem:[%s21132_s16 + $0x8a4] ss:$52 sps:$4 sm:$0xff]  }
 0x3b4   : > { %v18932_v39 = vld [vmem:[%s21132_s16 + $0x904] ss:$52 sps:$4 sm:$0xff]  }
 0x3b5   : > { %13588 = vmatpush1.bf16.msra.mxu1 %v18870_v38  ;;  %v18927_v38 = vld [vmem:[%s21132_s16 + $0x8a0] ss:$52 sps:$4 sm:$0xff]  }
 0x3b6   : > { %13957 = vmatpush1.bf16.msra.mxu0 %v18873_v33  ;;  %13589 = vmatprep.subr.bf16.mxu1 %v18878_v45  ;;  %v18935_v33 = vld [vmem:[%s21132_s16 + $0x90c] ss:$52 sps:$4 sm:$0xff]  }
 0x3b7   : > { %13958 = vmatprep.subr.bf16.mxu0 %v18881_v19  ;;  %v18930_v45 = vld [vmem:[%s21132_s16 + $0x900] ss:$52 sps:$4 sm:$0xff]  }
 0x3b8   : > { %v18938_v19 = vld [vmem:[%s21132_s16 + $0x96c] ss:$52 sps:$4 sm:$0xff]  }
 0x3b9   : > { %13590 = vmatpush1.bf16.msra.mxu1 %v18876_v46  ;;  %v18933_v46 = vld [vmem:[%s21132_s16 + $0x908] ss:$52 sps:$4 sm:$0xff]  }
 0x3ba   : > { %13959 = vmatpush1.bf16.msra.mxu0 %v18879_v34  ;;  %13591 = vmatprep.subr.bf16.mxu1 %v18884_v47  ;;  %v18941_v34 = vld [vmem:[%s21132_s16 + $0x974] ss:$52 sps:$4 sm:$0xff]  }
 0x3bb   : > { %13960 = vmatprep.subr.bf16.mxu0 %v18887_v42  ;;  %v18936_v47 = vld [vmem:[%s21132_s16 + $0x968] ss:$52 sps:$4 sm:$0xff]  }
 0x3bc   : > { %v18944_v42 = vld [vmem:[%s21132_s16 + $0x9d4] ss:$52 sps:$4 sm:$0xff]  }
 0x3bd   : > { %13592 = vmatpush1.bf16.msra.mxu1 %v18882_v48  ;;  %v18939_v48 = vld [vmem:[%s21132_s16 + $0x970] ss:$52 sps:$4 sm:$0xff]  }
 0x3be   : > { %13961 = vmatpush1.bf16.msra.mxu0 %v18885_v25  ;;  %13593 = vmatprep.subr.bf16.mxu1 %v18890_v5  ;;  %v18942_v25 = vld [vmem:[%s21132_s16 + $0x9d0] ss:$52 sps:$4 sm:$0xff]  }
 0x3bf   : > { %13962 = vmatprep.subr.bf16.mxu0 %v18893_v50  ;;  %v18947_v5 = vld [vmem:[%s21132_s16 + $0x9dc] ss:$52 sps:$4 sm:$0xff]  }
 0x3c0   : > { %v18950_v50 = vld [vmem:[%s21132_s16 + $0xa3c] ss:$52 sps:$4 sm:$0xff]  }
 0x3c1   : > { %13594 = vmatpush1.bf16.msra.mxu1 %v18888_v35  ;;  %v18945_v35 = vld [vmem:[%s21132_s16 + $0x9d8] ss:$52 sps:$4 sm:$0xff]  }
 0x3c2   : > { %13963 = vmatpush1.bf16.msra.mxu0 %v18891_v52  ;;  %13604 = vmatprep.subr.bf16.mxu1 %v18896_v55  ;;  %v18948_v52 = vld [vmem:[%s21132_s16 + $0xa38] ss:$52 sps:$4 sm:$0xff]  }
 0x3c3   : > { %13973 = vmatprep.subr.bf16.mxu0 %v18899_v56  ;;  %v18953_v55 = vld [vmem:[%s21132_s16 + $0xa44] ss:$52 sps:$4 sm:$0xff]  }
 0x3c4   : > { %13596 = vmatmul.mubr.bf16.vlgmr.msra.gmra.mrb[8].mxu1 %v21283_v54  ;;  %v18956_v56 = vld [vmem:[%s21132_s16 + $0xaa4] ss:$52 sps:$4 sm:$0xff]  }
 0x3c5   : > { %13965 = vmatmul.mubr.bf16.vlgmr.msra.gmra.mrb[20].mxu0 %v21283_v54  ;;  %13605 = vmatpush1.bf16.msra.mxu1 %v18894_v62  ;;  %v18951_v62 = vld [vmem:[%s21132_s16 + $0xa40] ss:$52 sps:$4 sm:$0xff]  }
 0x3c6   : > { %13636 = vmatprep.mubr.bf16.mxu1 %v21293_v60  ;;  %13974 = vmatpush1.bf16.msra.mxu0 %v18897_v59  ;;  %v18954_v59 = vld [vmem:[%s21132_s16 + $0xaa0] ss:$52 sps:$4 sm:$0xff]  }
 0x3c7   : > { %14005 = vmatprep.mubr.bf16.mxu0 %v21293_v60  ;;  %13606 = vmatprep.subr.bf16.mxu1 %v18902_v0  ;;  %v18959_v0 = vld [vmem:[%s21132_s16 + $0xaac] ss:$52 sps:$4 sm:$0xff]  }
 0x3c8   : > { %13975 = vmatprep.subr.bf16.mxu0 %v18905_v6  ;;  %v18960_v6 = vld [vmem:[%s21132_s16 + $0xb08] ss:$52 sps:$4 sm:$0xff]  }
 0x3c9   : > { %13607 = vmatpush1.bf16.msra.mxu1 %v18900_v1  ;;  %v18957_v1 = vld [vmem:[%s21132_s16 + $0xaa8] ss:$52 sps:$4 sm:$0xff]  }
 0x3ca   : > { %13976 = vmatpush1.bf16.msra.mxu0 %v18903_v3  ;;  %13608 = vmatprep.subr.bf16.mxu1 %v18908_v7  ;;  %v18962_v3 = vld [vmem:[%s21132_s16 + $0xb0c] ss:$52 sps:$4 sm:$0xff]   ;;  %v18965_v7 = vld [vmem:[%s21132_s16 + $0xb14] ss:$52 sps:$4 sm:$0xff]  }
 0x3cb   : > { %13977 = vmatprep.subr.bf16.mxu0 %v18911_v9  ;;  %v18963_v9 = vld [vmem:[%s21132_s16 + $0xb10] ss:$52 sps:$4 sm:$0xff]  }
 0x3cd   : > { %13609 = vmatpush1.bf16.msra.mxu1 %v18906_v10  ;;  %v18968_v10 = vld [vmem:[%s21132_s16 + $0xb74] ss:$52 sps:$4 sm:$0xff]  }
 0x3ce   : > { %13978 = vmatpush1.bf16.msra.mxu0 %v18909_v23  ;;  %13610 = vmatprep.subr.bf16.mxu1 %v18914_v12  ;;  %v18966_v23 = vld [vmem:[%s21132_s16 + $0xb70] ss:$52 sps:$4 sm:$0xff]  }
 0x3cf   : > { %13979 = vmatprep.subr.bf16.mxu0 %v18917_v2  ;;  %v18971_v12 = vld [vmem:[%s21132_s16 + $0xb7c] ss:$52 sps:$4 sm:$0xff]  }
 0x3d0   : > { %v18974_v2 = vld [vmem:[%s21132_s16 + $0xbdc] ss:$52 sps:$4 sm:$0xff]  }
 0x3d1   : > { %13611 = vmatpush1.bf16.msra.mxu1 %v18912_v13  ;;  %v18969_v13 = vld [vmem:[%s21132_s16 + $0xb78] ss:$52 sps:$4 sm:$0xff]  }
 0x3d2   : > { %13980 = vmatpush1.bf16.msra.mxu0 %v18915_v17  ;;  %13612 = vmatprep.subr.bf16.mxu1 %v18920_v20  ;;  %v18972_v17 = vld [vmem:[%s21132_s16 + $0xbd8] ss:$52 sps:$4 sm:$0xff]  }
 0x3d3   : > { %13981 = vmatprep.subr.bf16.mxu0 %v18923_v27  ;;  %v18977_v20 = vld [vmem:[%s21132_s16 + $0xbe4] ss:$52 sps:$4 sm:$0xff]  }
 0x3d4   : > { %v18980_v27 = vld [vmem:[%s21132_s16 + $0xc44] ss:$52 sps:$4 sm:$0xff]  }
 0x3d5   : > { %13613 = vmatpush1.bf16.msra.mxu1 %v18918_v22  ;;  %v18975_v22 = vld [vmem:[%s21132_s16 + $0xbe0] ss:$52 sps:$4 sm:$0xff]  }
 0x3d6   : > { %13982 = vmatpush1.bf16.msra.mxu0 %v18921_v32  ;;  %13614 = vmatprep.subr.bf16.mxu1 %v18926_v28  ;;  %v18978_v32 = vld [vmem:[%s21132_s16 + $0xc40] ss:$52 sps:$4 sm:$0xff]  }
 0x3d7   : > { %13983 = vmatprep.subr.bf16.mxu0 %v18929_v31  ;;  %v18983_v28 = vld [vmem:[%s21132_s16 + $0xc4c] ss:$52 sps:$4 sm:$0xff]  }
 0x3d8   : > { %v18986_v31 = vld [vmem:[%s21132_s16 + $0xcac] ss:$52 sps:$4 sm:$0xff]  }
 0x3d9   : > { %13615 = vmatpush1.bf16.msra.mxu1 %v18924_v30  ;;  %v18981_v30 = vld [vmem:[%s21132_s16 + $0xc48] ss:$52 sps:$4 sm:$0xff]  }
 0x3da   : > { %13984 = vmatpush1.bf16.msra.mxu0 %v18927_v38  ;;  %13616 = vmatprep.subr.bf16.mxu1 %v18932_v39  ;;  %v18984_v38 = vld [vmem:[%s21132_s16 + $0xca8] ss:$52 sps:$4 sm:$0xff]  }
 0x3db   : > { %13985 = vmatprep.subr.bf16.mxu0 %v18935_v33  ;;  %v18989_v39 = vld [vmem:[%s21132_s16 + $0xcb4] ss:$52 sps:$4 sm:$0xff]   ;;  %v18987_v33 = vld [vmem:[%s21132_s16 + $0xcb0] ss:$52 sps:$4 sm:$0xff]  }
 0x3dd   : > { %13617 = vmatpush1.bf16.msra.mxu1 %v18930_v45  ;;  %v18992_v45 = vld [vmem:[%s21132_s16 + $0xd14] ss:$52 sps:$4 sm:$0xff]  }
 0x3de   : > { %13986 = vmatpush1.bf16.msra.mxu0 %v18933_v46  ;;  %13618 = vmatprep.subr.bf16.mxu1 %v18938_v19  ;;  %v18990_v46 = vld [vmem:[%s21132_s16 + $0xd10] ss:$52 sps:$4 sm:$0xff]  }
 0x3df   : > { %13987 = vmatprep.subr.bf16.mxu0 %v18941_v34  ;;  %v18995_v19 = vld [vmem:[%s21132_s16 + $0xd1c] ss:$52 sps:$4 sm:$0xff]   ;;  %v18993_v34 = vld [vmem:[%s21132_s16 + $0xd18] ss:$52 sps:$4 sm:$0xff]  }
 0x3e1   : > { %13619 = vmatpush1.bf16.msra.mxu1 %v18936_v47  ;;  %v18998_v47 = vld [vmem:[%s21132_s16 + $0xd7c] ss:$52 sps:$4 sm:$0xff]  }
 0x3e2   : > { %13988 = vmatpush1.bf16.msra.mxu0 %v18939_v48  ;;  %13620 = vmatprep.subr.bf16.mxu1 %v18944_v42  ;;  %v18996_v48 = vld [vmem:[%s21132_s16 + $0xd78] ss:$52 sps:$4 sm:$0xff]   ;;  %v18999_v42 = vld [vmem:[%s21132_s16 + $0xd80] ss:$52 sps:$4 sm:$0xff]  }
 0x3e3   : > { %13989 = vmatprep.subr.bf16.mxu0 %v18947_v5  ;;  %v19004_v5 = vld [vmem:[%s21132_s16 + $0xde4] ss:$52 sps:$4 sm:$0xff]  }
 0x3e5   : > { %13621 = vmatpush1.bf16.msra.mxu1 %v18942_v25  ;;  %v19001_v25 = vld [vmem:[%s21132_s16 + $0xd84] ss:$52 sps:$4 sm:$0xff]  }
 0x3e6   : > { %13990 = vmatpush1.bf16.msra.mxu0 %v18945_v35  ;;  %13622 = vmatprep.subr.bf16.mxu1 %v18950_v50  ;;  %v19007_v35 = vld [vmem:[%s21132_s16 + $0xdec] ss:$52 sps:$4 sm:$0xff]  }
 0x3e7   : > { %13991 = vmatprep.subr.bf16.mxu0 %v18953_v55  ;;  %v19002_v50 = vld [vmem:[%s21132_s16 + $0xde0] ss:$52 sps:$4 sm:$0xff]  }
 0x3e8   : > { %v19010_v55 = vld [vmem:[%s21132_s16 + $0xe4c] ss:$52 sps:$4 sm:$0xff]  }
 0x3e9   : > { %13623 = vmatpush1.bf16.msra.mxu1 %v18948_v52  ;;  %v19005_v52 = vld [vmem:[%s21132_s16 + $0xde8] ss:$52 sps:$4 sm:$0xff]  }
 0x3ea   : > { %13992 = vmatpush1.bf16.msra.mxu0 %v18951_v62  ;;  %13624 = vmatprep.subr.bf16.mxu1 %v18956_v56  ;;  %v19008_v62 = vld [vmem:[%s21132_s16 + $0xe48] ss:$52 sps:$4 sm:$0xff]  }
 0x3eb   : > { %13993 = vmatprep.subr.bf16.mxu0 %v18959_v0  ;;  %v19013_v56 = vld [vmem:[%s21132_s16 + $0xe54] ss:$52 sps:$4 sm:$0xff]  }
 0x3ec   : > { %v19016_v0 = vld [vmem:[%s21132_s16 + $0xeb4] ss:$52 sps:$4 sm:$0xff]  }
 0x3ed   : > { %13625 = vmatpush1.bf16.msra.mxu1 %v18954_v59  ;;  %v19011_v59 = vld [vmem:[%s21132_s16 + $0xe50] ss:$52 sps:$4 sm:$0xff]  }
 0x3ee   : > { %13994 = vmatpush1.bf16.msra.mxu0 %v18957_v1  ;;  %13626 = vmatprep.subr.bf16.mxu1 %v18962_v3  ;;  %v19014_v1 = vld [vmem:[%s21132_s16 + $0xeb0] ss:$52 sps:$4 sm:$0xff]  }
 0x3ef   : > { %13995 = vmatprep.subr.bf16.mxu0 %v18965_v7  ;;  %v19019_v3 = vld [vmem:[%s21132_s16 + $0xebc] ss:$52 sps:$4 sm:$0xff]  }
 0x3f0   : > { %v19022_v7 = vld [vmem:[%s21132_s16 + $0xf1c] ss:$52 sps:$4 sm:$0xff]  }
 0x3f1   : > { %13627 = vmatpush1.bf16.msra.mxu1 %v18960_v6  ;;  %v19017_v6 = vld [vmem:[%s21132_s16 + $0xeb8] ss:$52 sps:$4 sm:$0xff]  }
 0x3f2   : > { %13996 = vmatpush1.bf16.msra.mxu0 %v18963_v9  ;;  %13628 = vmatprep.subr.bf16.mxu1 %v18968_v10  ;;  %v19020_v9 = vld [vmem:[%s21132_s16 + $0xf18] ss:$52 sps:$4 sm:$0xff]  }
 0x3f3   : > { %13997 = vmatprep.subr.bf16.mxu0 %v18971_v12  ;;  %v19025_v10 = vld [vmem:[%s21132_s16 + $0xf24] ss:$52 sps:$4 sm:$0xff]  }
 0x3f4   : > { %v19028_v12 = vld [vmem:[%s21132_s16 + $0xf84] ss:$52 sps:$4 sm:$0xff]  }
 0x3f5   : > { %13629 = vmatpush1.bf16.msra.mxu1 %v18966_v23  ;;  %v19023_v23 = vld [vmem:[%s21132_s16 + $0xf20] ss:$52 sps:$4 sm:$0xff]  }
 0x3f6   : > { %13998 = vmatpush1.bf16.msra.mxu0 %v18969_v13  ;;  %13630 = vmatprep.subr.bf16.mxu1 %v18974_v2  ;;  %v19026_v13 = vld [vmem:[%s21132_s16 + $0xf80] ss:$52 sps:$4 sm:$0xff]  }
 0x3f7   : > { %13999 = vmatprep.subr.bf16.mxu0 %v18977_v20  ;;  %v19031_v2 = vld [vmem:[%s21132_s16 + $0xf8c] ss:$52 sps:$4 sm:$0xff]  }
 0x3f8   : > { %v19034_v20 = vld [vmem:[%s21132_s16 + $0xfec] ss:$52 sps:$4 sm:$0xff]  }
 0x3f9   : > { %13631 = vmatpush1.bf16.msra.mxu1 %v18972_v17  ;;  %v19029_v17 = vld [vmem:[%s21132_s16 + $0xf88] ss:$52 sps:$4 sm:$0xff]  }
 0x3fa   : > { %14000 = vmatpush1.bf16.msra.mxu0 %v18975_v22  ;;  %13632 = vmatprep.subr.bf16.mxu1 %v18980_v27  ;;  %v19032_v22 = vld [vmem:[%s21132_s16 + $0xfe8] ss:$52 sps:$4 sm:$0xff]  }
 0x3fb   : > { %14001 = vmatprep.subr.bf16.mxu0 %v18983_v28  ;;  %v19037_v27 = vld [vmem:[%s21132_s16 + $0xff4] ss:$52 sps:$4 sm:$0xff]  }
 0x3fc   : > { %v19040_v28 = vld [vmem:[%s21132_s16 + $0x1054] ss:$52 sps:$4 sm:$0xff]  }
 0x3fd   : > { %13633 = vmatpush1.bf16.msra.mxu1 %v18978_v32  ;;  %v19035_v32 = vld [vmem:[%s21132_s16 + $0xff0] ss:$52 sps:$4 sm:$0xff]  }
 0x3fe   : > { %14002 = vmatpush1.bf16.msra.mxu0 %v18981_v30  ;;  %13634 = vmatprep.subr.bf16.mxu1 %v18986_v31  ;;  %v19038_v30 = vld [vmem:[%s21132_s16 + $0x1050] ss:$52 sps:$4 sm:$0xff]  }
 0x3ff   : > { %14003 = vmatprep.subr.bf16.mxu0 %v18989_v39  ;;  %v19043_v31 = vld [vmem:[%s21132_s16 + $0x105c] ss:$52 sps:$4 sm:$0xff]  }
 0x400   : > { %v19046_v39 = vld [vmem:[%s21132_s16 + $0x10bc] ss:$52 sps:$4 sm:$0xff]  }
 0x401   : > { %13635 = vmatpush1.bf16.msra.mxu1 %v18984_v38  ;;  %v19041_v38 = vld [vmem:[%s21132_s16 + $0x1058] ss:$52 sps:$4 sm:$0xff]  }
 0x402   : > { %14004 = vmatpush1.bf16.msra.mxu0 %v18987_v33  ;;  %13645 = vmatprep.subr.bf16.mxu1 %v18992_v45  ;;  %v19044_v33 = vld [vmem:[%s21132_s16 + $0x10b8] ss:$52 sps:$4 sm:$0xff]  }
 0x403   : > { %14014 = vmatprep.subr.bf16.mxu0 %v18995_v19  ;;  %v19049_v45 = vld [vmem:[%s21132_s16 + $0x10c4] ss:$52 sps:$4 sm:$0xff]  }
 0x404   : > { %13637 = vmatmul.mubr.bf16.vlgmr.msra.gmra.mrb[8].mxu1 %v21414_v57  ;;  %v19052_v19 = vld [vmem:[%s21132_s16 + $0x1124] ss:$52 sps:$4 sm:$0xff]  }
 0x405   : > { %14006 = vmatmul.mubr.bf16.vlgmr.msra.gmra.mrb[20].mxu0 %v21414_v57  ;;  %13646 = vmatpush1.bf16.msra.mxu1 %v18990_v46  ;;  %v19047_v46 = vld [vmem:[%s21132_s16 + $0x10c0] ss:$52 sps:$4 sm:$0xff]  }
 0x406   : > { %13677 = vmatprep.mubr.bf16.mxu1 %v21418_v63  ;;  %14015 = vmatpush1.bf16.msra.mxu0 %v18993_v34  ;;  %v19050_v34 = vld [vmem:[%s21132_s16 + $0x1120] ss:$52 sps:$4 sm:$0xff]  }
 0x407   : > { %14046 = vmatprep.mubr.bf16.mxu0 %v21418_v63  ;;  %13647 = vmatprep.subr.bf16.mxu1 %v18998_v47  ;;  %v19055_v47 = vld [vmem:[%s21132_s16 + $0x112c] ss:$52 sps:$4 sm:$0xff]  }
 0x408   : > { %14016 = vmatprep.subr.bf16.mxu0 %v19001_v25  ;;  %v19056_v25 = vld [vmem:[%s21132_s16 + $0x1188] ss:$52 sps:$4 sm:$0xff]  }
 0x409   : > { %13648 = vmatpush1.bf16.msra.mxu1 %v18996_v48  ;;  %v19053_v48 = vld [vmem:[%s21132_s16 + $0x1128] ss:$52 sps:$4 sm:$0xff]  }
 0x40a   : > { %14017 = vmatpush1.bf16.msra.mxu0 %v18999_v42  ;;  %13649 = vmatprep.subr.bf16.mxu1 %v19004_v5  ;;  %v19058_v42 = vld [vmem:[%s21132_s16 + $0x118c] ss:$52 sps:$4 sm:$0xff]   ;;  %v19061_v5 = vld [vmem:[%s21132_s16 + $0x1194] ss:$52 sps:$4 sm:$0xff]  }
 0x40b   : > { %14018 = vmatprep.subr.bf16.mxu0 %v19007_v35  ;;  %v19059_v35 = vld [vmem:[%s21132_s16 + $0x1190] ss:$52 sps:$4 sm:$0xff]  }
 0x40d   : > { %13650 = vmatpush1.bf16.msra.mxu1 %v19002_v50  ;;  %v19064_v50 = vld [vmem:[%s21132_s16 + $0x11f4] ss:$52 sps:$4 sm:$0xff]  }
 0x40e   : > { %14019 = vmatpush1.bf16.msra.mxu0 %v19005_v52  ;;  %13651 = vmatprep.subr.bf16.mxu1 %v19010_v55  ;;  %v19062_v52 = vld [vmem:[%s21132_s16 + $0x11f0] ss:$52 sps:$4 sm:$0xff]  }
 0x40f   : > { %14020 = vmatprep.subr.bf16.mxu0 %v19013_v56  ;;  %v19067_v55 = vld [vmem:[%s21132_s16 + $0x11fc] ss:$52 sps:$4 sm:$0xff]  }
 0x410   : > { %v19070_v56 = vld [vmem:[%s21132_s16 + $0x125c] ss:$52 sps:$4 sm:$0xff]  }
 0x411   : > { %13652 = vmatpush1.bf16.msra.mxu1 %v19008_v62  ;;  %v19065_v62 = vld [vmem:[%s21132_s16 + $0x11f8] ss:$52 sps:$4 sm:$0xff]  }
 0x412   : > { %14021 = vmatpush1.bf16.msra.mxu0 %v19011_v59  ;;  %13653 = vmatprep.subr.bf16.mxu1 %v19016_v0  ;;  %v19068_v59 = vld [vmem:[%s21132_s16 + $0x1258] ss:$52 sps:$4 sm:$0xff]  }
 0x413   : > { %14022 = vmatprep.subr.bf16.mxu0 %v19019_v3  ;;  %v19073_v0 = vld [vmem:[%s21132_s16 + $0x1264] ss:$52 sps:$4 sm:$0xff]  }
 0x414   : > { %v19076_v3 = vld [vmem:[%s21132_s16 + $0x12c4] ss:$52 sps:$4 sm:$0xff]  }
 0x415   : > { %13654 = vmatpush1.bf16.msra.mxu1 %v19014_v1  ;;  %v19071_v1 = vld [vmem:[%s21132_s16 + $0x1260] ss:$52 sps:$4 sm:$0xff]  }
 0x416   : > { %14023 = vmatpush1.bf16.msra.mxu0 %v19017_v6  ;;  %13655 = vmatprep.subr.bf16.mxu1 %v19022_v7  ;;  %v19074_v6 = vld [vmem:[%s21132_s16 + $0x12c0] ss:$52 sps:$4 sm:$0xff]  }
 0x417   : > { %14024 = vmatprep.subr.bf16.mxu0 %v19025_v10  ;;  %v19079_v7 = vld [vmem:[%s21132_s16 + $0x12cc] ss:$52 sps:$4 sm:$0xff]  }
 0x418   : > { %v19082_v10 = vld [vmem:[%s21132_s16 + $0x132c] ss:$52 sps:$4 sm:$0xff]  }
 0x419   : > { %13656 = vmatpush1.bf16.msra.mxu1 %v19020_v9  ;;  %v19077_v9 = vld [vmem:[%s21132_s16 + $0x12c8] ss:$52 sps:$4 sm:$0xff]  }
 0x41a   : > { %14025 = vmatpush1.bf16.msra.mxu0 %v19023_v23  ;;  %13657 = vmatprep.subr.bf16.mxu1 %v19028_v12  ;;  %v19080_v23 = vld [vmem:[%s21132_s16 + $0x1328] ss:$52 sps:$4 sm:$0xff]  }
 0x41b   : > { %14026 = vmatprep.subr.bf16.mxu0 %v19031_v2  ;;  %v19085_v12 = vld [vmem:[%s21132_s16 + $0x1334] ss:$52 sps:$4 sm:$0xff]  }
 0x41c   : > { %v19088_v2 = vld [vmem:[%s21132_s16 + $0x1394] ss:$52 sps:$4 sm:$0xff]  }
 0x41d   : > { %13658 = vmatpush1.bf16.msra.mxu1 %v19026_v13  ;;  %v19083_v13 = vld [vmem:[%s21132_s16 + $0x1330] ss:$52 sps:$4 sm:$0xff]  }
 0x41e   : > { %14027 = vmatpush1.bf16.msra.mxu0 %v19029_v17  ;;  %13659 = vmatprep.subr.bf16.mxu1 %v19034_v20  ;;  %v19086_v17 = vld [vmem:[%s21132_s16 + $0x1390] ss:$52 sps:$4 sm:$0xff]  }
 0x41f   : > { %14028 = vmatprep.subr.bf16.mxu0 %v19037_v27  ;;  %v19091_v20 = vld [vmem:[%s21132_s16 + $0x139c] ss:$52 sps:$4 sm:$0xff]  }
 0x420   : > { %v19094_v27 = vld [vmem:[%s21132_s16 + $0x13fc] ss:$52 sps:$4 sm:$0xff]  }
 0x421   : > { %13660 = vmatpush1.bf16.msra.mxu1 %v19032_v22  ;;  %v19089_v22 = vld [vmem:[%s21132_s16 + $0x1398] ss:$52 sps:$4 sm:$0xff]  }
 0x422   : > { %14029 = vmatpush1.bf16.msra.mxu0 %v19035_v32  ;;  %13661 = vmatprep.subr.bf16.mxu1 %v19040_v28  ;;  %v19092_v32 = vld [vmem:[%s21132_s16 + $0x13f8] ss:$52 sps:$4 sm:$0xff]   ;;  %v19095_v28 = vld [vmem:[%s21132_s16 + $0x1400] ss:$52 sps:$4 sm:$0xff]  }
 0x423   : > { %14030 = vmatprep.subr.bf16.mxu0 %v19043_v31  ;;  %v19100_v31 = vld [vmem:[%s21132_s16 + $0x1464] ss:$52 sps:$4 sm:$0xff]  }
 0x425   : > { %13662 = vmatpush1.bf16.msra.mxu1 %v19038_v30  ;;  %v19097_v30 = vld [vmem:[%s21132_s16 + $0x1404] ss:$52 sps:$4 sm:$0xff]  }
 0x426   : > { %14031 = vmatpush1.bf16.msra.mxu0 %v19041_v38  ;;  %13663 = vmatprep.subr.bf16.mxu1 %v19046_v39  ;;  %v19103_v38 = vld [vmem:[%s21132_s16 + $0x146c] ss:$52 sps:$4 sm:$0xff]  }
 0x427   : > { %14032 = vmatprep.subr.bf16.mxu0 %v19049_v45  ;;  %v19098_v39 = vld [vmem:[%s21132_s16 + $0x1460] ss:$52 sps:$4 sm:$0xff]  }
 0x428   : > { %v19106_v45 = vld [vmem:[%s21132_s16 + $0x14cc] ss:$52 sps:$4 sm:$0xff]  }
 0x429   : > { %13664 = vmatpush1.bf16.msra.mxu1 %v19044_v33  ;;  %v19101_v33 = vld [vmem:[%s21132_s16 + $0x1468] ss:$52 sps:$4 sm:$0xff]  }
 0x42a   : > { %14033 = vmatpush1.bf16.msra.mxu0 %v19047_v46  ;;  %13665 = vmatprep.subr.bf16.mxu1 %v19052_v19  ;;  %v19109_v46 = vld [vmem:[%s21132_s16 + $0x14d4] ss:$52 sps:$4 sm:$0xff]  }
 0x42b   : > { %14034 = vmatprep.subr.bf16.mxu0 %v19055_v47  ;;  %v19104_v19 = vld [vmem:[%s21132_s16 + $0x14c8] ss:$52 sps:$4 sm:$0xff]  }
 0x42c   : > { %v19112_v47 = vld [vmem:[%s21132_s16 + $0x1534] ss:$52 sps:$4 sm:$0xff]  }
 0x42d   : > { %13666 = vmatpush1.bf16.msra.mxu1 %v19050_v34  ;;  %v19107_v34 = vld [vmem:[%s21132_s16 + $0x14d0] ss:$52 sps:$4 sm:$0xff]  }
 0x42e   : > { %14035 = vmatpush1.bf16.msra.mxu0 %v19053_v48  ;;  %13667 = vmatprep.subr.bf16.mxu1 %v19058_v42  ;;  %v19115_v48 = vld [vmem:[%s21132_s16 + $0x153c] ss:$52 sps:$4 sm:$0xff]  }
 0x42f   : > { %14036 = vmatprep.subr.bf16.mxu0 %v19061_v5  ;;  %v19110_v42 = vld [vmem:[%s21132_s16 + $0x1530] ss:$52 sps:$4 sm:$0xff]   ;;  %v19113_v5 = vld [vmem:[%s21132_s16 + $0x1538] ss:$52 sps:$4 sm:$0xff]  }
 0x431   : > { %13668 = vmatpush1.bf16.msra.mxu1 %v19056_v25  ;;  %v3252_v25 = vld [vmem:[%s22178_s22] sm:$0xff] }
 0x432   : > { %14037 = vmatpush1.bf16.msra.mxu0 %v19059_v35  ;;  %13669 = vmatprep.subr.bf16.mxu1 %v19064_v50  ;;  %v19118_v35 = vld [vmem:[%s21132_s16 + $0x159c] ss:$52 sps:$4 sm:$0xff]   ;;  %v19121_v50 = vld [vmem:[%s21132_s16 + $0x15a4] ss:$52 sps:$4 sm:$0xff]  }
 0x433   : > { %14038 = vmatprep.subr.bf16.mxu0 %v19067_v55  ;;  %v3259_v55 = vrot.slane %v3252_v25, %v21257_v24 }
 0x435   : > { %13670 = vmatpush1.bf16.msra.mxu1 %v19062_v52  ;;  %v19116_v52 = vld [vmem:[%s21132_s16 + $0x1598] ss:$52 sps:$4 sm:$0xff]  }
 0x436   : > { %14039 = vmatpush1.bf16.msra.mxu0 %v19065_v62  ;;  %13671 = vmatprep.subr.bf16.mxu1 %v19070_v56  ;;  %v3267_v62 = vrot.slane %v3252_v25, %v21312_v11  ;;  %v3263_v56 = vrot.slane %v3252_v25, %v21262_v26 }
 0x437   : > { %14040 = vmatprep.subr.bf16.mxu0 %v19073_v0  ;;  %v19119_v0 = vld [vmem:[%s21132_s16 + $0x15a0] ss:$52 sps:$4 sm:$0xff]  }
 0x439   : > { %13672 = vmatpush1.bf16.msra.mxu1 %v19068_v59  ;;  %v3271_v59 = vrot.slane %v3252_v25, %v21269_v29  ;;  %v19148_v25 = vld [vmem:[%s21132_s16 + $0x17a4] ss:$52 sps:$4 sm:$0xff]  }
 0x43a   : > { %14041 = vmatpush1.bf16.msra.mxu0 %v19071_v1  ;;  %13673 = vmatprep.subr.bf16.mxu1 %v19076_v3  ;;  %v19124_v1 = vld [vmem:[%s21132_s16 + $0x1604] ss:$52 sps:$4 sm:$0xff]  }
 0x43b   : > { %14042 = vmatprep.subr.bf16.mxu0 %v19079_v7  ;;  %v19127_v7 = vld [vmem:[%s21132_s16 + $0x160c] ss:$52 sps:$4 sm:$0xff]  }
 0x43d   : > { %13674 = vmatpush1.bf16.msra.mxu1 %v19074_v6  ;;  %v19122_v6 = vld [vmem:[%s21132_s16 + $0x1600] ss:$52 sps:$4 sm:$0xff]  }
 0x43e   : > { %14043 = vmatpush1.bf16.msra.mxu0 %v19077_v9  ;;  %13675 = vmatprep.subr.bf16.mxu1 %v19082_v10 }
 0x43f   : > { %14044 = vmatprep.subr.bf16.mxu0 %v19085_v12 }
 0x441   : > { %13676 = vmatpush1.bf16.msra.mxu1 %v19080_v23 }
 0x442   : > { %14045 = vmatpush1.bf16.msra.mxu0 %v19083_v13  ;;  %13686 = vmatprep.subr.bf16.mxu1 %v19088_v2 }
 0x443   : > { %14055 = vmatprep.subr.bf16.mxu0 %v19091_v20 }
 0x444   : > { %13678 = vmatmul.mubr.bf16.vlgmr.msra.gmra.mrb[8].mxu1 %v21492_v41 }
 0x445   : > { %14047 = vmatmul.mubr.bf16.vlgmr.msra.gmra.mrb[20].mxu0 %v21492_v41  ;;  %13687 = vmatpush1.bf16.msra.mxu1 %v19086_v17 }
 0x446   : > { %13718 = vmatprep.mubr.bf16.mxu1 %v21498_v61  ;;  %14056 = vmatpush1.bf16.msra.mxu0 %v19089_v22 }
 0x447   : > { %14087 = vmatprep.mubr.bf16.mxu0 %v21498_v61  ;;  %13688 = vmatprep.subr.bf16.mxu1 %v19094_v27 }
 0x448   : > { %14057 = vmatprep.subr.bf16.mxu0 %v19097_v30 }
 0x449   : > { %13689 = vmatpush1.bf16.msra.mxu1 %v19092_v32  ;;  %v19125_v32 = vld [vmem:[%s21132_s16 + $0x1608] ss:$52 sps:$4 sm:$0xff]  }
 0x44a   : > { %14058 = vmatpush1.bf16.msra.mxu0 %v19095_v28  ;;  %13690 = vmatprep.subr.bf16.mxu1 %v19100_v31  ;;  %v19130_v28 = vld [vmem:[%s21132_s16 + $0x166c] ss:$52 sps:$4 sm:$0xff]   ;;  %v19128_v31 = vld [vmem:[%s21132_s16 + $0x1668] ss:$52 sps:$4 sm:$0xff]  }
 0x44b   : > { %14059 = vmatprep.subr.bf16.mxu0 %v19103_v38  ;;  %v19133_v38 = vld [vmem:[%s21132_s16 + $0x1674] ss:$52 sps:$4 sm:$0xff]  }
 0x44d   : > { %13691 = vmatpush1.bf16.msra.mxu1 %v19098_v39  ;;  %v19131_v39 = vld [vmem:[%s21132_s16 + $0x1670] ss:$52 sps:$4 sm:$0xff]  }
 0x44e   : > { %14060 = vmatpush1.bf16.msra.mxu0 %v19101_v33  ;;  %13692 = vmatprep.subr.bf16.mxu1 %v19106_v45  ;;  %v19136_v33 = vld [vmem:[%s21132_s16 + $0x16d4] ss:$52 sps:$4 sm:$0xff]   ;;  %v19134_v45 = vld [vmem:[%s21132_s16 + $0x16d0] ss:$52 sps:$4 sm:$0xff]  }
 0x44f   : > { %14061 = vmatprep.subr.bf16.mxu0 %v19109_v46  ;;  %v19139_v46 = vld [vmem:[%s21132_s16 + $0x16dc] ss:$52 sps:$4 sm:$0xff]  }
 0x451   : > { %13693 = vmatpush1.bf16.msra.mxu1 %v19104_v19  ;;  %v19137_v19 = vld [vmem:[%s21132_s16 + $0x16d8] ss:$52 sps:$4 sm:$0xff]  }
 0x452   : > { %14062 = vmatpush1.bf16.msra.mxu0 %v19107_v34  ;;  %13694 = vmatprep.subr.bf16.mxu1 %v19112_v47  ;;  %v19142_v34 = vld [vmem:[%s21132_s16 + $0x173c] ss:$52 sps:$4 sm:$0xff]   ;;  %v19140_v47 = vld [vmem:[%s21132_s16 + $0x1738] ss:$52 sps:$4 sm:$0xff]  }
 0x453   : > { %14063 = vmatprep.subr.bf16.mxu0 %v19115_v48  ;;  %v19145_v48 = vld [vmem:[%s21132_s16 + $0x1744] ss:$52 sps:$4 sm:$0xff]  }
 0x455   : > { %13695 = vmatpush1.bf16.msra.mxu1 %v19110_v42  ;;  %v19143_v42 = vld [vmem:[%s21132_s16 + $0x1740] ss:$52 sps:$4 sm:$0xff]  }
 0x456   : > { %14064 = vmatpush1.bf16.msra.mxu0 %v19113_v5  ;;  %13696 = vmatprep.subr.bf16.mxu1 %v19118_v35  ;;  %v19146_v5 = vld [vmem:[%s21132_s16 + $0x17a0] ss:$52 sps:$4 sm:$0xff]  }
 0x457   : > { %v13187_v3 = vpop.f32.mrb[4].mxu1  ;;  %14065 = vmatprep.subr.bf16.mxu0 %v19121_v50  ;;  %v19151_v35 = vld [vmem:[%s21132_s16 + $0x17ac] ss:$52 sps:$4 sm:$0xff]   ;;  %v19149_v50 = vld [vmem:[%s21132_s16 + $0x17a8] ss:$52 sps:$4 sm:$0xff]  }
 0x458   : > { %v17648_v9 = vadd.f32 %v13187_v3, %v3259_v55  ;;  %v13556_v10 = vpop.f32.mrb[16].mxu0  ;;  %v13189_v23 = vpop.f32.mrb[5].mxu1  ;;  %v19152_v55 = vld [vmem:[%s21132_s16 + $0x1808] ss:$52 sps:$4 sm:$0xff]   ;;  %v19161_v3 = vld [vmem:[%s21132_s16 + $0x1878] ss:$52 sps:$4 sm:$0xff]  }
 0x459   : > { %v17650_v12 = vadd.f32 %v13556_v10, %v3267_v62  ;;  %v17649_v13 = vadd.f32 %v13189_v23, %v3263_v56  ;;  %v13558_v2 = vpop.f32.mrb[17].mxu0  ;;  %v13191_v17 = vpop.f32.mrb[6].mxu1  ;;  %13697 = vmatpush1.bf16.msra.mxu1 %v19116_v52  ;;  %v19154_v52 = vld [vmem:[%s21132_s16 + $0x180c] ss:$52 sps:$4 sm:$0xff]   ;;  %v19157_v62 = vld [vmem:[%s21132_s16 + $0x1814] ss:$52 sps:$4 sm:$0xff]  }
 0x45a   : > { %15399 = vst [vmem:[%s22194_s8] sm:$0xff] %v17648_v9  ;;  %v17651_v20 = vadd.f32 %v13558_v2, %v3271_v59  ;;  %v13560_v22 = vpop.f32.mrb[18].mxu0  ;;  %14066 = vmatpush1.bf16.msra.mxu0 %v19119_v0  ;;  %v13192_v27 = vpop.f32.mrb[7].mxu1  ;;  %13698 = vmatprep.subr.bf16.mxu1 %v19124_v1  ;;  %v19155_v56 = vld [vmem:[%s21132_s16 + $0x1810] ss:$52 sps:$4 sm:$0xff]   ;;  %v19160_v59 = vld [vmem:[%s21132_s16 + $0x1874] ss:$52 sps:$4 sm:$0xff]  }
 0x45b   : > { %15401 = vst [vmem:[%s22194_s8 + $0x10] sm:$0xff] %v17650_v12  ;;  %15400 = vst [vmem:[%s22194_s8 + $0x8] sm:$0xff] %v17649_v13  ;;  %v13561_v30 = vpop.f32.mrb[19].mxu0  ;;  %14067 = vmatprep.subr.bf16.mxu0 %v19127_v7  ;;  %v19158_v0 = vld [vmem:[%s21132_s16 + $0x1870] ss:$52 sps:$4 sm:$0xff]  }
 0x45c   : > { %15402 = vst [vmem:[%s22194_s8 + $0x18] sm:$0xff] %v17651_v20  ;;  %v19163_v1 = vld [vmem:[%s21132_s16 + $0x187c] ss:$52 sps:$4 sm:$0xff]   ;;  %v19169_v7 = vld [vmem:[%s21132_s16 + $0x18e4] ss:$52 sps:$4 sm:$0xff]  }
 0x45d   : > { %13699 = vmatpush1.bf16.msra.mxu1 %v19122_v6  ;;  %v19166_v6 = vld [vmem:[%s21132_s16 + $0x18dc] ss:$52 sps:$4 sm:$0xff]   ;;  %v19164_v9 = vld [vmem:[%s21132_s16 + $0x18d8] ss:$52 sps:$4 sm:$0xff]   ;;  %v19167_v10 = vld [vmem:[%s21132_s16 + $0x18e0] ss:$52 sps:$4 sm:$0xff]  }
 0x45e   : > { %14068 = vmatpush1.bf16.msra.mxu0 %v19125_v32  ;;  %13700 = vmatprep.subr.bf16.mxu1 %v19130_v28  ;;  %v19172_v23 = vld [vmem:[%s21132_s16 + $0x1944] ss:$52 sps:$4 sm:$0xff]   ;;  %v19175_v12 = vld [vmem:[%s21132_s16 + $0x194c] ss:$52 sps:$4 sm:$0xff]   ;;  %v19173_v2 = vld [vmem:[%s21132_s16 + $0x1948] ss:$52 sps:$4 sm:$0xff]  }
 0x45f   : > { %14069 = vmatprep.subr.bf16.mxu0 %v19133_v38  ;;  %v19170_v13 = vld [vmem:[%s21132_s16 + $0x1940] ss:$52 sps:$4 sm:$0xff]   ;;  %v19176_v22 = vld [vmem:[%s21132_s16 + $0x19a8] ss:$52 sps:$4 sm:$0xff]   ;;  %v19179_v27 = vld [vmem:[%s21132_s16 + $0x19b0] ss:$52 sps:$4 sm:$0xff]  }
 0x460   : > { %v19178_v17 = vld [vmem:[%s21132_s16 + $0x19ac] ss:$52 sps:$4 sm:$0xff]   ;;  %v19181_v20 = vld [vmem:[%s21132_s16 + $0x19b4] ss:$52 sps:$4 sm:$0xff]   ;;  %v19187_v28 = vld [vmem:[%s21132_s16 + $0x1a1c] ss:$52 sps:$4 sm:$0xff]  }
 0x461   : > { %13701 = vmatpush1.bf16.msra.mxu1 %v19128_v31  ;;  %v19184_v32 = vld [vmem:[%s21132_s16 + $0x1a14] ss:$52 sps:$4 sm:$0xff]   ;;  %v19182_v30 = vld [vmem:[%s21132_s16 + $0x1a10] ss:$52 sps:$4 sm:$0xff]   ;;  %v19185_v31 = vld [vmem:[%s21132_s16 + $0x1a18] ss:$52 sps:$4 sm:$0xff]  }
 0x462   : > { %14070 = vmatpush1.bf16.msra.mxu0 %v19131_v39  ;;  %13702 = vmatprep.subr.bf16.mxu1 %v19136_v33  ;;  %v19190_v38 = vld [vmem:[%s21132_s16 + $0x1a7c] ss:$52 sps:$4 sm:$0xff]   ;;  %v19193_v39 = vld [vmem:[%s21132_s16 + $0x1a84] ss:$52 sps:$4 sm:$0xff]  }
 0x463   : > { %14071 = vmatprep.subr.bf16.mxu0 %v19139_v46  ;;  %v19188_v33 = vld [vmem:[%s21132_s16 + $0x1a78] ss:$52 sps:$4 sm:$0xff]  }
 0x464   : > { %v19196_v46 = vld [vmem:[%s21132_s16 + $0x1ae4] ss:$52 sps:$4 sm:$0xff]  }
 0x465   : > { %13703 = vmatpush1.bf16.msra.mxu1 %v19134_v45  ;;  %v19191_v45 = vld [vmem:[%s21132_s16 + $0x1a80] ss:$52 sps:$4 sm:$0xff]  }
 0x466   : > { %14072 = vmatpush1.bf16.msra.mxu0 %v19137_v19  ;;  %13704 = vmatprep.subr.bf16.mxu1 %v19142_v34  ;;  %v19199_v19 = vld [vmem:[%s21132_s16 + $0x1aec] ss:$52 sps:$4 sm:$0xff]  }
 0x467   : > { %14073 = vmatprep.subr.bf16.mxu0 %v19145_v48  ;;  %v19194_v34 = vld [vmem:[%s21132_s16 + $0x1ae0] ss:$52 sps:$4 sm:$0xff]  }
 0x468   : > { %v19202_v48 = vld [vmem:[%s21132_s16 + $0x1b4c] ss:$52 sps:$4 sm:$0xff]  }
 0x469   : > { %13705 = vmatpush1.bf16.msra.mxu1 %v19140_v47  ;;  %v19197_v47 = vld [vmem:[%s21132_s16 + $0x1ae8] ss:$52 sps:$4 sm:$0xff]  }
 0x46a   : > { %14074 = vmatpush1.bf16.msra.mxu0 %v19143_v42  ;;  %13706 = vmatprep.subr.bf16.mxu1 %v19148_v25  ;;  %v19205_v42 = vld [vmem:[%s21132_s16 + $0x1b54] ss:$52 sps:$4 sm:$0xff]  }
 0x46b   : > { %14075 = vmatprep.subr.bf16.mxu0 %v19151_v35  ;;  %v19200_v25 = vld [vmem:[%s21132_s16 + $0x1b48] ss:$52 sps:$4 sm:$0xff]  }
 0x46c   : > { %v19208_v35 = vld [vmem:[%s21132_s16 + $0x1bb4] ss:$52 sps:$4 sm:$0xff]  }
 0x46d   : > { %13707 = vmatpush1.bf16.msra.mxu1 %v19146_v5  ;;  %v19203_v5 = vld [vmem:[%s21132_s16 + $0x1b50] ss:$52 sps:$4 sm:$0xff]  }
 0x46e   : > { %14076 = vmatpush1.bf16.msra.mxu0 %v19149_v50  ;;  %13708 = vmatprep.subr.bf16.mxu1 %v19154_v52  ;;  %v19211_v50 = vld [vmem:[%s21132_s16 + $0x1bbc] ss:$52 sps:$4 sm:$0xff]  }
 0x46f   : > { %14077 = vmatprep.subr.bf16.mxu0 %v19157_v62  ;;  %v19206_v52 = vld [vmem:[%s21132_s16 + $0x1bb0] ss:$52 sps:$4 sm:$0xff]  }
 0x470   : > { %v19214_v62 = vld [vmem:[%s21132_s16 + $0x1c1c] ss:$52 sps:$4 sm:$0xff]  }
 0x471   : > { %13709 = vmatpush1.bf16.msra.mxu1 %v19152_v55  ;;  %v19209_v55 = vld [vmem:[%s21132_s16 + $0x1bb8] ss:$52 sps:$4 sm:$0xff]  }
 0x472   : > { %14078 = vmatpush1.bf16.msra.mxu0 %v19155_v56  ;;  %13710 = vmatprep.subr.bf16.mxu1 %v19160_v59  ;;  %v19217_v56 = vld [vmem:[%s21132_s16 + $0x1c24] ss:$52 sps:$4 sm:$0xff]  }
 0x473   : > { %14079 = vmatprep.subr.bf16.mxu0 %v19163_v1  ;;  %v19212_v59 = vld [vmem:[%s21132_s16 + $0x1c18] ss:$52 sps:$4 sm:$0xff]  }
 0x474   : > { %v19220_v1 = vld [vmem:[%s21132_s16 + $0x1c84] ss:$52 sps:$4 sm:$0xff]  }
 0x475   : > { %13711 = vmatpush1.bf16.msra.mxu1 %v19158_v0  ;;  %v19215_v0 = vld [vmem:[%s21132_s16 + $0x1c20] ss:$52 sps:$4 sm:$0xff]  }
 0x476   : > { %14080 = vmatpush1.bf16.msra.mxu0 %v19161_v3  ;;  %13712 = vmatprep.subr.bf16.mxu1 %v19166_v6  ;;  %v19223_v3 = vld [vmem:[%s21132_s16 + $0x1c8c] ss:$52 sps:$4 sm:$0xff]  }
 0x477   : > { %14081 = vmatprep.subr.bf16.mxu0 %v19169_v7  ;;  %v19218_v6 = vld [vmem:[%s21132_s16 + $0x1c80] ss:$52 sps:$4 sm:$0xff]   ;;  %v19221_v7 = vld [vmem:[%s21132_s16 + $0x1c88] ss:$52 sps:$4 sm:$0xff]  }
 0x479   : > { %13713 = vmatpush1.bf16.msra.mxu1 %v19164_v9  ;;  %v19226_v9 = vld [vmem:[%s21132_s16 + $0x1cec] ss:$52 sps:$4 sm:$0xff]  }
 0x47a   : > { %14082 = vmatpush1.bf16.msra.mxu0 %v19167_v10  ;;  %13714 = vmatprep.subr.bf16.mxu1 %v19172_v23  ;;  %v19229_v10 = vld [vmem:[%s21132_s16 + $0x1cf4] ss:$52 sps:$4 sm:$0xff]  }
 0x47b   : > { %14083 = vmatprep.subr.bf16.mxu0 %v19175_v12  ;;  %v19224_v23 = vld [vmem:[%s21132_s16 + $0x1ce8] ss:$52 sps:$4 sm:$0xff]   ;;  %v19227_v12 = vld [vmem:[%s21132_s16 + $0x1cf0] ss:$52 sps:$4 sm:$0xff]  }
 0x47d   : > { %13715 = vmatpush1.bf16.msra.mxu1 %v19170_v13  ;;  %v19232_v13 = vld [vmem:[%s21132_s16 + $0x1d54] ss:$52 sps:$4 sm:$0xff]  }
 0x47e   : > { %14084 = vmatpush1.bf16.msra.mxu0 %v19173_v2  ;;  %13716 = vmatprep.subr.bf16.mxu1 %v19178_v17  ;;  %v19235_v2 = vld [vmem:[%s21132_s16 + $0x1d5c] ss:$52 sps:$4 sm:$0xff]  }
 0x47f   : > { %14085 = vmatprep.subr.bf16.mxu0 %v19181_v20  ;;  %v19230_v17 = vld [vmem:[%s21132_s16 + $0x1d50] ss:$52 sps:$4 sm:$0xff]   ;;  %v19233_v20 = vld [vmem:[%s21132_s16 + $0x1d58] ss:$52 sps:$4 sm:$0xff]  }
 0x481   : > { %13717 = vmatpush1.bf16.msra.mxu1 %v19176_v22  ;;  %v19238_v22 = vld [vmem:[%s21132_s16 + $0x1dbc] ss:$52 sps:$4 sm:$0xff]  }
 0x482   : > { %14086 = vmatpush1.bf16.msra.mxu0 %v19179_v27  ;;  %13727 = vmatprep.subr.bf16.mxu1 %v19184_v32  ;;  %v19241_v27 = vld [vmem:[%s21132_s16 + $0x1dc4] ss:$52 sps:$4 sm:$0xff]  }
 0x483   : > { %14096 = vmatprep.subr.bf16.mxu0 %v19187_v28  ;;  %v19236_v32 = vld [vmem:[%s21132_s16 + $0x1db8] ss:$52 sps:$4 sm:$0xff]   ;;  %v19239_v28 = vld [vmem:[%s21132_s16 + $0x1dc0] ss:$52 sps:$4 sm:$0xff]  }
 0x484   : > { %13719 = vmatmul.mubr.bf16.vlgmr.msra.gmra.mrb[8].mxu1 %v21571_v49 }
 0x485   : > { %14088 = vmatmul.mubr.bf16.vlgmr.msra.gmra.mrb[20].mxu0 %v21571_v49  ;;  %13728 = vmatpush1.bf16.msra.mxu1 %v19182_v30  ;;  %v19244_v30 = vld [vmem:[%s21132_s16 + $0x1e24] ss:$52 sps:$4 sm:$0xff]  }
 0x486   : > { %13759 = vmatprep.mubr.bf16.mxu1 %v21575_v51  ;;  %14097 = vmatpush1.bf16.msra.mxu0 %v19185_v31  ;;  %v19247_v31 = vld [vmem:[%s21132_s16 + $0x1e2c] ss:$52 sps:$4 sm:$0xff]  }
 0x487   : > { %14128 = vmatprep.mubr.bf16.mxu0 %v21575_v51  ;;  %13729 = vmatprep.subr.bf16.mxu1 %v19190_v38  ;;  %v19242_v38 = vld [vmem:[%s21132_s16 + $0x1e20] ss:$52 sps:$4 sm:$0xff]  }
 0x488   : > { %14098 = vmatprep.subr.bf16.mxu0 %v19193_v39  ;;  %v19245_v39 = vld [vmem:[%s21132_s16 + $0x1e28] ss:$52 sps:$4 sm:$0xff]  }
 0x489   : > { %13730 = vmatpush1.bf16.msra.mxu1 %v19188_v33  ;;  %v19250_v33 = vld [vmem:[%s21132_s16 + $0x1e8c] ss:$52 sps:$4 sm:$0xff]  }
 0x48a   : > { %14099 = vmatpush1.bf16.msra.mxu0 %v19191_v45  ;;  %13731 = vmatprep.subr.bf16.mxu1 %v19196_v46  ;;  %v19253_v45 = vld [vmem:[%s21132_s16 + $0x1e94] ss:$52 sps:$4 sm:$0xff]  }
 0x48b   : > { %14100 = vmatprep.subr.bf16.mxu0 %v19199_v19  ;;  %v19248_v46 = vld [vmem:[%s21132_s16 + $0x1e88] ss:$52 sps:$4 sm:$0xff]   ;;  %v19251_v19 = vld [vmem:[%s21132_s16 + $0x1e90] ss:$52 sps:$4 sm:$0xff]  }
 0x48d   : > { %13732 = vmatpush1.bf16.msra.mxu1 %v19194_v34  ;;  %v19256_v34 = vld [vmem:[%s21132_s16 + $0x1ef4] ss:$52 sps:$4 sm:$0xff]  }
 0x48e   : > { %14101 = vmatpush1.bf16.msra.mxu0 %v19197_v47  ;;  %13733 = vmatprep.subr.bf16.mxu1 %v19202_v48  ;;  %v19259_v47 = vld [vmem:[%s21132_s16 + $0x1efc] ss:$52 sps:$4 sm:$0xff]  }
 0x48f   : > { %14102 = vmatprep.subr.bf16.mxu0 %v19205_v42  ;;  %v19254_v48 = vld [vmem:[%s21132_s16 + $0x1ef0] ss:$52 sps:$4 sm:$0xff]   ;;  %v19257_v42 = vld [vmem:[%s21132_s16 + $0x1ef8] ss:$52 sps:$4 sm:$0xff]  }
 0x491   : > { %13734 = vmatpush1.bf16.msra.mxu1 %v19200_v25  ;;  %v19262_v25 = vld [vmem:[%s21132_s16 + $0x1f5c] ss:$52 sps:$4 sm:$0xff]  }
 0x492   : > { %14103 = vmatpush1.bf16.msra.mxu0 %v19203_v5  ;;  %13735 = vmatprep.subr.bf16.mxu1 %v19208_v35  ;;  %v19265_v5 = vld [vmem:[%s21132_s16 + $0x1f64] ss:$52 sps:$4 sm:$0xff]  }
 0x493   : > { %14104 = vmatprep.subr.bf16.mxu0 %v19211_v50  ;;  %v19260_v35 = vld [vmem:[%s21132_s16 + $0x1f58] ss:$52 sps:$4 sm:$0xff]   ;;  %v19263_v50 = vld [vmem:[%s21132_s16 + $0x1f60] ss:$52 sps:$4 sm:$0xff]  }
 0x495   : > { %13736 = vmatpush1.bf16.msra.mxu1 %v19206_v52  ;;  %v19268_v52 = vld [vmem:[%s21132_s16 + $0x1fc4] ss:$52 sps:$4 sm:$0xff]  }
 0x496   : > { %14105 = vmatpush1.bf16.msra.mxu0 %v19209_v55  ;;  %13737 = vmatprep.subr.bf16.mxu1 %v19214_v62  ;;  %v19271_v55 = vld [vmem:[%s21132_s16 + $0x1fcc] ss:$52 sps:$4 sm:$0xff]  }
 0x497   : > { %14106 = vmatprep.subr.bf16.mxu0 %v19217_v56  ;;  %v19266_v62 = vld [vmem:[%s21132_s16 + $0x1fc0] ss:$52 sps:$4 sm:$0xff]   ;;  %v19269_v56 = vld [vmem:[%s21132_s16 + $0x1fc8] ss:$52 sps:$4 sm:$0xff]  }
 0x499   : > { %13738 = vmatpush1.bf16.msra.mxu1 %v19212_v59  ;;  %v19274_v59 = vld [vmem:[%s21132_s16 + $0x202c] ss:$52 sps:$4 sm:$0xff]  }
 0x49a   : > { %14107 = vmatpush1.bf16.msra.mxu0 %v19215_v0  ;;  %13739 = vmatprep.subr.bf16.mxu1 %v19220_v1  ;;  %v19277_v0 = vld [vmem:[%s21132_s16 + $0x2034] ss:$52 sps:$4 sm:$0xff]  }
 0x49b   : > { %14108 = vmatprep.subr.bf16.mxu0 %v19223_v3  ;;  %v19272_v1 = vld [vmem:[%s21132_s16 + $0x2028] ss:$52 sps:$4 sm:$0xff]   ;;  %v19275_v3 = vld [vmem:[%s21132_s16 + $0x2030] ss:$52 sps:$4 sm:$0xff]  }
 0x49d   : > { %13740 = vmatpush1.bf16.msra.mxu1 %v19218_v6  ;;  %v19280_v6 = vld [vmem:[%s21132_s16 + $0x2094] ss:$52 sps:$4 sm:$0xff]  }
 0x49e   : > { %14109 = vmatpush1.bf16.msra.mxu0 %v19221_v7  ;;  %13741 = vmatprep.subr.bf16.mxu1 %v19226_v9  ;;  %v19283_v7 = vld [vmem:[%s21132_s16 + $0x209c] ss:$52 sps:$4 sm:$0xff]  }
 0x49f   : > { %14110 = vmatprep.subr.bf16.mxu0 %v19229_v10  ;;  %v19278_v9 = vld [vmem:[%s21132_s16 + $0x2090] ss:$52 sps:$4 sm:$0xff]   ;;  %v19281_v10 = vld [vmem:[%s21132_s16 + $0x2098] ss:$52 sps:$4 sm:$0xff]  }
 0x4a1   : > { %13742 = vmatpush1.bf16.msra.mxu1 %v19224_v23  ;;  %v19286_v23 = vld [vmem:[%s21132_s16 + $0x20fc] ss:$52 sps:$4 sm:$0xff]  }
 0x4a2   : > { %14111 = vmatpush1.bf16.msra.mxu0 %v19227_v12  ;;  %13743 = vmatprep.subr.bf16.mxu1 %v19232_v13  ;;  %v19289_v12 = vld [vmem:[%s21132_s16 + $0x2104] ss:$52 sps:$4 sm:$0xff]  }
 0x4a3   : > { %14112 = vmatprep.subr.bf16.mxu0 %v19235_v2  ;;  %v19284_v13 = vld [vmem:[%s21132_s16 + $0x20f8] ss:$52 sps:$4 sm:$0xff]   ;;  %v19287_v2 = vld [vmem:[%s21132_s16 + $0x2100] ss:$52 sps:$4 sm:$0xff]  }
 0x4a5   : > { %13744 = vmatpush1.bf16.msra.mxu1 %v19230_v17  ;;  %v19292_v17 = vld [vmem:[%s21132_s16 + $0x2164] ss:$52 sps:$4 sm:$0xff]  }
 0x4a6   : > { %14113 = vmatpush1.bf16.msra.mxu0 %v19233_v20  ;;  %13745 = vmatprep.subr.bf16.mxu1 %v19238_v22  ;;  %v19295_v20 = vld [vmem:[%s21132_s16 + $0x216c] ss:$52 sps:$4 sm:$0xff]  }
 0x4a7   : > { %14114 = vmatprep.subr.bf16.mxu0 %v19241_v27  ;;  %v19290_v22 = vld [vmem:[%s21132_s16 + $0x2160] ss:$52 sps:$4 sm:$0xff]   ;;  %v19293_v27 = vld [vmem:[%s21132_s16 + $0x2168] ss:$52 sps:$4 sm:$0xff]  }
 0x4a9   : > { %13746 = vmatpush1.bf16.msra.mxu1 %v19236_v32  ;;  %v19298_v32 = vld [vmem:[%s21132_s16 + $0x21cc] ss:$52 sps:$4 sm:$0xff]  }
 0x4aa   : > { %14115 = vmatpush1.bf16.msra.mxu0 %v19239_v28  ;;  %13747 = vmatprep.subr.bf16.mxu1 %v19244_v30  ;;  %v19301_v28 = vld [vmem:[%s21132_s16 + $0x21d4] ss:$52 sps:$4 sm:$0xff]  }
 0x4ab   : > { %14116 = vmatprep.subr.bf16.mxu0 %v19247_v31  ;;  %v19296_v30 = vld [vmem:[%s21132_s16 + $0x21c8] ss:$52 sps:$4 sm:$0xff]   ;;  %v19299_v31 = vld [vmem:[%s21132_s16 + $0x21d0] ss:$52 sps:$4 sm:$0xff]  }
 0x4ad   : > { %13748 = vmatpush1.bf16.msra.mxu1 %v19242_v38  ;;  %v19304_v38 = vld [vmem:[%s21132_s16 + $0x2234] ss:$52 sps:$4 sm:$0xff]  }
 0x4ae   : > { %14117 = vmatpush1.bf16.msra.mxu0 %v19245_v39  ;;  %13749 = vmatprep.subr.bf16.mxu1 %v19250_v33  ;;  %v19307_v39 = vld [vmem:[%s21132_s16 + $0x223c] ss:$52 sps:$4 sm:$0xff]  }
 0x4af   : > { %14118 = vmatprep.subr.bf16.mxu0 %v19253_v45  ;;  %v19302_v33 = vld [vmem:[%s21132_s16 + $0x2230] ss:$52 sps:$4 sm:$0xff]   ;;  %v19305_v45 = vld [vmem:[%s21132_s16 + $0x2238] ss:$52 sps:$4 sm:$0xff]  }
 0x4b1   : > { %13750 = vmatpush1.bf16.msra.mxu1 %v19248_v46  ;;  %v19310_v46 = vld [vmem:[%s21132_s16 + $0x229c] ss:$52 sps:$4 sm:$0xff]  }
 0x4b2   : > { %14119 = vmatpush1.bf16.msra.mxu0 %v19251_v19  ;;  %13751 = vmatprep.subr.bf16.mxu1 %v19256_v34  ;;  %v19313_v19 = vld [vmem:[%s21132_s16 + $0x22a4] ss:$52 sps:$4 sm:$0xff]  }
 0x4b3   : > { %14120 = vmatprep.subr.bf16.mxu0 %v19259_v47  ;;  %v19308_v34 = vld [vmem:[%s21132_s16 + $0x2298] ss:$52 sps:$4 sm:$0xff]   ;;  %v19311_v47 = vld [vmem:[%s21132_s16 + $0x22a0] ss:$52 sps:$4 sm:$0xff]  }
 0x4b5   : > { %13752 = vmatpush1.bf16.msra.mxu1 %v19254_v48  ;;  %v19316_v48 = vld [vmem:[%s21132_s16 + $0x2304] ss:$52 sps:$4 sm:$0xff]  }
 0x4b6   : > { %14121 = vmatpush1.bf16.msra.mxu0 %v19257_v42  ;;  %13753 = vmatprep.subr.bf16.mxu1 %v19262_v25  ;;  %v19319_v42 = vld [vmem:[%s21132_s16 + $0x230c] ss:$52 sps:$4 sm:$0xff]  }
 0x4b7   : > { %14122 = vmatprep.subr.bf16.mxu0 %v19265_v5  ;;  %v19314_v25 = vld [vmem:[%s21132_s16 + $0x2300] ss:$52 sps:$4 sm:$0xff]   ;;  %v19317_v5 = vld [vmem:[%s21132_s16 + $0x2308] ss:$52 sps:$4 sm:$0xff]  }
 0x4b9   : > { %13754 = vmatpush1.bf16.msra.mxu1 %v19260_v35  ;;  %v19322_v35 = vld [vmem:[%s21132_s16 + $0x236c] ss:$52 sps:$4 sm:$0xff]  }
 0x4ba   : > { %14123 = vmatpush1.bf16.msra.mxu0 %v19263_v50  ;;  %13755 = vmatprep.subr.bf16.mxu1 %v19268_v52  ;;  %v19325_v50 = vld [vmem:[%s21132_s16 + $0x2374] ss:$52 sps:$4 sm:$0xff]  }
 0x4bb   : > { %14124 = vmatprep.subr.bf16.mxu0 %v19271_v55  ;;  %v19320_v52 = vld [vmem:[%s21132_s16 + $0x2368] ss:$52 sps:$4 sm:$0xff]   ;;  %v19323_v55 = vld [vmem:[%s21132_s16 + $0x2370] ss:$52 sps:$4 sm:$0xff]  }
 0x4bd   : > { %13756 = vmatpush1.bf16.msra.mxu1 %v19266_v62  ;;  %v19328_v62 = vld [vmem:[%s21132_s16 + $0x23d4] ss:$52 sps:$4 sm:$0xff]  }
 0x4be   : > { %14125 = vmatpush1.bf16.msra.mxu0 %v19269_v56  ;;  %13757 = vmatprep.subr.bf16.mxu1 %v19274_v59  ;;  %v19331_v56 = vld [vmem:[%s21132_s16 + $0x23dc] ss:$52 sps:$4 sm:$0xff]  }
 0x4bf   : > { %14126 = vmatprep.subr.bf16.mxu0 %v19277_v0  ;;  %v19326_v59 = vld [vmem:[%s21132_s16 + $0x23d0] ss:$52 sps:$4 sm:$0xff]   ;;  %v19329_v0 = vld [vmem:[%s21132_s16 + $0x23d8] ss:$52 sps:$4 sm:$0xff]  }
 0x4c1   : > { %13758 = vmatpush1.bf16.msra.mxu1 %v19272_v1  ;;  %v19334_v1 = vld [vmem:[%s21132_s16 + $0x243c] ss:$52 sps:$4 sm:$0xff]  }
 0x4c2   : > { %14127 = vmatpush1.bf16.msra.mxu0 %v19275_v3  ;;  %13768 = vmatprep.subr.bf16.mxu1 %v19280_v6  ;;  %v19337_v3 = vld [vmem:[%s21132_s16 + $0x2444] ss:$52 sps:$4 sm:$0xff]  }
 0x4c3   : > { %14137 = vmatprep.subr.bf16.mxu0 %v19283_v7  ;;  %v19332_v6 = vld [vmem:[%s21132_s16 + $0x2438] ss:$52 sps:$4 sm:$0xff]   ;;  %v19335_v7 = vld [vmem:[%s21132_s16 + $0x2440] ss:$52 sps:$4 sm:$0xff]  }
 0x4c4   : > { %13760 = vmatmul.mubr.bf16.vlgmr.msra.gmra.mrb[8].mxu1 %v21651_v58 }
 0x4c5   : > { %14129 = vmatmul.mubr.bf16.vlgmr.msra.gmra.mrb[20].mxu0 %v21651_v58  ;;  %13769 = vmatpush1.bf16.msra.mxu1 %v19278_v9  ;;  %v19340_v9 = vld [vmem:[%s21132_s16 + $0x24a4] ss:$52 sps:$4 sm:$0xff]  }
 0x4c6   : > { %13800 = vmatprep.mubr.bf16.mxu1 %v21653_v8  ;;  %14138 = vmatpush1.bf16.msra.mxu0 %v19281_v10  ;;  %v19343_v10 = vld [vmem:[%s21132_s16 + $0x24ac] ss:$52 sps:$4 sm:$0xff]  }
 0x4c7   : > { %14169 = vmatprep.mubr.bf16.mxu0 %v21653_v8  ;;  %13770 = vmatprep.subr.bf16.mxu1 %v19286_v23  ;;  %v19338_v23 = vld [vmem:[%s21132_s16 + $0x24a0] ss:$52 sps:$4 sm:$0xff]  }
 0x4c8   : > { %14139 = vmatprep.subr.bf16.mxu0 %v19289_v12  ;;  %v19341_v12 = vld [vmem:[%s21132_s16 + $0x24a8] ss:$52 sps:$4 sm:$0xff]  }
 0x4c9   : > { %13771 = vmatpush1.bf16.msra.mxu1 %v19284_v13  ;;  %v19346_v13 = vld [vmem:[%s21132_s16 + $0x250c] ss:$52 sps:$4 sm:$0xff]  }
 0x4ca   : > { %14140 = vmatpush1.bf16.msra.mxu0 %v19287_v2  ;;  %13772 = vmatprep.subr.bf16.mxu1 %v19292_v17  ;;  %v19349_v2 = vld [vmem:[%s21132_s16 + $0x2514] ss:$52 sps:$4 sm:$0xff]  }
 0x4cb   : > { %14141 = vmatprep.subr.bf16.mxu0 %v19295_v20  ;;  %v19344_v17 = vld [vmem:[%s21132_s16 + $0x2508] ss:$52 sps:$4 sm:$0xff]   ;;  %v19347_v20 = vld [vmem:[%s21132_s16 + $0x2510] ss:$52 sps:$4 sm:$0xff]  }
 0x4cd   : > { %13773 = vmatpush1.bf16.msra.mxu1 %v19290_v22  ;;  %v19352_v22 = vld [vmem:[%s21132_s16 + $0x2574] ss:$52 sps:$4 sm:$0xff]  }
 0x4ce   : > { %14142 = vmatpush1.bf16.msra.mxu0 %v19293_v27  ;;  %13774 = vmatprep.subr.bf16.mxu1 %v19298_v32  ;;  %v19355_v27 = vld [vmem:[%s21132_s16 + $0x257c] ss:$52 sps:$4 sm:$0xff]  }
 0x4cf   : > { %14143 = vmatprep.subr.bf16.mxu0 %v19301_v28  ;;  %v19350_v32 = vld [vmem:[%s21132_s16 + $0x2570] ss:$52 sps:$4 sm:$0xff]   ;;  %v19353_v28 = vld [vmem:[%s21132_s16 + $0x2578] ss:$52 sps:$4 sm:$0xff]  }
 0x4d1   : > { %13775 = vmatpush1.bf16.msra.mxu1 %v19296_v30  ;;  %v19358_v30 = vld [vmem:[%s21132_s16 + $0x25dc] ss:$52 sps:$4 sm:$0xff]  }
 0x4d2   : > { %14144 = vmatpush1.bf16.msra.mxu0 %v19299_v31  ;;  %13776 = vmatprep.subr.bf16.mxu1 %v19304_v38  ;;  %v19361_v31 = vld [vmem:[%s21132_s16 + $0x25e4] ss:$52 sps:$4 sm:$0xff]  }
 0x4d3   : > { %14145 = vmatprep.subr.bf16.mxu0 %v19307_v39  ;;  %v19356_v38 = vld [vmem:[%s21132_s16 + $0x25d8] ss:$52 sps:$4 sm:$0xff]   ;;  %v19359_v39 = vld [vmem:[%s21132_s16 + $0x25e0] ss:$52 sps:$4 sm:$0xff]  }
 0x4d5   : > { %13777 = vmatpush1.bf16.msra.mxu1 %v19302_v33  ;;  %v19364_v33 = vld [vmem:[%s21132_s16 + $0x2644] ss:$52 sps:$4 sm:$0xff]  }
 0x4d6   : > { %14146 = vmatpush1.bf16.msra.mxu0 %v19305_v45  ;;  %13778 = vmatprep.subr.bf16.mxu1 %v19310_v46  ;;  %v19367_v45 = vld [vmem:[%s21132_s16 + $0x264c] ss:$52 sps:$4 sm:$0xff]  }
 0x4d7   : > { %14147 = vmatprep.subr.bf16.mxu0 %v19313_v19  ;;  %v19362_v46 = vld [vmem:[%s21132_s16 + $0x2640] ss:$52 sps:$4 sm:$0xff]   ;;  %v19365_v19 = vld [vmem:[%s21132_s16 + $0x2648] ss:$52 sps:$4 sm:$0xff]  }
 0x4d9   : > { %13779 = vmatpush1.bf16.msra.mxu1 %v19308_v34  ;;  %v19370_v34 = vld [vmem:[%s21132_s16 + $0x26ac] ss:$52 sps:$4 sm:$0xff]  }
 0x4da   : > { %14148 = vmatpush1.bf16.msra.mxu0 %v19311_v47  ;;  %13780 = vmatprep.subr.bf16.mxu1 %v19316_v48  ;;  %v19373_v47 = vld [vmem:[%s21132_s16 + $0x26b4] ss:$52 sps:$4 sm:$0xff]  }
 0x4db   : > { %14149 = vmatprep.subr.bf16.mxu0 %v19319_v42  ;;  %v19368_v48 = vld [vmem:[%s21132_s16 + $0x26a8] ss:$52 sps:$4 sm:$0xff]   ;;  %v19371_v42 = vld [vmem:[%s21132_s16 + $0x26b0] ss:$52 sps:$4 sm:$0xff]  }
 0x4dd   : > { %13781 = vmatpush1.bf16.msra.mxu1 %v19314_v25  ;;  %v19376_v25 = vld [vmem:[%s21132_s16 + $0x2714] ss:$52 sps:$4 sm:$0xff]  }
 0x4de   : > { %14150 = vmatpush1.bf16.msra.mxu0 %v19317_v5  ;;  %13782 = vmatprep.subr.bf16.mxu1 %v19322_v35  ;;  %v19379_v5 = vld [vmem:[%s21132_s16 + $0x271c] ss:$52 sps:$4 sm:$0xff]  }
 0x4df   : > { %14151 = vmatprep.subr.bf16.mxu0 %v19325_v50  ;;  %v19374_v35 = vld [vmem:[%s21132_s16 + $0x2710] ss:$52 sps:$4 sm:$0xff]   ;;  %v19377_v50 = vld [vmem:[%s21132_s16 + $0x2718] ss:$52 sps:$4 sm:$0xff]  }
 0x4e1   : > { %13783 = vmatpush1.bf16.msra.mxu1 %v19320_v52  ;;  %v19382_v52 = vld [vmem:[%s21132_s16 + $0x277c] ss:$52 sps:$4 sm:$0xff]  }
 0x4e2   : > { %14152 = vmatpush1.bf16.msra.mxu0 %v19323_v55  ;;  %13784 = vmatprep.subr.bf16.mxu1 %v19328_v62  ;;  %v19385_v55 = vld [vmem:[%s21132_s16 + $0x2784] ss:$52 sps:$4 sm:$0xff]  }
 0x4e3   : > { %14153 = vmatprep.subr.bf16.mxu0 %v19331_v56  ;;  %v19380_v62 = vld [vmem:[%s21132_s16 + $0x2778] ss:$52 sps:$4 sm:$0xff]   ;;  %v19383_v56 = vld [vmem:[%s21132_s16 + $0x2780] ss:$52 sps:$4 sm:$0xff]  }
 0x4e5   : > { %13785 = vmatpush1.bf16.msra.mxu1 %v19326_v59  ;;  %v19388_v59 = vld [vmem:[%s21132_s16 + $0x27e4] ss:$52 sps:$4 sm:$0xff]  }
 0x4e6   : > { %14154 = vmatpush1.bf16.msra.mxu0 %v19329_v0  ;;  %13786 = vmatprep.subr.bf16.mxu1 %v19334_v1  ;;  %v19391_v0 = vld [vmem:[%s21132_s16 + $0x27ec] ss:$52 sps:$4 sm:$0xff]  }
 0x4e7   : > { %14155 = vmatprep.subr.bf16.mxu0 %v19337_v3  ;;  %v19386_v1 = vld [vmem:[%s21132_s16 + $0x27e0] ss:$52 sps:$4 sm:$0xff]   ;;  %v19389_v3 = vld [vmem:[%s21132_s16 + $0x27e8] ss:$52 sps:$4 sm:$0xff]  }
 0x4e9   : > { %13787 = vmatpush1.bf16.msra.mxu1 %v19332_v6  ;;  %v19394_v6 = vld [vmem:[%s21132_s16 + $0x284c] ss:$52 sps:$4 sm:$0xff]  }
 0x4ea   : > { %14156 = vmatpush1.bf16.msra.mxu0 %v19335_v7  ;;  %13788 = vmatprep.subr.bf16.mxu1 %v19340_v9  ;;  %v19397_v7 = vld [vmem:[%s21132_s16 + $0x2854] ss:$52 sps:$4 sm:$0xff]  }
 0x4eb   : > { %14157 = vmatprep.subr.bf16.mxu0 %v19343_v10  ;;  %v19392_v9 = vld [vmem:[%s21132_s16 + $0x2848] ss:$52 sps:$4 sm:$0xff]   ;;  %v19395_v10 = vld [vmem:[%s21132_s16 + $0x2850] ss:$52 sps:$4 sm:$0xff]  }
 0x4ed   : > { %13789 = vmatpush1.bf16.msra.mxu1 %v19338_v23  ;;  %v19400_v23 = vld [vmem:[%s21132_s16 + $0x28b4] ss:$52 sps:$4 sm:$0xff]  }
 0x4ee   : > { %14158 = vmatpush1.bf16.msra.mxu0 %v19341_v12  ;;  %13790 = vmatprep.subr.bf16.mxu1 %v19346_v13  ;;  %v19403_v12 = vld [vmem:[%s21132_s16 + $0x28bc] ss:$52 sps:$4 sm:$0xff]  }
 0x4ef   : > { %14159 = vmatprep.subr.bf16.mxu0 %v19349_v2  ;;  %v19398_v13 = vld [vmem:[%s21132_s16 + $0x28b0] ss:$52 sps:$4 sm:$0xff]   ;;  %v19401_v2 = vld [vmem:[%s21132_s16 + $0x28b8] ss:$52 sps:$4 sm:$0xff]  }
 0x4f1   : > { %13791 = vmatpush1.bf16.msra.mxu1 %v19344_v17  ;;  %v19406_v17 = vld [vmem:[%s21132_s16 + $0x291c] ss:$52 sps:$4 sm:$0xff]  }
 0x4f2   : > { %14160 = vmatpush1.bf16.msra.mxu0 %v19347_v20  ;;  %13792 = vmatprep.subr.bf16.mxu1 %v19352_v22  ;;  %v19409_v20 = vld [vmem:[%s21132_s16 + $0x2924] ss:$52 sps:$4 sm:$0xff]  }
 0x4f3   : > { %14161 = vmatprep.subr.bf16.mxu0 %v19355_v27  ;;  %v19404_v22 = vld [vmem:[%s21132_s16 + $0x2918] ss:$52 sps:$4 sm:$0xff]   ;;  %v19407_v27 = vld [vmem:[%s21132_s16 + $0x2920] ss:$52 sps:$4 sm:$0xff]  }
 0x4f5   : > { %13793 = vmatpush1.bf16.msra.mxu1 %v19350_v32  ;;  %v19412_v32 = vld [vmem:[%s21132_s16 + $0x2984] ss:$52 sps:$4 sm:$0xff]  }
 0x4f6   : > { %14162 = vmatpush1.bf16.msra.mxu0 %v19353_v28  ;;  %13794 = vmatprep.subr.bf16.mxu1 %v19358_v30  ;;  %v19415_v28 = vld [vmem:[%s21132_s16 + $0x298c] ss:$52 sps:$4 sm:$0xff]  }
 0x4f7   : > { %14163 = vmatprep.subr.bf16.mxu0 %v19361_v31  ;;  %v19410_v30 = vld [vmem:[%s21132_s16 + $0x2980] ss:$52 sps:$4 sm:$0xff]   ;;  %v19413_v31 = vld [vmem:[%s21132_s16 + $0x2988] ss:$52 sps:$4 sm:$0xff]  }
 0x4f9   : > { %13795 = vmatpush1.bf16.msra.mxu1 %v19356_v38  ;;  %v19418_v38 = vld [vmem:[%s21132_s16 + $0x29ec] ss:$52 sps:$4 sm:$0xff]  }
 0x4fa   : > { %14164 = vmatpush1.bf16.msra.mxu0 %v19359_v39  ;;  %13796 = vmatprep.subr.bf16.mxu1 %v19364_v33  ;;  %v19421_v39 = vld [vmem:[%s21132_s16 + $0x29f4] ss:$52 sps:$4 sm:$0xff]  }
 0x4fb   : > { %14165 = vmatprep.subr.bf16.mxu0 %v19367_v45  ;;  %v19416_v33 = vld [vmem:[%s21132_s16 + $0x29e8] ss:$52 sps:$4 sm:$0xff]   ;;  %v19419_v45 = vld [vmem:[%s21132_s16 + $0x29f0] ss:$52 sps:$4 sm:$0xff]  }
 0x4fd   : > { %13797 = vmatpush1.bf16.msra.mxu1 %v19362_v46  ;;  %v19424_v46 = vld [vmem:[%s21132_s16 + $0x2a54] ss:$52 sps:$4 sm:$0xff]  }
 0x4fe   : > { %14166 = vmatpush1.bf16.msra.mxu0 %v19365_v19  ;;  %13798 = vmatprep.subr.bf16.mxu1 %v19370_v34  ;;  %v19427_v19 = vld [vmem:[%s21132_s16 + $0x2a5c] ss:$52 sps:$4 sm:$0xff]  }
 0x4ff   : > { %14167 = vmatprep.subr.bf16.mxu0 %v19373_v47  ;;  %v19422_v34 = vld [vmem:[%s21132_s16 + $0x2a50] ss:$52 sps:$4 sm:$0xff]   ;;  %v19425_v47 = vld [vmem:[%s21132_s16 + $0x2a58] ss:$52 sps:$4 sm:$0xff]  }
 0x501   : > { %13799 = vmatpush1.bf16.msra.mxu1 %v19368_v48  ;;  %v19430_v48 = vld [vmem:[%s21132_s16 + $0x2abc] ss:$52 sps:$4 sm:$0xff]  }
 0x502   : > { %14168 = vmatpush1.bf16.msra.mxu0 %v19371_v42  ;;  %13809 = vmatprep.subr.bf16.mxu1 %v19376_v25  ;;  %v19433_v42 = vld [vmem:[%s21132_s16 + $0x2ac4] ss:$52 sps:$4 sm:$0xff]  }
 0x503   : > { %14178 = vmatprep.subr.bf16.mxu0 %v19379_v5  ;;  %v19428_v25 = vld [vmem:[%s21132_s16 + $0x2ab8] ss:$52 sps:$4 sm:$0xff]   ;;  %v19431_v5 = vld [vmem:[%s21132_s16 + $0x2ac0] ss:$52 sps:$4 sm:$0xff]  }
 0x504   : > { %13801 = vmatmul.mubr.bf16.vlgmr.msra.gmra.mrb[8].mxu1 %v21724_v37 }
 0x505   : > { %14170 = vmatmul.mubr.bf16.vlgmr.msra.gmra.mrb[20].mxu0 %v21724_v37  ;;  %13810 = vmatpush1.bf16.msra.mxu1 %v19374_v35  ;;  %v19436_v35 = vld [vmem:[%s21132_s16 + $0x2b24] ss:$52 sps:$4 sm:$0xff]  }
 0x506   : > { %13841 = vmatprep.mubr.bf16.mxu1 %v21726_v40  ;;  %14179 = vmatpush1.bf16.msra.mxu0 %v19377_v50  ;;  %v19439_v50 = vld [vmem:[%s21132_s16 + $0x2b2c] ss:$52 sps:$4 sm:$0xff]  }
 0x507   : > { %14210 = vmatprep.mubr.bf16.mxu0 %v21726_v40  ;;  %13811 = vmatprep.subr.bf16.mxu1 %v19382_v52  ;;  %v19434_v52 = vld [vmem:[%s21132_s16 + $0x2b20] ss:$52 sps:$4 sm:$0xff]  }
 0x508   : > { %14180 = vmatprep.subr.bf16.mxu0 %v19385_v55  ;;  %v19437_v55 = vld [vmem:[%s21132_s16 + $0x2b28] ss:$52 sps:$4 sm:$0xff]  }
 0x509   : > { %13812 = vmatpush1.bf16.msra.mxu1 %v19380_v62  ;;  %v19442_v62 = vld [vmem:[%s21132_s16 + $0x2b8c] ss:$52 sps:$4 sm:$0xff]  }
 0x50a   : > { %14181 = vmatpush1.bf16.msra.mxu0 %v19383_v56  ;;  %13813 = vmatprep.subr.bf16.mxu1 %v19388_v59  ;;  %v19445_v56 = vld [vmem:[%s21132_s16 + $0x2b94] ss:$52 sps:$4 sm:$0xff]  }
 0x50b   : > { %14182 = vmatprep.subr.bf16.mxu0 %v19391_v0  ;;  %v19440_v59 = vld [vmem:[%s21132_s16 + $0x2b88] ss:$52 sps:$4 sm:$0xff]   ;;  %v19443_v0 = vld [vmem:[%s21132_s16 + $0x2b90] ss:$52 sps:$4 sm:$0xff]  }
 0x50d   : > { %13814 = vmatpush1.bf16.msra.mxu1 %v19386_v1  ;;  %v19448_v1 = vld [vmem:[%s21132_s16 + $0x2bf4] ss:$52 sps:$4 sm:$0xff]  }
 0x50e   : > { %14183 = vmatpush1.bf16.msra.mxu0 %v19389_v3  ;;  %13815 = vmatprep.subr.bf16.mxu1 %v19394_v6  ;;  %v19451_v3 = vld [vmem:[%s21132_s16 + $0x2bfc] ss:$52 sps:$4 sm:$0xff]  }
 0x50f   : > { %14184 = vmatprep.subr.bf16.mxu0 %v19397_v7  ;;  %v19446_v6 = vld [vmem:[%s21132_s16 + $0x2bf0] ss:$52 sps:$4 sm:$0xff]   ;;  %v19449_v7 = vld [vmem:[%s21132_s16 + $0x2bf8] ss:$52 sps:$4 sm:$0xff]  }
 0x511   : > { %13816 = vmatpush1.bf16.msra.mxu1 %v19392_v9  ;;  %v19454_v9 = vld [vmem:[%s21132_s16 + $0x2c5c] ss:$52 sps:$4 sm:$0xff]  }
 0x512   : > { %14185 = vmatpush1.bf16.msra.mxu0 %v19395_v10  ;;  %13817 = vmatprep.subr.bf16.mxu1 %v19400_v23  ;;  %v19457_v10 = vld [vmem:[%s21132_s16 + $0x2c64] ss:$52 sps:$4 sm:$0xff]  }
 0x513   : > { %14186 = vmatprep.subr.bf16.mxu0 %v19403_v12  ;;  %v19452_v23 = vld [vmem:[%s21132_s16 + $0x2c58] ss:$52 sps:$4 sm:$0xff]   ;;  %v19455_v12 = vld [vmem:[%s21132_s16 + $0x2c60] ss:$52 sps:$4 sm:$0xff]  }
 0x515   : > { %13818 = vmatpush1.bf16.msra.mxu1 %v19398_v13  ;;  %v19460_v13 = vld [vmem:[%s21132_s16 + $0x2cc4] ss:$52 sps:$4 sm:$0xff]  }
 0x516   : > { %14187 = vmatpush1.bf16.msra.mxu0 %v19401_v2  ;;  %13819 = vmatprep.subr.bf16.mxu1 %v19406_v17  ;;  %v19463_v2 = vld [vmem:[%s21132_s16 + $0x2ccc] ss:$52 sps:$4 sm:$0xff]  }
 0x517   : > { %14188 = vmatprep.subr.bf16.mxu0 %v19409_v20  ;;  %v19458_v17 = vld [vmem:[%s21132_s16 + $0x2cc0] ss:$52 sps:$4 sm:$0xff]   ;;  %v19461_v20 = vld [vmem:[%s21132_s16 + $0x2cc8] ss:$52 sps:$4 sm:$0xff]  }
 0x519   : > { %13820 = vmatpush1.bf16.msra.mxu1 %v19404_v22  ;;  %v19466_v22 = vld [vmem:[%s21132_s16 + $0x2d2c] ss:$52 sps:$4 sm:$0xff]  }
 0x51a   : > { %14189 = vmatpush1.bf16.msra.mxu0 %v19407_v27  ;;  %13821 = vmatprep.subr.bf16.mxu1 %v19412_v32  ;;  %v19469_v27 = vld [vmem:[%s21132_s16 + $0x2d34] ss:$52 sps:$4 sm:$0xff]  }
 0x51b   : > { %14190 = vmatprep.subr.bf16.mxu0 %v19415_v28  ;;  %v19464_v32 = vld [vmem:[%s21132_s16 + $0x2d28] ss:$52 sps:$4 sm:$0xff]   ;;  %v19467_v28 = vld [vmem:[%s21132_s16 + $0x2d30] ss:$52 sps:$4 sm:$0xff]  }
 0x51d   : > { %13822 = vmatpush1.bf16.msra.mxu1 %v19410_v30  ;;  %v19472_v30 = vld [vmem:[%s21132_s16 + $0x2d94] ss:$52 sps:$4 sm:$0xff]  }
 0x51e   : > { %14191 = vmatpush1.bf16.msra.mxu0 %v19413_v31  ;;  %13823 = vmatprep.subr.bf16.mxu1 %v19418_v38  ;;  %v19475_v31 = vld [vmem:[%s21132_s16 + $0x2d9c] ss:$52 sps:$4 sm:$0xff]  }
 0x51f   : > { %14192 = vmatprep.subr.bf16.mxu0 %v19421_v39  ;;  %v19470_v38 = vld [vmem:[%s21132_s16 + $0x2d90] ss:$52 sps:$4 sm:$0xff]   ;;  %v19473_v39 = vld [vmem:[%s21132_s16 + $0x2d98] ss:$52 sps:$4 sm:$0xff]  }
 0x521   : > { %13824 = vmatpush1.bf16.msra.mxu1 %v19416_v33  ;;  %v19478_v33 = vld [vmem:[%s21132_s16 + $0x2dfc] ss:$52 sps:$4 sm:$0xff]  }
 0x522   : > { %14193 = vmatpush1.bf16.msra.mxu0 %v19419_v45  ;;  %13825 = vmatprep.subr.bf16.mxu1 %v19424_v46  ;;  %v19481_v45 = vld [vmem:[%s21132_s16 + $0x2e04] ss:$52 sps:$4 sm:$0xff]  }
 0x523   : > { %14194 = vmatprep.subr.bf16.mxu0 %v19427_v19  ;;  %v19476_v46 = vld [vmem:[%s21132_s16 + $0x2df8] ss:$52 sps:$4 sm:$0xff]   ;;  %v19479_v19 = vld [vmem:[%s21132_s16 + $0x2e00] ss:$52 sps:$4 sm:$0xff]  }
 0x525   : > { %13826 = vmatpush1.bf16.msra.mxu1 %v19422_v34  ;;  %v19484_v34 = vld [vmem:[%s21132_s16 + $0x2e64] ss:$52 sps:$4 sm:$0xff]  }
 0x526   : > { %14195 = vmatpush1.bf16.msra.mxu0 %v19425_v47  ;;  %13827 = vmatprep.subr.bf16.mxu1 %v19430_v48  ;;  %v19487_v47 = vld [vmem:[%s21132_s16 + $0x2e6c] ss:$52 sps:$4 sm:$0xff]  }
 0x527   : > { %14196 = vmatprep.subr.bf16.mxu0 %v19433_v42  ;;  %v19482_v48 = vld [vmem:[%s21132_s16 + $0x2e60] ss:$52 sps:$4 sm:$0xff]   ;;  %v19485_v42 = vld [vmem:[%s21132_s16 + $0x2e68] ss:$52 sps:$4 sm:$0xff]  }
 0x529   : > { %13828 = vmatpush1.bf16.msra.mxu1 %v19428_v25  ;;  %v19490_v25 = vld [vmem:[%s21132_s16 + $0x2ecc] ss:$52 sps:$4 sm:$0xff]  }
 0x52a   : > { %14197 = vmatpush1.bf16.msra.mxu0 %v19431_v5  ;;  %13829 = vmatprep.subr.bf16.mxu1 %v19436_v35  ;;  %v19493_v5 = vld [vmem:[%s21132_s16 + $0x2ed4] ss:$52 sps:$4 sm:$0xff]  }
 0x52b   : > { %14198 = vmatprep.subr.bf16.mxu0 %v19439_v50  ;;  %v19488_v35 = vld [vmem:[%s21132_s16 + $0x2ec8] ss:$52 sps:$4 sm:$0xff]   ;;  %v19491_v50 = vld [vmem:[%s21132_s16 + $0x2ed0] ss:$52 sps:$4 sm:$0xff]  }
 0x52d   : > { %13830 = vmatpush1.bf16.msra.mxu1 %v19434_v52  ;;  %v19496_v52 = vld [vmem:[%s21132_s16 + $0x2f34] ss:$52 sps:$4 sm:$0xff]  }
 0x52e   : > { %14199 = vmatpush1.bf16.msra.mxu0 %v19437_v55  ;;  %13831 = vmatprep.subr.bf16.mxu1 %v19442_v62  ;;  %v19499_v55 = vld [vmem:[%s21132_s16 + $0x2f3c] ss:$52 sps:$4 sm:$0xff]  }
 0x52f   : > { %14200 = vmatprep.subr.bf16.mxu0 %v19445_v56  ;;  %v19494_v62 = vld [vmem:[%s21132_s16 + $0x2f30] ss:$52 sps:$4 sm:$0xff]   ;;  %v19497_v56 = vld [vmem:[%s21132_s16 + $0x2f38] ss:$52 sps:$4 sm:$0xff]  }
 0x531   : > { %13832 = vmatpush1.bf16.msra.mxu1 %v19440_v59  ;;  %v19502_v59 = vld [vmem:[%s21132_s16 + $0x2f9c] ss:$52 sps:$4 sm:$0xff]  }
 0x532   : > { %14201 = vmatpush1.bf16.msra.mxu0 %v19443_v0  ;;  %13833 = vmatprep.subr.bf16.mxu1 %v19448_v1  ;;  %v19505_v0 = vld [vmem:[%s21132_s16 + $0x2fa4] ss:$52 sps:$4 sm:$0xff]  }
 0x533   : > { %14202 = vmatprep.subr.bf16.mxu0 %v19451_v3  ;;  %v19500_v1 = vld [vmem:[%s21132_s16 + $0x2f98] ss:$52 sps:$4 sm:$0xff]   ;;  %v19503_v3 = vld [vmem:[%s21132_s16 + $0x2fa0] ss:$52 sps:$4 sm:$0xff]  }
 0x535   : > { %13834 = vmatpush1.bf16.msra.mxu1 %v19446_v6  ;;  %v19508_v6 = vld [vmem:[%s21132_s16 + $0x3004] ss:$52 sps:$4 sm:$0xff]  }
 0x536   : > { %14203 = vmatpush1.bf16.msra.mxu0 %v19449_v7  ;;  %13835 = vmatprep.subr.bf16.mxu1 %v19454_v9  ;;  %v19511_v7 = vld [vmem:[%s21132_s16 + $0x300c] ss:$52 sps:$4 sm:$0xff]  }
 0x537   : > { %14204 = vmatprep.subr.bf16.mxu0 %v19457_v10  ;;  %v19506_v9 = vld [vmem:[%s21132_s16 + $0x3000] ss:$52 sps:$4 sm:$0xff]   ;;  %v19509_v10 = vld [vmem:[%s21132_s16 + $0x3008] ss:$52 sps:$4 sm:$0xff]  }
 0x539   : > { %13836 = vmatpush1.bf16.msra.mxu1 %v19452_v23  ;;  %v19514_v23 = vld [vmem:[%s21132_s16 + $0x306c] ss:$52 sps:$4 sm:$0xff]  }
 0x53a   : > { %14205 = vmatpush1.bf16.msra.mxu0 %v19455_v12  ;;  %13837 = vmatprep.subr.bf16.mxu1 %v19460_v13  ;;  %v19517_v12 = vld [vmem:[%s21132_s16 + $0x3074] ss:$52 sps:$4 sm:$0xff]  }
 0x53b   : > { %14206 = vmatprep.subr.bf16.mxu0 %v19463_v2  ;;  %v19512_v13 = vld [vmem:[%s21132_s16 + $0x3068] ss:$52 sps:$4 sm:$0xff]   ;;  %v19515_v2 = vld [vmem:[%s21132_s16 + $0x3070] ss:$52 sps:$4 sm:$0xff]  }
 0x53d   : > { %13838 = vmatpush1.bf16.msra.mxu1 %v19458_v17  ;;  %v19520_v17 = vld [vmem:[%s21132_s16 + $0x30d4] ss:$52 sps:$4 sm:$0xff]  }
 0x53e   : > { %14207 = vmatpush1.bf16.msra.mxu0 %v19461_v20  ;;  %13839 = vmatprep.subr.bf16.mxu1 %v19466_v22  ;;  %v19523_v20 = vld [vmem:[%s21132_s16 + $0x30dc] ss:$52 sps:$4 sm:$0xff]  }
 0x53f   : > { %14208 = vmatprep.subr.bf16.mxu0 %v19469_v27  ;;  %v19518_v22 = vld [vmem:[%s21132_s16 + $0x30d0] ss:$52 sps:$4 sm:$0xff]   ;;  %v19521_v27 = vld [vmem:[%s21132_s16 + $0x30d8] ss:$52 sps:$4 sm:$0xff]  }
 0x541   : > { %13840 = vmatpush1.bf16.msra.mxu1 %v19464_v32  ;;  %v19526_v32 = vld [vmem:[%s21132_s16 + $0x313c] ss:$52 sps:$4 sm:$0xff]  }
 0x542   : > { %14209 = vmatpush1.bf16.msra.mxu0 %v19467_v28  ;;  %13850 = vmatprep.subr.bf16.mxu1 %v19472_v30  ;;  %v19529_v28 = vld [vmem:[%s21132_s16 + $0x3144] ss:$52 sps:$4 sm:$0xff]  }
 0x543   : > { %14219 = vmatprep.subr.bf16.mxu0 %v19475_v31  ;;  %v19524_v30 = vld [vmem:[%s21132_s16 + $0x3138] ss:$52 sps:$4 sm:$0xff]   ;;  %v19527_v31 = vld [vmem:[%s21132_s16 + $0x3140] ss:$52 sps:$4 sm:$0xff]  }
 0x544   : > { %13842 = vmatmul.mubr.bf16.vlgmr.msra.gmra.mrb[8].mxu1 %v21798_v43 }
 0x545   : > { %14211 = vmatmul.mubr.bf16.vlgmr.msra.gmra.mrb[20].mxu0 %v21798_v43  ;;  %13851 = vmatpush1.bf16.msra.mxu1 %v19470_v38  ;;  %v19532_v38 = vld [vmem:[%s21132_s16 + $0x31a4] ss:$52 sps:$4 sm:$0xff]  }
 0x546   : > { %13882 = vmatprep.mubr.bf16.mxu1 %v21800_v44  ;;  %14220 = vmatpush1.bf16.msra.mxu0 %v19473_v39  ;;  %v19535_v39 = vld [vmem:[%s21132_s16 + $0x31ac] ss:$52 sps:$4 sm:$0xff]  }
 0x547   : > { %14251 = vmatprep.mubr.bf16.mxu0 %v21800_v44  ;;  %13852 = vmatprep.subr.bf16.mxu1 %v19478_v33  ;;  %v19530_v33 = vld [vmem:[%s21132_s16 + $0x31a0] ss:$52 sps:$4 sm:$0xff]  }
 0x548   : > { %14221 = vmatprep.subr.bf16.mxu0 %v19481_v45  ;;  %v19533_v45 = vld [vmem:[%s21132_s16 + $0x31a8] ss:$52 sps:$4 sm:$0xff]  }
 0x549   : > { %13853 = vmatpush1.bf16.msra.mxu1 %v19476_v46  ;;  %v19538_v46 = vld [vmem:[%s21132_s16 + $0x320c] ss:$52 sps:$4 sm:$0xff]  }
 0x54a   : > { %14222 = vmatpush1.bf16.msra.mxu0 %v19479_v19  ;;  %13854 = vmatprep.subr.bf16.mxu1 %v19484_v34  ;;  %v19541_v19 = vld [vmem:[%s21132_s16 + $0x3214] ss:$52 sps:$4 sm:$0xff]  }
 0x54b   : > { %14223 = vmatprep.subr.bf16.mxu0 %v19487_v47  ;;  %v19536_v34 = vld [vmem:[%s21132_s16 + $0x3208] ss:$52 sps:$4 sm:$0xff]   ;;  %v19539_v47 = vld [vmem:[%s21132_s16 + $0x3210] ss:$52 sps:$4 sm:$0xff]  }
 0x54d   : > { %13855 = vmatpush1.bf16.msra.mxu1 %v19482_v48  ;;  %v19544_v48 = vld [vmem:[%s21132_s16 + $0x3274] ss:$52 sps:$4 sm:$0xff]  }
 0x54e   : > { %14224 = vmatpush1.bf16.msra.mxu0 %v19485_v42  ;;  %13856 = vmatprep.subr.bf16.mxu1 %v19490_v25  ;;  %v19547_v42 = vld [vmem:[%s21132_s16 + $0x327c] ss:$52 sps:$4 sm:$0xff]  }
 0x54f   : > { %14225 = vmatprep.subr.bf16.mxu0 %v19493_v5  ;;  %v19542_v25 = vld [vmem:[%s21132_s16 + $0x3270] ss:$52 sps:$4 sm:$0xff]   ;;  %v19545_v5 = vld [vmem:[%s21132_s16 + $0x3278] ss:$52 sps:$4 sm:$0xff]  }
 0x551   : > { %13857 = vmatpush1.bf16.msra.mxu1 %v19488_v35  ;;  %v19550_v35 = vld [vmem:[%s21132_s16 + $0x32dc] ss:$52 sps:$4 sm:$0xff]  }
 0x552   : > { %14226 = vmatpush1.bf16.msra.mxu0 %v19491_v50  ;;  %13858 = vmatprep.subr.bf16.mxu1 %v19496_v52  ;;  %v19553_v50 = vld [vmem:[%s21132_s16 + $0x32e4] ss:$52 sps:$4 sm:$0xff]  }
 0x553   : > { %14227 = vmatprep.subr.bf16.mxu0 %v19499_v55  ;;  %v19548_v52 = vld [vmem:[%s21132_s16 + $0x32d8] ss:$52 sps:$4 sm:$0xff]   ;;  %v19551_v55 = vld [vmem:[%s21132_s16 + $0x32e0] ss:$52 sps:$4 sm:$0xff]  }
 0x555   : > { %13859 = vmatpush1.bf16.msra.mxu1 %v19494_v62  ;;  %v19556_v62 = vld [vmem:[%s21132_s16 + $0x3344] ss:$52 sps:$4 sm:$0xff]  }
 0x556   : > { %14228 = vmatpush1.bf16.msra.mxu0 %v19497_v56  ;;  %13860 = vmatprep.subr.bf16.mxu1 %v19502_v59  ;;  %v19559_v56 = vld [vmem:[%s21132_s16 + $0x334c] ss:$52 sps:$4 sm:$0xff]  }
 0x557   : > { %14229 = vmatprep.subr.bf16.mxu0 %v19505_v0  ;;  %v19554_v59 = vld [vmem:[%s21132_s16 + $0x3340] ss:$52 sps:$4 sm:$0xff]   ;;  %v19557_v0 = vld [vmem:[%s21132_s16 + $0x3348] ss:$52 sps:$4 sm:$0xff]  }
 0x559   : > { %13861 = vmatpush1.bf16.msra.mxu1 %v19500_v1  ;;  %v19562_v1 = vld [vmem:[%s21132_s16 + $0x33ac] ss:$52 sps:$4 sm:$0xff]  }
 0x55a   : > { %14230 = vmatpush1.bf16.msra.mxu0 %v19503_v3  ;;  %13862 = vmatprep.subr.bf16.mxu1 %v19508_v6  ;;  %v19565_v3 = vld [vmem:[%s21132_s16 + $0x33b4] ss:$52 sps:$4 sm:$0xff]  }
 0x55b   : > { %14231 = vmatprep.subr.bf16.mxu0 %v19511_v7  ;;  %v19560_v6 = vld [vmem:[%s21132_s16 + $0x33a8] ss:$52 sps:$4 sm:$0xff]   ;;  %v19563_v7 = vld [vmem:[%s21132_s16 + $0x33b0] ss:$52 sps:$4 sm:$0xff]  }
 0x55d   : > { %13863 = vmatpush1.bf16.msra.mxu1 %v19506_v9  ;;  %v19568_v9 = vld [vmem:[%s21132_s16 + $0x3414] ss:$52 sps:$4 sm:$0xff]  }
 0x55e   : > { %14232 = vmatpush1.bf16.msra.mxu0 %v19509_v10  ;;  %13864 = vmatprep.subr.bf16.mxu1 %v19514_v23  ;;  %v19571_v10 = vld [vmem:[%s21132_s16 + $0x341c] ss:$52 sps:$4 sm:$0xff]  }
 0x55f   : > { %14233 = vmatprep.subr.bf16.mxu0 %v19517_v12  ;;  %v19566_v23 = vld [vmem:[%s21132_s16 + $0x3410] ss:$52 sps:$4 sm:$0xff]   ;;  %v19569_v12 = vld [vmem:[%s21132_s16 + $0x3418] ss:$52 sps:$4 sm:$0xff]  }
 0x561   : > { %13865 = vmatpush1.bf16.msra.mxu1 %v19512_v13  ;;  %v19574_v13 = vld [vmem:[%s21132_s16 + $0x347c] ss:$52 sps:$4 sm:$0xff]  }
 0x562   : > { %14234 = vmatpush1.bf16.msra.mxu0 %v19515_v2  ;;  %13866 = vmatprep.subr.bf16.mxu1 %v19520_v17  ;;  %v19577_v2 = vld [vmem:[%s21132_s16 + $0x3484] ss:$52 sps:$4 sm:$0xff]  }
 0x563   : > { %14235 = vmatprep.subr.bf16.mxu0 %v19523_v20  ;;  %v19572_v17 = vld [vmem:[%s21132_s16 + $0x3478] ss:$52 sps:$4 sm:$0xff]   ;;  %v19575_v20 = vld [vmem:[%s21132_s16 + $0x3480] ss:$52 sps:$4 sm:$0xff]  }
 0x565   : > { %13867 = vmatpush1.bf16.msra.mxu1 %v19518_v22  ;;  %v19580_v22 = vld [vmem:[%s21132_s16 + $0x34e4] ss:$52 sps:$4 sm:$0xff]  }
 0x566   : > { %14236 = vmatpush1.bf16.msra.mxu0 %v19521_v27  ;;  %13868 = vmatprep.subr.bf16.mxu1 %v19526_v32  ;;  %v19583_v27 = vld [vmem:[%s21132_s16 + $0x34ec] ss:$52 sps:$4 sm:$0xff]  }
 0x567   : > { %14237 = vmatprep.subr.bf16.mxu0 %v19529_v28  ;;  %v19578_v32 = vld [vmem:[%s21132_s16 + $0x34e0] ss:$52 sps:$4 sm:$0xff]   ;;  %v19581_v28 = vld [vmem:[%s21132_s16 + $0x34e8] ss:$52 sps:$4 sm:$0xff]  }
 0x569   : > { %13869 = vmatpush1.bf16.msra.mxu1 %v19524_v30  ;;  %v19586_v30 = vld [vmem:[%s21132_s16 + $0x354c] ss:$52 sps:$4 sm:$0xff]  }
 0x56a   : > { %14238 = vmatpush1.bf16.msra.mxu0 %v19527_v31  ;;  %13870 = vmatprep.subr.bf16.mxu1 %v19532_v38  ;;  %v19589_v31 = vld [vmem:[%s21132_s16 + $0x3554] ss:$52 sps:$4 sm:$0xff]  }
 0x56b   : > { %14239 = vmatprep.subr.bf16.mxu0 %v19535_v39  ;;  %v19584_v38 = vld [vmem:[%s21132_s16 + $0x3548] ss:$52 sps:$4 sm:$0xff]   ;;  %v19587_v39 = vld [vmem:[%s21132_s16 + $0x3550] ss:$52 sps:$4 sm:$0xff]  }
 0x56d   : > { %13871 = vmatpush1.bf16.msra.mxu1 %v19530_v33  ;;  %v19592_v33 = vld [vmem:[%s21132_s16 + $0x35b4] ss:$52 sps:$4 sm:$0xff]  }
 0x56e   : > { %14240 = vmatpush1.bf16.msra.mxu0 %v19533_v45  ;;  %13872 = vmatprep.subr.bf16.mxu1 %v19538_v46  ;;  %v19595_v45 = vld [vmem:[%s21132_s16 + $0x35bc] ss:$52 sps:$4 sm:$0xff]  }
 0x56f   : > { %14241 = vmatprep.subr.bf16.mxu0 %v19541_v19  ;;  %v19590_v46 = vld [vmem:[%s21132_s16 + $0x35b0] ss:$52 sps:$4 sm:$0xff]   ;;  %v19593_v19 = vld [vmem:[%s21132_s16 + $0x35b8] ss:$52 sps:$4 sm:$0xff]  }
 0x571   : > { %13873 = vmatpush1.bf16.msra.mxu1 %v19536_v34  ;;  %v19598_v34 = vld [vmem:[%s21132_s16 + $0x361c] ss:$52 sps:$4 sm:$0xff]  }
 0x572   : > { %14242 = vmatpush1.bf16.msra.mxu0 %v19539_v47  ;;  %13874 = vmatprep.subr.bf16.mxu1 %v19544_v48  ;;  %v19601_v47 = vld [vmem:[%s21132_s16 + $0x3624] ss:$52 sps:$4 sm:$0xff]  }
 0x573   : > { %14243 = vmatprep.subr.bf16.mxu0 %v19547_v42  ;;  %v19596_v48 = vld [vmem:[%s21132_s16 + $0x3618] ss:$52 sps:$4 sm:$0xff]   ;;  %v19599_v42 = vld [vmem:[%s21132_s16 + $0x3620] ss:$52 sps:$4 sm:$0xff]  }
 0x575   : > { %13875 = vmatpush1.bf16.msra.mxu1 %v19542_v25  ;;  %v19604_v25 = vld [vmem:[%s21132_s16 + $0x3684] ss:$52 sps:$4 sm:$0xff]  }
 0x576   : > { %14244 = vmatpush1.bf16.msra.mxu0 %v19545_v5  ;;  %13876 = vmatprep.subr.bf16.mxu1 %v19550_v35  ;;  %v19607_v5 = vld [vmem:[%s21132_s16 + $0x368c] ss:$52 sps:$4 sm:$0xff]  }
 0x577   : > { %14245 = vmatprep.subr.bf16.mxu0 %v19553_v50  ;;  %v19602_v35 = vld [vmem:[%s21132_s16 + $0x3680] ss:$52 sps:$4 sm:$0xff]   ;;  %v19605_v50 = vld [vmem:[%s21132_s16 + $0x3688] ss:$52 sps:$4 sm:$0xff]  }
 0x579   : > { %13877 = vmatpush1.bf16.msra.mxu1 %v19548_v52  ;;  %v19610_v52 = vld [vmem:[%s21132_s16 + $0x36ec] ss:$52 sps:$4 sm:$0xff]  }
 0x57a   : > { %14246 = vmatpush1.bf16.msra.mxu0 %v19551_v55  ;;  %13878 = vmatprep.subr.bf16.mxu1 %v19556_v62  ;;  %v19613_v55 = vld [vmem:[%s21132_s16 + $0x36f4] ss:$52 sps:$4 sm:$0xff]  }
 0x57b   : > { %14247 = vmatprep.subr.bf16.mxu0 %v19559_v56  ;;  %v19608_v62 = vld [vmem:[%s21132_s16 + $0x36e8] ss:$52 sps:$4 sm:$0xff]   ;;  %v19611_v56 = vld [vmem:[%s21132_s16 + $0x36f0] ss:$52 sps:$4 sm:$0xff]  }
 0x57d   : > { %13879 = vmatpush1.bf16.msra.mxu1 %v19554_v59  ;;  %v19616_v59 = vld [vmem:[%s21132_s16 + $0x3754] ss:$52 sps:$4 sm:$0xff]  }
 0x57e   : > { %14248 = vmatpush1.bf16.msra.mxu0 %v19557_v0  ;;  %13880 = vmatprep.subr.bf16.mxu1 %v19562_v1  ;;  %v19619_v0 = vld [vmem:[%s21132_s16 + $0x375c] ss:$52 sps:$4 sm:$0xff]  }
 0x57f   : > { %14249 = vmatprep.subr.bf16.mxu0 %v19565_v3  ;;  %v19614_v1 = vld [vmem:[%s21132_s16 + $0x3750] ss:$52 sps:$4 sm:$0xff]   ;;  %v19617_v3 = vld [vmem:[%s21132_s16 + $0x3758] ss:$52 sps:$4 sm:$0xff]  }
 0x581   : > { %13881 = vmatpush1.bf16.msra.mxu1 %v19560_v6  ;;  %v19622_v6 = vld [vmem:[%s21132_s16 + $0x37bc] ss:$52 sps:$4 sm:$0xff]  }
 0x582   : > { %14250 = vmatpush1.bf16.msra.mxu0 %v19563_v7  ;;  %13891 = vmatprep.subr.bf16.mxu1 %v19568_v9  ;;  %v19625_v7 = vld [vmem:[%s21132_s16 + $0x37c4] ss:$52 sps:$4 sm:$0xff]  }
 0x583   : > { %14260 = vmatprep.subr.bf16.mxu0 %v19571_v10  ;;  %v19620_v9 = vld [vmem:[%s21132_s16 + $0x37b8] ss:$52 sps:$4 sm:$0xff]   ;;  %v19623_v10 = vld [vmem:[%s21132_s16 + $0x37c0] ss:$52 sps:$4 sm:$0xff]  }
 0x584   : > { %13883 = vmatmul.mubr.bf16.vlgmr.msra.gmra.mrb[8].mxu1 %v21876_v15 }
 0x585   : > { %14252 = vmatmul.mubr.bf16.vlgmr.msra.gmra.mrb[20].mxu0 %v21876_v15  ;;  %13892 = vmatpush1.bf16.msra.mxu1 %v19566_v23  ;;  %v19628_v23 = vld [vmem:[%s21132_s16 + $0x3824] ss:$52 sps:$4 sm:$0xff]  }
 0x586   : > { %13923 = vmatprep.mubr.bf16.mxu1 %v21878_v36  ;;  %14261 = vmatpush1.bf16.msra.mxu0 %v19569_v12  ;;  %v19631_v12 = vld [vmem:[%s21132_s16 + $0x382c] ss:$52 sps:$4 sm:$0xff]  }
 0x587   : > { %14292 = vmatprep.mubr.bf16.mxu0 %v21878_v36  ;;  %13893 = vmatprep.subr.bf16.mxu1 %v19574_v13  ;;  %v19626_v13 = vld [vmem:[%s21132_s16 + $0x3820] ss:$52 sps:$4 sm:$0xff]  }
 0x588   : > { %14262 = vmatprep.subr.bf16.mxu0 %v19577_v2  ;;  %v19629_v2 = vld [vmem:[%s21132_s16 + $0x3828] ss:$52 sps:$4 sm:$0xff]  }
 0x589   : > { %13894 = vmatpush1.bf16.msra.mxu1 %v19572_v17  ;;  %v19634_v17 = vld [vmem:[%s21132_s16 + $0x388c] ss:$52 sps:$4 sm:$0xff]  }
 0x58a   : > { %14263 = vmatpush1.bf16.msra.mxu0 %v19575_v20  ;;  %13895 = vmatprep.subr.bf16.mxu1 %v19580_v22  ;;  %v19637_v20 = vld [vmem:[%s21132_s16 + $0x3894] ss:$52 sps:$4 sm:$0xff]  }
 0x58b   : > { %14264 = vmatprep.subr.bf16.mxu0 %v19583_v27  ;;  %v19632_v22 = vld [vmem:[%s21132_s16 + $0x3888] ss:$52 sps:$4 sm:$0xff]   ;;  %v19635_v27 = vld [vmem:[%s21132_s16 + $0x3890] ss:$52 sps:$4 sm:$0xff]  }
 0x58d   : > { %13896 = vmatpush1.bf16.msra.mxu1 %v19578_v32  ;;  %v19640_v32 = vld [vmem:[%s21132_s16 + $0x38f4] ss:$52 sps:$4 sm:$0xff]  }
 0x58e   : > { %14265 = vmatpush1.bf16.msra.mxu0 %v19581_v28  ;;  %13897 = vmatprep.subr.bf16.mxu1 %v19586_v30  ;;  %v19643_v28 = vld [vmem:[%s21132_s16 + $0x38fc] ss:$52 sps:$4 sm:$0xff]  }
 0x58f   : > { %14266 = vmatprep.subr.bf16.mxu0 %v19589_v31  ;;  %v19638_v30 = vld [vmem:[%s21132_s16 + $0x38f0] ss:$52 sps:$4 sm:$0xff]   ;;  %v19641_v31 = vld [vmem:[%s21132_s16 + $0x38f8] ss:$52 sps:$4 sm:$0xff]  }
 0x591   : > { %13898 = vmatpush1.bf16.msra.mxu1 %v19584_v38  ;;  %v19646_v38 = vld [vmem:[%s21132_s16 + $0x395c] ss:$52 sps:$4 sm:$0xff]  }
 0x592   : > { %14267 = vmatpush1.bf16.msra.mxu0 %v19587_v39  ;;  %13899 = vmatprep.subr.bf16.mxu1 %v19592_v33  ;;  %v19649_v39 = vld [vmem:[%s21132_s16 + $0x3964] ss:$52 sps:$4 sm:$0xff]  }
 0x593   : > { %14268 = vmatprep.subr.bf16.mxu0 %v19595_v45  ;;  %v19644_v33 = vld [vmem:[%s21132_s16 + $0x3958] ss:$52 sps:$4 sm:$0xff]   ;;  %v19647_v45 = vld [vmem:[%s21132_s16 + $0x3960] ss:$52 sps:$4 sm:$0xff]  }
 0x595   : > { %13900 = vmatpush1.bf16.msra.mxu1 %v19590_v46  ;;  %v19652_v46 = vld [vmem:[%s21132_s16 + $0x39c4] ss:$52 sps:$4 sm:$0xff]  }
 0x596   : > { %14269 = vmatpush1.bf16.msra.mxu0 %v19593_v19  ;;  %13901 = vmatprep.subr.bf16.mxu1 %v19598_v34  ;;  %v19655_v19 = vld [vmem:[%s21132_s16 + $0x39cc] ss:$52 sps:$4 sm:$0xff]  }
 0x597   : > { %14270 = vmatprep.subr.bf16.mxu0 %v19601_v47  ;;  %v19650_v34 = vld [vmem:[%s21132_s16 + $0x39c0] ss:$52 sps:$4 sm:$0xff]   ;;  %v19653_v47 = vld [vmem:[%s21132_s16 + $0x39c8] ss:$52 sps:$4 sm:$0xff]  }
 0x599   : > { %13902 = vmatpush1.bf16.msra.mxu1 %v19596_v48  ;;  %v19658_v48 = vld [vmem:[%s21132_s16 + $0x3a2c] ss:$52 sps:$4 sm:$0xff]  }
 0x59a   : > { %14271 = vmatpush1.bf16.msra.mxu0 %v19599_v42  ;;  %13903 = vmatprep.subr.bf16.mxu1 %v19604_v25  ;;  %v19661_v42 = vld [vmem:[%s21132_s16 + $0x3a34] ss:$52 sps:$4 sm:$0xff]  }
 0x59b   : > { %14272 = vmatprep.subr.bf16.mxu0 %v19607_v5  ;;  %v19656_v25 = vld [vmem:[%s21132_s16 + $0x3a28] ss:$52 sps:$4 sm:$0xff]   ;;  %v19659_v5 = vld [vmem:[%s21132_s16 + $0x3a30] ss:$52 sps:$4 sm:$0xff]  }
 0x59d   : > { %13904 = vmatpush1.bf16.msra.mxu1 %v19602_v35  ;;  %v19664_v35 = vld [vmem:[%s21132_s16 + $0x24] ss:$52 sps:$4 sm:$0xff]  }
 0x59e   : > { %14273 = vmatpush1.bf16.msra.mxu0 %v19605_v50  ;;  %13905 = vmatprep.subr.bf16.mxu1 %v19610_v52  ;;  %v19667_v50 = vld [vmem:[%s21132_s16 + $0x2c] ss:$52 sps:$4 sm:$0xff]  }
 0x59f   : > { %14274 = vmatprep.subr.bf16.mxu0 %v19613_v55  ;;  %v19662_v52 = vld [vmem:[%s21132_s16 + $0x20] ss:$52 sps:$4 sm:$0xff]   ;;  %v19665_v55 = vld [vmem:[%s21132_s16 + $0x28] ss:$52 sps:$4 sm:$0xff]  }
 0x5a1   : > { %13906 = vmatpush1.bf16.msra.mxu1 %v19608_v62  ;;  %v19670_v62 = vld [vmem:[%s21132_s16 + $0x8c] ss:$52 sps:$4 sm:$0xff]  }
 0x5a2   : > { %14275 = vmatpush1.bf16.msra.mxu0 %v19611_v56  ;;  %13907 = vmatprep.subr.bf16.mxu1 %v19616_v59  ;;  %v19673_v56 = vld [vmem:[%s21132_s16 + $0x94] ss:$52 sps:$4 sm:$0xff]  }
 0x5a3   : > { %14276 = vmatprep.subr.bf16.mxu0 %v19619_v0  ;;  %v19668_v59 = vld [vmem:[%s21132_s16 + $0x88] ss:$52 sps:$4 sm:$0xff]   ;;  %v19671_v0 = vld [vmem:[%s21132_s16 + $0x90] ss:$52 sps:$4 sm:$0xff]  }
 0x5a5   : > { %13908 = vmatpush1.bf16.msra.mxu1 %v19614_v1  ;;  %v19676_v1 = vld [vmem:[%s21132_s16 + $0xf4] ss:$52 sps:$4 sm:$0xff]  }
 0x5a6   : > { %14277 = vmatpush1.bf16.msra.mxu0 %v19617_v3  ;;  %13909 = vmatprep.subr.bf16.mxu1 %v19622_v6  ;;  %v19679_v3 = vld [vmem:[%s21132_s16 + $0xfc] ss:$52 sps:$4 sm:$0xff]  }
 0x5a7   : > { %14278 = vmatprep.subr.bf16.mxu0 %v19625_v7  ;;  %v19674_v6 = vld [vmem:[%s21132_s16 + $0xf0] ss:$52 sps:$4 sm:$0xff]   ;;  %v19677_v7 = vld [vmem:[%s21132_s16 + $0xf8] ss:$52 sps:$4 sm:$0xff]  }
 0x5a9   : > { %13910 = vmatpush1.bf16.msra.mxu1 %v19620_v9  ;;  %v19682_v9 = vld [vmem:[%s21132_s16 + $0x15c] ss:$52 sps:$4 sm:$0xff]  }
 0x5aa   : > { %14279 = vmatpush1.bf16.msra.mxu0 %v19623_v10  ;;  %13911 = vmatprep.subr.bf16.mxu1 %v19628_v23  ;;  %v19685_v10 = vld [vmem:[%s21132_s16 + $0x164] ss:$52 sps:$4 sm:$0xff]  }
 0x5ab   : > { %14280 = vmatprep.subr.bf16.mxu0 %v19631_v12  ;;  %v19680_v23 = vld [vmem:[%s21132_s16 + $0x158] ss:$52 sps:$4 sm:$0xff]   ;;  %v19683_v12 = vld [vmem:[%s21132_s16 + $0x160] ss:$52 sps:$4 sm:$0xff]  }
 0x5ad   : > { %13912 = vmatpush1.bf16.msra.mxu1 %v19626_v13  ;;  %v19688_v13 = vld [vmem:[%s21132_s16 + $0x1c4] ss:$52 sps:$4 sm:$0xff]  }
 0x5ae   : > { %14281 = vmatpush1.bf16.msra.mxu0 %v19629_v2  ;;  %13913 = vmatprep.subr.bf16.mxu1 %v19634_v17  ;;  %v19691_v2 = vld [vmem:[%s21132_s16 + $0x1cc] ss:$52 sps:$4 sm:$0xff]  }
 0x5af   : > { %14282 = vmatprep.subr.bf16.mxu0 %v19637_v20  ;;  %v19686_v17 = vld [vmem:[%s21132_s16 + $0x1c0] ss:$52 sps:$4 sm:$0xff]   ;;  %v19689_v20 = vld [vmem:[%s21132_s16 + $0x1c8] ss:$52 sps:$4 sm:$0xff]  }
 0x5b1   : > { %13914 = vmatpush1.bf16.msra.mxu1 %v19632_v22  ;;  %v19694_v22 = vld [vmem:[%s21132_s16 + $0x22c] ss:$52 sps:$4 sm:$0xff]  }
 0x5b2   : > { %14283 = vmatpush1.bf16.msra.mxu0 %v19635_v27  ;;  %13915 = vmatprep.subr.bf16.mxu1 %v19640_v32  ;;  %v19697_v27 = vld [vmem:[%s21132_s16 + $0x234] ss:$52 sps:$4 sm:$0xff]  }
 0x5b3   : > { %14284 = vmatprep.subr.bf16.mxu0 %v19643_v28  ;;  %v19692_v32 = vld [vmem:[%s21132_s16 + $0x228] ss:$52 sps:$4 sm:$0xff]   ;;  %v19695_v28 = vld [vmem:[%s21132_s16 + $0x230] ss:$52 sps:$4 sm:$0xff]  }
 0x5b5   : > { %13916 = vmatpush1.bf16.msra.mxu1 %v19638_v30  ;;  %v19700_v30 = vld [vmem:[%s21132_s16 + $0x294] ss:$52 sps:$4 sm:$0xff]  }
 0x5b6   : > { %14285 = vmatpush1.bf16.msra.mxu0 %v19641_v31  ;;  %13917 = vmatprep.subr.bf16.mxu1 %v19646_v38  ;;  %v19703_v31 = vld [vmem:[%s21132_s16 + $0x29c] ss:$52 sps:$4 sm:$0xff]  }
 0x5b7   : > { %14286 = vmatprep.subr.bf16.mxu0 %v19649_v39  ;;  %v19698_v38 = vld [vmem:[%s21132_s16 + $0x290] ss:$52 sps:$4 sm:$0xff]   ;;  %v19701_v39 = vld [vmem:[%s21132_s16 + $0x298] ss:$52 sps:$4 sm:$0xff]  }
 0x5b9   : > { %13918 = vmatpush1.bf16.msra.mxu1 %v19644_v33  ;;  %v19706_v33 = vld [vmem:[%s21132_s16 + $0x2fc] ss:$52 sps:$4 sm:$0xff]  }
 0x5ba   : > { %14287 = vmatpush1.bf16.msra.mxu0 %v19647_v45  ;;  %13919 = vmatprep.subr.bf16.mxu1 %v19652_v46  ;;  %v19709_v45 = vld [vmem:[%s21132_s16 + $0x304] ss:$52 sps:$4 sm:$0xff]  }
 0x5bb   : > { %14288 = vmatprep.subr.bf16.mxu0 %v19655_v19  ;;  %v19704_v46 = vld [vmem:[%s21132_s16 + $0x2f8] ss:$52 sps:$4 sm:$0xff]   ;;  %v19707_v19 = vld [vmem:[%s21132_s16 + $0x300] ss:$52 sps:$4 sm:$0xff]  }
 0x5bd   : > { %13920 = vmatpush1.bf16.msra.mxu1 %v19650_v34  ;;  %v19712_v34 = vld [vmem:[%s21132_s16 + $0x364] ss:$52 sps:$4 sm:$0xff]  }
 0x5be   : > { %14289 = vmatpush1.bf16.msra.mxu0 %v19653_v47  ;;  %13921 = vmatprep.subr.bf16.mxu1 %v19658_v48  ;;  %v19715_v47 = vld [vmem:[%s21132_s16 + $0x36c] ss:$52 sps:$4 sm:$0xff]  }
 0x5bf   : > { %14290 = vmatprep.subr.bf16.mxu0 %v19661_v42  ;;  %v19710_v48 = vld [vmem:[%s21132_s16 + $0x360] ss:$52 sps:$4 sm:$0xff]   ;;  %v19713_v42 = vld [vmem:[%s21132_s16 + $0x368] ss:$52 sps:$4 sm:$0xff]  }
 0x5c1   : > { %13922 = vmatpush1.bf16.msra.mxu1 %v19656_v25  ;;  %v19718_v25 = vld [vmem:[%s21132_s16 + $0x3cc] ss:$52 sps:$4 sm:$0xff]  }
 0x5c2   : > { %14291 = vmatpush1.bf16.msra.mxu0 %v19659_v5  ;;  %14301 = vmatprep.subr.bf16.mxu1 %v19664_v35  ;;  %v19721_v5 = vld [vmem:[%s21132_s16 + $0x3d4] ss:$52 sps:$4 sm:$0xff]  }
 0x5c3   : > { %14670 = vmatprep.subr.bf16.mxu0 %v19667_v50  ;;  %v19716_v35 = vld [vmem:[%s21132_s16 + $0x3c8] ss:$52 sps:$4 sm:$0xff]   ;;  %v19719_v50 = vld [vmem:[%s21132_s16 + $0x3d0] ss:$52 sps:$4 sm:$0xff]  }
 0x5c4   : > { %13924 = vmatmul.mubr.bf16.vlgmr.msra.gmra.mrb[8].mxu1 %v21951_v21 }
 0x5c5   : > { %14293 = vmatmul.mubr.bf16.vlgmr.msra.gmra.mrb[20].mxu0 %v21951_v21  ;;  %14302 = vmatpush1.bf16.msra.mxu1 %v19662_v52  ;;  %v19724_v52 = vld [vmem:[%s21132_s16 + $0x434] ss:$52 sps:$4 sm:$0xff]  }
 0x5c6   : > { %14333 = vmatprep.mubr.bf16.mxu1 %v21281_v53  ;;  %14671 = vmatpush1.bf16.msra.mxu0 %v19665_v55  ;;  %v19727_v55 = vld [vmem:[%s21132_s16 + $0x43c] ss:$52 sps:$4 sm:$0xff]  }
 0x5c7   : > { %14702 = vmatprep.mubr.bf16.mxu0 %v21281_v53  ;;  %14303 = vmatprep.subr.bf16.mxu1 %v19670_v62  ;;  %v19722_v62 = vld [vmem:[%s21132_s16 + $0x430] ss:$52 sps:$4 sm:$0xff]  }
 0x5c8   : > { %14672 = vmatprep.subr.bf16.mxu0 %v19673_v56  ;;  %v19725_v56 = vld [vmem:[%s21132_s16 + $0x438] ss:$52 sps:$4 sm:$0xff]  }
 0x5c9   : > { %14304 = vmatpush1.bf16.msra.mxu1 %v19668_v59  ;;  %v19730_v59 = vld [vmem:[%s21132_s16 + $0x49c] ss:$52 sps:$4 sm:$0xff]  }
 0x5ca   : > { %14673 = vmatpush1.bf16.msra.mxu0 %v19671_v0  ;;  %14305 = vmatprep.subr.bf16.mxu1 %v19676_v1  ;;  %v19733_v0 = vld [vmem:[%s21132_s16 + $0x4a4] ss:$52 sps:$4 sm:$0xff]  }
 0x5cb   : > { %14674 = vmatprep.subr.bf16.mxu0 %v19679_v3  ;;  %v19728_v1 = vld [vmem:[%s21132_s16 + $0x498] ss:$52 sps:$4 sm:$0xff]   ;;  %v19731_v3 = vld [vmem:[%s21132_s16 + $0x4a0] ss:$52 sps:$4 sm:$0xff]  }
 0x5cd   : > { %14306 = vmatpush1.bf16.msra.mxu1 %v19674_v6  ;;  %v19736_v6 = vld [vmem:[%s21132_s16 + $0x504] ss:$52 sps:$4 sm:$0xff]  }
 0x5ce   : > { %14675 = vmatpush1.bf16.msra.mxu0 %v19677_v7  ;;  %14307 = vmatprep.subr.bf16.mxu1 %v19682_v9  ;;  %v19739_v7 = vld [vmem:[%s21132_s16 + $0x50c] ss:$52 sps:$4 sm:$0xff]  }
 0x5cf   : > { %14676 = vmatprep.subr.bf16.mxu0 %v19685_v10  ;;  %v19734_v9 = vld [vmem:[%s21132_s16 + $0x500] ss:$52 sps:$4 sm:$0xff]   ;;  %v19737_v10 = vld [vmem:[%s21132_s16 + $0x508] ss:$52 sps:$4 sm:$0xff]  }
 0x5d1   : > { %14308 = vmatpush1.bf16.msra.mxu1 %v19680_v23  ;;  %v19742_v23 = vld [vmem:[%s21132_s16 + $0x56c] ss:$52 sps:$4 sm:$0xff]  }
 0x5d2   : > { %14677 = vmatpush1.bf16.msra.mxu0 %v19683_v12  ;;  %14309 = vmatprep.subr.bf16.mxu1 %v19688_v13  ;;  %v19745_v12 = vld [vmem:[%s21132_s16 + $0x574] ss:$52 sps:$4 sm:$0xff]  }
 0x5d3   : > { %14678 = vmatprep.subr.bf16.mxu0 %v19691_v2  ;;  %v19740_v13 = vld [vmem:[%s21132_s16 + $0x568] ss:$52 sps:$4 sm:$0xff]   ;;  %v19743_v2 = vld [vmem:[%s21132_s16 + $0x570] ss:$52 sps:$4 sm:$0xff]  }
 0x5d5   : > { %14310 = vmatpush1.bf16.msra.mxu1 %v19686_v17  ;;  %v19748_v17 = vld [vmem:[%s21132_s16 + $0x5d4] ss:$52 sps:$4 sm:$0xff]  }
 0x5d6   : > { %14679 = vmatpush1.bf16.msra.mxu0 %v19689_v20  ;;  %14311 = vmatprep.subr.bf16.mxu1 %v19694_v22  ;;  %v19751_v20 = vld [vmem:[%s21132_s16 + $0x5dc] ss:$52 sps:$4 sm:$0xff]  }
 0x5d7   : > { %14680 = vmatprep.subr.bf16.mxu0 %v19697_v27  ;;  %v19746_v22 = vld [vmem:[%s21132_s16 + $0x5d0] ss:$52 sps:$4 sm:$0xff]   ;;  %v19749_v27 = vld [vmem:[%s21132_s16 + $0x5d8] ss:$52 sps:$4 sm:$0xff]  }
 0x5d9   : > { %14312 = vmatpush1.bf16.msra.mxu1 %v19692_v32  ;;  %v19754_v32 = vld [vmem:[%s21132_s16 + $0x63c] ss:$52 sps:$4 sm:$0xff]  }
 0x5da   : > { %14681 = vmatpush1.bf16.msra.mxu0 %v19695_v28  ;;  %14313 = vmatprep.subr.bf16.mxu1 %v19700_v30  ;;  %v19757_v28 = vld [vmem:[%s21132_s16 + $0x644] ss:$52 sps:$4 sm:$0xff]  }
 0x5db   : > { %14682 = vmatprep.subr.bf16.mxu0 %v19703_v31  ;;  %v19752_v30 = vld [vmem:[%s21132_s16 + $0x638] ss:$52 sps:$4 sm:$0xff]   ;;  %v19755_v31 = vld [vmem:[%s21132_s16 + $0x640] ss:$52 sps:$4 sm:$0xff]  }
 0x5dd   : > { %14314 = vmatpush1.bf16.msra.mxu1 %v19698_v38  ;;  %v19760_v38 = vld [vmem:[%s21132_s16 + $0x6a4] ss:$52 sps:$4 sm:$0xff]  }
 0x5de   : > { %14683 = vmatpush1.bf16.msra.mxu0 %v19701_v39  ;;  %14315 = vmatprep.subr.bf16.mxu1 %v19706_v33  ;;  %v19763_v39 = vld [vmem:[%s21132_s16 + $0x6ac] ss:$52 sps:$4 sm:$0xff]  }
 0x5df   : > { %14684 = vmatprep.subr.bf16.mxu0 %v19709_v45  ;;  %v19758_v33 = vld [vmem:[%s21132_s16 + $0x6a0] ss:$52 sps:$4 sm:$0xff]   ;;  %v19761_v45 = vld [vmem:[%s21132_s16 + $0x6a8] ss:$52 sps:$4 sm:$0xff]  }
 0x5e1   : > { %14316 = vmatpush1.bf16.msra.mxu1 %v19704_v46  ;;  %v19766_v46 = vld [vmem:[%s21132_s16 + $0x70c] ss:$52 sps:$4 sm:$0xff]  }
 0x5e2   : > { %14685 = vmatpush1.bf16.msra.mxu0 %v19707_v19  ;;  %14317 = vmatprep.subr.bf16.mxu1 %v19712_v34  ;;  %v19769_v19 = vld [vmem:[%s21132_s16 + $0x714] ss:$52 sps:$4 sm:$0xff]  }
 0x5e3   : > { %14686 = vmatprep.subr.bf16.mxu0 %v19715_v47  ;;  %v19764_v34 = vld [vmem:[%s21132_s16 + $0x708] ss:$52 sps:$4 sm:$0xff]   ;;  %v19767_v47 = vld [vmem:[%s21132_s16 + $0x710] ss:$52 sps:$4 sm:$0xff]  }
 0x5e5   : > { %14318 = vmatpush1.bf16.msra.mxu1 %v19710_v48  ;;  %v19772_v48 = vld [vmem:[%s21132_s16 + $0x774] ss:$52 sps:$4 sm:$0xff]  }
 0x5e6   : > { %14687 = vmatpush1.bf16.msra.mxu0 %v19713_v42  ;;  %14319 = vmatprep.subr.bf16.mxu1 %v19718_v25  ;;  %v19775_v42 = vld [vmem:[%s21132_s16 + $0x77c] ss:$52 sps:$4 sm:$0xff]  }
 0x5e7   : > { %14688 = vmatprep.subr.bf16.mxu0 %v19721_v5  ;;  %v19770_v25 = vld [vmem:[%s21132_s16 + $0x770] ss:$52 sps:$4 sm:$0xff]   ;;  %v19773_v5 = vld [vmem:[%s21132_s16 + $0x778] ss:$52 sps:$4 sm:$0xff]  }
 0x5e9   : > { %14320 = vmatpush1.bf16.msra.mxu1 %v19716_v35  ;;  %v19778_v35 = vld [vmem:[%s21132_s16 + $0x7dc] ss:$52 sps:$4 sm:$0xff]  }
 0x5ea   : > { %14689 = vmatpush1.bf16.msra.mxu0 %v19719_v50  ;;  %14321 = vmatprep.subr.bf16.mxu1 %v19724_v52  ;;  %v19781_v50 = vld [vmem:[%s21132_s16 + $0x7e4] ss:$52 sps:$4 sm:$0xff]  }
 0x5eb   : > { %14690 = vmatprep.subr.bf16.mxu0 %v19727_v55  ;;  %v19776_v52 = vld [vmem:[%s21132_s16 + $0x7d8] ss:$52 sps:$4 sm:$0xff]   ;;  %v19779_v55 = vld [vmem:[%s21132_s16 + $0x7e0] ss:$52 sps:$4 sm:$0xff]  }
 0x5ed   : > { %14322 = vmatpush1.bf16.msra.mxu1 %v19722_v62  ;;  %v19784_v62 = vld [vmem:[%s21132_s16 + $0x844] ss:$52 sps:$4 sm:$0xff]  }
 0x5ee   : > { %14691 = vmatpush1.bf16.msra.mxu0 %v19725_v56  ;;  %14323 = vmatprep.subr.bf16.mxu1 %v19730_v59  ;;  %v19787_v56 = vld [vmem:[%s21132_s16 + $0x84c] ss:$52 sps:$4 sm:$0xff]  }
 0x5ef   : > { %14692 = vmatprep.subr.bf16.mxu0 %v19733_v0  ;;  %v19782_v59 = vld [vmem:[%s21132_s16 + $0x840] ss:$52 sps:$4 sm:$0xff]   ;;  %v19785_v0 = vld [vmem:[%s21132_s16 + $0x848] ss:$52 sps:$4 sm:$0xff]  }
 0x5f1   : > { %14324 = vmatpush1.bf16.msra.mxu1 %v19728_v1  ;;  %v19790_v1 = vld [vmem:[%s21132_s16 + $0x8ac] ss:$52 sps:$4 sm:$0xff]  }
 0x5f2   : > { %14693 = vmatpush1.bf16.msra.mxu0 %v19731_v3  ;;  %14325 = vmatprep.subr.bf16.mxu1 %v19736_v6  ;;  %v19793_v3 = vld [vmem:[%s21132_s16 + $0x8b4] ss:$52 sps:$4 sm:$0xff]  }
 0x5f3   : > { %14694 = vmatprep.subr.bf16.mxu0 %v19739_v7  ;;  %v19788_v6 = vld [vmem:[%s21132_s16 + $0x8a8] ss:$52 sps:$4 sm:$0xff]   ;;  %v19791_v7 = vld [vmem:[%s21132_s16 + $0x8b0] ss:$52 sps:$4 sm:$0xff]  }
 0x5f5   : > { %14326 = vmatpush1.bf16.msra.mxu1 %v19734_v9  ;;  %v19796_v9 = vld [vmem:[%s21132_s16 + $0x914] ss:$52 sps:$4 sm:$0xff]  }
 0x5f6   : > { %14695 = vmatpush1.bf16.msra.mxu0 %v19737_v10  ;;  %14327 = vmatprep.subr.bf16.mxu1 %v19742_v23  ;;  %v19799_v10 = vld [vmem:[%s21132_s16 + $0x91c] ss:$52 sps:$4 sm:$0xff]  }
 0x5f7   : > { %14696 = vmatprep.subr.bf16.mxu0 %v19745_v12  ;;  %v19794_v23 = vld [vmem:[%s21132_s16 + $0x910] ss:$52 sps:$4 sm:$0xff]   ;;  %v19797_v12 = vld [vmem:[%s21132_s16 + $0x918] ss:$52 sps:$4 sm:$0xff]  }
 0x5f9   : > { %14328 = vmatpush1.bf16.msra.mxu1 %v19740_v13  ;;  %v19802_v13 = vld [vmem:[%s21132_s16 + $0x97c] ss:$52 sps:$4 sm:$0xff]  }
 0x5fa   : > { %14697 = vmatpush1.bf16.msra.mxu0 %v19743_v2  ;;  %14329 = vmatprep.subr.bf16.mxu1 %v19748_v17  ;;  %v19805_v2 = vld [vmem:[%s21132_s16 + $0x984] ss:$52 sps:$4 sm:$0xff]  }
 0x5fb   : > { %14698 = vmatprep.subr.bf16.mxu0 %v19751_v20  ;;  %v19800_v17 = vld [vmem:[%s21132_s16 + $0x978] ss:$52 sps:$4 sm:$0xff]   ;;  %v19803_v20 = vld [vmem:[%s21132_s16 + $0x980] ss:$52 sps:$4 sm:$0xff]  }
 0x5fd   : > { %14330 = vmatpush1.bf16.msra.mxu1 %v19746_v22  ;;  %v19808_v22 = vld [vmem:[%s21132_s16 + $0x9e4] ss:$52 sps:$4 sm:$0xff]  }
 0x5fe   : > { %14699 = vmatpush1.bf16.msra.mxu0 %v19749_v27  ;;  %14331 = vmatprep.subr.bf16.mxu1 %v19754_v32  ;;  %v19811_v27 = vld [vmem:[%s21132_s16 + $0x9ec] ss:$52 sps:$4 sm:$0xff]  }
 0x5ff   : > { %14700 = vmatprep.subr.bf16.mxu0 %v19757_v28  ;;  %v19806_v32 = vld [vmem:[%s21132_s16 + $0x9e0] ss:$52 sps:$4 sm:$0xff]   ;;  %v19809_v28 = vld [vmem:[%s21132_s16 + $0x9e8] ss:$52 sps:$4 sm:$0xff]  }
 0x601   : > { %14332 = vmatpush1.bf16.msra.mxu1 %v19752_v30  ;;  %v19814_v30 = vld [vmem:[%s21132_s16 + $0xa4c] ss:$52 sps:$4 sm:$0xff]  }
 0x602   : > { %14701 = vmatpush1.bf16.msra.mxu0 %v19755_v31  ;;  %14342 = vmatprep.subr.bf16.mxu1 %v19760_v38  ;;  %v19817_v31 = vld [vmem:[%s21132_s16 + $0xa54] ss:$52 sps:$4 sm:$0xff]  }
 0x603   : > { %14711 = vmatprep.subr.bf16.mxu0 %v19763_v39  ;;  %v19812_v38 = vld [vmem:[%s21132_s16 + $0xa48] ss:$52 sps:$4 sm:$0xff]   ;;  %v19815_v39 = vld [vmem:[%s21132_s16 + $0xa50] ss:$52 sps:$4 sm:$0xff]  }
 0x604   : > { %14334 = vmatmul.mubr.bf16.vlgmr.msra.gmra.mrb[12].mxu1 %v21283_v54 }
 0x605   : > { %14703 = vmatmul.mubr.bf16.vlgmr.msra.gmra.mrb[24].mxu0 %v21283_v54  ;;  %14343 = vmatpush1.bf16.msra.mxu1 %v19758_v33  ;;  %v19820_v33 = vld [vmem:[%s21132_s16 + $0xab4] ss:$52 sps:$4 sm:$0xff]  }
 0x606   : > { %14374 = vmatprep.mubr.bf16.mxu1 %v21293_v60  ;;  %14712 = vmatpush1.bf16.msra.mxu0 %v19761_v45  ;;  %v19823_v45 = vld [vmem:[%s21132_s16 + $0xabc] ss:$52 sps:$4 sm:$0xff]  }
 0x607   : > { %14743 = vmatprep.mubr.bf16.mxu0 %v21293_v60  ;;  %14344 = vmatprep.subr.bf16.mxu1 %v19766_v46  ;;  %v19818_v46 = vld [vmem:[%s21132_s16 + $0xab0] ss:$52 sps:$4 sm:$0xff]  }
 0x608   : > { %14713 = vmatprep.subr.bf16.mxu0 %v19769_v19  ;;  %v19821_v19 = vld [vmem:[%s21132_s16 + $0xab8] ss:$52 sps:$4 sm:$0xff]  }
 0x609   : > { %14345 = vmatpush1.bf16.msra.mxu1 %v19764_v34  ;;  %v19826_v34 = vld [vmem:[%s21132_s16 + $0xb1c] ss:$52 sps:$4 sm:$0xff]  }
 0x60a   : > { %14714 = vmatpush1.bf16.msra.mxu0 %v19767_v47  ;;  %14346 = vmatprep.subr.bf16.mxu1 %v19772_v48  ;;  %v19829_v47 = vld [vmem:[%s21132_s16 + $0xb24] ss:$52 sps:$4 sm:$0xff]  }
 0x60b   : > { %14715 = vmatprep.subr.bf16.mxu0 %v19775_v42  ;;  %v19824_v48 = vld [vmem:[%s21132_s16 + $0xb18] ss:$52 sps:$4 sm:$0xff]   ;;  %v19827_v42 = vld [vmem:[%s21132_s16 + $0xb20] ss:$52 sps:$4 sm:$0xff]  }
 0x60d   : > { %14347 = vmatpush1.bf16.msra.mxu1 %v19770_v25  ;;  %v19832_v25 = vld [vmem:[%s21132_s16 + $0xb84] ss:$52 sps:$4 sm:$0xff]  }
 0x60e   : > { %14716 = vmatpush1.bf16.msra.mxu0 %v19773_v5  ;;  %14348 = vmatprep.subr.bf16.mxu1 %v19778_v35  ;;  %v19835_v5 = vld [vmem:[%s21132_s16 + $0xb8c] ss:$52 sps:$4 sm:$0xff]  }
 0x60f   : > { %14717 = vmatprep.subr.bf16.mxu0 %v19781_v50  ;;  %v19830_v35 = vld [vmem:[%s21132_s16 + $0xb80] ss:$52 sps:$4 sm:$0xff]   ;;  %v19833_v50 = vld [vmem:[%s21132_s16 + $0xb88] ss:$52 sps:$4 sm:$0xff]  }
 0x611   : > { %14349 = vmatpush1.bf16.msra.mxu1 %v19776_v52  ;;  %v19838_v52 = vld [vmem:[%s21132_s16 + $0xbec] ss:$52 sps:$4 sm:$0xff]  }
 0x612   : > { %14718 = vmatpush1.bf16.msra.mxu0 %v19779_v55  ;;  %14350 = vmatprep.subr.bf16.mxu1 %v19784_v62  ;;  %v19841_v55 = vld [vmem:[%s21132_s16 + $0xbf4] ss:$52 sps:$4 sm:$0xff]  }
 0x613   : > { %14719 = vmatprep.subr.bf16.mxu0 %v19787_v56  ;;  %v19836_v62 = vld [vmem:[%s21132_s16 + $0xbe8] ss:$52 sps:$4 sm:$0xff]   ;;  %v19839_v56 = vld [vmem:[%s21132_s16 + $0xbf0] ss:$52 sps:$4 sm:$0xff]  }
 0x615   : > { %14351 = vmatpush1.bf16.msra.mxu1 %v19782_v59  ;;  %v19844_v59 = vld [vmem:[%s21132_s16 + $0xc54] ss:$52 sps:$4 sm:$0xff]  }
 0x616   : > { %14720 = vmatpush1.bf16.msra.mxu0 %v19785_v0  ;;  %14352 = vmatprep.subr.bf16.mxu1 %v19790_v1  ;;  %v19847_v0 = vld [vmem:[%s21132_s16 + $0xc5c] ss:$52 sps:$4 sm:$0xff]  }
 0x617   : > { %14721 = vmatprep.subr.bf16.mxu0 %v19793_v3  ;;  %v19842_v1 = vld [vmem:[%s21132_s16 + $0xc50] ss:$52 sps:$4 sm:$0xff]   ;;  %v19845_v3 = vld [vmem:[%s21132_s16 + $0xc58] ss:$52 sps:$4 sm:$0xff]  }
 0x619   : > { %14353 = vmatpush1.bf16.msra.mxu1 %v19788_v6  ;;  %v19850_v6 = vld [vmem:[%s21132_s16 + $0xcbc] ss:$52 sps:$4 sm:$0xff]  }
 0x61a   : > { %14722 = vmatpush1.bf16.msra.mxu0 %v19791_v7  ;;  %14354 = vmatprep.subr.bf16.mxu1 %v19796_v9  ;;  %v19853_v7 = vld [vmem:[%s21132_s16 + $0xcc4] ss:$52 sps:$4 sm:$0xff]  }
 0x61b   : > { %14723 = vmatprep.subr.bf16.mxu0 %v19799_v10  ;;  %v19848_v9 = vld [vmem:[%s21132_s16 + $0xcb8] ss:$52 sps:$4 sm:$0xff]   ;;  %v19851_v10 = vld [vmem:[%s21132_s16 + $0xcc0] ss:$52 sps:$4 sm:$0xff]  }
 0x61d   : > { %14355 = vmatpush1.bf16.msra.mxu1 %v19794_v23  ;;  %v19856_v23 = vld [vmem:[%s21132_s16 + $0xd24] ss:$52 sps:$4 sm:$0xff]  }
 0x61e   : > { %14724 = vmatpush1.bf16.msra.mxu0 %v19797_v12  ;;  %14356 = vmatprep.subr.bf16.mxu1 %v19802_v13  ;;  %v19859_v12 = vld [vmem:[%s21132_s16 + $0xd2c] ss:$52 sps:$4 sm:$0xff]  }
 0x61f   : > { %14725 = vmatprep.subr.bf16.mxu0 %v19805_v2  ;;  %v19854_v13 = vld [vmem:[%s21132_s16 + $0xd20] ss:$52 sps:$4 sm:$0xff]   ;;  %v19857_v2 = vld [vmem:[%s21132_s16 + $0xd28] ss:$52 sps:$4 sm:$0xff]  }
 0x621   : > { %14357 = vmatpush1.bf16.msra.mxu1 %v19800_v17  ;;  %v19862_v17 = vld [vmem:[%s21132_s16 + $0xd8c] ss:$52 sps:$4 sm:$0xff]  }
 0x622   : > { %14726 = vmatpush1.bf16.msra.mxu0 %v19803_v20  ;;  %14358 = vmatprep.subr.bf16.mxu1 %v19808_v22  ;;  %v19865_v20 = vld [vmem:[%s21132_s16 + $0xd94] ss:$52 sps:$4 sm:$0xff]  }
 0x623   : > { %14727 = vmatprep.subr.bf16.mxu0 %v19811_v27  ;;  %v19860_v22 = vld [vmem:[%s21132_s16 + $0xd88] ss:$52 sps:$4 sm:$0xff]   ;;  %v19863_v27 = vld [vmem:[%s21132_s16 + $0xd90] ss:$52 sps:$4 sm:$0xff]  }
 0x625   : > { %14359 = vmatpush1.bf16.msra.mxu1 %v19806_v32  ;;  %v19868_v32 = vld [vmem:[%s21132_s16 + $0xdf4] ss:$52 sps:$4 sm:$0xff]  }
 0x626   : > { %14728 = vmatpush1.bf16.msra.mxu0 %v19809_v28  ;;  %14360 = vmatprep.subr.bf16.mxu1 %v19814_v30  ;;  %v19871_v28 = vld [vmem:[%s21132_s16 + $0xdfc] ss:$52 sps:$4 sm:$0xff]  }
 0x627   : > { %14729 = vmatprep.subr.bf16.mxu0 %v19817_v31  ;;  %v19866_v30 = vld [vmem:[%s21132_s16 + $0xdf0] ss:$52 sps:$4 sm:$0xff]   ;;  %v19869_v31 = vld [vmem:[%s21132_s16 + $0xdf8] ss:$52 sps:$4 sm:$0xff]  }
 0x629   : > { %14361 = vmatpush1.bf16.msra.mxu1 %v19812_v38  ;;  %v19874_v38 = vld [vmem:[%s21132_s16 + $0xe5c] ss:$52 sps:$4 sm:$0xff]  }
 0x62a   : > { %14730 = vmatpush1.bf16.msra.mxu0 %v19815_v39  ;;  %14362 = vmatprep.subr.bf16.mxu1 %v19820_v33  ;;  %v19877_v39 = vld [vmem:[%s21132_s16 + $0xe64] ss:$52 sps:$4 sm:$0xff]  }
 0x62b   : > { %14731 = vmatprep.subr.bf16.mxu0 %v19823_v45  ;;  %v19872_v33 = vld [vmem:[%s21132_s16 + $0xe58] ss:$52 sps:$4 sm:$0xff]   ;;  %v19875_v45 = vld [vmem:[%s21132_s16 + $0xe60] ss:$52 sps:$4 sm:$0xff]  }
 0x62d   : > { %14363 = vmatpush1.bf16.msra.mxu1 %v19818_v46  ;;  %v19880_v46 = vld [vmem:[%s21132_s16 + $0xec4] ss:$52 sps:$4 sm:$0xff]  }
 0x62e   : > { %14732 = vmatpush1.bf16.msra.mxu0 %v19821_v19  ;;  %14364 = vmatprep.subr.bf16.mxu1 %v19826_v34  ;;  %v19883_v19 = vld [vmem:[%s21132_s16 + $0xecc] ss:$52 sps:$4 sm:$0xff]  }
 0x62f   : > { %14733 = vmatprep.subr.bf16.mxu0 %v19829_v47  ;;  %v19878_v34 = vld [vmem:[%s21132_s16 + $0xec0] ss:$52 sps:$4 sm:$0xff]   ;;  %v19881_v47 = vld [vmem:[%s21132_s16 + $0xec8] ss:$52 sps:$4 sm:$0xff]  }
 0x631   : > { %14365 = vmatpush1.bf16.msra.mxu1 %v19824_v48  ;;  %v19886_v48 = vld [vmem:[%s21132_s16 + $0xf2c] ss:$52 sps:$4 sm:$0xff]  }
 0x632   : > { %14734 = vmatpush1.bf16.msra.mxu0 %v19827_v42  ;;  %14366 = vmatprep.subr.bf16.mxu1 %v19832_v25  ;;  %v19889_v42 = vld [vmem:[%s21132_s16 + $0xf34] ss:$52 sps:$4 sm:$0xff]  }
 0x633   : > { %14735 = vmatprep.subr.bf16.mxu0 %v19835_v5  ;;  %v19884_v25 = vld [vmem:[%s21132_s16 + $0xf28] ss:$52 sps:$4 sm:$0xff]   ;;  %v19887_v5 = vld [vmem:[%s21132_s16 + $0xf30] ss:$52 sps:$4 sm:$0xff]  }
 0x635   : > { %14367 = vmatpush1.bf16.msra.mxu1 %v19830_v35  ;;  %v19892_v35 = vld [vmem:[%s21132_s16 + $0xf94] ss:$52 sps:$4 sm:$0xff]  }
 0x636   : > { %14736 = vmatpush1.bf16.msra.mxu0 %v19833_v50  ;;  %14368 = vmatprep.subr.bf16.mxu1 %v19838_v52  ;;  %v19895_v50 = vld [vmem:[%s21132_s16 + $0xf9c] ss:$52 sps:$4 sm:$0xff]  }
 0x637   : > { %14737 = vmatprep.subr.bf16.mxu0 %v19841_v55  ;;  %v19890_v52 = vld [vmem:[%s21132_s16 + $0xf90] ss:$52 sps:$4 sm:$0xff]   ;;  %v19893_v55 = vld [vmem:[%s21132_s16 + $0xf98] ss:$52 sps:$4 sm:$0xff]  }
 0x639   : > { %14369 = vmatpush1.bf16.msra.mxu1 %v19836_v62  ;;  %v19898_v62 = vld [vmem:[%s21132_s16 + $0xffc] ss:$52 sps:$4 sm:$0xff]  }
 0x63a   : > { %14738 = vmatpush1.bf16.msra.mxu0 %v19839_v56  ;;  %14370 = vmatprep.subr.bf16.mxu1 %v19844_v59  ;;  %v19901_v56 = vld [vmem:[%s21132_s16 + $0x1004] ss:$52 sps:$4 sm:$0xff]  }
 0x63b   : > { %14739 = vmatprep.subr.bf16.mxu0 %v19847_v0  ;;  %v19896_v59 = vld [vmem:[%s21132_s16 + $0xff8] ss:$52 sps:$4 sm:$0xff]   ;;  %v19899_v0 = vld [vmem:[%s21132_s16 + $0x1000] ss:$52 sps:$4 sm:$0xff]  }
 0x63d   : > { %14371 = vmatpush1.bf16.msra.mxu1 %v19842_v1  ;;  %v19904_v1 = vld [vmem:[%s21132_s16 + $0x1064] ss:$52 sps:$4 sm:$0xff]  }
 0x63e   : > { %14740 = vmatpush1.bf16.msra.mxu0 %v19845_v3  ;;  %14372 = vmatprep.subr.bf16.mxu1 %v19850_v6  ;;  %v19907_v3 = vld [vmem:[%s21132_s16 + $0x106c] ss:$52 sps:$4 sm:$0xff]  }
 0x63f   : > { %14741 = vmatprep.subr.bf16.mxu0 %v19853_v7  ;;  %v19902_v6 = vld [vmem:[%s21132_s16 + $0x1060] ss:$52 sps:$4 sm:$0xff]   ;;  %v19905_v7 = vld [vmem:[%s21132_s16 + $0x1068] ss:$52 sps:$4 sm:$0xff]  }
 0x641   : > { %14373 = vmatpush1.bf16.msra.mxu1 %v19848_v9  ;;  %v19910_v9 = vld [vmem:[%s21132_s16 + $0x10cc] ss:$52 sps:$4 sm:$0xff]  }
 0x642   : > { %14742 = vmatpush1.bf16.msra.mxu0 %v19851_v10  ;;  %14383 = vmatprep.subr.bf16.mxu1 %v19856_v23  ;;  %v19913_v10 = vld [vmem:[%s21132_s16 + $0x10d4] ss:$52 sps:$4 sm:$0xff]  }
 0x643   : > { %14752 = vmatprep.subr.bf16.mxu0 %v19859_v12  ;;  %v19908_v23 = vld [vmem:[%s21132_s16 + $0x10c8] ss:$52 sps:$4 sm:$0xff]   ;;  %v19911_v12 = vld [vmem:[%s21132_s16 + $0x10d0] ss:$52 sps:$4 sm:$0xff]  }
 0x644   : > { %14375 = vmatmul.mubr.bf16.vlgmr.msra.gmra.mrb[12].mxu1 %v21414_v57 }
 0x645   : > { %14744 = vmatmul.mubr.bf16.vlgmr.msra.gmra.mrb[24].mxu0 %v21414_v57  ;;  %14384 = vmatpush1.bf16.msra.mxu1 %v19854_v13  ;;  %v19916_v13 = vld [vmem:[%s21132_s16 + $0x1134] ss:$52 sps:$4 sm:$0xff]  }
 0x646   : > { %14415 = vmatprep.mubr.bf16.mxu1 %v21418_v63  ;;  %14753 = vmatpush1.bf16.msra.mxu0 %v19857_v2  ;;  %v19919_v2 = vld [vmem:[%s21132_s16 + $0x113c] ss:$52 sps:$4 sm:$0xff]  }
 0x647   : > { %14784 = vmatprep.mubr.bf16.mxu0 %v21418_v63  ;;  %14385 = vmatprep.subr.bf16.mxu1 %v19862_v17  ;;  %v19914_v17 = vld [vmem:[%s21132_s16 + $0x1130] ss:$52 sps:$4 sm:$0xff]  }
 0x648   : > { %14754 = vmatprep.subr.bf16.mxu0 %v19865_v20  ;;  %v19917_v20 = vld [vmem:[%s21132_s16 + $0x1138] ss:$52 sps:$4 sm:$0xff]  }
 0x649   : > { %14386 = vmatpush1.bf16.msra.mxu1 %v19860_v22  ;;  %v19922_v22 = vld [vmem:[%s21132_s16 + $0x119c] ss:$52 sps:$4 sm:$0xff]  }
 0x64a   : > { %14755 = vmatpush1.bf16.msra.mxu0 %v19863_v27  ;;  %14387 = vmatprep.subr.bf16.mxu1 %v19868_v32  ;;  %v19925_v27 = vld [vmem:[%s21132_s16 + $0x11a4] ss:$52 sps:$4 sm:$0xff]  }
 0x64b   : > { %14756 = vmatprep.subr.bf16.mxu0 %v19871_v28  ;;  %v19920_v32 = vld [vmem:[%s21132_s16 + $0x1198] ss:$52 sps:$4 sm:$0xff]   ;;  %v19923_v28 = vld [vmem:[%s21132_s16 + $0x11a0] ss:$52 sps:$4 sm:$0xff]  }
 0x64d   : > { %14388 = vmatpush1.bf16.msra.mxu1 %v19866_v30  ;;  %v19928_v30 = vld [vmem:[%s21132_s16 + $0x1204] ss:$52 sps:$4 sm:$0xff]  }
 0x64e   : > { %14757 = vmatpush1.bf16.msra.mxu0 %v19869_v31  ;;  %14389 = vmatprep.subr.bf16.mxu1 %v19874_v38  ;;  %v19931_v31 = vld [vmem:[%s21132_s16 + $0x120c] ss:$52 sps:$4 sm:$0xff]  }
 0x64f   : > { %14758 = vmatprep.subr.bf16.mxu0 %v19877_v39  ;;  %v19926_v38 = vld [vmem:[%s21132_s16 + $0x1200] ss:$52 sps:$4 sm:$0xff]   ;;  %v19929_v39 = vld [vmem:[%s21132_s16 + $0x1208] ss:$52 sps:$4 sm:$0xff]  }
 0x651   : > { %14390 = vmatpush1.bf16.msra.mxu1 %v19872_v33  ;;  %v19934_v33 = vld [vmem:[%s21132_s16 + $0x126c] ss:$52 sps:$4 sm:$0xff]  }
 0x652   : > { %14759 = vmatpush1.bf16.msra.mxu0 %v19875_v45  ;;  %14391 = vmatprep.subr.bf16.mxu1 %v19880_v46  ;;  %v19937_v45 = vld [vmem:[%s21132_s16 + $0x1274] ss:$52 sps:$4 sm:$0xff]  }
 0x653   : > { %14760 = vmatprep.subr.bf16.mxu0 %v19883_v19  ;;  %v19932_v46 = vld [vmem:[%s21132_s16 + $0x1268] ss:$52 sps:$4 sm:$0xff]   ;;  %v19935_v19 = vld [vmem:[%s21132_s16 + $0x1270] ss:$52 sps:$4 sm:$0xff]  }
 0x655   : > { %14392 = vmatpush1.bf16.msra.mxu1 %v19878_v34  ;;  %v19940_v34 = vld [vmem:[%s21132_s16 + $0x12d4] ss:$52 sps:$4 sm:$0xff]  }
 0x656   : > { %14761 = vmatpush1.bf16.msra.mxu0 %v19881_v47  ;;  %14393 = vmatprep.subr.bf16.mxu1 %v19886_v48  ;;  %v19943_v47 = vld [vmem:[%s21132_s16 + $0x12dc] ss:$52 sps:$4 sm:$0xff]  }
 0x657   : > { %14762 = vmatprep.subr.bf16.mxu0 %v19889_v42  ;;  %v19938_v48 = vld [vmem:[%s21132_s16 + $0x12d0] ss:$52 sps:$4 sm:$0xff]   ;;  %v19941_v42 = vld [vmem:[%s21132_s16 + $0x12d8] ss:$52 sps:$4 sm:$0xff]  }
 0x659   : > { %14394 = vmatpush1.bf16.msra.mxu1 %v19884_v25  ;;  %v19946_v25 = vld [vmem:[%s21132_s16 + $0x133c] ss:$52 sps:$4 sm:$0xff]  }
 0x65a   : > { %14763 = vmatpush1.bf16.msra.mxu0 %v19887_v5  ;;  %14395 = vmatprep.subr.bf16.mxu1 %v19892_v35  ;;  %v19949_v5 = vld [vmem:[%s21132_s16 + $0x1344] ss:$52 sps:$4 sm:$0xff]  }
 0x65b   : > { %14764 = vmatprep.subr.bf16.mxu0 %v19895_v50  ;;  %v19944_v35 = vld [vmem:[%s21132_s16 + $0x1338] ss:$52 sps:$4 sm:$0xff]   ;;  %v19947_v50 = vld [vmem:[%s21132_s16 + $0x1340] ss:$52 sps:$4 sm:$0xff]  }
 0x65d   : > { %14396 = vmatpush1.bf16.msra.mxu1 %v19890_v52  ;;  %v19952_v52 = vld [vmem:[%s21132_s16 + $0x13a4] ss:$52 sps:$4 sm:$0xff]  }
 0x65e   : > { %14765 = vmatpush1.bf16.msra.mxu0 %v19893_v55  ;;  %14397 = vmatprep.subr.bf16.mxu1 %v19898_v62  ;;  %v19955_v55 = vld [vmem:[%s21132_s16 + $0x13ac] ss:$52 sps:$4 sm:$0xff]  }
 0x65f   : > { %14766 = vmatprep.subr.bf16.mxu0 %v19901_v56  ;;  %v19950_v62 = vld [vmem:[%s21132_s16 + $0x13a0] ss:$52 sps:$4 sm:$0xff]   ;;  %v19953_v56 = vld [vmem:[%s21132_s16 + $0x13a8] ss:$52 sps:$4 sm:$0xff]  }
 0x661   : > { %14398 = vmatpush1.bf16.msra.mxu1 %v19896_v59  ;;  %v19958_v59 = vld [vmem:[%s21132_s16 + $0x140c] ss:$52 sps:$4 sm:$0xff]  }
 0x662   : > { %14767 = vmatpush1.bf16.msra.mxu0 %v19899_v0  ;;  %14399 = vmatprep.subr.bf16.mxu1 %v19904_v1  ;;  %v19961_v0 = vld [vmem:[%s21132_s16 + $0x1414] ss:$52 sps:$4 sm:$0xff]  }
 0x663   : > { %14768 = vmatprep.subr.bf16.mxu0 %v19907_v3  ;;  %v19956_v1 = vld [vmem:[%s21132_s16 + $0x1408] ss:$52 sps:$4 sm:$0xff]   ;;  %v19959_v3 = vld [vmem:[%s21132_s16 + $0x1410] ss:$52 sps:$4 sm:$0xff]  }
 0x665   : > { %14400 = vmatpush1.bf16.msra.mxu1 %v19902_v6  ;;  %v19964_v6 = vld [vmem:[%s21132_s16 + $0x1474] ss:$52 sps:$4 sm:$0xff]  }
 0x666   : > { %14769 = vmatpush1.bf16.msra.mxu0 %v19905_v7  ;;  %14401 = vmatprep.subr.bf16.mxu1 %v19910_v9  ;;  %v19967_v7 = vld [vmem:[%s21132_s16 + $0x147c] ss:$52 sps:$4 sm:$0xff]  }
 0x667   : > { %14770 = vmatprep.subr.bf16.mxu0 %v19913_v10  ;;  %v19962_v9 = vld [vmem:[%s21132_s16 + $0x1470] ss:$52 sps:$4 sm:$0xff]   ;;  %v19965_v10 = vld [vmem:[%s21132_s16 + $0x1478] ss:$52 sps:$4 sm:$0xff]  }
 0x669   : > { %14402 = vmatpush1.bf16.msra.mxu1 %v19908_v23  ;;  %v19970_v23 = vld [vmem:[%s21132_s16 + $0x14dc] ss:$52 sps:$4 sm:$0xff]  }
 0x66a   : > { %14771 = vmatpush1.bf16.msra.mxu0 %v19911_v12  ;;  %14403 = vmatprep.subr.bf16.mxu1 %v19916_v13  ;;  %v19973_v12 = vld [vmem:[%s21132_s16 + $0x14e4] ss:$52 sps:$4 sm:$0xff]  }
 0x66b   : > { %14772 = vmatprep.subr.bf16.mxu0 %v19919_v2  ;;  %v19968_v13 = vld [vmem:[%s21132_s16 + $0x14d8] ss:$52 sps:$4 sm:$0xff]   ;;  %v19971_v2 = vld [vmem:[%s21132_s16 + $0x14e0] ss:$52 sps:$4 sm:$0xff]  }
 0x66d   : > { %14404 = vmatpush1.bf16.msra.mxu1 %v19914_v17  ;;  %v19976_v17 = vld [vmem:[%s21132_s16 + $0x1544] ss:$52 sps:$4 sm:$0xff]  }
 0x66e   : > { %14773 = vmatpush1.bf16.msra.mxu0 %v19917_v20  ;;  %14405 = vmatprep.subr.bf16.mxu1 %v19922_v22  ;;  %v19979_v20 = vld [vmem:[%s21132_s16 + $0x154c] ss:$52 sps:$4 sm:$0xff]  }
 0x66f   : > { %14774 = vmatprep.subr.bf16.mxu0 %v19925_v27  ;;  %v19974_v22 = vld [vmem:[%s21132_s16 + $0x1540] ss:$52 sps:$4 sm:$0xff]   ;;  %v19977_v27 = vld [vmem:[%s21132_s16 + $0x1548] ss:$52 sps:$4 sm:$0xff]  }
 0x671   : > { %14406 = vmatpush1.bf16.msra.mxu1 %v19920_v32  ;;  %v19982_v32 = vld [vmem:[%s21132_s16 + $0x15ac] ss:$52 sps:$4 sm:$0xff]  }
 0x672   : > { %14775 = vmatpush1.bf16.msra.mxu0 %v19923_v28  ;;  %14407 = vmatprep.subr.bf16.mxu1 %v19928_v30  ;;  %v19985_v28 = vld [vmem:[%s21132_s16 + $0x15b4] ss:$52 sps:$4 sm:$0xff]  }
 0x673   : > { %14776 = vmatprep.subr.bf16.mxu0 %v19931_v31  ;;  %v20744_v30 = vld [vmem:[%s22178_s22] sm:$0xff] }
 0x674   : > { %v3275_v31 = vrot.slane %v20744_v30, %v21374_v4 }
 0x675   : > { %14408 = vmatpush1.bf16.msra.mxu1 %v19926_v38  ;;  %v3283_v38 = vrot.slane %v20744_v30, %v21322_v16 }
 0x676   : > { %14777 = vmatpush1.bf16.msra.mxu0 %v19929_v39  ;;  %14409 = vmatprep.subr.bf16.mxu1 %v19934_v33  ;;  %v3279_v39 = vrot.slane %v20744_v30, %v21317_v14  ;;  %v19980_v33 = vld [vmem:[%s21132_s16 + $0x15a8] ss:$52 sps:$4 sm:$0xff]  }
 0x677   : > { %14778 = vmatprep.subr.bf16.mxu0 %v19937_v45  ;;  %v3287_v45 = vrot.slane %v20744_v30, %v21325_v18  ;;  %v19986_v18 = vld [vmem:[%s21132_s16 + $0x1610] ss:$52 sps:$4 sm:$0xff]   ;;  %v20016_v30 = vld [vmem:[%s21132_s16 + $0x1818] ss:$52 sps:$4 sm:$0xff]  }
 0x679   : > { %14410 = vmatpush1.bf16.msra.mxu1 %v19932_v46  ;;  %v19983_v46 = vld [vmem:[%s21132_s16 + $0x15b0] ss:$52 sps:$4 sm:$0xff]  }
 0x67a   : > { %14779 = vmatpush1.bf16.msra.mxu0 %v19935_v19  ;;  %14411 = vmatprep.subr.bf16.mxu1 %v19940_v34  ;;  %v19988_v19 = vld [vmem:[%s21132_s16 + $0x1614] ss:$52 sps:$4 sm:$0xff]  }
 0x67b   : > { %14780 = vmatprep.subr.bf16.mxu0 %v19943_v47  ;;  %v19991_v47 = vld [vmem:[%s21132_s16 + $0x161c] ss:$52 sps:$4 sm:$0xff]  }
 0x67d   : > { %14412 = vmatpush1.bf16.msra.mxu1 %v19938_v48 }
 0x67e   : > { %14781 = vmatpush1.bf16.msra.mxu0 %v19941_v42  ;;  %14413 = vmatprep.subr.bf16.mxu1 %v19946_v25 }
 0x67f   : > { %14782 = vmatprep.subr.bf16.mxu0 %v19949_v5 }
 0x681   : > { %14414 = vmatpush1.bf16.msra.mxu1 %v19944_v35 }
 0x682   : > { %14783 = vmatpush1.bf16.msra.mxu0 %v19947_v50  ;;  %14424 = vmatprep.subr.bf16.mxu1 %v19952_v52 }
 0x683   : > { %14793 = vmatprep.subr.bf16.mxu0 %v19955_v55 }
 0x684   : > { %14416 = vmatmul.mubr.bf16.vlgmr.msra.gmra.mrb[12].mxu1 %v21492_v41 }
 0x685   : > { %14785 = vmatmul.mubr.bf16.vlgmr.msra.gmra.mrb[24].mxu0 %v21492_v41  ;;  %14425 = vmatpush1.bf16.msra.mxu1 %v19950_v62  ;;  %v19989_v62 = vld [vmem:[%s21132_s16 + $0x1618] ss:$52 sps:$4 sm:$0xff]  }
 0x686   : > { %14456 = vmatprep.mubr.bf16.mxu1 %v21498_v61  ;;  %14794 = vmatpush1.bf16.msra.mxu0 %v19953_v56  ;;  %v19994_v56 = vld [vmem:[%s21132_s16 + $0x167c] ss:$52 sps:$4 sm:$0xff]  }
 0x687   : > { %14825 = vmatprep.mubr.bf16.mxu0 %v21498_v61  ;;  %14426 = vmatprep.subr.bf16.mxu1 %v19958_v59 }
 0x688   : > { %14795 = vmatprep.subr.bf16.mxu0 %v19961_v0  ;;  %v19997_v0 = vld [vmem:[%s21132_s16 + $0x1684] ss:$52 sps:$4 sm:$0xff]  }
 0x689   : > { %14427 = vmatpush1.bf16.msra.mxu1 %v19956_v1  ;;  %v19992_v1 = vld [vmem:[%s21132_s16 + $0x1678] ss:$52 sps:$4 sm:$0xff]  }
 0x68a   : > { %14796 = vmatpush1.bf16.msra.mxu0 %v19959_v3  ;;  %14428 = vmatprep.subr.bf16.mxu1 %v19964_v6  ;;  %v19995_v3 = vld [vmem:[%s21132_s16 + $0x1680] ss:$52 sps:$4 sm:$0xff]   ;;  %v20000_v6 = vld [vmem:[%s21132_s16 + $0x16e4] ss:$52 sps:$4 sm:$0xff]  }
 0x68b   : > { %14797 = vmatprep.subr.bf16.mxu0 %v19967_v7  ;;  %v20003_v7 = vld [vmem:[%s21132_s16 + $0x16ec] ss:$52 sps:$4 sm:$0xff]  }
 0x68d   : > { %14429 = vmatpush1.bf16.msra.mxu1 %v19962_v9  ;;  %v19998_v9 = vld [vmem:[%s21132_s16 + $0x16e0] ss:$52 sps:$4 sm:$0xff]  }
 0x68e   : > { %14798 = vmatpush1.bf16.msra.mxu0 %v19965_v10  ;;  %14430 = vmatprep.subr.bf16.mxu1 %v19970_v23  ;;  %v20001_v10 = vld [vmem:[%s21132_s16 + $0x16e8] ss:$52 sps:$4 sm:$0xff]   ;;  %v20006_v23 = vld [vmem:[%s21132_s16 + $0x174c] ss:$52 sps:$4 sm:$0xff]  }
 0x68f   : > { %14799 = vmatprep.subr.bf16.mxu0 %v19973_v12  ;;  %v20009_v12 = vld [vmem:[%s21132_s16 + $0x1754] ss:$52 sps:$4 sm:$0xff]  }
 0x691   : > { %14431 = vmatpush1.bf16.msra.mxu1 %v19968_v13  ;;  %v20004_v13 = vld [vmem:[%s21132_s16 + $0x1748] ss:$52 sps:$4 sm:$0xff]  }
 0x692   : > { %14800 = vmatpush1.bf16.msra.mxu0 %v19971_v2  ;;  %14432 = vmatprep.subr.bf16.mxu1 %v19976_v17  ;;  %v20007_v2 = vld [vmem:[%s21132_s16 + $0x1750] ss:$52 sps:$4 sm:$0xff]   ;;  %v20012_v17 = vld [vmem:[%s21132_s16 + $0x17b4] ss:$52 sps:$4 sm:$0xff]  }
 0x693   : > { %14801 = vmatprep.subr.bf16.mxu0 %v19979_v20  ;;  %v20015_v20 = vld [vmem:[%s21132_s16 + $0x17bc] ss:$52 sps:$4 sm:$0xff]  }
 0x695   : > { %14433 = vmatpush1.bf16.msra.mxu1 %v19974_v22  ;;  %v20010_v22 = vld [vmem:[%s21132_s16 + $0x17b0] ss:$52 sps:$4 sm:$0xff]  }
 0x696   : > { %14802 = vmatpush1.bf16.msra.mxu0 %v19977_v27  ;;  %14434 = vmatprep.subr.bf16.mxu1 %v19982_v32  ;;  %v20013_v27 = vld [vmem:[%s21132_s16 + $0x17b8] ss:$52 sps:$4 sm:$0xff]   ;;  %v20018_v32 = vld [vmem:[%s21132_s16 + $0x181c] ss:$52 sps:$4 sm:$0xff]  }
 0x697   : > { %v13925_v34 = vpop.f32.mrb[8].mxu1  ;;  %14803 = vmatprep.subr.bf16.mxu0 %v19985_v28  ;;  %v20021_v28 = vld [vmem:[%s21132_s16 + $0x1824] ss:$52 sps:$4 sm:$0xff]  }
 0x698   : > { %v17652_v48 = vadd.f32 %v13925_v34, %v3275_v31  ;;  %v14294_v42 = vpop.f32.mrb[20].mxu0  ;;  %v13927_v16 = vpop.f32.mrb[9].mxu1  ;;  %v20019_v31 = vld [vmem:[%s21132_s16 + $0x1820] ss:$52 sps:$4 sm:$0xff]   ;;  %v20028_v34 = vld [vmem:[%s21132_s16 + $0x18e8] ss:$52 sps:$4 sm:$0xff]  }
 0x699   : > { %v17654_v14 = vadd.f32 %v14294_v42, %v3283_v38  ;;  %v17653_v25 = vadd.f32 %v13927_v16, %v3279_v39  ;;  %v14296_v5 = vpop.f32.mrb[21].mxu0  ;;  %v13929_v35 = vpop.f32.mrb[10].mxu1  ;;  %14435 = vmatpush1.bf16.msra.mxu1 %v19980_v33  ;;  %v20024_v38 = vld [vmem:[%s21132_s16 + $0x1884] ss:$52 sps:$4 sm:$0xff]   ;;  %v20027_v39 = vld [vmem:[%s21132_s16 + $0x188c] ss:$52 sps:$4 sm:$0xff]  }
 0x69a   : > { %15403 = vst [vmem:[%s22194_s8 + $0x20] sm:$0xff] %v17652_v48  ;;  %v17655_v50 = vadd.f32 %v14296_v5, %v3287_v45  ;;  %v14298_v52 = vpop.f32.mrb[22].mxu0  ;;  %14804 = vmatpush1.bf16.msra.mxu0 %v19983_v46  ;;  %v13930_v55 = vpop.f32.mrb[11].mxu1  ;;  %14436 = vmatprep.subr.bf16.mxu1 %v19988_v19  ;;  %v20022_v33 = vld [vmem:[%s21132_s16 + $0x1880] ss:$52 sps:$4 sm:$0xff]  }
 0x69b   : > { %15405 = vst [vmem:[%s22194_s8 + $0x30] sm:$0xff] %v17654_v14  ;;  %15404 = vst [vmem:[%s22194_s8 + $0x28] sm:$0xff] %v17653_v25  ;;  %v14299_v59 = vpop.f32.mrb[23].mxu0  ;;  %14805 = vmatprep.subr.bf16.mxu0 %v19991_v47  ;;  %v20025_v45 = vld [vmem:[%s21132_s16 + $0x1888] ss:$52 sps:$4 sm:$0xff]  }
 0x69c   : > { %15406 = vst [vmem:[%s22194_s8 + $0x38] sm:$0xff] %v17655_v50  ;;  %v20030_v46 = vld [vmem:[%s21132_s16 + $0x18ec] ss:$52 sps:$4 sm:$0xff]   ;;  %v20033_v19 = vld [vmem:[%s21132_s16 + $0x18f4] ss:$52 sps:$4 sm:$0xff]  }
 0x69d   : > { %14437 = vmatpush1.bf16.msra.mxu1 %v19986_v18  ;;  %v20031_v47 = vld [vmem:[%s21132_s16 + $0x18f0] ss:$52 sps:$4 sm:$0xff]   ;;  %v20036_v48 = vld [vmem:[%s21132_s16 + $0x1954] ss:$52 sps:$4 sm:$0xff]   ;;  %v20037_v14 = vld [vmem:[%s21132_s16 + $0x1958] ss:$52 sps:$4 sm:$0xff]  }
 0x69e   : > { %14806 = vmatpush1.bf16.msra.mxu0 %v19989_v62  ;;  %14438 = vmatprep.subr.bf16.mxu1 %v19994_v56  ;;  %v20039_v42 = vld [vmem:[%s21132_s16 + $0x195c] ss:$52 sps:$4 sm:$0xff]   ;;  %v20045_v5 = vld [vmem:[%s21132_s16 + $0x19c4] ss:$52 sps:$4 sm:$0xff]   ;;  %v20043_v18 = vld [vmem:[%s21132_s16 + $0x19c0] ss:$52 sps:$4 sm:$0xff]  }
 0x69f   : > { %14807 = vmatprep.subr.bf16.mxu0 %v19997_v0  ;;  %v20034_v16 = vld [vmem:[%s21132_s16 + $0x1950] ss:$52 sps:$4 sm:$0xff]   ;;  %v20040_v35 = vld [vmem:[%s21132_s16 + $0x19b8] ss:$52 sps:$4 sm:$0xff]   ;;  %v20046_v55 = vld [vmem:[%s21132_s16 + $0x1a20] ss:$52 sps:$4 sm:$0xff]  }
 0x6a0   : > { %v20042_v25 = vld [vmem:[%s21132_s16 + $0x19bc] ss:$52 sps:$4 sm:$0xff]   ;;  %v20048_v50 = vld [vmem:[%s21132_s16 + $0x1a24] ss:$52 sps:$4 sm:$0xff]   ;;  %v20051_v52 = vld [vmem:[%s21132_s16 + $0x1a2c] ss:$52 sps:$4 sm:$0xff]  }
 0x6a1   : > { %14439 = vmatpush1.bf16.msra.mxu1 %v19992_v1  ;;  %v20049_v62 = vld [vmem:[%s21132_s16 + $0x1a28] ss:$52 sps:$4 sm:$0xff]   ;;  %v20054_v56 = vld [vmem:[%s21132_s16 + $0x1a8c] ss:$52 sps:$4 sm:$0xff]   ;;  %v20055_v1 = vld [vmem:[%s21132_s16 + $0x1a90] ss:$52 sps:$4 sm:$0xff]  }
 0x6a2   : > { %14808 = vmatpush1.bf16.msra.mxu0 %v19995_v3  ;;  %14440 = vmatprep.subr.bf16.mxu1 %v20000_v6  ;;  %v20057_v59 = vld [vmem:[%s21132_s16 + $0x1a94] ss:$52 sps:$4 sm:$0xff]   ;;  %v20063_v6 = vld [vmem:[%s21132_s16 + $0x1afc] ss:$52 sps:$4 sm:$0xff]  }
 0x6a3   : > { %14809 = vmatprep.subr.bf16.mxu0 %v20003_v7  ;;  %v20052_v0 = vld [vmem:[%s21132_s16 + $0x1a88] ss:$52 sps:$4 sm:$0xff]   ;;  %v20058_v7 = vld [vmem:[%s21132_s16 + $0x1af0] ss:$52 sps:$4 sm:$0xff]  }
 0x6a4   : > { %v20060_v3 = vld [vmem:[%s21132_s16 + $0x1af4] ss:$52 sps:$4 sm:$0xff]  }
 0x6a5   : > { %14441 = vmatpush1.bf16.msra.mxu1 %v19998_v9  ;;  %v20061_v9 = vld [vmem:[%s21132_s16 + $0x1af8] ss:$52 sps:$4 sm:$0xff]  }
 0x6a6   : > { %14810 = vmatpush1.bf16.msra.mxu0 %v20001_v10  ;;  %14442 = vmatprep.subr.bf16.mxu1 %v20006_v23  ;;  %v20066_v10 = vld [vmem:[%s21132_s16 + $0x1b5c] ss:$52 sps:$4 sm:$0xff]   ;;  %v20069_v23 = vld [vmem:[%s21132_s16 + $0x1b64] ss:$52 sps:$4 sm:$0xff]  }
 0x6a7   : > { %14811 = vmatprep.subr.bf16.mxu0 %v20009_v12  ;;  %v20064_v12 = vld [vmem:[%s21132_s16 + $0x1b58] ss:$52 sps:$4 sm:$0xff]  }
 0x6a9   : > { %14443 = vmatpush1.bf16.msra.mxu1 %v20004_v13  ;;  %v20067_v13 = vld [vmem:[%s21132_s16 + $0x1b60] ss:$52 sps:$4 sm:$0xff]  }
 0x6aa   : > { %14812 = vmatpush1.bf16.msra.mxu0 %v20007_v2  ;;  %14444 = vmatprep.subr.bf16.mxu1 %v20012_v17  ;;  %v20072_v2 = vld [vmem:[%s21132_s16 + $0x1bc4] ss:$52 sps:$4 sm:$0xff]   ;;  %v20075_v17 = vld [vmem:[%s21132_s16 + $0x1bcc] ss:$52 sps:$4 sm:$0xff]  }
 0x6ab   : > { %14813 = vmatprep.subr.bf16.mxu0 %v20015_v20  ;;  %v20070_v20 = vld [vmem:[%s21132_s16 + $0x1bc0] ss:$52 sps:$4 sm:$0xff]  }
 0x6ad   : > { %14445 = vmatpush1.bf16.msra.mxu1 %v20010_v22  ;;  %v20073_v22 = vld [vmem:[%s21132_s16 + $0x1bc8] ss:$52 sps:$4 sm:$0xff]  }
 0x6ae   : > { %14814 = vmatpush1.bf16.msra.mxu0 %v20013_v27  ;;  %14446 = vmatprep.subr.bf16.mxu1 %v20018_v32  ;;  %v20078_v27 = vld [vmem:[%s21132_s16 + $0x1c2c] ss:$52 sps:$4 sm:$0xff]   ;;  %v20081_v32 = vld [vmem:[%s21132_s16 + $0x1c34] ss:$52 sps:$4 sm:$0xff]  }
 0x6af   : > { %14815 = vmatprep.subr.bf16.mxu0 %v20021_v28  ;;  %v20076_v28 = vld [vmem:[%s21132_s16 + $0x1c28] ss:$52 sps:$4 sm:$0xff]  }
 0x6b1   : > { %14447 = vmatpush1.bf16.msra.mxu1 %v20016_v30  ;;  %v20079_v30 = vld [vmem:[%s21132_s16 + $0x1c30] ss:$52 sps:$4 sm:$0xff]  }
 0x6b2   : > { %14816 = vmatpush1.bf16.msra.mxu0 %v20019_v31  ;;  %14448 = vmatprep.subr.bf16.mxu1 %v20024_v38  ;;  %v20084_v31 = vld [vmem:[%s21132_s16 + $0x1c94] ss:$52 sps:$4 sm:$0xff]   ;;  %v20087_v38 = vld [vmem:[%s21132_s16 + $0x1c9c] ss:$52 sps:$4 sm:$0xff]  }
 0x6b3   : > { %14817 = vmatprep.subr.bf16.mxu0 %v20027_v39  ;;  %v20082_v39 = vld [vmem:[%s21132_s16 + $0x1c90] ss:$52 sps:$4 sm:$0xff]  }
 0x6b5   : > { %14449 = vmatpush1.bf16.msra.mxu1 %v20022_v33  ;;  %v20085_v33 = vld [vmem:[%s21132_s16 + $0x1c98] ss:$52 sps:$4 sm:$0xff]  }
 0x6b6   : > { %14818 = vmatpush1.bf16.msra.mxu0 %v20025_v45  ;;  %14450 = vmatprep.subr.bf16.mxu1 %v20030_v46  ;;  %v20090_v45 = vld [vmem:[%s21132_s16 + $0x1cfc] ss:$52 sps:$4 sm:$0xff]   ;;  %v20093_v46 = vld [vmem:[%s21132_s16 + $0x1d04] ss:$52 sps:$4 sm:$0xff]  }
 0x6b7   : > { %14819 = vmatprep.subr.bf16.mxu0 %v20033_v19  ;;  %v20088_v19 = vld [vmem:[%s21132_s16 + $0x1cf8] ss:$52 sps:$4 sm:$0xff]  }
 0x6b9   : > { %14451 = vmatpush1.bf16.msra.mxu1 %v20028_v34  ;;  %v20091_v34 = vld [vmem:[%s21132_s16 + $0x1d00] ss:$52 sps:$4 sm:$0xff]  }
 0x6ba   : > { %14820 = vmatpush1.bf16.msra.mxu0 %v20031_v47  ;;  %14452 = vmatprep.subr.bf16.mxu1 %v20036_v48  ;;  %v20096_v47 = vld [vmem:[%s21132_s16 + $0x1d64] ss:$52 sps:$4 sm:$0xff]   ;;  %v20099_v48 = vld [vmem:[%s21132_s16 + $0x1d6c] ss:$52 sps:$4 sm:$0xff]  }
 0x6bb   : > { %14821 = vmatprep.subr.bf16.mxu0 %v20039_v42  ;;  %v20094_v42 = vld [vmem:[%s21132_s16 + $0x1d60] ss:$52 sps:$4 sm:$0xff]  }
 0x6bd   : > { %14453 = vmatpush1.bf16.msra.mxu1 %v20034_v16  ;;  %v20097_v16 = vld [vmem:[%s21132_s16 + $0x1d68] ss:$52 sps:$4 sm:$0xff]  }
 0x6be   : > { %14822 = vmatpush1.bf16.msra.mxu0 %v20037_v14  ;;  %14454 = vmatprep.subr.bf16.mxu1 %v20042_v25  ;;  %v20102_v14 = vld [vmem:[%s21132_s16 + $0x1dcc] ss:$52 sps:$4 sm:$0xff]   ;;  %v20105_v25 = vld [vmem:[%s21132_s16 + $0x1dd4] ss:$52 sps:$4 sm:$0xff]  }
 0x6bf   : > { %14823 = vmatprep.subr.bf16.mxu0 %v20045_v5  ;;  %v20100_v5 = vld [vmem:[%s21132_s16 + $0x1dc8] ss:$52 sps:$4 sm:$0xff]  }
 0x6c1   : > { %14455 = vmatpush1.bf16.msra.mxu1 %v20040_v35  ;;  %v20103_v35 = vld [vmem:[%s21132_s16 + $0x1dd0] ss:$52 sps:$4 sm:$0xff]  }
 0x6c2   : > { %14824 = vmatpush1.bf16.msra.mxu0 %v20043_v18  ;;  %14465 = vmatprep.subr.bf16.mxu1 %v20048_v50  ;;  %v20108_v18 = vld [vmem:[%s21132_s16 + $0x1e34] ss:$52 sps:$4 sm:$0xff]   ;;  %v20111_v50 = vld [vmem:[%s21132_s16 + $0x1e3c] ss:$52 sps:$4 sm:$0xff]  }
 0x6c3   : > { %14834 = vmatprep.subr.bf16.mxu0 %v20051_v52  ;;  %v20106_v52 = vld [vmem:[%s21132_s16 + $0x1e30] ss:$52 sps:$4 sm:$0xff]  }
 0x6c4   : > { %14457 = vmatmul.mubr.bf16.vlgmr.msra.gmra.mrb[12].mxu1 %v21571_v49 }
 0x6c5   : > { %14826 = vmatmul.mubr.bf16.vlgmr.msra.gmra.mrb[24].mxu0 %v21571_v49  ;;  %14466 = vmatpush1.bf16.msra.mxu1 %v20046_v55  ;;  %v20109_v55 = vld [vmem:[%s21132_s16 + $0x1e38] ss:$52 sps:$4 sm:$0xff]  }
 0x6c6   : > { %14497 = vmatprep.mubr.bf16.mxu1 %v21575_v51  ;;  %14835 = vmatpush1.bf16.msra.mxu0 %v20049_v62  ;;  %v20114_v62 = vld [vmem:[%s21132_s16 + $0x1e9c] ss:$52 sps:$4 sm:$0xff]  }
 0x6c7   : > { %14866 = vmatprep.mubr.bf16.mxu0 %v21575_v51  ;;  %14467 = vmatprep.subr.bf16.mxu1 %v20054_v56  ;;  %v20117_v56 = vld [vmem:[%s21132_s16 + $0x1ea4] ss:$52 sps:$4 sm:$0xff]  }
 0x6c8   : > { %14836 = vmatprep.subr.bf16.mxu0 %v20057_v59  ;;  %v20112_v59 = vld [vmem:[%s21132_s16 + $0x1e98] ss:$52 sps:$4 sm:$0xff]  }
 0x6c9   : > { %14468 = vmatpush1.bf16.msra.mxu1 %v20052_v0  ;;  %v20115_v0 = vld [vmem:[%s21132_s16 + $0x1ea0] ss:$52 sps:$4 sm:$0xff]  }
 0x6ca   : > { %14837 = vmatpush1.bf16.msra.mxu0 %v20055_v1  ;;  %14469 = vmatprep.subr.bf16.mxu1 %v20060_v3  ;;  %v20120_v1 = vld [vmem:[%s21132_s16 + $0x1f04] ss:$52 sps:$4 sm:$0xff]   ;;  %v20123_v3 = vld [vmem:[%s21132_s16 + $0x1f0c] ss:$52 sps:$4 sm:$0xff]  }
 0x6cb   : > { %14838 = vmatprep.subr.bf16.mxu0 %v20063_v6  ;;  %v20118_v6 = vld [vmem:[%s21132_s16 + $0x1f00] ss:$52 sps:$4 sm:$0xff]  }
 0x6cd   : > { %14470 = vmatpush1.bf16.msra.mxu1 %v20058_v7  ;;  %v20121_v7 = vld [vmem:[%s21132_s16 + $0x1f08] ss:$52 sps:$4 sm:$0xff]  }
 0x6ce   : > { %14839 = vmatpush1.bf16.msra.mxu0 %v20061_v9  ;;  %14471 = vmatprep.subr.bf16.mxu1 %v20066_v10  ;;  %v20126_v9 = vld [vmem:[%s21132_s16 + $0x1f6c] ss:$52 sps:$4 sm:$0xff]   ;;  %v20129_v10 = vld [vmem:[%s21132_s16 + $0x1f74] ss:$52 sps:$4 sm:$0xff]  }
 0x6cf   : > { %14840 = vmatprep.subr.bf16.mxu0 %v20069_v23  ;;  %v20124_v23 = vld [vmem:[%s21132_s16 + $0x1f68] ss:$52 sps:$4 sm:$0xff]  }
 0x6d1   : > { %14472 = vmatpush1.bf16.msra.mxu1 %v20064_v12  ;;  %v20127_v12 = vld [vmem:[%s21132_s16 + $0x1f70] ss:$52 sps:$4 sm:$0xff]  }
 0x6d2   : > { %14841 = vmatpush1.bf16.msra.mxu0 %v20067_v13  ;;  %14473 = vmatprep.subr.bf16.mxu1 %v20072_v2  ;;  %v20132_v13 = vld [vmem:[%s21132_s16 + $0x1fd4] ss:$52 sps:$4 sm:$0xff]   ;;  %v20135_v2 = vld [vmem:[%s21132_s16 + $0x1fdc] ss:$52 sps:$4 sm:$0xff]  }
 0x6d3   : > { %14842 = vmatprep.subr.bf16.mxu0 %v20075_v17  ;;  %v20130_v17 = vld [vmem:[%s21132_s16 + $0x1fd0] ss:$52 sps:$4 sm:$0xff]  }
 0x6d5   : > { %14474 = vmatpush1.bf16.msra.mxu1 %v20070_v20  ;;  %v20133_v20 = vld [vmem:[%s21132_s16 + $0x1fd8] ss:$52 sps:$4 sm:$0xff]  }
 0x6d6   : > { %14843 = vmatpush1.bf16.msra.mxu0 %v20073_v22  ;;  %14475 = vmatprep.subr.bf16.mxu1 %v20078_v27  ;;  %v20138_v22 = vld [vmem:[%s21132_s16 + $0x203c] ss:$52 sps:$4 sm:$0xff]   ;;  %v20141_v27 = vld [vmem:[%s21132_s16 + $0x2044] ss:$52 sps:$4 sm:$0xff]  }
 0x6d7   : > { %14844 = vmatprep.subr.bf16.mxu0 %v20081_v32  ;;  %v20136_v32 = vld [vmem:[%s21132_s16 + $0x2038] ss:$52 sps:$4 sm:$0xff]  }
 0x6d9   : > { %14476 = vmatpush1.bf16.msra.mxu1 %v20076_v28  ;;  %v20139_v28 = vld [vmem:[%s21132_s16 + $0x2040] ss:$52 sps:$4 sm:$0xff]  }
 0x6da   : > { %14845 = vmatpush1.bf16.msra.mxu0 %v20079_v30  ;;  %14477 = vmatprep.subr.bf16.mxu1 %v20084_v31  ;;  %v20144_v30 = vld [vmem:[%s21132_s16 + $0x20a4] ss:$52 sps:$4 sm:$0xff]   ;;  %v20147_v31 = vld [vmem:[%s21132_s16 + $0x20ac] ss:$52 sps:$4 sm:$0xff]  }
 0x6db   : > { %14846 = vmatprep.subr.bf16.mxu0 %v20087_v38  ;;  %v20142_v38 = vld [vmem:[%s21132_s16 + $0x20a0] ss:$52 sps:$4 sm:$0xff]  }
 0x6dd   : > { %14478 = vmatpush1.bf16.msra.mxu1 %v20082_v39  ;;  %v20145_v39 = vld [vmem:[%s21132_s16 + $0x20a8] ss:$52 sps:$4 sm:$0xff]  }
 0x6de   : > { %14847 = vmatpush1.bf16.msra.mxu0 %v20085_v33  ;;  %14479 = vmatprep.subr.bf16.mxu1 %v20090_v45  ;;  %v20150_v33 = vld [vmem:[%s21132_s16 + $0x210c] ss:$52 sps:$4 sm:$0xff]   ;;  %v20153_v45 = vld [vmem:[%s21132_s16 + $0x2114] ss:$52 sps:$4 sm:$0xff]  }
 0x6df   : > { %14848 = vmatprep.subr.bf16.mxu0 %v20093_v46  ;;  %v20148_v46 = vld [vmem:[%s21132_s16 + $0x2108] ss:$52 sps:$4 sm:$0xff]  }
 0x6e1   : > { %14480 = vmatpush1.bf16.msra.mxu1 %v20088_v19  ;;  %v20151_v19 = vld [vmem:[%s21132_s16 + $0x2110] ss:$52 sps:$4 sm:$0xff]  }
 0x6e2   : > { %14849 = vmatpush1.bf16.msra.mxu0 %v20091_v34  ;;  %14481 = vmatprep.subr.bf16.mxu1 %v20096_v47  ;;  %v20156_v34 = vld [vmem:[%s21132_s16 + $0x2174] ss:$52 sps:$4 sm:$0xff]   ;;  %v20159_v47 = vld [vmem:[%s21132_s16 + $0x217c] ss:$52 sps:$4 sm:$0xff]  }
 0x6e3   : > { %14850 = vmatprep.subr.bf16.mxu0 %v20099_v48  ;;  %v20154_v48 = vld [vmem:[%s21132_s16 + $0x2170] ss:$52 sps:$4 sm:$0xff]  }
 0x6e5   : > { %14482 = vmatpush1.bf16.msra.mxu1 %v20094_v42  ;;  %v20157_v42 = vld [vmem:[%s21132_s16 + $0x2178] ss:$52 sps:$4 sm:$0xff]  }
 0x6e6   : > { %14851 = vmatpush1.bf16.msra.mxu0 %v20097_v16  ;;  %14483 = vmatprep.subr.bf16.mxu1 %v20102_v14  ;;  %v20162_v16 = vld [vmem:[%s21132_s16 + $0x21dc] ss:$52 sps:$4 sm:$0xff]   ;;  %v20165_v14 = vld [vmem:[%s21132_s16 + $0x21e4] ss:$52 sps:$4 sm:$0xff]  }
 0x6e7   : > { %14852 = vmatprep.subr.bf16.mxu0 %v20105_v25  ;;  %v20160_v25 = vld [vmem:[%s21132_s16 + $0x21d8] ss:$52 sps:$4 sm:$0xff]  }
 0x6e9   : > { %14484 = vmatpush1.bf16.msra.mxu1 %v20100_v5  ;;  %v20163_v5 = vld [vmem:[%s21132_s16 + $0x21e0] ss:$52 sps:$4 sm:$0xff]  }
 0x6ea   : > { %14853 = vmatpush1.bf16.msra.mxu0 %v20103_v35  ;;  %14485 = vmatprep.subr.bf16.mxu1 %v20108_v18  ;;  %v20168_v35 = vld [vmem:[%s21132_s16 + $0x2244] ss:$52 sps:$4 sm:$0xff]   ;;  %v20171_v18 = vld [vmem:[%s21132_s16 + $0x224c] ss:$52 sps:$4 sm:$0xff]  }
 0x6eb   : > { %14854 = vmatprep.subr.bf16.mxu0 %v20111_v50  ;;  %v20166_v50 = vld [vmem:[%s21132_s16 + $0x2240] ss:$52 sps:$4 sm:$0xff]  }
 0x6ed   : > { %14486 = vmatpush1.bf16.msra.mxu1 %v20106_v52  ;;  %v20169_v52 = vld [vmem:[%s21132_s16 + $0x2248] ss:$52 sps:$4 sm:$0xff]  }
 0x6ee   : > { %14855 = vmatpush1.bf16.msra.mxu0 %v20109_v55  ;;  %14487 = vmatprep.subr.bf16.mxu1 %v20114_v62  ;;  %v20174_v55 = vld [vmem:[%s21132_s16 + $0x22ac] ss:$52 sps:$4 sm:$0xff]   ;;  %v20177_v62 = vld [vmem:[%s21132_s16 + $0x22b4] ss:$52 sps:$4 sm:$0xff]  }
 0x6ef   : > { %14856 = vmatprep.subr.bf16.mxu0 %v20117_v56  ;;  %v20172_v56 = vld [vmem:[%s21132_s16 + $0x22a8] ss:$52 sps:$4 sm:$0xff]  }
 0x6f1   : > { %14488 = vmatpush1.bf16.msra.mxu1 %v20112_v59  ;;  %v20175_v59 = vld [vmem:[%s21132_s16 + $0x22b0] ss:$52 sps:$4 sm:$0xff]  }
 0x6f2   : > { %14857 = vmatpush1.bf16.msra.mxu0 %v20115_v0  ;;  %14489 = vmatprep.subr.bf16.mxu1 %v20120_v1  ;;  %v20180_v0 = vld [vmem:[%s21132_s16 + $0x2314] ss:$52 sps:$4 sm:$0xff]   ;;  %v20183_v1 = vld [vmem:[%s21132_s16 + $0x231c] ss:$52 sps:$4 sm:$0xff]  }
 0x6f3   : > { %14858 = vmatprep.subr.bf16.mxu0 %v20123_v3  ;;  %v20178_v3 = vld [vmem:[%s21132_s16 + $0x2310] ss:$52 sps:$4 sm:$0xff]  }
 0x6f5   : > { %14490 = vmatpush1.bf16.msra.mxu1 %v20118_v6  ;;  %v20181_v6 = vld [vmem:[%s21132_s16 + $0x2318] ss:$52 sps:$4 sm:$0xff]  }
 0x6f6   : > { %14859 = vmatpush1.bf16.msra.mxu0 %v20121_v7  ;;  %14491 = vmatprep.subr.bf16.mxu1 %v20126_v9  ;;  %v20186_v7 = vld [vmem:[%s21132_s16 + $0x237c] ss:$52 sps:$4 sm:$0xff]   ;;  %v20189_v9 = vld [vmem:[%s21132_s16 + $0x2384] ss:$52 sps:$4 sm:$0xff]  }
 0x6f7   : > { %14860 = vmatprep.subr.bf16.mxu0 %v20129_v10  ;;  %v20184_v10 = vld [vmem:[%s21132_s16 + $0x2378] ss:$52 sps:$4 sm:$0xff]  }
 0x6f9   : > { %14492 = vmatpush1.bf16.msra.mxu1 %v20124_v23  ;;  %v20187_v23 = vld [vmem:[%s21132_s16 + $0x2380] ss:$52 sps:$4 sm:$0xff]  }
 0x6fa   : > { %14861 = vmatpush1.bf16.msra.mxu0 %v20127_v12  ;;  %14493 = vmatprep.subr.bf16.mxu1 %v20132_v13  ;;  %v20192_v12 = vld [vmem:[%s21132_s16 + $0x23e4] ss:$52 sps:$4 sm:$0xff]   ;;  %v20195_v13 = vld [vmem:[%s21132_s16 + $0x23ec] ss:$52 sps:$4 sm:$0xff]  }
 0x6fb   : > { %14862 = vmatprep.subr.bf16.mxu0 %v20135_v2  ;;  %v20190_v2 = vld [vmem:[%s21132_s16 + $0x23e0] ss:$52 sps:$4 sm:$0xff]  }
 0x6fd   : > { %14494 = vmatpush1.bf16.msra.mxu1 %v20130_v17  ;;  %v20193_v17 = vld [vmem:[%s21132_s16 + $0x23e8] ss:$52 sps:$4 sm:$0xff]  }
 0x6fe   : > { %14863 = vmatpush1.bf16.msra.mxu0 %v20133_v20  ;;  %14495 = vmatprep.subr.bf16.mxu1 %v20138_v22  ;;  %v20198_v20 = vld [vmem:[%s21132_s16 + $0x244c] ss:$52 sps:$4 sm:$0xff]   ;;  %v20201_v22 = vld [vmem:[%s21132_s16 + $0x2454] ss:$52 sps:$4 sm:$0xff]  }
 0x6ff   : > { %14864 = vmatprep.subr.bf16.mxu0 %v20141_v27  ;;  %v20196_v27 = vld [vmem:[%s21132_s16 + $0x2448] ss:$52 sps:$4 sm:$0xff]  }
 0x701   : > { %14496 = vmatpush1.bf16.msra.mxu1 %v20136_v32  ;;  %v20199_v32 = vld [vmem:[%s21132_s16 + $0x2450] ss:$52 sps:$4 sm:$0xff]  }
 0x702   : > { %14865 = vmatpush1.bf16.msra.mxu0 %v20139_v28  ;;  %14506 = vmatprep.subr.bf16.mxu1 %v20144_v30  ;;  %v20204_v28 = vld [vmem:[%s21132_s16 + $0x24b4] ss:$52 sps:$4 sm:$0xff]   ;;  %v20207_v30 = vld [vmem:[%s21132_s16 + $0x24bc] ss:$52 sps:$4 sm:$0xff]  }
 0x703   : > { %14875 = vmatprep.subr.bf16.mxu0 %v20147_v31  ;;  %v20202_v31 = vld [vmem:[%s21132_s16 + $0x24b0] ss:$52 sps:$4 sm:$0xff]  }
 0x704   : > { %14498 = vmatmul.mubr.bf16.vlgmr.msra.gmra.mrb[12].mxu1 %v21651_v58 }
 0x705   : > { %14867 = vmatmul.mubr.bf16.vlgmr.msra.gmra.mrb[24].mxu0 %v21651_v58  ;;  %14507 = vmatpush1.bf16.msra.mxu1 %v20142_v38  ;;  %v20205_v38 = vld [vmem:[%s21132_s16 + $0x24b8] ss:$52 sps:$4 sm:$0xff]  }
 0x706   : > { %14538 = vmatprep.mubr.bf16.mxu1 %v21653_v8  ;;  %14876 = vmatpush1.bf16.msra.mxu0 %v20145_v39  ;;  %v20210_v39 = vld [vmem:[%s21132_s16 + $0x251c] ss:$52 sps:$4 sm:$0xff]  }
 0x707   : > { %14907 = vmatprep.mubr.bf16.mxu0 %v21653_v8  ;;  %14508 = vmatprep.subr.bf16.mxu1 %v20150_v33  ;;  %v20213_v33 = vld [vmem:[%s21132_s16 + $0x2524] ss:$52 sps:$4 sm:$0xff]  }
 0x708   : > { %14877 = vmatprep.subr.bf16.mxu0 %v20153_v45  ;;  %v20208_v45 = vld [vmem:[%s21132_s16 + $0x2518] ss:$52 sps:$4 sm:$0xff]  }
 0x709   : > { %14509 = vmatpush1.bf16.msra.mxu1 %v20148_v46  ;;  %v20211_v46 = vld [vmem:[%s21132_s16 + $0x2520] ss:$52 sps:$4 sm:$0xff]  }
 0x70a   : > { %14878 = vmatpush1.bf16.msra.mxu0 %v20151_v19  ;;  %14510 = vmatprep.subr.bf16.mxu1 %v20156_v34  ;;  %v20216_v19 = vld [vmem:[%s21132_s16 + $0x2584] ss:$52 sps:$4 sm:$0xff]   ;;  %v20219_v34 = vld [vmem:[%s21132_s16 + $0x258c] ss:$52 sps:$4 sm:$0xff]  }
 0x70b   : > { %14879 = vmatprep.subr.bf16.mxu0 %v20159_v47  ;;  %v20214_v47 = vld [vmem:[%s21132_s16 + $0x2580] ss:$52 sps:$4 sm:$0xff]  }
 0x70d   : > { %14511 = vmatpush1.bf16.msra.mxu1 %v20154_v48  ;;  %v20217_v48 = vld [vmem:[%s21132_s16 + $0x2588] ss:$52 sps:$4 sm:$0xff]  }
 0x70e   : > { %14880 = vmatpush1.bf16.msra.mxu0 %v20157_v42  ;;  %14512 = vmatprep.subr.bf16.mxu1 %v20162_v16  ;;  %v20222_v42 = vld [vmem:[%s21132_s16 + $0x25ec] ss:$52 sps:$4 sm:$0xff]   ;;  %v20225_v16 = vld [vmem:[%s21132_s16 + $0x25f4] ss:$52 sps:$4 sm:$0xff]  }
 0x70f   : > { %14881 = vmatprep.subr.bf16.mxu0 %v20165_v14  ;;  %v20220_v14 = vld [vmem:[%s21132_s16 + $0x25e8] ss:$52 sps:$4 sm:$0xff]  }
 0x711   : > { %14513 = vmatpush1.bf16.msra.mxu1 %v20160_v25  ;;  %v20223_v25 = vld [vmem:[%s21132_s16 + $0x25f0] ss:$52 sps:$4 sm:$0xff]  }
 0x712   : > { %14882 = vmatpush1.bf16.msra.mxu0 %v20163_v5  ;;  %14514 = vmatprep.subr.bf16.mxu1 %v20168_v35  ;;  %v20228_v5 = vld [vmem:[%s21132_s16 + $0x2654] ss:$52 sps:$4 sm:$0xff]   ;;  %v20231_v35 = vld [vmem:[%s21132_s16 + $0x265c] ss:$52 sps:$4 sm:$0xff]  }
 0x713   : > { %14883 = vmatprep.subr.bf16.mxu0 %v20171_v18  ;;  %v20226_v18 = vld [vmem:[%s21132_s16 + $0x2650] ss:$52 sps:$4 sm:$0xff]  }
 0x715   : > { %14515 = vmatpush1.bf16.msra.mxu1 %v20166_v50  ;;  %v20229_v50 = vld [vmem:[%s21132_s16 + $0x2658] ss:$52 sps:$4 sm:$0xff]  }
 0x716   : > { %14884 = vmatpush1.bf16.msra.mxu0 %v20169_v52  ;;  %14516 = vmatprep.subr.bf16.mxu1 %v20174_v55  ;;  %v20234_v52 = vld [vmem:[%s21132_s16 + $0x26bc] ss:$52 sps:$4 sm:$0xff]   ;;  %v20237_v55 = vld [vmem:[%s21132_s16 + $0x26c4] ss:$52 sps:$4 sm:$0xff]  }
 0x717   : > { %14885 = vmatprep.subr.bf16.mxu0 %v20177_v62  ;;  %v20232_v62 = vld [vmem:[%s21132_s16 + $0x26b8] ss:$52 sps:$4 sm:$0xff]  }
 0x719   : > { %14517 = vmatpush1.bf16.msra.mxu1 %v20172_v56  ;;  %v20235_v56 = vld [vmem:[%s21132_s16 + $0x26c0] ss:$52 sps:$4 sm:$0xff]  }
 0x71a   : > { %14886 = vmatpush1.bf16.msra.mxu0 %v20175_v59  ;;  %14518 = vmatprep.subr.bf16.mxu1 %v20180_v0  ;;  %v20240_v59 = vld [vmem:[%s21132_s16 + $0x2724] ss:$52 sps:$4 sm:$0xff]   ;;  %v20243_v0 = vld [vmem:[%s21132_s16 + $0x272c] ss:$52 sps:$4 sm:$0xff]  }
 0x71b   : > { %14887 = vmatprep.subr.bf16.mxu0 %v20183_v1  ;;  %v20238_v1 = vld [vmem:[%s21132_s16 + $0x2720] ss:$52 sps:$4 sm:$0xff]  }
 0x71d   : > { %14519 = vmatpush1.bf16.msra.mxu1 %v20178_v3  ;;  %v20241_v3 = vld [vmem:[%s21132_s16 + $0x2728] ss:$52 sps:$4 sm:$0xff]  }
 0x71e   : > { %14888 = vmatpush1.bf16.msra.mxu0 %v20181_v6  ;;  %14520 = vmatprep.subr.bf16.mxu1 %v20186_v7  ;;  %v20246_v6 = vld [vmem:[%s21132_s16 + $0x278c] ss:$52 sps:$4 sm:$0xff]   ;;  %v20249_v7 = vld [vmem:[%s21132_s16 + $0x2794] ss:$52 sps:$4 sm:$0xff]  }
 0x71f   : > { %14889 = vmatprep.subr.bf16.mxu0 %v20189_v9  ;;  %v20244_v9 = vld [vmem:[%s21132_s16 + $0x2788] ss:$52 sps:$4 sm:$0xff]  }
 0x721   : > { %14521 = vmatpush1.bf16.msra.mxu1 %v20184_v10  ;;  %v20247_v10 = vld [vmem:[%s21132_s16 + $0x2790] ss:$52 sps:$4 sm:$0xff]  }
 0x722   : > { %14890 = vmatpush1.bf16.msra.mxu0 %v20187_v23  ;;  %14522 = vmatprep.subr.bf16.mxu1 %v20192_v12  ;;  %v20252_v23 = vld [vmem:[%s21132_s16 + $0x27f4] ss:$52 sps:$4 sm:$0xff]   ;;  %v20255_v12 = vld [vmem:[%s21132_s16 + $0x27fc] ss:$52 sps:$4 sm:$0xff]  }
 0x723   : > { %14891 = vmatprep.subr.bf16.mxu0 %v20195_v13  ;;  %v20250_v13 = vld [vmem:[%s21132_s16 + $0x27f0] ss:$52 sps:$4 sm:$0xff]  }
 0x725   : > { %14523 = vmatpush1.bf16.msra.mxu1 %v20190_v2  ;;  %v20253_v2 = vld [vmem:[%s21132_s16 + $0x27f8] ss:$52 sps:$4 sm:$0xff]  }
 0x726   : > { %14892 = vmatpush1.bf16.msra.mxu0 %v20193_v17  ;;  %14524 = vmatprep.subr.bf16.mxu1 %v20198_v20  ;;  %v20258_v17 = vld [vmem:[%s21132_s16 + $0x285c] ss:$52 sps:$4 sm:$0xff]   ;;  %v20261_v20 = vld [vmem:[%s21132_s16 + $0x2864] ss:$52 sps:$4 sm:$0xff]  }
 0x727   : > { %14893 = vmatprep.subr.bf16.mxu0 %v20201_v22  ;;  %v20256_v22 = vld [vmem:[%s21132_s16 + $0x2858] ss:$52 sps:$4 sm:$0xff]  }
 0x729   : > { %14525 = vmatpush1.bf16.msra.mxu1 %v20196_v27  ;;  %v20259_v27 = vld [vmem:[%s21132_s16 + $0x2860] ss:$52 sps:$4 sm:$0xff]  }
 0x72a   : > { %14894 = vmatpush1.bf16.msra.mxu0 %v20199_v32  ;;  %14526 = vmatprep.subr.bf16.mxu1 %v20204_v28  ;;  %v20264_v32 = vld [vmem:[%s21132_s16 + $0x28c4] ss:$52 sps:$4 sm:$0xff]   ;;  %v20267_v28 = vld [vmem:[%s21132_s16 + $0x28cc] ss:$52 sps:$4 sm:$0xff]  }
 0x72b   : > { %14895 = vmatprep.subr.bf16.mxu0 %v20207_v30  ;;  %v20262_v30 = vld [vmem:[%s21132_s16 + $0x28c0] ss:$52 sps:$4 sm:$0xff]  }
 0x72d   : > { %14527 = vmatpush1.bf16.msra.mxu1 %v20202_v31  ;;  %v20265_v31 = vld [vmem:[%s21132_s16 + $0x28c8] ss:$52 sps:$4 sm:$0xff]  }
 0x72e   : > { %14896 = vmatpush1.bf16.msra.mxu0 %v20205_v38  ;;  %14528 = vmatprep.subr.bf16.mxu1 %v20210_v39  ;;  %v20270_v38 = vld [vmem:[%s21132_s16 + $0x292c] ss:$52 sps:$4 sm:$0xff]   ;;  %v20273_v39 = vld [vmem:[%s21132_s16 + $0x2934] ss:$52 sps:$4 sm:$0xff]  }
 0x72f   : > { %14897 = vmatprep.subr.bf16.mxu0 %v20213_v33  ;;  %v20268_v33 = vld [vmem:[%s21132_s16 + $0x2928] ss:$52 sps:$4 sm:$0xff]  }
 0x731   : > { %14529 = vmatpush1.bf16.msra.mxu1 %v20208_v45  ;;  %v20271_v45 = vld [vmem:[%s21132_s16 + $0x2930] ss:$52 sps:$4 sm:$0xff]  }
 0x732   : > { %14898 = vmatpush1.bf16.msra.mxu0 %v20211_v46  ;;  %14530 = vmatprep.subr.bf16.mxu1 %v20216_v19  ;;  %v20276_v46 = vld [vmem:[%s21132_s16 + $0x2994] ss:$52 sps:$4 sm:$0xff]   ;;  %v20279_v19 = vld [vmem:[%s21132_s16 + $0x299c] ss:$52 sps:$4 sm:$0xff]  }
 0x733   : > { %14899 = vmatprep.subr.bf16.mxu0 %v20219_v34  ;;  %v20274_v34 = vld [vmem:[%s21132_s16 + $0x2990] ss:$52 sps:$4 sm:$0xff]  }
 0x735   : > { %14531 = vmatpush1.bf16.msra.mxu1 %v20214_v47  ;;  %v20277_v47 = vld [vmem:[%s21132_s16 + $0x2998] ss:$52 sps:$4 sm:$0xff]  }
 0x736   : > { %14900 = vmatpush1.bf16.msra.mxu0 %v20217_v48  ;;  %14532 = vmatprep.subr.bf16.mxu1 %v20222_v42  ;;  %v20282_v48 = vld [vmem:[%s21132_s16 + $0x29fc] ss:$52 sps:$4 sm:$0xff]   ;;  %v20285_v42 = vld [vmem:[%s21132_s16 + $0x2a04] ss:$52 sps:$4 sm:$0xff]  }
 0x737   : > { %14901 = vmatprep.subr.bf16.mxu0 %v20225_v16  ;;  %v20280_v16 = vld [vmem:[%s21132_s16 + $0x29f8] ss:$52 sps:$4 sm:$0xff]  }
 0x739   : > { %14533 = vmatpush1.bf16.msra.mxu1 %v20220_v14  ;;  %v20283_v14 = vld [vmem:[%s21132_s16 + $0x2a00] ss:$52 sps:$4 sm:$0xff]  }
 0x73a   : > { %14902 = vmatpush1.bf16.msra.mxu0 %v20223_v25  ;;  %14534 = vmatprep.subr.bf16.mxu1 %v20228_v5  ;;  %v20288_v25 = vld [vmem:[%s21132_s16 + $0x2a64] ss:$52 sps:$4 sm:$0xff]   ;;  %v20291_v5 = vld [vmem:[%s21132_s16 + $0x2a6c] ss:$52 sps:$4 sm:$0xff]  }
 0x73b   : > { %14903 = vmatprep.subr.bf16.mxu0 %v20231_v35  ;;  %v20286_v35 = vld [vmem:[%s21132_s16 + $0x2a60] ss:$52 sps:$4 sm:$0xff]  }
 0x73d   : > { %14535 = vmatpush1.bf16.msra.mxu1 %v20226_v18  ;;  %v20289_v18 = vld [vmem:[%s21132_s16 + $0x2a68] ss:$52 sps:$4 sm:$0xff]  }
 0x73e   : > { %14904 = vmatpush1.bf16.msra.mxu0 %v20229_v50  ;;  %14536 = vmatprep.subr.bf16.mxu1 %v20234_v52  ;;  %v20294_v50 = vld [vmem:[%s21132_s16 + $0x2acc] ss:$52 sps:$4 sm:$0xff]   ;;  %v20297_v52 = vld [vmem:[%s21132_s16 + $0x2ad4] ss:$52 sps:$4 sm:$0xff]  }
 0x73f   : > { %14905 = vmatprep.subr.bf16.mxu0 %v20237_v55  ;;  %v20292_v55 = vld [vmem:[%s21132_s16 + $0x2ac8] ss:$52 sps:$4 sm:$0xff]  }
 0x741   : > { %14537 = vmatpush1.bf16.msra.mxu1 %v20232_v62  ;;  %v20295_v62 = vld [vmem:[%s21132_s16 + $0x2ad0] ss:$52 sps:$4 sm:$0xff]  }
 0x742   : > { %14906 = vmatpush1.bf16.msra.mxu0 %v20235_v56  ;;  %14547 = vmatprep.subr.bf16.mxu1 %v20240_v59  ;;  %v20300_v56 = vld [vmem:[%s21132_s16 + $0x2b34] ss:$52 sps:$4 sm:$0xff]   ;;  %v20303_v59 = vld [vmem:[%s21132_s16 + $0x2b3c] ss:$52 sps:$4 sm:$0xff]  }
 0x743   : > { %14916 = vmatprep.subr.bf16.mxu0 %v20243_v0  ;;  %v20298_v0 = vld [vmem:[%s21132_s16 + $0x2b30] ss:$52 sps:$4 sm:$0xff]  }
 0x744   : > { %14539 = vmatmul.mubr.bf16.vlgmr.msra.gmra.mrb[12].mxu1 %v21724_v37 }
 0x745   : > { %14908 = vmatmul.mubr.bf16.vlgmr.msra.gmra.mrb[24].mxu0 %v21724_v37  ;;  %14548 = vmatpush1.bf16.msra.mxu1 %v20238_v1  ;;  %v20301_v1 = vld [vmem:[%s21132_s16 + $0x2b38] ss:$52 sps:$4 sm:$0xff]  }
 0x746   : > { %14579 = vmatprep.mubr.bf16.mxu1 %v21726_v40  ;;  %14917 = vmatpush1.bf16.msra.mxu0 %v20241_v3  ;;  %v20306_v3 = vld [vmem:[%s21132_s16 + $0x2b9c] ss:$52 sps:$4 sm:$0xff]  }
 0x747   : > { %14948 = vmatprep.mubr.bf16.mxu0 %v21726_v40  ;;  %14549 = vmatprep.subr.bf16.mxu1 %v20246_v6  ;;  %v20309_v6 = vld [vmem:[%s21132_s16 + $0x2ba4] ss:$52 sps:$4 sm:$0xff]  }
 0x748   : > { %14918 = vmatprep.subr.bf16.mxu0 %v20249_v7  ;;  %v20304_v7 = vld [vmem:[%s21132_s16 + $0x2b98] ss:$52 sps:$4 sm:$0xff]  }
 0x749   : > { %14550 = vmatpush1.bf16.msra.mxu1 %v20244_v9  ;;  %v20307_v9 = vld [vmem:[%s21132_s16 + $0x2ba0] ss:$52 sps:$4 sm:$0xff]  }
 0x74a   : > { %14919 = vmatpush1.bf16.msra.mxu0 %v20247_v10  ;;  %14551 = vmatprep.subr.bf16.mxu1 %v20252_v23  ;;  %v20312_v10 = vld [vmem:[%s21132_s16 + $0x2c04] ss:$52 sps:$4 sm:$0xff]   ;;  %v20315_v23 = vld [vmem:[%s21132_s16 + $0x2c0c] ss:$52 sps:$4 sm:$0xff]  }
 0x74b   : > { %14920 = vmatprep.subr.bf16.mxu0 %v20255_v12  ;;  %v20310_v12 = vld [vmem:[%s21132_s16 + $0x2c00] ss:$52 sps:$4 sm:$0xff]  }
 0x74d   : > { %14552 = vmatpush1.bf16.msra.mxu1 %v20250_v13  ;;  %v20313_v13 = vld [vmem:[%s21132_s16 + $0x2c08] ss:$52 sps:$4 sm:$0xff]  }
 0x74e   : > { %14921 = vmatpush1.bf16.msra.mxu0 %v20253_v2  ;;  %14553 = vmatprep.subr.bf16.mxu1 %v20258_v17  ;;  %v20318_v2 = vld [vmem:[%s21132_s16 + $0x2c6c] ss:$52 sps:$4 sm:$0xff]   ;;  %v20321_v17 = vld [vmem:[%s21132_s16 + $0x2c74] ss:$52 sps:$4 sm:$0xff]  }
 0x74f   : > { %14922 = vmatprep.subr.bf16.mxu0 %v20261_v20  ;;  %v20316_v20 = vld [vmem:[%s21132_s16 + $0x2c68] ss:$52 sps:$4 sm:$0xff]  }
 0x751   : > { %14554 = vmatpush1.bf16.msra.mxu1 %v20256_v22  ;;  %v20319_v22 = vld [vmem:[%s21132_s16 + $0x2c70] ss:$52 sps:$4 sm:$0xff]  }
 0x752   : > { %14923 = vmatpush1.bf16.msra.mxu0 %v20259_v27  ;;  %14555 = vmatprep.subr.bf16.mxu1 %v20264_v32  ;;  %v20324_v27 = vld [vmem:[%s21132_s16 + $0x2cd4] ss:$52 sps:$4 sm:$0xff]   ;;  %v20327_v32 = vld [vmem:[%s21132_s16 + $0x2cdc] ss:$52 sps:$4 sm:$0xff]  }
 0x753   : > { %14924 = vmatprep.subr.bf16.mxu0 %v20267_v28  ;;  %v20322_v28 = vld [vmem:[%s21132_s16 + $0x2cd0] ss:$52 sps:$4 sm:$0xff]  }
 0x755   : > { %14556 = vmatpush1.bf16.msra.mxu1 %v20262_v30  ;;  %v20325_v30 = vld [vmem:[%s21132_s16 + $0x2cd8] ss:$52 sps:$4 sm:$0xff]  }
 0x756   : > { %14925 = vmatpush1.bf16.msra.mxu0 %v20265_v31  ;;  %14557 = vmatprep.subr.bf16.mxu1 %v20270_v38  ;;  %v20330_v31 = vld [vmem:[%s21132_s16 + $0x2d3c] ss:$52 sps:$4 sm:$0xff]   ;;  %v20333_v38 = vld [vmem:[%s21132_s16 + $0x2d44] ss:$52 sps:$4 sm:$0xff]  }
 0x757   : > { %14926 = vmatprep.subr.bf16.mxu0 %v20273_v39  ;;  %v20328_v39 = vld [vmem:[%s21132_s16 + $0x2d38] ss:$52 sps:$4 sm:$0xff]  }
 0x759   : > { %14558 = vmatpush1.bf16.msra.mxu1 %v20268_v33  ;;  %v20331_v33 = vld [vmem:[%s21132_s16 + $0x2d40] ss:$52 sps:$4 sm:$0xff]  }
 0x75a   : > { %14927 = vmatpush1.bf16.msra.mxu0 %v20271_v45  ;;  %14559 = vmatprep.subr.bf16.mxu1 %v20276_v46  ;;  %v20336_v45 = vld [vmem:[%s21132_s16 + $0x2da4] ss:$52 sps:$4 sm:$0xff]   ;;  %v20339_v46 = vld [vmem:[%s21132_s16 + $0x2dac] ss:$52 sps:$4 sm:$0xff]  }
 0x75b   : > { %14928 = vmatprep.subr.bf16.mxu0 %v20279_v19  ;;  %v20334_v19 = vld [vmem:[%s21132_s16 + $0x2da0] ss:$52 sps:$4 sm:$0xff]  }
 0x75d   : > { %14560 = vmatpush1.bf16.msra.mxu1 %v20274_v34  ;;  %v20337_v34 = vld [vmem:[%s21132_s16 + $0x2da8] ss:$52 sps:$4 sm:$0xff]  }
 0x75e   : > { %14929 = vmatpush1.bf16.msra.mxu0 %v20277_v47  ;;  %14561 = vmatprep.subr.bf16.mxu1 %v20282_v48  ;;  %v20342_v47 = vld [vmem:[%s21132_s16 + $0x2e0c] ss:$52 sps:$4 sm:$0xff]   ;;  %v20345_v48 = vld [vmem:[%s21132_s16 + $0x2e14] ss:$52 sps:$4 sm:$0xff]  }
 0x75f   : > { %14930 = vmatprep.subr.bf16.mxu0 %v20285_v42  ;;  %v20340_v42 = vld [vmem:[%s21132_s16 + $0x2e08] ss:$52 sps:$4 sm:$0xff]  }
 0x761   : > { %14562 = vmatpush1.bf16.msra.mxu1 %v20280_v16  ;;  %v20343_v16 = vld [vmem:[%s21132_s16 + $0x2e10] ss:$52 sps:$4 sm:$0xff]  }
 0x762   : > { %14931 = vmatpush1.bf16.msra.mxu0 %v20283_v14  ;;  %14563 = vmatprep.subr.bf16.mxu1 %v20288_v25  ;;  %v20348_v14 = vld [vmem:[%s21132_s16 + $0x2e74] ss:$52 sps:$4 sm:$0xff]   ;;  %v20351_v25 = vld [vmem:[%s21132_s16 + $0x2e7c] ss:$52 sps:$4 sm:$0xff]  }
 0x763   : > { %14932 = vmatprep.subr.bf16.mxu0 %v20291_v5  ;;  %v20346_v5 = vld [vmem:[%s21132_s16 + $0x2e70] ss:$52 sps:$4 sm:$0xff]  }
 0x765   : > { %14564 = vmatpush1.bf16.msra.mxu1 %v20286_v35  ;;  %v20349_v35 = vld [vmem:[%s21132_s16 + $0x2e78] ss:$52 sps:$4 sm:$0xff]  }
 0x766   : > { %14933 = vmatpush1.bf16.msra.mxu0 %v20289_v18  ;;  %14565 = vmatprep.subr.bf16.mxu1 %v20294_v50  ;;  %v20354_v18 = vld [vmem:[%s21132_s16 + $0x2edc] ss:$52 sps:$4 sm:$0xff]   ;;  %v20357_v50 = vld [vmem:[%s21132_s16 + $0x2ee4] ss:$52 sps:$4 sm:$0xff]  }
 0x767   : > { %14934 = vmatprep.subr.bf16.mxu0 %v20297_v52  ;;  %v20352_v52 = vld [vmem:[%s21132_s16 + $0x2ed8] ss:$52 sps:$4 sm:$0xff]  }
 0x769   : > { %14566 = vmatpush1.bf16.msra.mxu1 %v20292_v55  ;;  %v20355_v55 = vld [vmem:[%s21132_s16 + $0x2ee0] ss:$52 sps:$4 sm:$0xff]  }
 0x76a   : > { %14935 = vmatpush1.bf16.msra.mxu0 %v20295_v62  ;;  %14567 = vmatprep.subr.bf16.mxu1 %v20300_v56  ;;  %v20360_v62 = vld [vmem:[%s21132_s16 + $0x2f44] ss:$52 sps:$4 sm:$0xff]   ;;  %v20363_v56 = vld [vmem:[%s21132_s16 + $0x2f4c] ss:$52 sps:$4 sm:$0xff]  }
 0x76b   : > { %14936 = vmatprep.subr.bf16.mxu0 %v20303_v59  ;;  %v20358_v59 = vld [vmem:[%s21132_s16 + $0x2f40] ss:$52 sps:$4 sm:$0xff]  }
 0x76d   : > { %14568 = vmatpush1.bf16.msra.mxu1 %v20298_v0  ;;  %v20361_v0 = vld [vmem:[%s21132_s16 + $0x2f48] ss:$52 sps:$4 sm:$0xff]  }
 0x76e   : > { %14937 = vmatpush1.bf16.msra.mxu0 %v20301_v1  ;;  %14569 = vmatprep.subr.bf16.mxu1 %v20306_v3  ;;  %v20366_v1 = vld [vmem:[%s21132_s16 + $0x2fac] ss:$52 sps:$4 sm:$0xff]   ;;  %v20369_v3 = vld [vmem:[%s21132_s16 + $0x2fb4] ss:$52 sps:$4 sm:$0xff]  }
 0x76f   : > { %14938 = vmatprep.subr.bf16.mxu0 %v20309_v6  ;;  %v20364_v6 = vld [vmem:[%s21132_s16 + $0x2fa8] ss:$52 sps:$4 sm:$0xff]  }
 0x771   : > { %14570 = vmatpush1.bf16.msra.mxu1 %v20304_v7  ;;  %v20367_v7 = vld [vmem:[%s21132_s16 + $0x2fb0] ss:$52 sps:$4 sm:$0xff]  }
 0x772   : > { %14939 = vmatpush1.bf16.msra.mxu0 %v20307_v9  ;;  %14571 = vmatprep.subr.bf16.mxu1 %v20312_v10  ;;  %v20372_v9 = vld [vmem:[%s21132_s16 + $0x3014] ss:$52 sps:$4 sm:$0xff]   ;;  %v20375_v10 = vld [vmem:[%s21132_s16 + $0x301c] ss:$52 sps:$4 sm:$0xff]  }
 0x773   : > { %14940 = vmatprep.subr.bf16.mxu0 %v20315_v23  ;;  %v20370_v23 = vld [vmem:[%s21132_s16 + $0x3010] ss:$52 sps:$4 sm:$0xff]  }
 0x775   : > { %14572 = vmatpush1.bf16.msra.mxu1 %v20310_v12  ;;  %v20373_v12 = vld [vmem:[%s21132_s16 + $0x3018] ss:$52 sps:$4 sm:$0xff]  }
 0x776   : > { %14941 = vmatpush1.bf16.msra.mxu0 %v20313_v13  ;;  %14573 = vmatprep.subr.bf16.mxu1 %v20318_v2  ;;  %v20378_v13 = vld [vmem:[%s21132_s16 + $0x307c] ss:$52 sps:$4 sm:$0xff]   ;;  %v20381_v2 = vld [vmem:[%s21132_s16 + $0x3084] ss:$52 sps:$4 sm:$0xff]  }
 0x777   : > { %14942 = vmatprep.subr.bf16.mxu0 %v20321_v17  ;;  %v20376_v17 = vld [vmem:[%s21132_s16 + $0x3078] ss:$52 sps:$4 sm:$0xff]  }
 0x779   : > { %14574 = vmatpush1.bf16.msra.mxu1 %v20316_v20  ;;  %v20379_v20 = vld [vmem:[%s21132_s16 + $0x3080] ss:$52 sps:$4 sm:$0xff]  }
 0x77a   : > { %14943 = vmatpush1.bf16.msra.mxu0 %v20319_v22  ;;  %14575 = vmatprep.subr.bf16.mxu1 %v20324_v27  ;;  %v20384_v22 = vld [vmem:[%s21132_s16 + $0x30e4] ss:$52 sps:$4 sm:$0xff]   ;;  %v20387_v27 = vld [vmem:[%s21132_s16 + $0x30ec] ss:$52 sps:$4 sm:$0xff]  }
 0x77b   : > { %14944 = vmatprep.subr.bf16.mxu0 %v20327_v32  ;;  %v20382_v32 = vld [vmem:[%s21132_s16 + $0x30e0] ss:$52 sps:$4 sm:$0xff]  }
 0x77d   : > { %14576 = vmatpush1.bf16.msra.mxu1 %v20322_v28  ;;  %v20385_v28 = vld [vmem:[%s21132_s16 + $0x30e8] ss:$52 sps:$4 sm:$0xff]  }
 0x77e   : > { %14945 = vmatpush1.bf16.msra.mxu0 %v20325_v30  ;;  %14577 = vmatprep.subr.bf16.mxu1 %v20330_v31  ;;  %v20390_v30 = vld [vmem:[%s21132_s16 + $0x314c] ss:$52 sps:$4 sm:$0xff]   ;;  %v20393_v31 = vld [vmem:[%s21132_s16 + $0x3154] ss:$52 sps:$4 sm:$0xff]  }
 0x77f   : > { %14946 = vmatprep.subr.bf16.mxu0 %v20333_v38  ;;  %v20388_v38 = vld [vmem:[%s21132_s16 + $0x3148] ss:$52 sps:$4 sm:$0xff]  }
 0x781   : > { %14578 = vmatpush1.bf16.msra.mxu1 %v20328_v39  ;;  %v20391_v39 = vld [vmem:[%s21132_s16 + $0x3150] ss:$52 sps:$4 sm:$0xff]  }
 0x782   : > { %14947 = vmatpush1.bf16.msra.mxu0 %v20331_v33  ;;  %14588 = vmatprep.subr.bf16.mxu1 %v20336_v45  ;;  %v20396_v33 = vld [vmem:[%s21132_s16 + $0x31b4] ss:$52 sps:$4 sm:$0xff]   ;;  %v20399_v45 = vld [vmem:[%s21132_s16 + $0x31bc] ss:$52 sps:$4 sm:$0xff]  }
 0x783   : > { %14957 = vmatprep.subr.bf16.mxu0 %v20339_v46  ;;  %v20394_v46 = vld [vmem:[%s21132_s16 + $0x31b0] ss:$52 sps:$4 sm:$0xff]  }
 0x784   : > { %14580 = vmatmul.mubr.bf16.vlgmr.msra.gmra.mrb[12].mxu1 %v21798_v43 }
 0x785   : > { %14949 = vmatmul.mubr.bf16.vlgmr.msra.gmra.mrb[24].mxu0 %v21798_v43  ;;  %14589 = vmatpush1.bf16.msra.mxu1 %v20334_v19  ;;  %v20397_v19 = vld [vmem:[%s21132_s16 + $0x31b8] ss:$52 sps:$4 sm:$0xff]  }
 0x786   : > { %14620 = vmatprep.mubr.bf16.mxu1 %v21800_v44  ;;  %14958 = vmatpush1.bf16.msra.mxu0 %v20337_v34  ;;  %v20402_v34 = vld [vmem:[%s21132_s16 + $0x321c] ss:$52 sps:$4 sm:$0xff]  }
 0x787   : > { %14989 = vmatprep.mubr.bf16.mxu0 %v21800_v44  ;;  %14590 = vmatprep.subr.bf16.mxu1 %v20342_v47  ;;  %v20405_v47 = vld [vmem:[%s21132_s16 + $0x3224] ss:$52 sps:$4 sm:$0xff]  }
 0x788   : > { %14959 = vmatprep.subr.bf16.mxu0 %v20345_v48  ;;  %v20400_v48 = vld [vmem:[%s21132_s16 + $0x3218] ss:$52 sps:$4 sm:$0xff]  }
 0x789   : > { %14591 = vmatpush1.bf16.msra.mxu1 %v20340_v42  ;;  %v20403_v42 = vld [vmem:[%s21132_s16 + $0x3220] ss:$52 sps:$4 sm:$0xff]  }
 0x78a   : > { %14960 = vmatpush1.bf16.msra.mxu0 %v20343_v16  ;;  %14592 = vmatprep.subr.bf16.mxu1 %v20348_v14  ;;  %v20408_v16 = vld [vmem:[%s21132_s16 + $0x3284] ss:$52 sps:$4 sm:$0xff]   ;;  %v20411_v14 = vld [vmem:[%s21132_s16 + $0x328c] ss:$52 sps:$4 sm:$0xff]  }
 0x78b   : > { %14961 = vmatprep.subr.bf16.mxu0 %v20351_v25  ;;  %v20406_v25 = vld [vmem:[%s21132_s16 + $0x3280] ss:$52 sps:$4 sm:$0xff]  }
 0x78d   : > { %14593 = vmatpush1.bf16.msra.mxu1 %v20346_v5  ;;  %v20409_v5 = vld [vmem:[%s21132_s16 + $0x3288] ss:$52 sps:$4 sm:$0xff]  }
 0x78e   : > { %14962 = vmatpush1.bf16.msra.mxu0 %v20349_v35  ;;  %14594 = vmatprep.subr.bf16.mxu1 %v20354_v18  ;;  %v20414_v35 = vld [vmem:[%s21132_s16 + $0x32ec] ss:$52 sps:$4 sm:$0xff]   ;;  %v20417_v18 = vld [vmem:[%s21132_s16 + $0x32f4] ss:$52 sps:$4 sm:$0xff]  }
 0x78f   : > { %14963 = vmatprep.subr.bf16.mxu0 %v20357_v50  ;;  %v20412_v50 = vld [vmem:[%s21132_s16 + $0x32e8] ss:$52 sps:$4 sm:$0xff]  }
 0x791   : > { %14595 = vmatpush1.bf16.msra.mxu1 %v20352_v52  ;;  %v20415_v52 = vld [vmem:[%s21132_s16 + $0x32f0] ss:$52 sps:$4 sm:$0xff]  }
 0x792   : > { %14964 = vmatpush1.bf16.msra.mxu0 %v20355_v55  ;;  %14596 = vmatprep.subr.bf16.mxu1 %v20360_v62  ;;  %v20420_v55 = vld [vmem:[%s21132_s16 + $0x3354] ss:$52 sps:$4 sm:$0xff]   ;;  %v20423_v62 = vld [vmem:[%s21132_s16 + $0x335c] ss:$52 sps:$4 sm:$0xff]  }
 0x793   : > { %14965 = vmatprep.subr.bf16.mxu0 %v20363_v56  ;;  %v20418_v56 = vld [vmem:[%s21132_s16 + $0x3350] ss:$52 sps:$4 sm:$0xff]  }
 0x795   : > { %14597 = vmatpush1.bf16.msra.mxu1 %v20358_v59  ;;  %v20421_v59 = vld [vmem:[%s21132_s16 + $0x3358] ss:$52 sps:$4 sm:$0xff]  }
 0x796   : > { %14966 = vmatpush1.bf16.msra.mxu0 %v20361_v0  ;;  %14598 = vmatprep.subr.bf16.mxu1 %v20366_v1  ;;  %v20426_v0 = vld [vmem:[%s21132_s16 + $0x33bc] ss:$52 sps:$4 sm:$0xff]   ;;  %v20429_v1 = vld [vmem:[%s21132_s16 + $0x33c4] ss:$52 sps:$4 sm:$0xff]  }
 0x797   : > { %14967 = vmatprep.subr.bf16.mxu0 %v20369_v3  ;;  %v20424_v3 = vld [vmem:[%s21132_s16 + $0x33b8] ss:$52 sps:$4 sm:$0xff]  }
 0x799   : > { %14599 = vmatpush1.bf16.msra.mxu1 %v20364_v6  ;;  %v20427_v6 = vld [vmem:[%s21132_s16 + $0x33c0] ss:$52 sps:$4 sm:$0xff]  }
 0x79a   : > { %14968 = vmatpush1.bf16.msra.mxu0 %v20367_v7  ;;  %14600 = vmatprep.subr.bf16.mxu1 %v20372_v9  ;;  %v20432_v7 = vld [vmem:[%s21132_s16 + $0x3424] ss:$52 sps:$4 sm:$0xff]   ;;  %v20435_v9 = vld [vmem:[%s21132_s16 + $0x342c] ss:$52 sps:$4 sm:$0xff]  }
 0x79b   : > { %14969 = vmatprep.subr.bf16.mxu0 %v20375_v10  ;;  %v20430_v10 = vld [vmem:[%s21132_s16 + $0x3420] ss:$52 sps:$4 sm:$0xff]  }
 0x79d   : > { %14601 = vmatpush1.bf16.msra.mxu1 %v20370_v23  ;;  %v20433_v23 = vld [vmem:[%s21132_s16 + $0x3428] ss:$52 sps:$4 sm:$0xff]  }
 0x79e   : > { %14970 = vmatpush1.bf16.msra.mxu0 %v20373_v12  ;;  %14602 = vmatprep.subr.bf16.mxu1 %v20378_v13  ;;  %v20438_v12 = vld [vmem:[%s21132_s16 + $0x348c] ss:$52 sps:$4 sm:$0xff]   ;;  %v20441_v13 = vld [vmem:[%s21132_s16 + $0x3494] ss:$52 sps:$4 sm:$0xff]  }
 0x79f   : > { %14971 = vmatprep.subr.bf16.mxu0 %v20381_v2  ;;  %v20436_v2 = vld [vmem:[%s21132_s16 + $0x3488] ss:$52 sps:$4 sm:$0xff]  }
 0x7a1   : > { %14603 = vmatpush1.bf16.msra.mxu1 %v20376_v17  ;;  %v20439_v17 = vld [vmem:[%s21132_s16 + $0x3490] ss:$52 sps:$4 sm:$0xff]  }
 0x7a2   : > { %14972 = vmatpush1.bf16.msra.mxu0 %v20379_v20  ;;  %14604 = vmatprep.subr.bf16.mxu1 %v20384_v22  ;;  %v20444_v20 = vld [vmem:[%s21132_s16 + $0x34f4] ss:$52 sps:$4 sm:$0xff]   ;;  %v20447_v22 = vld [vmem:[%s21132_s16 + $0x34fc] ss:$52 sps:$4 sm:$0xff]  }
 0x7a3   : > { %14973 = vmatprep.subr.bf16.mxu0 %v20387_v27  ;;  %v20442_v27 = vld [vmem:[%s21132_s16 + $0x34f0] ss:$52 sps:$4 sm:$0xff]  }
 0x7a5   : > { %14605 = vmatpush1.bf16.msra.mxu1 %v20382_v32  ;;  %v20445_v32 = vld [vmem:[%s21132_s16 + $0x34f8] ss:$52 sps:$4 sm:$0xff]  }
 0x7a6   : > { %14974 = vmatpush1.bf16.msra.mxu0 %v20385_v28  ;;  %14606 = vmatprep.subr.bf16.mxu1 %v20390_v30  ;;  %v20450_v28 = vld [vmem:[%s21132_s16 + $0x355c] ss:$52 sps:$4 sm:$0xff]   ;;  %v20453_v30 = vld [vmem:[%s21132_s16 + $0x3564] ss:$52 sps:$4 sm:$0xff]  }
 0x7a7   : > { %14975 = vmatprep.subr.bf16.mxu0 %v20393_v31  ;;  %v20448_v31 = vld [vmem:[%s21132_s16 + $0x3558] ss:$52 sps:$4 sm:$0xff]  }
 0x7a9   : > { %14607 = vmatpush1.bf16.msra.mxu1 %v20388_v38  ;;  %v20451_v38 = vld [vmem:[%s21132_s16 + $0x3560] ss:$52 sps:$4 sm:$0xff]  }
 0x7aa   : > { %14976 = vmatpush1.bf16.msra.mxu0 %v20391_v39  ;;  %14608 = vmatprep.subr.bf16.mxu1 %v20396_v33  ;;  %v20456_v39 = vld [vmem:[%s21132_s16 + $0x35c4] ss:$52 sps:$4 sm:$0xff]   ;;  %v20459_v33 = vld [vmem:[%s21132_s16 + $0x35cc] ss:$52 sps:$4 sm:$0xff]  }
 0x7ab   : > { %14977 = vmatprep.subr.bf16.mxu0 %v20399_v45  ;;  %v20454_v45 = vld [vmem:[%s21132_s16 + $0x35c0] ss:$52 sps:$4 sm:$0xff]  }
 0x7ad   : > { %14609 = vmatpush1.bf16.msra.mxu1 %v20394_v46  ;;  %v20457_v46 = vld [vmem:[%s21132_s16 + $0x35c8] ss:$52 sps:$4 sm:$0xff]  }
 0x7ae   : > { %14978 = vmatpush1.bf16.msra.mxu0 %v20397_v19  ;;  %14610 = vmatprep.subr.bf16.mxu1 %v20402_v34  ;;  %v20462_v19 = vld [vmem:[%s21132_s16 + $0x362c] ss:$52 sps:$4 sm:$0xff]   ;;  %v20465_v34 = vld [vmem:[%s21132_s16 + $0x3634] ss:$52 sps:$4 sm:$0xff]  }
 0x7af   : > { %14979 = vmatprep.subr.bf16.mxu0 %v20405_v47  ;;  %v20460_v47 = vld [vmem:[%s21132_s16 + $0x3628] ss:$52 sps:$4 sm:$0xff]  }
 0x7b1   : > { %14611 = vmatpush1.bf16.msra.mxu1 %v20400_v48  ;;  %v20463_v48 = vld [vmem:[%s21132_s16 + $0x3630] ss:$52 sps:$4 sm:$0xff]  }
 0x7b2   : > { %14980 = vmatpush1.bf16.msra.mxu0 %v20403_v42  ;;  %14612 = vmatprep.subr.bf16.mxu1 %v20408_v16  ;;  %v20468_v42 = vld [vmem:[%s21132_s16 + $0x3694] ss:$52 sps:$4 sm:$0xff]   ;;  %v20471_v16 = vld [vmem:[%s21132_s16 + $0x369c] ss:$52 sps:$4 sm:$0xff]  }
 0x7b3   : > { %14981 = vmatprep.subr.bf16.mxu0 %v20411_v14  ;;  %v20466_v14 = vld [vmem:[%s21132_s16 + $0x3690] ss:$52 sps:$4 sm:$0xff]  }
 0x7b5   : > { %14613 = vmatpush1.bf16.msra.mxu1 %v20406_v25  ;;  %v20469_v25 = vld [vmem:[%s21132_s16 + $0x3698] ss:$52 sps:$4 sm:$0xff]  }
 0x7b6   : > { %14982 = vmatpush1.bf16.msra.mxu0 %v20409_v5  ;;  %14614 = vmatprep.subr.bf16.mxu1 %v20414_v35  ;;  %v20474_v5 = vld [vmem:[%s21132_s16 + $0x36fc] ss:$52 sps:$4 sm:$0xff]   ;;  %v20477_v35 = vld [vmem:[%s21132_s16 + $0x3704] ss:$52 sps:$4 sm:$0xff]  }
 0x7b7   : > { %14983 = vmatprep.subr.bf16.mxu0 %v20417_v18  ;;  %v20472_v18 = vld [vmem:[%s21132_s16 + $0x36f8] ss:$52 sps:$4 sm:$0xff]  }
 0x7b9   : > { %14615 = vmatpush1.bf16.msra.mxu1 %v20412_v50  ;;  %v20475_v50 = vld [vmem:[%s21132_s16 + $0x3700] ss:$52 sps:$4 sm:$0xff]  }
 0x7ba   : > { %14984 = vmatpush1.bf16.msra.mxu0 %v20415_v52  ;;  %14616 = vmatprep.subr.bf16.mxu1 %v20420_v55  ;;  %v20480_v52 = vld [vmem:[%s21132_s16 + $0x3764] ss:$52 sps:$4 sm:$0xff]   ;;  %v20483_v55 = vld [vmem:[%s21132_s16 + $0x376c] ss:$52 sps:$4 sm:$0xff]  }
 0x7bb   : > { %14985 = vmatprep.subr.bf16.mxu0 %v20423_v62  ;;  %v20478_v62 = vld [vmem:[%s21132_s16 + $0x3760] ss:$52 sps:$4 sm:$0xff]  }
 0x7bd   : > { %14617 = vmatpush1.bf16.msra.mxu1 %v20418_v56  ;;  %v20481_v56 = vld [vmem:[%s21132_s16 + $0x3768] ss:$52 sps:$4 sm:$0xff]  }
 0x7be   : > { %14986 = vmatpush1.bf16.msra.mxu0 %v20421_v59  ;;  %14618 = vmatprep.subr.bf16.mxu1 %v20426_v0  ;;  %v20486_v59 = vld [vmem:[%s21132_s16 + $0x37cc] ss:$52 sps:$4 sm:$0xff]   ;;  %v20489_v0 = vld [vmem:[%s21132_s16 + $0x37d4] ss:$52 sps:$4 sm:$0xff]  }
 0x7bf   : > { %14987 = vmatprep.subr.bf16.mxu0 %v20429_v1  ;;  %v20484_v1 = vld [vmem:[%s21132_s16 + $0x37c8] ss:$52 sps:$4 sm:$0xff]  }
 0x7c1   : > { %14619 = vmatpush1.bf16.msra.mxu1 %v20424_v3  ;;  %v20487_v3 = vld [vmem:[%s21132_s16 + $0x37d0] ss:$52 sps:$4 sm:$0xff]  }
 0x7c2   : > { %14988 = vmatpush1.bf16.msra.mxu0 %v20427_v6  ;;  %14629 = vmatprep.subr.bf16.mxu1 %v20432_v7  ;;  %v20492_v6 = vld [vmem:[%s21132_s16 + $0x3834] ss:$52 sps:$4 sm:$0xff]   ;;  %v20495_v7 = vld [vmem:[%s21132_s16 + $0x383c] ss:$52 sps:$4 sm:$0xff]  }
 0x7c3   : > { %14998 = vmatprep.subr.bf16.mxu0 %v20435_v9  ;;  %v20490_v9 = vld [vmem:[%s21132_s16 + $0x3830] ss:$52 sps:$4 sm:$0xff]  }
 0x7c4   : > { %14621 = vmatmul.mubr.bf16.vlgmr.msra.gmra.mrb[12].mxu1 %v21876_v15 }
 0x7c5   : > { %14990 = vmatmul.mubr.bf16.vlgmr.msra.gmra.mrb[24].mxu0 %v21876_v15  ;;  %14630 = vmatpush1.bf16.msra.mxu1 %v20430_v10  ;;  %v20493_v10 = vld [vmem:[%s21132_s16 + $0x3838] ss:$52 sps:$4 sm:$0xff]  }
 0x7c6   : > { %14661 = vmatprep.mubr.bf16.mxu1 %v21878_v36  ;;  %14999 = vmatpush1.bf16.msra.mxu0 %v20433_v23  ;;  %v20498_v23 = vld [vmem:[%s21132_s16 + $0x389c] ss:$52 sps:$4 sm:$0xff]  }
 0x7c7   : > { %15030 = vmatprep.mubr.bf16.mxu0 %v21878_v36  ;;  %14631 = vmatprep.subr.bf16.mxu1 %v20438_v12  ;;  %v20501_v12 = vld [vmem:[%s21132_s16 + $0x38a4] ss:$52 sps:$4 sm:$0xff]  }
 0x7c8   : > { %15000 = vmatprep.subr.bf16.mxu0 %v20441_v13  ;;  %v20496_v13 = vld [vmem:[%s21132_s16 + $0x3898] ss:$52 sps:$4 sm:$0xff]  }
 0x7c9   : > { %14632 = vmatpush1.bf16.msra.mxu1 %v20436_v2  ;;  %v20499_v2 = vld [vmem:[%s21132_s16 + $0x38a0] ss:$52 sps:$4 sm:$0xff]  }
 0x7ca   : > { %15001 = vmatpush1.bf16.msra.mxu0 %v20439_v17  ;;  %14633 = vmatprep.subr.bf16.mxu1 %v20444_v20  ;;  %v20504_v17 = vld [vmem:[%s21132_s16 + $0x3904] ss:$52 sps:$4 sm:$0xff]   ;;  %v20507_v20 = vld [vmem:[%s21132_s16 + $0x390c] ss:$52 sps:$4 sm:$0xff]  }
 0x7cb   : > { %15002 = vmatprep.subr.bf16.mxu0 %v20447_v22  ;;  %v20502_v22 = vld [vmem:[%s21132_s16 + $0x3900] ss:$52 sps:$4 sm:$0xff]  }
 0x7cd   : > { %14634 = vmatpush1.bf16.msra.mxu1 %v20442_v27  ;;  %v20505_v27 = vld [vmem:[%s21132_s16 + $0x3908] ss:$52 sps:$4 sm:$0xff]  }
 0x7ce   : > { %15003 = vmatpush1.bf16.msra.mxu0 %v20445_v32  ;;  %14635 = vmatprep.subr.bf16.mxu1 %v20450_v28  ;;  %v20510_v32 = vld [vmem:[%s21132_s16 + $0x396c] ss:$52 sps:$4 sm:$0xff]   ;;  %v20513_v28 = vld [vmem:[%s21132_s16 + $0x3974] ss:$52 sps:$4 sm:$0xff]  }
 0x7cf   : > { %15004 = vmatprep.subr.bf16.mxu0 %v20453_v30  ;;  %v20508_v30 = vld [vmem:[%s21132_s16 + $0x3968] ss:$52 sps:$4 sm:$0xff]  }
 0x7d1   : > { %14636 = vmatpush1.bf16.msra.mxu1 %v20448_v31  ;;  %v20511_v31 = vld [vmem:[%s21132_s16 + $0x3970] ss:$52 sps:$4 sm:$0xff]  }
 0x7d2   : > { %15005 = vmatpush1.bf16.msra.mxu0 %v20451_v38  ;;  %14637 = vmatprep.subr.bf16.mxu1 %v20456_v39  ;;  %v20516_v38 = vld [vmem:[%s21132_s16 + $0x39d4] ss:$52 sps:$4 sm:$0xff]   ;;  %v20519_v39 = vld [vmem:[%s21132_s16 + $0x39dc] ss:$52 sps:$4 sm:$0xff]  }
 0x7d3   : > { %15006 = vmatprep.subr.bf16.mxu0 %v20459_v33  ;;  %v20514_v33 = vld [vmem:[%s21132_s16 + $0x39d0] ss:$52 sps:$4 sm:$0xff]  }
 0x7d5   : > { %14638 = vmatpush1.bf16.msra.mxu1 %v20454_v45  ;;  %v20517_v45 = vld [vmem:[%s21132_s16 + $0x39d8] ss:$52 sps:$4 sm:$0xff]  }
 0x7d6   : > { %15007 = vmatpush1.bf16.msra.mxu0 %v20457_v46  ;;  %14639 = vmatprep.subr.bf16.mxu1 %v20462_v19  ;;  %v20522_v46 = vld [vmem:[%s21132_s16 + $0x3a3c] ss:$52 sps:$4 sm:$0xff]   ;;  %v20525_v19 = vld [vmem:[%s21132_s16 + $0x3a44] ss:$52 sps:$4 sm:$0xff]  }
 0x7d7   : > { %15008 = vmatprep.subr.bf16.mxu0 %v20465_v34  ;;  %v20520_v34 = vld [vmem:[%s21132_s16 + $0x3a38] ss:$52 sps:$4 sm:$0xff]  }
 0x7d9   : > { %14640 = vmatpush1.bf16.msra.mxu1 %v20460_v47  ;;  %v20523_v47 = vld [vmem:[%s21132_s16 + $0x3a40] ss:$52 sps:$4 sm:$0xff]  }
 0x7da   : > { %15009 = vmatpush1.bf16.msra.mxu0 %v20463_v48  ;;  %14641 = vmatprep.subr.bf16.mxu1 %v20468_v42  ;;  %v20526_v48 = vld [vmem:[%s21132_s16 + $0x370] ss:$52 sps:$4 sm:$0xff]  }
 0x7db   : > { %15010 = vmatprep.subr.bf16.mxu0 %v20471_v16  ;;  %v20527_v42 = vld [vmem:[%s21132_s16 + $0x9f0] ss:$52 sps:$4 sm:$0xff]  }
 0x7dc   : > { %v20528_v16 = vld [vmem:[%s21132_s16 + $0x30] ss:$52 sps:$4 sm:$0xff]  }
 0x7dd   : > { %14642 = vmatpush1.bf16.msra.mxu1 %v20466_v14  ;;  %v20529_v14 = vld [vmem:[%s21132_s16 + $0x6b0] ss:$52 sps:$4 sm:$0xff]  }
 0x7de   : > { %15011 = vmatpush1.bf16.msra.mxu0 %v20469_v25  ;;  %14643 = vmatprep.subr.bf16.mxu1 %v20474_v5  ;;  %v20530_v25 = vld [vmem:[%s21132_s16 + $0x3d8] ss:$52 sps:$4 sm:$0xff]  }
 0x7df   : > { %15012 = vmatprep.subr.bf16.mxu0 %v20477_v35  ;;  %v20531_v5 = vld [vmem:[%s21132_s16 + $0xa58] ss:$52 sps:$4 sm:$0xff]  }
 0x7e0   : > { %v20532_v35 = vld [vmem:[%s21132_s16 + $0x98] ss:$52 sps:$4 sm:$0xff]  }
 0x7e1   : > { %14644 = vmatpush1.bf16.msra.mxu1 %v20472_v18  ;;  %v20533_v18 = vld [vmem:[%s21132_s16 + $0x718] ss:$52 sps:$4 sm:$0xff]  }
 0x7e2   : > { %15013 = vmatpush1.bf16.msra.mxu0 %v20475_v50  ;;  %14645 = vmatprep.subr.bf16.mxu1 %v20480_v52  ;;  %v20534_v50 = vld [vmem:[%s21132_s16 + $0x440] ss:$52 sps:$4 sm:$0xff]  }
 0x7e3   : > { %15014 = vmatprep.subr.bf16.mxu0 %v20483_v55  ;;  %v20535_v52 = vld [vmem:[%s21132_s16 + $0xac0] ss:$52 sps:$4 sm:$0xff]  }
 0x7e4   : > { %v20536_v55 = vld [vmem:[%s21132_s16 + $0x100] ss:$52 sps:$4 sm:$0xff]  }
 0x7e5   : > { %14646 = vmatpush1.bf16.msra.mxu1 %v20478_v62  ;;  %v20537_v62 = vld [vmem:[%s21132_s16 + $0x780] ss:$52 sps:$4 sm:$0xff]  }
 0x7e6   : > { %15015 = vmatpush1.bf16.msra.mxu0 %v20481_v56  ;;  %14647 = vmatprep.subr.bf16.mxu1 %v20486_v59  ;;  %v20539_v56 = vld [vmem:[%s21132_s16 + $0xb28] ss:$52 sps:$4 sm:$0xff]  }
 0x7e7   : > { %15016 = vmatprep.subr.bf16.mxu0 %v20489_v0  ;;  %v20541_v59 = vld [vmem:[%s21132_s16 + $0x7e8] ss:$52 sps:$4 sm:$0xff]   ;;  %v20542_v0 = vld [vmem:[%s21132_s16 + $0x510] ss:$52 sps:$4 sm:$0xff]  }
 0x7e9   : > { %14648 = vmatpush1.bf16.msra.mxu1 %v20484_v1  ;;  %v20543_v1 = vld [vmem:[%s21132_s16 + $0xb90] ss:$52 sps:$4 sm:$0xff]  }
 0x7ea   : > { %15017 = vmatpush1.bf16.msra.mxu0 %v20487_v3  ;;  %14649 = vmatprep.subr.bf16.mxu1 %v20492_v6  ;;  %v20544_v3 = vld [vmem:[%s21132_s16 + $0x1d0] ss:$52 sps:$4 sm:$0xff]  }
 0x7eb   : > { %15018 = vmatprep.subr.bf16.mxu0 %v20495_v7  ;;  %v20545_v6 = vld [vmem:[%s21132_s16 + $0x850] ss:$52 sps:$4 sm:$0xff]   ;;  %v20546_v7 = vld [vmem:[%s21132_s16 + $0x578] ss:$52 sps:$4 sm:$0xff]  }
 0x7ed   : > { %14650 = vmatpush1.bf16.msra.mxu1 %v20490_v9  ;;  %v20547_v9 = vld [vmem:[%s21132_s16 + $0xbf8] ss:$52 sps:$4 sm:$0xff]  }
 0x7ee   : > { %15019 = vmatpush1.bf16.msra.mxu0 %v20493_v10  ;;  %14651 = vmatprep.subr.bf16.mxu1 %v20498_v23  ;;  %v20548_v10 = vld [vmem:[%s21132_s16 + $0x238] ss:$52 sps:$4 sm:$0xff]  }
 0x7ef   : > { %15020 = vmatprep.subr.bf16.mxu0 %v20501_v12  ;;  %v20549_v23 = vld [vmem:[%s21132_s16 + $0x8b8] ss:$52 sps:$4 sm:$0xff]   ;;  %v20550_v12 = vld [vmem:[%s21132_s16 + $0x5e0] ss:$52 sps:$4 sm:$0xff]  }
 0x7f1   : > { %14652 = vmatpush1.bf16.msra.mxu1 %v20496_v13  ;;  %v20551_v13 = vld [vmem:[%s21132_s16 + $0xc60] ss:$52 sps:$4 sm:$0xff]  }
 0x7f2   : > { %15021 = vmatpush1.bf16.msra.mxu0 %v20499_v2  ;;  %14653 = vmatprep.subr.bf16.mxu1 %v20504_v17  ;;  %v20552_v2 = vld [vmem:[%s21132_s16 + $0x2a0] ss:$52 sps:$4 sm:$0xff]  }
 0x7f3   : > { %15022 = vmatprep.subr.bf16.mxu0 %v20507_v20  ;;  %v20553_v17 = vld [vmem:[%s21132_s16 + $0x920] ss:$52 sps:$4 sm:$0xff]   ;;  %v20554_v20 = vld [vmem:[%s21132_s16 + $0x648] ss:$52 sps:$4 sm:$0xff]  }
 0x7f5   : > { %14654 = vmatpush1.bf16.msra.mxu1 %v20502_v22  ;;  %v20555_v22 = vld [vmem:[%s21132_s16 + $0xcc8] ss:$52 sps:$4 sm:$0xff]  }
 0x7f6   : > { %15023 = vmatpush1.bf16.msra.mxu0 %v20505_v27  ;;  %14655 = vmatprep.subr.bf16.mxu1 %v20510_v32  ;;  %v20556_v27 = vld [vmem:[%s21132_s16 + $0x308] ss:$52 sps:$4 sm:$0xff]  }
 0x7f7   : > { %15024 = vmatprep.subr.bf16.mxu0 %v20513_v28  ;;  %v20557_v32 = vld [vmem:[%s21132_s16 + $0x988] ss:$52 sps:$4 sm:$0xff]   ;;  %v20558_v28 = vld [vmem:[%s21132_s16 + $0x1070] ss:$52 sps:$4 sm:$0xff]  }
 0x7f9   : > { %14656 = vmatpush1.bf16.msra.mxu1 %v20508_v30  ;;  %v20559_v30 = vld [vmem:[%s21132_s16 + $0x16f0] ss:$52 sps:$4 sm:$0xff]  }
 0x7fa   : > { %15025 = vmatpush1.bf16.msra.mxu0 %v20511_v31  ;;  %14657 = vmatprep.subr.bf16.mxu1 %v20516_v38  ;;  %v20560_v31 = vld [vmem:[%s21132_s16 + $0xd30] ss:$52 sps:$4 sm:$0xff]  }
 0x7fb   : > { %15026 = vmatprep.subr.bf16.mxu0 %v20519_v39  ;;  %v20561_v38 = vld [vmem:[%s21132_s16 + $0x13b0] ss:$52 sps:$4 sm:$0xff]   ;;  %v20562_v39 = vld [vmem:[%s21132_s16 + $0x10d8] ss:$52 sps:$4 sm:$0xff]  }
 0x7fd   : > { %14658 = vmatpush1.bf16.msra.mxu1 %v20514_v33  ;;  %v20563_v33 = vld [vmem:[%s21132_s16 + $0x1758] ss:$52 sps:$4 sm:$0xff]  }
 0x7fe   : > { %15027 = vmatpush1.bf16.msra.mxu0 %v20517_v45  ;;  %14659 = vmatprep.subr.bf16.mxu1 %v20522_v46  ;;  %v20564_v45 = vld [vmem:[%s21132_s16 + $0xd98] ss:$52 sps:$4 sm:$0xff]  }
 0x7ff   : > { %15028 = vmatprep.subr.bf16.mxu0 %v20525_v19  ;;  %v20565_v46 = vld [vmem:[%s21132_s16 + $0x1418] ss:$52 sps:$4 sm:$0xff]   ;;  %v20566_v19 = vld [vmem:[%s21132_s16 + $0x1140] ss:$52 sps:$4 sm:$0xff]  }
 0x801   : > { %14660 = vmatpush1.bf16.msra.mxu1 %v20520_v34  ;;  %v20569_v34 = vld [vmem:[%s21132_s16 + $0x1480] ss:$52 sps:$4 sm:$0xff]  }
 0x802   : > { %15029 = vmatpush1.bf16.msra.mxu0 %v20523_v47  ;;  %17450 = vmatprep.subr.bf16.mxu1 %v20526_v48  ;;  %v20571_v47 = vld [vmem:[%s21132_s16 + $0x1828] ss:$52 sps:$4 sm:$0xff]  }
 0x803   : > { %17472 = vmatprep.subr.bf16.mxu0 %v20527_v42  ;;  %v20573_v48 = vld [vmem:[%s21132_s16 + $0x14e8] ss:$52 sps:$4 sm:$0xff]   ;;  %v20574_v42 = vld [vmem:[%s21132_s16 + $0x1210] ss:$52 sps:$4 sm:$0xff]  }
 0x804   : > { %14662 = vmatmul.mubr.bf16.vlgmr.msra.gmra.mrb[12].mxu1 %v21951_v21 }
 0x805   : > { %15031 = vmatmul.mubr.bf16.vlgmr.msra.gmra.mrb[24].mxu0 %v21951_v21  ;;  %17451 = vmatpush3.bf16.msra.mxu1 %v20528_v16  ;;  %v20575_v16 = vld [vmem:[%s21132_s16 + $0x1890] ss:$52 sps:$4 sm:$0xff]  }
 0x806   : > { %15071 = vmatprep.mubr.bf16.mxu1 %v21281_v53  ;;  %17473 = vmatpush3.bf16.msra.mxu0 %v20529_v14  ;;  %v20538_v53 = vld [vmem:[%s21132_s16 + $0x4a8] ss:$52 sps:$4 sm:$0xff]   ;;  %v20576_v14 = vld [vmem:[%s21132_s16 + $0xed0] ss:$52 sps:$4 sm:$0xff]  }
 0x807   : > { %15111 = vmatprep.mubr.bf16.mxu0 %v21293_v60  ;;  %17452 = vmatprep.subr.bf16.mxu1 %v20530_v25  ;;  %v20540_v60 = vld [vmem:[%s21132_s16 + $0x168] ss:$52 sps:$4 sm:$0xff]   ;;  %v20577_v25 = vld [vmem:[%s21132_s16 + $0x1550] ss:$52 sps:$4 sm:$0xff]  }
 0x808   : > { %17474 = vmatprep.subr.bf16.mxu0 %v20531_v5  ;;  %v20578_v5 = vld [vmem:[%s21132_s16 + $0x1278] ss:$52 sps:$4 sm:$0xff]  }
 0x809   : > { %17453 = vmatpush3.bf16.msra.mxu1 %v20532_v35  ;;  %v20579_v35 = vld [vmem:[%s21132_s16 + $0x18f8] ss:$52 sps:$4 sm:$0xff]  }
 0x80a   : > { %17475 = vmatpush3.bf16.msra.mxu0 %v20533_v18  ;;  %17454 = vmatprep.subr.bf16.mxu1 %v20534_v50  ;;  %v20580_v18 = vld [vmem:[%s21132_s16 + $0xf38] ss:$52 sps:$4 sm:$0xff]  }
 0x80b   : > { %17476 = vmatprep.subr.bf16.mxu0 %v20535_v52  ;;  %v20581_v50 = vld [vmem:[%s21132_s16 + $0x15b8] ss:$52 sps:$4 sm:$0xff]   ;;  %v20582_v52 = vld [vmem:[%s21132_s16 + $0x12e0] ss:$52 sps:$4 sm:$0xff]  }
 0x80d   : > { %17455 = vmatpush3.bf16.msra.mxu1 %v20536_v55  ;;  %v20583_v55 = vld [vmem:[%s21132_s16 + $0x1960] ss:$52 sps:$4 sm:$0xff]  }
 0x80e   : > { %17477 = vmatpush3.bf16.msra.mxu0 %v20537_v62  ;;  %17456 = vmatprep.subr.bf16.mxu1 %v20538_v53  ;;  %v20584_v62 = vld [vmem:[%s21132_s16 + $0xfa0] ss:$52 sps:$4 sm:$0xff]  }
 0x80f   : > { %17478 = vmatprep.subr.bf16.mxu0 %v20539_v56  ;;  %v20585_v53 = vld [vmem:[%s21132_s16 + $0x1620] ss:$52 sps:$4 sm:$0xff]   ;;  %v20586_v56 = vld [vmem:[%s21132_s16 + $0x1348] ss:$52 sps:$4 sm:$0xff]  }
 0x811   : > { %17457 = vmatpush3.bf16.msra.mxu1 %v20540_v60  ;;  %v20587_v60 = vld [vmem:[%s21132_s16 + $0x19c8] ss:$52 sps:$4 sm:$0xff]  }
 0x812   : > { %17479 = vmatpush3.bf16.msra.mxu0 %v20541_v59  ;;  %17458 = vmatprep.subr.bf16.mxu1 %v20542_v0  ;;  %v20588_v59 = vld [vmem:[%s21132_s16 + $0x1008] ss:$52 sps:$4 sm:$0xff]  }
 0x813   : > { %17480 = vmatprep.subr.bf16.mxu0 %v20543_v1  ;;  %v20589_v0 = vld [vmem:[%s21132_s16 + $0x1688] ss:$52 sps:$4 sm:$0xff]   ;;  %v20590_v1 = vld [vmem:[%s21132_s16 + $0x1d70] ss:$52 sps:$4 sm:$0xff]  }
 0x815   : > { %17459 = vmatpush3.bf16.msra.mxu1 %v20544_v3  ;;  %v20591_v3 = vld [vmem:[%s21132_s16 + $0x23f0] ss:$52 sps:$4 sm:$0xff]  }
 0x816   : > { %17481 = vmatpush3.bf16.msra.mxu0 %v20545_v6  ;;  %17460 = vmatprep.subr.bf16.mxu1 %v20546_v7  ;;  %v20592_v6 = vld [vmem:[%s21132_s16 + $0x1a30] ss:$52 sps:$4 sm:$0xff]  }
 0x817   : > { %17482 = vmatprep.subr.bf16.mxu0 %v20547_v9  ;;  %v20593_v7 = vld [vmem:[%s21132_s16 + $0x20b0] ss:$52 sps:$4 sm:$0xff]   ;;  %v20594_v9 = vld [vmem:[%s21132_s16 + $0x1dd8] ss:$52 sps:$4 sm:$0xff]  }
 0x819   : > { %17461 = vmatpush3.bf16.msra.mxu1 %v20548_v10  ;;  %v20595_v10 = vld [vmem:[%s21132_s16 + $0x2458] ss:$52 sps:$4 sm:$0xff]  }
 0x81a   : > { %17483 = vmatpush3.bf16.msra.mxu0 %v20549_v23  ;;  %17462 = vmatprep.subr.bf16.mxu1 %v20550_v12  ;;  %v20596_v23 = vld [vmem:[%s21132_s16 + $0x1a98] ss:$52 sps:$4 sm:$0xff]  }
 0x81b   : > { %17484 = vmatprep.subr.bf16.mxu0 %v20551_v13  ;;  %v20597_v12 = vld [vmem:[%s21132_s16 + $0x2118] ss:$52 sps:$4 sm:$0xff]   ;;  %v20598_v13 = vld [vmem:[%s21132_s16 + $0x1e40] ss:$52 sps:$4 sm:$0xff]  }
 0x81d   : > { %17463 = vmatpush3.bf16.msra.mxu1 %v20552_v2  ;;  %v20601_v2 = vld [vmem:[%s21132_s16 + $0x2180] ss:$52 sps:$4 sm:$0xff]  }
 0x81e   : > { %17485 = vmatpush3.bf16.msra.mxu0 %v20553_v17  ;;  %17464 = vmatprep.subr.bf16.mxu1 %v20554_v20  ;;  %v20603_v17 = vld [vmem:[%s21132_s16 + $0x2528] ss:$52 sps:$4 sm:$0xff]  }
 0x81f   : > { %17486 = vmatprep.subr.bf16.mxu0 %v20555_v22  ;;  %v20605_v20 = vld [vmem:[%s21132_s16 + $0x21e8] ss:$52 sps:$4 sm:$0xff]   ;;  %v20606_v22 = vld [vmem:[%s21132_s16 + $0x1f10] ss:$52 sps:$4 sm:$0xff]  }
 0x821   : > { %17465 = vmatpush3.bf16.msra.mxu1 %v20556_v27  ;;  %v20607_v27 = vld [vmem:[%s21132_s16 + $0x2590] ss:$52 sps:$4 sm:$0xff]  }
 0x822   : > { %17487 = vmatpush3.bf16.msra.mxu0 %v20557_v32  ;;  %17494 = vmatprep.subr.bf16.mxu1 %v20558_v28  ;;  %v20608_v32 = vld [vmem:[%s21132_s16 + $0x1bd0] ss:$52 sps:$4 sm:$0xff]  }
 0x823   : > { %17516 = vmatprep.subr.bf16.mxu0 %v20559_v30  ;;  %v20609_v28 = vld [vmem:[%s21132_s16 + $0x2250] ss:$52 sps:$4 sm:$0xff]   ;;  %v20610_v30 = vld [vmem:[%s21132_s16 + $0x1f78] ss:$52 sps:$4 sm:$0xff]  }
 0x824   : > { %15072 = vmatmul.mubr.bf16.vlgmr.msra.gmra.mrb[16].mxu1 %v21283_v54  ;;  %v20567_v54 = vld [vmem:[%s21132_s16 + $0x17c0] ss:$52 sps:$4 sm:$0xff]  }
 0x825   : > { %15112 = vmatmul.mubr.bf16.vlgmr.msra.gmra.mrb[28].mxu0 %v21414_v57  ;;  %17495 = vmatpush3.bf16.msra.mxu1 %v20560_v31  ;;  %v20568_v57 = vld [vmem:[%s21132_s16 + $0xe00] ss:$52 sps:$4 sm:$0xff]   ;;  %v20611_v31 = vld [vmem:[%s21132_s16 + $0x25f8] ss:$52 sps:$4 sm:$0xff]  }
 0x826   : > { %15151 = vmatprep.mubr.bf16.mxu1 %v21418_v63  ;;  %17517 = vmatpush3.bf16.msra.mxu0 %v20561_v38  ;;  %v20570_v63 = vld [vmem:[%s21132_s16 + $0x11a8] ss:$52 sps:$4 sm:$0xff]   ;;  %v20612_v38 = vld [vmem:[%s21132_s16 + $0x1c38] ss:$52 sps:$4 sm:$0xff]  }
 0x827   : > { %15191 = vmatprep.mubr.bf16.mxu0 %v21498_v61  ;;  %17496 = vmatprep.subr.bf16.mxu1 %v20562_v39  ;;  %v20572_v61 = vld [vmem:[%s21132_s16 + $0xe68] ss:$52 sps:$4 sm:$0xff]   ;;  %v20613_v39 = vld [vmem:[%s21132_s16 + $0x22b8] ss:$52 sps:$4 sm:$0xff]  }
 0x828   : > { %17518 = vmatprep.subr.bf16.mxu0 %v20563_v33  ;;  %v20614_v33 = vld [vmem:[%s21132_s16 + $0x1fe0] ss:$52 sps:$4 sm:$0xff]  }
 0x829   : > { %17497 = vmatpush3.bf16.msra.mxu1 %v20564_v45  ;;  %v20615_v45 = vld [vmem:[%s21132_s16 + $0x2660] ss:$52 sps:$4 sm:$0xff]  }
 0x82a   : > { %17519 = vmatpush3.bf16.msra.mxu0 %v20565_v46  ;;  %17498 = vmatprep.subr.bf16.mxu1 %v20566_v19  ;;  %v20616_v46 = vld [vmem:[%s21132_s16 + $0x1ca0] ss:$52 sps:$4 sm:$0xff]  }
 0x82b   : > { %17520 = vmatprep.subr.bf16.mxu0 %v20567_v54  ;;  %v20617_v19 = vld [vmem:[%s21132_s16 + $0x2320] ss:$52 sps:$4 sm:$0xff]   ;;  %v20618_v54 = vld [vmem:[%s21132_s16 + $0x2048] ss:$52 sps:$4 sm:$0xff]  }
 0x82d   : > { %17499 = vmatpush3.bf16.msra.mxu1 %v20568_v57  ;;  %v20619_v57 = vld [vmem:[%s21132_s16 + $0x26c8] ss:$52 sps:$4 sm:$0xff]  }
 0x82e   : > { %17521 = vmatpush3.bf16.msra.mxu0 %v20569_v34  ;;  %17500 = vmatprep.subr.bf16.mxu1 %v20570_v63  ;;  %v20620_v34 = vld [vmem:[%s21132_s16 + $0x1d08] ss:$52 sps:$4 sm:$0xff]  }
 0x82f   : > { %17522 = vmatprep.subr.bf16.mxu0 %v20571_v47  ;;  %v20621_v63 = vld [vmem:[%s21132_s16 + $0x2388] ss:$52 sps:$4 sm:$0xff]   ;;  %v20622_v47 = vld [vmem:[%s21132_s16 + $0x2a70] ss:$52 sps:$4 sm:$0xff]  }
 0x831   : > { %17501 = vmatpush3.bf16.msra.mxu1 %v20572_v61  ;;  %v20623_v61 = vld [vmem:[%s21132_s16 + $0x30f0] ss:$52 sps:$4 sm:$0xff]  }
 0x832   : > { %17523 = vmatpush3.bf16.msra.mxu0 %v20573_v48  ;;  %17502 = vmatprep.subr.bf16.mxu1 %v20574_v42  ;;  %v20624_v48 = vld [vmem:[%s21132_s16 + $0x2730] ss:$52 sps:$4 sm:$0xff]  }
 0x833   : > { %17524 = vmatprep.subr.bf16.mxu0 %v20575_v16  ;;  %v20625_v42 = vld [vmem:[%s21132_s16 + $0x2db0] ss:$52 sps:$4 sm:$0xff]   ;;  %v20626_v16 = vld [vmem:[%s21132_s16 + $0x2ad8] ss:$52 sps:$4 sm:$0xff]  }
 0x835   : > { %17503 = vmatpush3.bf16.msra.mxu1 %v20576_v14  ;;  %v20627_v14 = vld [vmem:[%s21132_s16 + $0x3158] ss:$52 sps:$4 sm:$0xff]  }
 0x836   : > { %17525 = vmatpush3.bf16.msra.mxu0 %v20577_v25  ;;  %17504 = vmatprep.subr.bf16.mxu1 %v20578_v5  ;;  %v20628_v25 = vld [vmem:[%s21132_s16 + $0x2798] ss:$52 sps:$4 sm:$0xff]  }
 0x837   : > { %17526 = vmatprep.subr.bf16.mxu0 %v20579_v35  ;;  %v20629_v5 = vld [vmem:[%s21132_s16 + $0x2e18] ss:$52 sps:$4 sm:$0xff]   ;;  %v20630_v35 = vld [vmem:[%s21132_s16 + $0x2b40] ss:$52 sps:$4 sm:$0xff]  }
 0x839   : > { %17505 = vmatpush3.bf16.msra.mxu1 %v20580_v18  ;;  %v20633_v18 = vld [vmem:[%s21132_s16 + $0x2e80] ss:$52 sps:$4 sm:$0xff]  }
 0x83a   : > { %17527 = vmatpush3.bf16.msra.mxu0 %v20581_v50  ;;  %17506 = vmatprep.subr.bf16.mxu1 %v20582_v52  ;;  %v20635_v50 = vld [vmem:[%s21132_s16 + $0x3228] ss:$52 sps:$4 sm:$0xff]  }
 0x83b   : > { %17528 = vmatprep.subr.bf16.mxu0 %v20583_v55  ;;  %v20637_v52 = vld [vmem:[%s21132_s16 + $0x2ee8] ss:$52 sps:$4 sm:$0xff]   ;;  %v20638_v55 = vld [vmem:[%s21132_s16 + $0x2c10] ss:$52 sps:$4 sm:$0xff]  }
 0x83d   : > { %17507 = vmatpush3.bf16.msra.mxu1 %v20584_v62  ;;  %v20639_v62 = vld [vmem:[%s21132_s16 + $0x3290] ss:$52 sps:$4 sm:$0xff]  }
 0x83e   : > { %17529 = vmatpush3.bf16.msra.mxu0 %v20585_v53  ;;  %17508 = vmatprep.subr.bf16.mxu1 %v20586_v56  ;;  %v20640_v53 = vld [vmem:[%s21132_s16 + $0x28d0] ss:$52 sps:$4 sm:$0xff]  }
 0x83f   : > { %17530 = vmatprep.subr.bf16.mxu0 %v20587_v60  ;;  %v20641_v56 = vld [vmem:[%s21132_s16 + $0x2f50] ss:$52 sps:$4 sm:$0xff]   ;;  %v20642_v60 = vld [vmem:[%s21132_s16 + $0x2c78] ss:$52 sps:$4 sm:$0xff]  }
 0x841   : > { %17509 = vmatpush3.bf16.msra.mxu1 %v20588_v59  ;;  %v20643_v59 = vld [vmem:[%s21132_s16 + $0x32f8] ss:$52 sps:$4 sm:$0xff]  }
 0x842   : > { %17531 = vmatpush3.bf16.msra.mxu0 %v20589_v0  ;;  %17538 = vmatprep.subr.bf16.mxu1 %v20590_v1  ;;  %v20644_v0 = vld [vmem:[%s21132_s16 + $0x2938] ss:$52 sps:$4 sm:$0xff]  }
 0x843   : > { %17560 = vmatprep.subr.bf16.mxu0 %v20591_v3  ;;  %v20645_v1 = vld [vmem:[%s21132_s16 + $0x2fb8] ss:$52 sps:$4 sm:$0xff]   ;;  %v20646_v3 = vld [vmem:[%s21132_s16 + $0x2ce0] ss:$52 sps:$4 sm:$0xff]  }
 0x844   : > { %15152 = vmatmul.mubr.bf16.vlgmr.msra.gmra.mrb[20].mxu1 %v21492_v41  ;;  %v20599_v41 = vld [vmem:[%s21132_s16 + $0x24c0] ss:$52 sps:$4 sm:$0xff]  }
 0x845   : > { %15192 = vmatmul.mubr.bf16.vlgmr.msra.gmra.mrb[32].mxu0 %v21571_v49  ;;  %17539 = vmatpush3.bf16.msra.mxu1 %v20592_v6  ;;  %v20600_v49 = vld [vmem:[%s21132_s16 + $0x1b00] ss:$52 sps:$4 sm:$0xff]  }
 0x846   : > { %15231 = vmatprep.mubr.bf16.mxu1 %v21575_v51  ;;  %17561 = vmatpush3.bf16.msra.mxu0 %v20593_v7  ;;  %v20602_v51 = vld [vmem:[%s21132_s16 + $0x1ea8] ss:$52 sps:$4 sm:$0xff]   ;;  %v20647_v6 = vld [vmem:[%s21132_s16 + $0x3360] ss:$52 sps:$4 sm:$0xff]  }
 0x847   : > { %15271 = vmatprep.mubr.bf16.mxu0 %v21653_v8  ;;  %17540 = vmatprep.subr.bf16.mxu1 %v20594_v9  ;;  %v20604_v8 = vld [vmem:[%s21132_s16 + $0x1b68] ss:$52 sps:$4 sm:$0xff]   ;;  %v20648_v7 = vld [vmem:[%s21132_s16 + $0x29a0] ss:$52 sps:$4 sm:$0xff]  }
 0x848   : > { %17562 = vmatprep.subr.bf16.mxu0 %v20595_v10  ;;  %v20649_v9 = vld [vmem:[%s21132_s16 + $0x3020] ss:$52 sps:$4 sm:$0xff]   ;;  %v20650_v10 = vld [vmem:[%s21132_s16 + $0x2d48] ss:$52 sps:$4 sm:$0xff]  }
 0x849   : > { %17541 = vmatpush3.bf16.msra.mxu1 %v20596_v23  ;;  %v20651_v23 = vld [vmem:[%s21132_s16 + $0x33c8] ss:$52 sps:$4 sm:$0xff]  }
 0x84a   : > { %17563 = vmatpush3.bf16.msra.mxu0 %v20597_v12  ;;  %17542 = vmatprep.subr.bf16.mxu1 %v20598_v13  ;;  %v20652_v12 = vld [vmem:[%s21132_s16 + $0x2a08] ss:$52 sps:$4 sm:$0xff]  }
 0x84b   : > { %17564 = vmatprep.subr.bf16.mxu0 %v20599_v41  ;;  %v20653_v13 = vld [vmem:[%s21132_s16 + $0x3088] ss:$52 sps:$4 sm:$0xff]   ;;  %v20654_v41 = vld [vmem:[%s21132_s16 + $0x3770] ss:$52 sps:$4 sm:$0xff]  }
 0x84d   : > { %17543 = vmatpush3.bf16.msra.mxu1 %v20600_v49  ;;  %v20655_v49 = vld [vmem:[%s21132_s16 + $0x3430] ss:$52 sps:$4 sm:$0xff]  }
 0x84e   : > { %17565 = vmatpush3.bf16.msra.mxu0 %v20601_v2  ;;  %17544 = vmatprep.subr.bf16.mxu1 %v20602_v51  ;;  %v20656_v2 = vld [vmem:[%s21132_s16 + $0x37d8] ss:$52 sps:$4 sm:$0xff]  }
 0x84f   : > { %17566 = vmatprep.subr.bf16.mxu0 %v20603_v17  ;;  %v20657_v51 = vld [vmem:[%s21132_s16 + $0x3498] ss:$52 sps:$4 sm:$0xff]   ;;  %v20658_v17 = vld [vmem:[%s21132_s16 + $0x3840] ss:$52 sps:$4 sm:$0xff]  }
 0x851   : > { %17545 = vmatpush3.bf16.msra.mxu1 %v20604_v8  ;;  %v20659_v8 = vld [vmem:[%s21132_s16 + $0x3500] ss:$52 sps:$4 sm:$0xff]  }
 0x852   : > { %17567 = vmatpush3.bf16.msra.mxu0 %v20605_v20  ;;  %17546 = vmatprep.subr.bf16.mxu1 %v20606_v22  ;;  %v20660_v20 = vld [vmem:[%s21132_s16 + $0x38a8] ss:$52 sps:$4 sm:$0xff]   ;;  %v20663_v22 = vld [vmem:[%s21132_s16 + $0x35d0] ss:$52 sps:$4 sm:$0xff]  }
 0x853   : > { %17568 = vmatprep.subr.bf16.mxu0 %v20607_v27  ;;  %v20665_v27 = vld [vmem:[%s21132_s16 + $0x3638] ss:$52 sps:$4 sm:$0xff]  }
 0x855   : > { %17547 = vmatpush3.bf16.msra.mxu1 %v20608_v32  ;;  %v20666_v32 = vld [vmem:[%s21132_s16 + $0x39e0] ss:$52 sps:$4 sm:$0xff]  }
 0x856   : > { %17569 = vmatpush3.bf16.msra.mxu0 %v20609_v28  ;;  %17548 = vmatprep.subr.bf16.mxu1 %v20610_v30  ;;  %v20667_v28 = vld [vmem:[%s21132_s16 + $0x36a0] ss:$52 sps:$4 sm:$0xff]   ;;  %v20668_v30 = vld [vmem:[%s21132_s16 + $0x3a48] ss:$52 sps:$4 sm:$0xff]  }
 0x857   : > { %17570 = vmatprep.subr.bf16.mxu0 %v20611_v31  ;;  %v20669_v31 = vld [vmem:[%s21132_s16 + $0x3708] ss:$52 sps:$4 sm:$0xff]  }
 0x859   : > { %17549 = vmatpush3.bf16.msra.mxu1 %v20612_v38  ;;  %v3253_v38 = vld [vmem:[%s22178_s22 + $0x8] sm:$0x1f] }
 0x85a   : > { %17571 = vmatpush3.bf16.msra.mxu0 %v20613_v39  ;;  %17550 = vmatprep.subr.bf16.mxu1 %v20614_v33  ;;  %v3291_v39 = vrot.slane %v3253_v38, %v21257_v24  ;;  %v3299_v33 = vrot.slane %v3253_v38, %v21312_v11 }
 0x85b   : > { %17572 = vmatprep.subr.bf16.mxu0 %v20615_v45  ;;  %v3295_v45 = vrot.slane %v3253_v38, %v21262_v26 }
 0x85d   : > { %17551 = vmatpush3.bf16.msra.mxu1 %v20616_v46  ;;  %v3303_v46 = vrot.slane %v3253_v38, %v21269_v29  ;;  %v3307_v29 = vrot.slane %v3253_v38, %v21374_v4 }
 0x85e   : > { %17573 = vmatpush3.bf16.msra.mxu0 %v20617_v19  ;;  %17552 = vmatprep.subr.bf16.mxu1 %v20618_v54 }
 0x85f   : > { %17574 = vmatprep.subr.bf16.mxu0 %v20619_v57 }
 0x861   : > { %17553 = vmatpush3.bf16.msra.mxu1 %v20620_v34 }
 0x862   : > { %17575 = vmatpush3.bf16.msra.mxu0 %v20621_v63  ;;  %17582 = vmatprep.subr.bf16.mxu1 %v20622_v47 }
 0x863   : > { %17604 = vmatprep.subr.bf16.mxu0 %v20623_v61 }
 0x864   : > { %15232 = vmatmul.mubr.bf16.vlgmr.msra.gmra.mrb[24].mxu1 %v21651_v58  ;;  %v20631_v58 = vld [vmem:[%s21132_s16 + $0x31c0] ss:$52 sps:$4 sm:$0xff]  }
 0x865   : > { %15272 = vmatmul.mubr.bf16.vlgmr.msra.gmra.mrb[36].mxu0 %v21724_v37  ;;  %17583 = vmatpush3.bf16.msra.mxu1 %v20624_v48  ;;  %v20632_v37 = vld [vmem:[%s21132_s16 + $0x2800] ss:$52 sps:$4 sm:$0xff]  }
 0x866   : > { %15311 = vmatprep.mubr.bf16.mxu1 %v21726_v40  ;;  %17605 = vmatpush3.bf16.msra.mxu0 %v20625_v42  ;;  %v20634_v40 = vld [vmem:[%s21132_s16 + $0x2ba8] ss:$52 sps:$4 sm:$0xff]  }
 0x867   : > { %15351 = vmatprep.mubr.bf16.mxu0 %v21800_v44  ;;  %17584 = vmatprep.subr.bf16.mxu1 %v20626_v16  ;;  %v20636_v44 = vld [vmem:[%s21132_s16 + $0x2868] ss:$52 sps:$4 sm:$0xff]  }
 0x868   : > { %17606 = vmatprep.subr.bf16.mxu0 %v20627_v14 }
 0x869   : > { %17585 = vmatpush3.bf16.msra.mxu1 %v20628_v25 }
 0x86a   : > { %17607 = vmatpush3.bf16.msra.mxu0 %v20629_v5  ;;  %17586 = vmatprep.subr.bf16.mxu1 %v20630_v35 }
 0x86b   : > { %17608 = vmatprep.subr.bf16.mxu0 %v20631_v58 }
 0x86d   : > { %17587 = vmatpush3.bf16.msra.mxu1 %v20632_v37 }
 0x86e   : > { %17609 = vmatpush3.bf16.msra.mxu0 %v20633_v18  ;;  %17588 = vmatprep.subr.bf16.mxu1 %v20634_v40 }
 0x86f   : > { %17610 = vmatprep.subr.bf16.mxu0 %v20635_v50 }
 0x871   : > { %17589 = vmatpush3.bf16.msra.mxu1 %v20636_v44 }
 0x872   : > { %17611 = vmatpush3.bf16.msra.mxu0 %v20637_v52  ;;  %17590 = vmatprep.subr.bf16.mxu1 %v20638_v55 }
 0x873   : > { %17612 = vmatprep.subr.bf16.mxu0 %v20639_v62 }
 0x875   : > { %17591 = vmatpush3.bf16.msra.mxu1 %v20640_v53 }
 0x876   : > { %17613 = vmatpush3.bf16.msra.mxu0 %v20641_v56  ;;  %17592 = vmatprep.subr.bf16.mxu1 %v20642_v60 }
 0x877   : > { %17614 = vmatprep.subr.bf16.mxu0 %v20643_v59 }
 0x879   : > { %17593 = vmatpush3.bf16.msra.mxu1 %v20644_v0 }
 0x87a   : > { %17615 = vmatpush3.bf16.msra.mxu0 %v20645_v1  ;;  %17594 = vmatprep.subr.bf16.mxu1 %v20646_v3 }
 0x87b   : > { %17616 = vmatprep.subr.bf16.mxu0 %v20647_v6 }
 0x87d   : > { %17595 = vmatpush3.bf16.msra.mxu1 %v20648_v7 }
 0x87e   : > { %17617 = vmatpush3.bf16.msra.mxu0 %v20649_v9  ;;  %17596 = vmatprep.subr.bf16.mxu1 %v20650_v10 }
 0x87f   : > { %17618 = vmatprep.subr.bf16.mxu0 %v20651_v23 }
 0x881   : > { %17597 = vmatpush3.bf16.msra.mxu1 %v20652_v12 }
 0x882   : > { %17619 = vmatpush3.bf16.msra.mxu0 %v20653_v13  ;;  %17626 = vmatprep.subr.bf16.mxu1 %v20654_v41 }
 0x884   : > { %15312 = vmatmul.mubr.bf16.vlgmr.msra.gmra.mrb[28].mxu1 %v21798_v43  ;;  %v20661_v43 = vld [vmem:[%s21132_s16 + $0x3568] ss:$52 sps:$4 sm:$0xff]  }
 0x885   : > { %15352 = vmatmul.mubr.bf16.vlgmr.msra.gmra.mrb[40].mxu0 %v21876_v15  ;;  %17627 = vmatpush3.bf16.msra.mxu1 %v20655_v49  ;;  %v20662_v15 = vld [vmem:[%s21132_s16 + $0x3910] ss:$52 sps:$4 sm:$0xff]  }
 0x886   : > { %15391 = vmatprep.mubr.bf16.mxu1 %v21878_v36  ;;  %17628 = vmatprep.subr.bf16.mxu1 %v20656_v2  ;;  %v20664_v36 = vld [vmem:[%s21132_s16 + $0x3978] ss:$52 sps:$4 sm:$0xff]  }
 0x889   : > { %17629 = vmatpush3.bf16.msra.mxu1 %v20657_v51 }
 0x88a   : > { %17630 = vmatprep.subr.bf16.mxu1 %v20658_v17 }
 0x88d   : > { %17631 = vmatpush3.bf16.msra.mxu1 %v20659_v8 }
 0x88e   : > { %17632 = vmatprep.subr.bf16.mxu1 %v20660_v20 }
 0x891   : > { %17633 = vmatpush3.bf16.msra.mxu1 %v20661_v43 }
 0x892   : > { %17634 = vmatprep.subr.bf16.mxu1 %v20662_v15 }
 0x895   : > { %17635 = vmatpush3.bf16.msra.mxu1 %v20663_v22 }
 0x896   : > { %17636 = vmatprep.subr.bf16.mxu1 %v20664_v36 }
 0x899   : > { %17637 = vmatpush3.bf16.msra.mxu1 %v20665_v27 }
 0x89a   : > { %17638 = vmatprep.subr.bf16.mxu1 %v20666_v32 }
 0x89d   : > { %17639 = vmatpush3.bf16.msra.mxu1 %v20667_v28 }
 0x89e   : > { %17640 = vmatprep.subr.bf16.mxu1 %v20668_v30 }
 0x8a1   : > { %17641 = vmatpush3.bf16.msra.mxu1 %v20669_v31 }
 0x8a4   : > { %15392 = vmatmul.mubr.bf16.vlgmr.msra.gmra.mrb[32].mxu1 %v21951_v21 }
 0x8d7   : > { %v14663_v19 = vpop.f32.mrb[12].mxu1 }
 0x8d8   : > { %v17656_v54 = vadd.f32 %v14663_v19, %v3291_v39  ;;  %v15032_v57 = vpop.f32.mrb[24].mxu0  ;;  %v14665_v34 = vpop.f32.mrb[13].mxu1 }
 0x8d9   : > { %v17658_v63 = vadd.f32 %v15032_v57, %v3299_v33  ;;  %v17657_v47 = vadd.f32 %v14665_v34, %v3295_v45  ;;  %v15034_v61 = vpop.f32.mrb[25].mxu0  ;;  %v14667_v21 = vpop.f32.mrb[14].mxu1 }
 0x8da   : > { %15407 = vst [vmem:[%s22194_s8 + $0x40] sm:$0xff] %v17656_v54  ;;  %v17659_v48 = vadd.f32 %v15034_v61, %v3303_v46  ;;  %v15036_v24 = vpop.f32.mrb[26].mxu0  ;;  %v14668_v42 = vpop.f32.mrb[15].mxu1 }
 0x8db   : > { %15409 = vst [vmem:[%s22194_s8 + $0x50] sm:$0xff] %v17658_v63  ;;  %15408 = vst [vmem:[%s22194_s8 + $0x48] sm:$0xff] %v17657_v47  ;;  %v15037_v11 = vpop.f32.mrb[27].mxu0 }
 0x8dc   : > { %15410 = vst [vmem:[%s22194_s8 + $0x58] sm:$0xff] %v17659_v48 }
 0x8f7   : > { %v17466_v26 = vpop.f32.mrb[16].mxu1 }
 0x8f8   : > { %v17488_v16 = vpop.f32.mrb[28].mxu0  ;;  %v17467_v14 = vpop.f32.mrb[17].mxu1 }
 0x8f9   : > { %v17468_v25 = vadd.f32 %v17467_v14, %v17466_v26  ;;  %v17489_v5 = vpop.f32.mrb[29].mxu0  ;;  %v17469_v35 = vpop.f32.mrb[18].mxu1 }
 0x8fa   : > { %v17490_v58 = vadd.f32 %v17489_v5, %v17488_v16  ;;  %v17491_v37 = vpop.f32.mrb[30].mxu0  ;;  %v17470_v18 = vpop.f32.mrb[19].mxu1 }
 0x8fb   : > { %v15074_v40 = vadd.f32 %v17468_v25, %v3307_v29  ;;  %v17492_v50 = vpop.f32.mrb[31].mxu0 }
 0x8fd   : > { %v15114_v44 = vadd.f32 %v17490_v58, %v15074_v40 }
 0x917   : > { %v17510_v52 = vpop.f32.mrb[20].mxu1 }
 0x918   : > { %v17532_v55 = vpop.f32.mrb[32].mxu0  ;;  %v17511_v62 = vpop.f32.mrb[21].mxu1 }
 0x919   : > { %v17512_v53 = vadd.f32 %v17511_v62, %v17510_v52  ;;  %v17533_v56 = vpop.f32.mrb[33].mxu0  ;;  %v17513_v60 = vpop.f32.mrb[22].mxu1 }
 0x91a   : > { %v17534_v59 = vadd.f32 %v17533_v56, %v17532_v55  ;;  %v17535_v0 = vpop.f32.mrb[34].mxu0  ;;  %v17514_v4 = vpop.f32.mrb[23].mxu1 }
 0x91b   : > { %v15154_v1 = vadd.f32 %v17512_v53, %v15114_v44  ;;  %v17536_v3 = vpop.f32.mrb[35].mxu0 }
 0x91d   : > { %v15194_v6 = vadd.f32 %v17534_v59, %v15154_v1 }
 0x937   : > { %v17554_v7 = vpop.f32.mrb[24].mxu1 }
 0x938   : > { %v17576_v9 = vpop.f32.mrb[36].mxu0  ;;  %v17555_v10 = vpop.f32.mrb[25].mxu1 }
 0x939   : > { %v17556_v23 = vadd.f32 %v17555_v10, %v17554_v7  ;;  %v17577_v12 = vpop.f32.mrb[37].mxu0  ;;  %v17557_v13 = vpop.f32.mrb[26].mxu1 }
 0x93a   : > { %v17578_v41 = vadd.f32 %v17577_v12, %v17576_v9  ;;  %v17579_v49 = vpop.f32.mrb[38].mxu0  ;;  %v17558_v2 = vpop.f32.mrb[27].mxu1 }
 0x93b   : > { %v15234_v51 = vadd.f32 %v17556_v23, %v15194_v6  ;;  %v17580_v17 = vpop.f32.mrb[39].mxu0 }
 0x93d   : > { %v15274_v8 = vadd.f32 %v17578_v41, %v15234_v51 }
 0x957   : > { %v17598_v20 = vpop.f32.mrb[28].mxu1 }
 0x958   : > { %v17620_v43 = vpop.f32.mrb[40].mxu0  ;;  %v17599_v15 = vpop.f32.mrb[29].mxu1 }
 0x959   : > { %v17600_v22 = vadd.f32 %v17599_v15, %v17598_v20  ;;  %v17621_v36 = vpop.f32.mrb[41].mxu0  ;;  %v17601_v27 = vpop.f32.mrb[30].mxu1 }
 0x95a   : > { %v17622_v32 = vadd.f32 %v17621_v36, %v17620_v43  ;;  %v17623_v28 = vpop.f32.mrb[42].mxu0  ;;  %v17602_v30 = vpop.f32.mrb[31].mxu1 }
 0x95b   : > { %v15314_v31 = vadd.f32 %v17600_v22, %v15274_v8  ;;  %v17624_v38 = vpop.f32.mrb[43].mxu0 }
 0x95d   : > { %v15354_v39 = vadd.f32 %v17622_v32, %v15314_v31 }
 0x977   : > { %v17642_v33 = vpop.f32.mrb[32].mxu1 }
 0x978   : > { %v17643_v45 = vpop.f32.mrb[33].mxu1 }
 0x979   : > { %v17644_v46 = vadd.f32 %v17643_v45, %v17642_v33  ;;  %v17645_v19 = vpop.f32.mrb[34].mxu1 }
 0x97a   : > { %v17646_v54 = vpop.f32.mrb[35].mxu1 }
 0x97b   : > { %v15394_v57 = vadd.f32 %v17644_v46, %v15354_v39 }
 0x97d   : > { %15411 = vst [vmem:[%s22194_s8 + $0x60] sm:$0xff] %v15394_v57 }
 0x97e PF: > { %p14_p4 = scmp.ge.s32.totalorder %s20964_s23, 4   ;;  %s23420_s18 = smov %s20895_s19 }
 0x97f   : > { %s23421_s19 = smov %s20899_s20  ;;  %s23422_s20 = smov %s20974_s26 }
 0x980   : > { %s23423_s21 = smov %s20964_s23  ;;  %16 = sbr.rel (!%p14_p4) target bundleno = 5 (0x5), region = 98 }
 0x987   :  { %15434 = vsyncpa [#allocation3], 1 }
 0x988   :  { %15436 = vsyncpa [#allocation3 + $0x1], 1 }
 0x989   :  { %15437 = vsyncpa [#allocation5], 1 }

</bundles_post_ra>
